<compile_context>
chip_gen: v7x
topology: tpu7x:2x2x1
jax: 0.10.0
libtpu: 0.0.40
codegen_flags: <defaults>
</compile_context>

<pallas_src>
import functools

import jax
import jax.numpy as jnp
import numpy as np
from jax import lax
from jax.experimental import pallas as pl
from jax.experimental.pallas import tpu as pltpu

# (out_channels, kernel, stride) for the three conv layers of CNN_MCTS.
ARCH = ((32, 8, 4), (64, 4, 2), (64, 3, 1))
HEAD_HIDDEN = 512

# Set to jnp.bfloat16 on v6e / v7x for ~2-3x MXU throughput (accumulation stays
# f32); jnp.float32 matches the PyTorch reference numerics.
COMPUTE_DTYPE = jnp.float32


def _rup(x, m):
    return ((x + m - 1) // m) * m


def _conv_dims(input_shape):
    """Spatial dims after each conv layer (mirrors CNN_MCTS._get_conv_out)."""
    _, h, w = input_shape
    dims = []
    for _, k, s in ARCH:
        h = (h - k) // s + 1
        w = (w - k) // s + 1
        dims.append((h, w))
    return dims


# ---------------------------------------------------------------------------
# Raw parameters (PyTorch layout: Conv2d (Cout,Cin,kh,kw), Linear (out,in)).
# ---------------------------------------------------------------------------
def init_params(key, input_shape, n_actions):
    cin, _, _ = input_shape
    (c1, k1, _), (c2, k2, _), (c3, k3, _) = ARCH
    h3, w3 = _conv_dims(input_shape)[-1]
    conv_out = c3 * h3 * w3
    ks = jax.random.split(key, 14)

    def w(k, shape, fan_in):
        return jax.random.normal(k, shape, jnp.float32) * (1.0 / np.sqrt(fan_in))

    return {
        "c1_w": w(ks[0], (c1, cin, k1, k1), cin * k1 * k1),
        "c1_b": 0.1 * jax.random.normal(ks[1], (c1,), jnp.float32),
        "c2_w": w(ks[2], (c2, c1, k2, k2), c1 * k2 * k2),
        "c2_b": 0.1 * jax.random.normal(ks[3], (c2,), jnp.float32),
        "c3_w": w(ks[4], (c3, c2, k3, k3), c2 * k3 * k3),
        "c3_b": 0.1 * jax.random.normal(ks[5], (c3,), jnp.float32),
        "p1_w": w(ks[6], (HEAD_HIDDEN, conv_out), conv_out),
        "p1_b": 0.1 * jax.random.normal(ks[7], (HEAD_HIDDEN,), jnp.float32),
        "p2_w": w(ks[8], (n_actions, HEAD_HIDDEN), HEAD_HIDDEN),
        "p2_b": 0.1 * jax.random.normal(ks[9], (n_actions,), jnp.float32),
        "v1_w": w(ks[10], (HEAD_HIDDEN, conv_out), conv_out),
        "v1_b": 0.1 * jax.random.normal(ks[11], (HEAD_HIDDEN,), jnp.float32),
        "v2_w": w(ks[12], (1, HEAD_HIDDEN), HEAD_HIDDEN),
        "v2_b": 0.1 * jax.random.normal(ks[13], (1,), jnp.float32),
    }


# ---------------------------------------------------------------------------
# One-time folding of the PyTorch-layout weights into padded, matmul-ready
# matrices (all im2col / NCHW-flatten bookkeeping lives here, NOT on the
# per-step path).
# ---------------------------------------------------------------------------
def fold_params(raw, input_shape, n_actions, compute_dtype=COMPUTE_DTYPE):
    cin, hh, ww = input_shape
    (c1, k1, s1), (c2, k2, s2), (c3, k3, s3) = ARCH
    (h1, w1), (h2, w2), (h3, w3) = _conv_dims(input_shape)

    n1p = _rup(w1 * c1, 128)          # padded lane width of one conv1 output row
    n2p = _rup(w2 * c2, 128)          # padded lane width of one conv2 output row
    n3p = _rup(h3 * w3 * c3, 128)     # padded flattened conv3 output
    kslab = k1 * ww * cin             # conv1 input row-slab length
    kslab_p = _rup(kslab, 128)
    nout_p = _rup(n_actions + 1, 128)

    c1w = np.asarray(raw["c1_w"], np.float32)
    c2w = np.asarray(raw["c2_w"], np.float32)
    c3w = np.asarray(raw["c3_w"], np.float32)

    # conv1, semi-folded over width: rows index (i, w_in, cin) of an input row
    # slab, cols index (ow1, c1) of one conv1 output row.
    w1f = np.zeros((kslab_p, n1p), np.float32)
    for i in range(k1):
        for ow in range(w1):
            for j in range(k1):
                w_in = ow * s1 + j
                r0 = (i * ww + w_in) * cin
                w1f[r0:r0 + cin, ow * c1:(ow + 1) * c1] = c1w[:, :, i, j].T
    b1f = np.zeros((1, n1p), np.float32)
    b1f[0, :w1 * c1] = np.tile(np.asarray(raw["c1_b"], np.float32), w1)

    # conv2, row-blocked: block i2 maps conv1 output row (oh2*s2+i2) to conv2
    # output row oh2.  Rows index (ow1, c1), cols index (ow2, c2).
    w2f = np.zeros((k2, n1p, n2p), np.float32)
    for i2 in range(k2):
        for ow2 in range(w2):
            for j2 in range(k2):
                ow1 = ow2 * s2 + j2
                w2f[i2, ow1 * c1:(ow1 + 1) * c1,
                    ow2 * c2:(ow2 + 1) * c2] = c2w[:, :, i2, j2].T
    b2f = np.zeros((1, n2p), np.float32)
    b2f[0, :w2 * c2] = np.tile(np.asarray(raw["c2_b"], np.float32), w2)

    # conv3, row-blocked over conv2 rows; output is the full flattened (NHWC)
    # conv3 activation.  Rows index (ow2, c2), cols index (oh3, ow3, c3).
    w3f = np.zeros((h2, n2p, n3p), np.float32)
    for oh2 in range(h2):
        for oh3 in range(h3):
            i3 = oh2 - oh3 * s3
            if not 0 <= i3 < k3:
                continue
            for ow3 in range(w3):
                for j3 in range(k3):
                    ow2 = ow3 * s3 + j3
                    col0 = (oh3 * w3 + ow3) * c3
                    w3f[oh2, ow2 * c2:(ow2 + 1) * c2,
                        col0:col0 + c3] = c3w[:, :, i3, j3].T
    b3f = np.zeros((1, n3p), np.float32)
    b3f[0, :h3 * w3 * c3] = np.tile(np.asarray(raw["c3_b"], np.float32), h3 * w3)

    # Heads.  The kernel's conv3 output is flattened NHWC; PyTorch's
    # .view(B, -1) flattens NCHW, so permute head-1 input rows once here.
    conv_out = c3 * h3 * w3
    perm = np.arange(conv_out).reshape(c3, h3, w3).transpose(1, 2, 0).reshape(-1)
    p1w = np.asarray(raw["p1_w"], np.float32)
    v1w = np.asarray(raw["v1_w"], np.float32)
    wh1 = np.zeros((n3p, 2 * HEAD_HIDDEN), np.float32)
    wh1[:conv_out, :HEAD_HIDDEN] = p1w[:, perm].T
    wh1[:conv_out, HEAD_HIDDEN:] = v1w[:, perm].T
    bh1 = np.zeros((1, 2 * HEAD_HIDDEN), np.float32)
    bh1[0, :HEAD_HIDDEN] = np.asarray(raw["p1_b"], np.float32)
    bh1[0, HEAD_HIDDEN:] = np.asarray(raw["v1_b"], np.float32)

    # Head layer 2: block-diagonal so policy logits and the value share one
    # lane-dense 128-wide output (lanes [0:n_actions] / [n_actions]).
    wh2 = np.zeros((2 * HEAD_HIDDEN, nout_p), np.float32)
    wh2[:HEAD_HIDDEN, :n_actions] = np.asarray(raw["p2_w"], np.float32).T
    wh2[HEAD_HIDDEN:, n_actions:n_actions + 1] = np.asarray(raw["v2_w"], np.float32).T
    bh2 = np.zeros((1, nout_p), np.float32)
    bh2[0, :n_actions] = np.asarray(raw["p2_b"], np.float32)
    bh2[0, n_actions] = float(np.asarray(raw["v2_b"], np.float32)[0])

    wd = compute_dtype
    return {
        "w1": jnp.asarray(w1f, wd), "b1": jnp.asarray(b1f, jnp.float32),
        "w2": jnp.asarray(w2f, wd), "b2": jnp.asarray(b2f, jnp.float32),
        "w3": jnp.asarray(w3f, wd), "b3": jnp.asarray(b3f, jnp.float32),
        "wh1": jnp.asarray(wh1, wd), "bh1": jnp.asarray(bh1, jnp.float32),
        "wh2": jnp.asarray(wh2, wd), "bh2": jnp.asarray(bh2, jnp.float32),
    }


# ---------------------------------------------------------------------------
# The single fused Pallas kernel: conv1 -> conv2 -> conv3 -> both heads.
# ---------------------------------------------------------------------------
def _cnn_mcts_kernel(s_ref, w1_ref, b1_ref, w2_ref, b2_ref, w3_ref, b3_ref,
                     wh1_ref, bh1_ref, wh2_ref, bh2_ref, o_ref, *, s2):
    """Entire CNN_MCTS forward on VMEM-resident data.

    s_ref   : (H1, Bp, Kslab_p) conv1 input row slabs (built in XLA).
    w1_ref  : (Kslab_p, N1p)    semi-folded conv1 weight.
    w2_ref  : (kh2, N1p, N2p)   row-blocked folded conv2 weight.
    w3_ref  : (H2, N2p, N3p)    row-blocked folded conv3 weight.
    wh1_ref : (N3p, 1024)       concatenated [policy | value] hidden weights.
    wh2_ref : (1024, Nout_p)    block-diagonal [policy logits | value] weight.
    o_ref   : (Bp, Nout_p)      lanes [0:n_actions] = policy, [n_actions] = value.
    """
    cdt = w1_ref.dtype
    h1_rows = s_ref.shape[0]
    kh2 = w2_ref.shape[0]
    h2_rows = w3_ref.shape[0]

    # conv1 + ReLU: one matmul per output row; results stay in vregs/VMEM.
    w1 = w1_ref[...]
    b1 = b1_ref[...]
    a1 = []
    for oh1 in range(h1_rows):
        acc = jnp.dot(s_ref[oh1], w1, preferred_element_type=jnp.float32) + b1
        a1.append(jnp.maximum(acc, 0.0))

    # conv2 + ReLU: each output row = sum of kh2 small matmuls over conv1 rows.
    w2 = [w2_ref[i] for i in range(kh2)]
    b2 = b2_ref[...]
    a2 = []
    for oh2 in range(h2_rows):
        acc = b2
        for i2 in range(kh2):
            acc = acc + jnp.dot(a1[oh2 * s2 + i2].astype(cdt), w2[i2],
                                preferred_element_type=jnp.float32)
        a2.append(jnp.maximum(acc, 0.0))

    # conv3 + ReLU: directly produces the flattened (NHWC) conv output.
    acc = b3_ref[...]
    for oh2 in range(h2_rows):
        acc = acc + jnp.dot(a2[oh2].astype(cdt), w3_ref[oh2],
                            preferred_element_type=jnp.float32)
    a3 = jnp.maximum(acc, 0.0)

    # Fused policy/value heads.
    h = jnp.dot(a3.astype(cdt), wh1_ref[...], preferred_element_type=jnp.float32)
    h = jnp.maximum(h + bh1_ref[...], 0.0)
    out = jnp.dot(h.astype(cdt), wh2_ref[...], preferred_element_type=jnp.float32)
    o_ref[...] = (out + bh2_ref[...]).astype(o_ref.dtype)


def make_forward(input_shape, n_actions):
    """Returns forward(folded_params, x) with all static shape config baked in."""
    cin, hh, ww = input_shape
    (c1, k1, s1), (c2, k2, s2), (c3, k3, s3) = ARCH
    (h1, w1), (h2, w2), (h3, w3) = _conv_dims(input_shape)
    kslab = k1 * ww * cin
    kslab_p = _rup(kslab, 128)
    nout_p = _rup(n_actions + 1, 128)

    kernel = functools.partial(_cnn_mcts_kernel, s2=s2)

    def forward(fp, x):
        """x: (B, C, H, W) f32 -> (policy (B, n_actions), value (B, 1))."""
        b = x.shape[0]
        bp = max(8, _rup(b, 8))          # pad batch to a full sublane tile
        cdt = fp["w1"].dtype

        # NHWC + batch pad: the only per-step layout work outside the kernel.
        x_nhwc = jnp.transpose(x.astype(jnp.float32), (0, 2, 3, 1))
        x_nhwc = jnp.pad(x_nhwc, ((0, bp - b), (0, 0), (0, 0), (0, 0)))

        # conv1 input row slabs: slab[oh1, b, (i, w, cin)] = x[b, oh1*s1+i, w, cin]
        slabs = jnp.stack(
            [x_nhwc[:, oh * s1:oh * s1 + k1].reshape(bp, kslab) for oh in range(h1)],
            axis=0)
        if kslab_p != kslab:
            slabs = jnp.pad(slabs, ((0, 0), (0, 0), (0, kslab_p - kslab)))
        slabs = slabs.astype(cdt)

        # Single fused invocation: no grid, every operand lives whole in VMEM
        # (~4 MiB total) so there is no per-step pipeline / launch cost.
        # NOTE: for very large MCTS batches, tile `bp` with a "parallel" grid
        # axis (256-512 rows per block) so v7x's two TensorCores split the batch.
        out = pl.pallas_call(
            kernel,
            out_shape=jax.ShapeDtypeStruct((bp, nout_p), jnp.float32),
            compiler_params=pltpu.CompilerParams(vmem_limit_bytes=32 * 1024 * 1024),
        )(slabs, fp["w1"], fp["b1"], fp["w2"], fp["b2"], fp["w3"], fp["b3"],
          fp["wh1"], fp["bh1"], fp["wh2"], fp["bh2"])

        policy = out[:b, :n_actions]
        value = out[:b, n_actions:n_actions + 1]
        return policy, value

    return forward


# ---------------------------------------------------------------------------
# Pure-XLA reference (PyTorch semantics) used only for validation in __main__.
# ---------------------------------------------------------------------------
def reference_forward(raw, x):
    h = x.astype(jnp.float32)
    for name, (_, _, stride) in zip(("c1", "c2", "c3"), ARCH):
        h = lax.conv_general_dilated(
            h, raw[f"{name}_w"], window_strides=(stride, stride), padding="VALID",
            dimension_numbers=("NCHW", "OIHW", "NCHW"))
        h = jnp.maximum(h + raw[f"{name}_b"][None, :, None, None], 0.0)
    flat = h.reshape(h.shape[0], -1)
    p = jnp.maximum(flat @ raw["p1_w"].T + raw["p1_b"], 0.0)
    p = p @ raw["p2_w"].T + raw["p2_b"]
    v = jnp.maximum(flat @ raw["v1_w"].T + raw["v1_b"], 0.0)
    v = v @ raw["v2_w"].T + raw["v2_b"]
    return p, v


if __name__ == "__main__":
    # Small shapes consistent with the conv stack (k8/s4 -> k4/s2 -> k3/s1):
    # 36 -> 8 -> 3 -> 1 spatial, conv_out_size = 64*1*1 = 64.
    B, C, H, W = 2, 4, 36, 36
    n_actions = 6
    input_shape = (C, H, W)

    key = jax.random.PRNGKey(0)
    k_param, k_input = jax.random.split(key)
    raw = init_params(k_param, input_shape, n_actions)
    x = jax.random.normal(k_input, (B, C, H, W), jnp.float32)

    folded = fold_params(raw, input_shape, n_actions)   # one-time weight prep
    forward = jax.jit(make_forward(input_shape, n_actions))

    policy, value = forward(folded, x)
    jax.block_until_ready((policy, value))

    assert policy.shape == (B, n_actions), policy.shape
    assert value.shape == (B, 1), value.shape

    # Validate against a pure-XLA reference of the PyTorch module.
    p_ref, v_ref = jax.jit(reference_forward)(raw, x)
    jax.block_until_ready((p_ref, v_ref))
    err = max(float(jnp.max(jnp.abs(policy - p_ref))),
              float(jnp.max(jnp.abs(value - v_ref))))
    assert err < 5e-2, f"mismatch vs reference: max abs err {err}"

    print("KERNEL_OK")
</pallas_src>

<mosaic_0001>
module attributes {stable_mosaic.version = 11 : i64} {
  func.func @_cnn_mcts_kernel(%arg0: memref<8x8x1152xf32, #tpu.memory_space<vmem>>, %arg1: memref<1152x256xf32, #tpu.memory_space<vmem>>, %arg2: memref<1x256xf32, #tpu.memory_space<vmem>>, %arg3: memref<4x256x256xf32, #tpu.memory_space<vmem>>, %arg4: memref<1x256xf32, #tpu.memory_space<vmem>>, %arg5: memref<3x256x128xf32, #tpu.memory_space<vmem>>, %arg6: memref<1x128xf32, #tpu.memory_space<vmem>>, %arg7: memref<128x1024xf32, #tpu.memory_space<vmem>>, %arg8: memref<1x1024xf32, #tpu.memory_space<vmem>>, %arg9: memref<1024x128xf32, #tpu.memory_space<vmem>>, %arg10: memref<1x128xf32, #tpu.memory_space<vmem>>, %arg11: memref<8x128xf32, #tpu.memory_space<vmem>>) attributes {dimension_semantics = [], scalar_prefetch = 0 : i64, scratch_operands = 0 : i64, tpu.core_type = #tpu.core_type<tc>} {
    %c0 = arith.constant 0 : index
    %c0_0 = arith.constant 0 : index
    %0 = vector.load %arg1[%c0, %c0_0] : memref<1152x256xf32, #tpu.memory_space<vmem>>, vector<1152x256xf32>
    %c0_1 = arith.constant 0 : index
    %c0_2 = arith.constant 0 : index
    %1 = vector.load %arg2[%c0_1, %c0_2] : memref<1x256xf32, #tpu.memory_space<vmem>>, vector<1x256xf32>
    %c0_3 = arith.constant 0 : index
    %c0_4 = arith.constant 0 : index
    %c0_5 = arith.constant 0 : index
    %2 = vector.load %arg0[%c0_3, %c0_4, %c0_5] : memref<8x8x1152xf32, #tpu.memory_space<vmem>>, vector<1x8x1152xf32>
    %3 = vector.shape_cast %2 : vector<1x8x1152xf32> to vector<8x1152xf32>
    %cst = arith.constant dense<0.000000e+00> : vector<8x256xf32>
    %4 = tpu.matmul %3, %0, %cst {dimension_numbers = #tpu.dot_dimension_numbers<[1], [0], [0], [1], [0, 0, 1, 1], [], []>} : vector<8x1152xf32>, vector<1152x256xf32>, vector<8x256xf32> -> vector<8x256xf32>
    %5 = vector.broadcast %1 : vector<1x256xf32> to vector<8x256xf32>
    %6 = arith.addf %4, %5 : vector<8x256xf32>
    %cst_6 = arith.constant 0.000000e+00 : f32
    %7 = vector.broadcast %cst_6 : f32 to vector<8x256xf32>
    %8 = arith.maximumf %6, %7 : vector<8x256xf32>
    %c1 = arith.constant 1 : index
    %c0_7 = arith.constant 0 : index
    %c0_8 = arith.constant 0 : index
    %9 = vector.load %arg0[%c1, %c0_7, %c0_8] : memref<8x8x1152xf32, #tpu.memory_space<vmem>>, vector<1x8x1152xf32>
    %10 = vector.shape_cast %9 : vector<1x8x1152xf32> to vector<8x1152xf32>
    %cst_9 = arith.constant dense<0.000000e+00> : vector<8x256xf32>
    %11 = tpu.matmul %10, %0, %cst_9 {dimension_numbers = #tpu.dot_dimension_numbers<[1], [0], [0], [1], [0, 0, 1, 1], [], []>} : vector<8x1152xf32>, vector<1152x256xf32>, vector<8x256xf32> -> vector<8x256xf32>
    %12 = vector.broadcast %1 : vector<1x256xf32> to vector<8x256xf32>
    %13 = arith.addf %11, %12 : vector<8x256xf32>
    %cst_10 = arith.constant 0.000000e+00 : f32
    %14 = vector.broadcast %cst_10 : f32 to vector<8x256xf32>
    %15 = arith.maximumf %13, %14 : vector<8x256xf32>
    %c2 = arith.constant 2 : index
    %c0_11 = arith.constant 0 : index
    %c0_12 = arith.constant 0 : index
    %16 = vector.load %arg0[%c2, %c0_11, %c0_12] : memref<8x8x1152xf32, #tpu.memory_space<vmem>>, vector<1x8x1152xf32>
    %17 = vector.shape_cast %16 : vector<1x8x1152xf32> to vector<8x1152xf32>
    %cst_13 = arith.constant dense<0.000000e+00> : vector<8x256xf32>
    %18 = tpu.matmul %17, %0, %cst_13 {dimension_numbers = #tpu.dot_dimension_numbers<[1], [0], [0], [1], [0, 0, 1, 1], [], []>} : vector<8x1152xf32>, vector<1152x256xf32>, vector<8x256xf32> -> vector<8x256xf32>
    %19 = vector.broadcast %1 : vector<1x256xf32> to vector<8x256xf32>
    %20 = arith.addf %18, %19 : vector<8x256xf32>
    %cst_14 = arith.constant 0.000000e+00 : f32
    %21 = vector.broadcast %cst_14 : f32 to vector<8x256xf32>
    %22 = arith.maximumf %20, %21 : vector<8x256xf32>
    %c3 = arith.constant 3 : index
    %c0_15 = arith.constant 0 : index
    %c0_16 = arith.constant 0 : index
    %23 = vector.load %arg0[%c3, %c0_15, %c0_16] : memref<8x8x1152xf32, #tpu.memory_space<vmem>>, vector<1x8x1152xf32>
    %24 = vector.shape_cast %23 : vector<1x8x1152xf32> to vector<8x1152xf32>
    %cst_17 = arith.constant dense<0.000000e+00> : vector<8x256xf32>
    %25 = tpu.matmul %24, %0, %cst_17 {dimension_numbers = #tpu.dot_dimension_numbers<[1], [0], [0], [1], [0, 0, 1, 1], [], []>} : vector<8x1152xf32>, vector<1152x256xf32>, vector<8x256xf32> -> vector<8x256xf32>
    %26 = vector.broadcast %1 : vector<1x256xf32> to vector<8x256xf32>
    %27 = arith.addf %25, %26 : vector<8x256xf32>
    %cst_18 = arith.constant 0.000000e+00 : f32
    %28 = vector.broadcast %cst_18 : f32 to vector<8x256xf32>
    %29 = arith.maximumf %27, %28 : vector<8x256xf32>
    %c4 = arith.constant 4 : index
    %c0_19 = arith.constant 0 : index
    %c0_20 = arith.constant 0 : index
    %30 = vector.load %arg0[%c4, %c0_19, %c0_20] : memref<8x8x1152xf32, #tpu.memory_space<vmem>>, vector<1x8x1152xf32>
    %31 = vector.shape_cast %30 : vector<1x8x1152xf32> to vector<8x1152xf32>
    %cst_21 = arith.constant dense<0.000000e+00> : vector<8x256xf32>
    %32 = tpu.matmul %31, %0, %cst_21 {dimension_numbers = #tpu.dot_dimension_numbers<[1], [0], [0], [1], [0, 0, 1, 1], [], []>} : vector<8x1152xf32>, vector<1152x256xf32>, vector<8x256xf32> -> vector<8x256xf32>
    %33 = vector.broadcast %1 : vector<1x256xf32> to vector<8x256xf32>
    %34 = arith.addf %32, %33 : vector<8x256xf32>
    %cst_22 = arith.constant 0.000000e+00 : f32
    %35 = vector.broadcast %cst_22 : f32 to vector<8x256xf32>
    %36 = arith.maximumf %34, %35 : vector<8x256xf32>
    %c5 = arith.constant 5 : index
    %c0_23 = arith.constant 0 : index
    %c0_24 = arith.constant 0 : index
    %37 = vector.load %arg0[%c5, %c0_23, %c0_24] : memref<8x8x1152xf32, #tpu.memory_space<vmem>>, vector<1x8x1152xf32>
    %38 = vector.shape_cast %37 : vector<1x8x1152xf32> to vector<8x1152xf32>
    %cst_25 = arith.constant dense<0.000000e+00> : vector<8x256xf32>
    %39 = tpu.matmul %38, %0, %cst_25 {dimension_numbers = #tpu.dot_dimension_numbers<[1], [0], [0], [1], [0, 0, 1, 1], [], []>} : vector<8x1152xf32>, vector<1152x256xf32>, vector<8x256xf32> -> vector<8x256xf32>
    %40 = vector.broadcast %1 : vector<1x256xf32> to vector<8x256xf32>
    %41 = arith.addf %39, %40 : vector<8x256xf32>
    %cst_26 = arith.constant 0.000000e+00 : f32
    %42 = vector.broadcast %cst_26 : f32 to vector<8x256xf32>
    %43 = arith.maximumf %41, %42 : vector<8x256xf32>
    %c6 = arith.constant 6 : index
    %c0_27 = arith.constant 0 : index
    %c0_28 = arith.constant 0 : index
    %44 = vector.load %arg0[%c6, %c0_27, %c0_28] : memref<8x8x1152xf32, #tpu.memory_space<vmem>>, vector<1x8x1152xf32>
    %45 = vector.shape_cast %44 : vector<1x8x1152xf32> to vector<8x1152xf32>
    %cst_29 = arith.constant dense<0.000000e+00> : vector<8x256xf32>
    %46 = tpu.matmul %45, %0, %cst_29 {dimension_numbers = #tpu.dot_dimension_numbers<[1], [0], [0], [1], [0, 0, 1, 1], [], []>} : vector<8x1152xf32>, vector<1152x256xf32>, vector<8x256xf32> -> vector<8x256xf32>
    %47 = vector.broadcast %1 : vector<1x256xf32> to vector<8x256xf32>
    %48 = arith.addf %46, %47 : vector<8x256xf32>
    %cst_30 = arith.constant 0.000000e+00 : f32
    %49 = vector.broadcast %cst_30 : f32 to vector<8x256xf32>
    %50 = arith.maximumf %48, %49 : vector<8x256xf32>
    %c7 = arith.constant 7 : index
    %c0_31 = arith.constant 0 : index
    %c0_32 = arith.constant 0 : index
    %51 = vector.load %arg0[%c7, %c0_31, %c0_32] : memref<8x8x1152xf32, #tpu.memory_space<vmem>>, vector<1x8x1152xf32>
    %52 = vector.shape_cast %51 : vector<1x8x1152xf32> to vector<8x1152xf32>
    %cst_33 = arith.constant dense<0.000000e+00> : vector<8x256xf32>
    %53 = tpu.matmul %52, %0, %cst_33 {dimension_numbers = #tpu.dot_dimension_numbers<[1], [0], [0], [1], [0, 0, 1, 1], [], []>} : vector<8x1152xf32>, vector<1152x256xf32>, vector<8x256xf32> -> vector<8x256xf32>
    %54 = vector.broadcast %1 : vector<1x256xf32> to vector<8x256xf32>
    %55 = arith.addf %53, %54 : vector<8x256xf32>
    %cst_34 = arith.constant 0.000000e+00 : f32
    %56 = vector.broadcast %cst_34 : f32 to vector<8x256xf32>
    %57 = arith.maximumf %55, %56 : vector<8x256xf32>
    %c0_35 = arith.constant 0 : index
    %c0_36 = arith.constant 0 : index
    %c0_37 = arith.constant 0 : index
    %58 = vector.load %arg3[%c0_35, %c0_36, %c0_37] : memref<4x256x256xf32, #tpu.memory_space<vmem>>, vector<1x256x256xf32>
    %59 = vector.shape_cast %58 : vector<1x256x256xf32> to vector<256x256xf32>
    %c1_38 = arith.constant 1 : index
    %c0_39 = arith.constant 0 : index
    %c0_40 = arith.constant 0 : index
    %60 = vector.load %arg3[%c1_38, %c0_39, %c0_40] : memref<4x256x256xf32, #tpu.memory_space<vmem>>, vector<1x256x256xf32>
    %61 = vector.shape_cast %60 : vector<1x256x256xf32> to vector<256x256xf32>
    %c2_41 = arith.constant 2 : index
    %c0_42 = arith.constant 0 : index
    %c0_43 = arith.constant 0 : index
    %62 = vector.load %arg3[%c2_41, %c0_42, %c0_43] : memref<4x256x256xf32, #tpu.memory_space<vmem>>, vector<1x256x256xf32>
    %63 = vector.shape_cast %62 : vector<1x256x256xf32> to vector<256x256xf32>
    %c3_44 = arith.constant 3 : index
    %c0_45 = arith.constant 0 : index
    %c0_46 = arith.constant 0 : index
    %64 = vector.load %arg3[%c3_44, %c0_45, %c0_46] : memref<4x256x256xf32, #tpu.memory_space<vmem>>, vector<1x256x256xf32>
    %65 = vector.shape_cast %64 : vector<1x256x256xf32> to vector<256x256xf32>
    %c0_47 = arith.constant 0 : index
    %c0_48 = arith.constant 0 : index
    %66 = vector.load %arg4[%c0_47, %c0_48] : memref<1x256xf32, #tpu.memory_space<vmem>>, vector<1x256xf32>
    %cst_49 = arith.constant dense<0.000000e+00> : vector<8x256xf32>
    %67 = tpu.matmul %8, %59, %cst_49 {dimension_numbers = #tpu.dot_dimension_numbers<[1], [0], [0], [1], [0, 0, 1, 1], [], []>} : vector<8x256xf32>, vector<256x256xf32>, vector<8x256xf32> -> vector<8x256xf32>
    %68 = vector.broadcast %66 : vector<1x256xf32> to vector<8x256xf32>
    %69 = arith.addf %68, %67 : vector<8x256xf32>
    %cst_50 = arith.constant dense<0.000000e+00> : vector<8x256xf32>
    %70 = tpu.matmul %15, %61, %cst_50 {dimension_numbers = #tpu.dot_dimension_numbers<[1], [0], [0], [1], [0, 0, 1, 1], [], []>} : vector<8x256xf32>, vector<256x256xf32>, vector<8x256xf32> -> vector<8x256xf32>
    %71 = arith.addf %69, %70 : vector<8x256xf32>
    %cst_51 = arith.constant dense<0.000000e+00> : vector<8x256xf32>
    %72 = tpu.matmul %22, %63, %cst_51 {dimension_numbers = #tpu.dot_dimension_numbers<[1], [0], [0], [1], [0, 0, 1, 1], [], []>} : vector<8x256xf32>, vector<256x256xf32>, vector<8x256xf32> -> vector<8x256xf32>
    %73 = arith.addf %71, %72 : vector<8x256xf32>
    %cst_52 = arith.constant dense<0.000000e+00> : vector<8x256xf32>
    %74 = tpu.matmul %29, %65, %cst_52 {dimension_numbers = #tpu.dot_dimension_numbers<[1], [0], [0], [1], [0, 0, 1, 1], [], []>} : vector<8x256xf32>, vector<256x256xf32>, vector<8x256xf32> -> vector<8x256xf32>
    %75 = arith.addf %73, %74 : vector<8x256xf32>
    %cst_53 = arith.constant 0.000000e+00 : f32
    %76 = vector.broadcast %cst_53 : f32 to vector<8x256xf32>
    %77 = arith.maximumf %75, %76 : vector<8x256xf32>
    %cst_54 = arith.constant dense<0.000000e+00> : vector<8x256xf32>
    %78 = tpu.matmul %22, %59, %cst_54 {dimension_numbers = #tpu.dot_dimension_numbers<[1], [0], [0], [1], [0, 0, 1, 1], [], []>} : vector<8x256xf32>, vector<256x256xf32>, vector<8x256xf32> -> vector<8x256xf32>
    %79 = vector.broadcast %66 : vector<1x256xf32> to vector<8x256xf32>
    %80 = arith.addf %79, %78 : vector<8x256xf32>
    %cst_55 = arith.constant dense<0.000000e+00> : vector<8x256xf32>
    %81 = tpu.matmul %29, %61, %cst_55 {dimension_numbers = #tpu.dot_dimension_numbers<[1], [0], [0], [1], [0, 0, 1, 1], [], []>} : vector<8x256xf32>, vector<256x256xf32>, vector<8x256xf32> -> vector<8x256xf32>
    %82 = arith.addf %80, %81 : vector<8x256xf32>
    %cst_56 = arith.constant dense<0.000000e+00> : vector<8x256xf32>
    %83 = tpu.matmul %36, %63, %cst_56 {dimension_numbers = #tpu.dot_dimension_numbers<[1], [0], [0], [1], [0, 0, 1, 1], [], []>} : vector<8x256xf32>, vector<256x256xf32>, vector<8x256xf32> -> vector<8x256xf32>
    %84 = arith.addf %82, %83 : vector<8x256xf32>
    %cst_57 = arith.constant dense<0.000000e+00> : vector<8x256xf32>
    %85 = tpu.matmul %43, %65, %cst_57 {dimension_numbers = #tpu.dot_dimension_numbers<[1], [0], [0], [1], [0, 0, 1, 1], [], []>} : vector<8x256xf32>, vector<256x256xf32>, vector<8x256xf32> -> vector<8x256xf32>
    %86 = arith.addf %84, %85 : vector<8x256xf32>
    %cst_58 = arith.constant 0.000000e+00 : f32
    %87 = vector.broadcast %cst_58 : f32 to vector<8x256xf32>
    %88 = arith.maximumf %86, %87 : vector<8x256xf32>
    %cst_59 = arith.constant dense<0.000000e+00> : vector<8x256xf32>
    %89 = tpu.matmul %36, %59, %cst_59 {dimension_numbers = #tpu.dot_dimension_numbers<[1], [0], [0], [1], [0, 0, 1, 1], [], []>} : vector<8x256xf32>, vector<256x256xf32>, vector<8x256xf32> -> vector<8x256xf32>
    %90 = vector.broadcast %66 : vector<1x256xf32> to vector<8x256xf32>
    %91 = arith.addf %90, %89 : vector<8x256xf32>
    %cst_60 = arith.constant dense<0.000000e+00> : vector<8x256xf32>
    %92 = tpu.matmul %43, %61, %cst_60 {dimension_numbers = #tpu.dot_dimension_numbers<[1], [0], [0], [1], [0, 0, 1, 1], [], []>} : vector<8x256xf32>, vector<256x256xf32>, vector<8x256xf32> -> vector<8x256xf32>
    %93 = arith.addf %91, %92 : vector<8x256xf32>
    %cst_61 = arith.constant dense<0.000000e+00> : vector<8x256xf32>
    %94 = tpu.matmul %50, %63, %cst_61 {dimension_numbers = #tpu.dot_dimension_numbers<[1], [0], [0], [1], [0, 0, 1, 1], [], []>} : vector<8x256xf32>, vector<256x256xf32>, vector<8x256xf32> -> vector<8x256xf32>
    %95 = arith.addf %93, %94 : vector<8x256xf32>
    %cst_62 = arith.constant dense<0.000000e+00> : vector<8x256xf32>
    %96 = tpu.matmul %57, %65, %cst_62 {dimension_numbers = #tpu.dot_dimension_numbers<[1], [0], [0], [1], [0, 0, 1, 1], [], []>} : vector<8x256xf32>, vector<256x256xf32>, vector<8x256xf32> -> vector<8x256xf32>
    %97 = arith.addf %95, %96 : vector<8x256xf32>
    %cst_63 = arith.constant 0.000000e+00 : f32
    %98 = vector.broadcast %cst_63 : f32 to vector<8x256xf32>
    %99 = arith.maximumf %97, %98 : vector<8x256xf32>
    %c0_64 = arith.constant 0 : index
    %c0_65 = arith.constant 0 : index
    %100 = vector.load %arg6[%c0_64, %c0_65] : memref<1x128xf32, #tpu.memory_space<vmem>>, vector<1x128xf32>
    %c0_66 = arith.constant 0 : index
    %c0_67 = arith.constant 0 : index
    %c0_68 = arith.constant 0 : index
    %101 = vector.load %arg5[%c0_66, %c0_67, %c0_68] : memref<3x256x128xf32, #tpu.memory_space<vmem>>, vector<1x256x128xf32>
    %102 = vector.shape_cast %101 : vector<1x256x128xf32> to vector<256x128xf32>
    %cst_69 = arith.constant dense<0.000000e+00> : vector<8x128xf32>
    %103 = tpu.matmul %77, %102, %cst_69 {dimension_numbers = #tpu.dot_dimension_numbers<[1], [0], [0], [1], [0, 0, 1, 1], [], []>} : vector<8x256xf32>, vector<256x128xf32>, vector<8x128xf32> -> vector<8x128xf32>
    %104 = vector.broadcast %100 : vector<1x128xf32> to vector<8x128xf32>
    %105 = arith.addf %104, %103 : vector<8x128xf32>
    %c1_70 = arith.constant 1 : index
    %c0_71 = arith.constant 0 : index
    %c0_72 = arith.constant 0 : index
    %106 = vector.load %arg5[%c1_70, %c0_71, %c0_72] : memref<3x256x128xf32, #tpu.memory_space<vmem>>, vector<1x256x128xf32>
    %107 = vector.shape_cast %106 : vector<1x256x128xf32> to vector<256x128xf32>
    %cst_73 = arith.constant dense<0.000000e+00> : vector<8x128xf32>
    %108 = tpu.matmul %88, %107, %cst_73 {dimension_numbers = #tpu.dot_dimension_numbers<[1], [0], [0], [1], [0, 0, 1, 1], [], []>} : vector<8x256xf32>, vector<256x128xf32>, vector<8x128xf32> -> vector<8x128xf32>
    %109 = arith.addf %105, %108 : vector<8x128xf32>
    %c2_74 = arith.constant 2 : index
    %c0_75 = arith.constant 0 : index
    %c0_76 = arith.constant 0 : index
    %110 = vector.load %arg5[%c2_74, %c0_75, %c0_76] : memref<3x256x128xf32, #tpu.memory_space<vmem>>, vector<1x256x128xf32>
    %111 = vector.shape_cast %110 : vector<1x256x128xf32> to vector<256x128xf32>
    %cst_77 = arith.constant dense<0.000000e+00> : vector<8x128xf32>
    %112 = tpu.matmul %99, %111, %cst_77 {dimension_numbers = #tpu.dot_dimension_numbers<[1], [0], [0], [1], [0, 0, 1, 1], [], []>} : vector<8x256xf32>, vector<256x128xf32>, vector<8x128xf32> -> vector<8x128xf32>
    %113 = arith.addf %109, %112 : vector<8x128xf32>
    %cst_78 = arith.constant 0.000000e+00 : f32
    %114 = vector.broadcast %cst_78 : f32 to vector<8x128xf32>
    %115 = arith.maximumf %113, %114 : vector<8x128xf32>
    %c0_79 = arith.constant 0 : index
    %c0_80 = arith.constant 0 : index
    %116 = vector.load %arg7[%c0_79, %c0_80] : memref<128x1024xf32, #tpu.memory_space<vmem>>, vector<128x1024xf32>
    %cst_81 = arith.constant dense<0.000000e+00> : vector<8x1024xf32>
    %117 = tpu.matmul %115, %116, %cst_81 {dimension_numbers = #tpu.dot_dimension_numbers<[1], [0], [0], [1], [0, 0, 1, 1], [], []>} : vector<8x128xf32>, vector<128x1024xf32>, vector<8x1024xf32> -> vector<8x1024xf32>
    %c0_82 = arith.constant 0 : index
    %c0_83 = arith.constant 0 : index
    %118 = vector.load %arg8[%c0_82, %c0_83] : memref<1x1024xf32, #tpu.memory_space<vmem>>, vector<1x1024xf32>
    %119 = vector.broadcast %118 : vector<1x1024xf32> to vector<8x1024xf32>
    %120 = arith.addf %117, %119 : vector<8x1024xf32>
    %cst_84 = arith.constant 0.000000e+00 : f32
    %121 = vector.broadcast %cst_84 : f32 to vector<8x1024xf32>
    %122 = arith.maximumf %120, %121 : vector<8x1024xf32>
    %c0_85 = arith.constant 0 : index
    %c0_86 = arith.constant 0 : index
    %123 = vector.load %arg9[%c0_85, %c0_86] : memref<1024x128xf32, #tpu.memory_space<vmem>>, vector<1024x128xf32>
    %cst_87 = arith.constant dense<0.000000e+00> : vector<8x128xf32>
    %124 = tpu.matmul %122, %123, %cst_87 {dimension_numbers = #tpu.dot_dimension_numbers<[1], [0], [0], [1], [0, 0, 1, 1], [], []>} : vector<8x1024xf32>, vector<1024x128xf32>, vector<8x128xf32> -> vector<8x128xf32>
    %c0_88 = arith.constant 0 : index
    %c0_89 = arith.constant 0 : index
    %125 = vector.load %arg10[%c0_88, %c0_89] : memref<1x128xf32, #tpu.memory_space<vmem>>, vector<1x128xf32>
    %126 = vector.broadcast %125 : vector<1x128xf32> to vector<8x128xf32>
    %127 = arith.addf %124, %126 : vector<8x128xf32>
    %c0_90 = arith.constant 0 : index
    %c0_91 = arith.constant 0 : index
    %128 = vector.load %arg11[%c0_90, %c0_91] : memref<8x128xf32, #tpu.memory_space<vmem>>, vector<8x128xf32>
    tpu.vector_store %arg11[%c0_90, %c0_91], %127 {strides = array<i32>} : memref<8x128xf32, #tpu.memory_space<vmem>>, vector<8x128xf32>,
    return
  }
}

</mosaic_0001>

<bundles_post_ra>
// kernel: forward.1
= control target key start
LH: loop header
LB: loop body
LE: loop exit
PB: predicated region body
PF: predicated region fallthrough
CT: control target
= control target key end

     0   :  { %s14977_s1 = inlined_call_operand.vmem [shape: f32[1152,256], index: 1, kind: input, shape index: {}]   ;;  %s14978_s0 = inlined_call_operand.vmem [shape: f32[8,8,1152], index: 0, kind: input, shape index: {}]   ;;  %s14979_s2 = inlined_call_operand.vmem [shape: f32[1,256], index: 2, kind: input, shape index: {}]   ;;  %s14980_s3 = inlined_call_operand.vmem [shape: f32[4,256,256], index: 3, kind: input, shape index: {}]   ;;  %s14981_s5 = inlined_call_operand.vmem [shape: f32[3,256,128], index: 5, kind: input, shape index: {}]   ;;  %s14982_s4 = inlined_call_operand.vmem [shape: f32[1,256], index: 4, kind: input, shape index: {}]   ;;  %s14983_s7 = inlined_call_operand.vmem [shape: f32[128,1024], index: 7, kind: input, shape index: {}]   ;;  %s14984_s6 = inlined_call_operand.vmem [shape: f32[1,128], index: 6, kind: input, shape index: {}]   ;;  %s14985_s9 = inlined_call_operand.vmem [shape: f32[1024,128], index: 9, kind: input, shape index: {}]   ;;  %s14986_s8 = inlined_call_operand.vmem [shape: f32[1,1024], index: 8, kind: input, shape index: {}]   ;;  %s14987_s10 = inlined_call_operand.vmem [shape: f32[1,128], index: 10, kind: input, shape index: {}]   ;;  %s14988_s11 = inlined_call_operand.vmem [shape: f32[8,128], index: 11, kind: output, shape index: {}]  }
   0x1   :  { %v39_v0 = vld [vmem:[%s14977_s1 + $0x8] sm:$0xff]  ;;  %v41_v1 = vld [vmem:[%s14977_s1 + $0x18] sm:$0xff]  ;;  %v38_v2 = vld [vmem:[%s14977_s1] sm:$0xff] }
   0x2   :  { %v9792_v3 = vpack.c.bf16 %v41_v1, %v39_v0  ;;  %v40_v4 = vld [vmem:[%s14977_s1 + $0x10] sm:$0xff]  ;;  %v43_v5 = vld [vmem:[%s14977_s1 + $0x28] sm:$0xff]  ;;  %v45_v6 = vld [vmem:[%s14977_s1 + $0x38] sm:$0xff] }
   0x3   :  { %v9803_v7 = vpack.c.bf16 %v40_v4, %v38_v2  ;;  %v9805_v8 = vpack.c.bf16 %v45_v6, %v43_v5  ;;  %v42_v9 = vld [vmem:[%s14977_s1 + $0x20] sm:$0xff]  ;;  %v44_v10 = vld [vmem:[%s14977_s1 + $0x30] sm:$0xff]  ;;  %v47_v11 = vld [vmem:[%s14977_s1 + $0x48] sm:$0xff] }
   0x4   :  { %6194 = vmatprep.subr.bf16.mxu0 %v9792_v3  ;;  %6482 = vmatprep.subr.bf16.mxu1 %v9792_v3  ;;  %v49_v12 = vld [vmem:[%s14977_s1 + $0x58] sm:$0xff]  ;;  %v9823_v13 = vpack.c.bf16 %v44_v10, %v42_v9  ;;  %v46_v15 = vld [vmem:[%s14977_s1 + $0x40] sm:$0xff]  ;;  %v48_v16 = vld [vmem:[%s14977_s1 + $0x50] sm:$0xff] }
   0x5   :  { %6196 = vmatpush1.bf16.msra.mxu0 %v9803_v7  ;;  %6484 = vmatpush1.bf16.msra.mxu1 %v9803_v7  ;;  %v9827_v14 = vpack.c.bf16 %v49_v12, %v47_v11  ;;  %v51_v17 = vld [vmem:[%s14977_s1 + $0x68] sm:$0xff]  ;;  %v53_v18 = vld [vmem:[%s14977_s1 + $0x78] sm:$0xff]  ;;  %v9843_v19 = vpack.c.bf16 %v48_v16, %v46_v15  ;;  %v50_v21 = vld [vmem:[%s14977_s1 + $0x60] sm:$0xff] }
   0x6   :  { %6198 = vmatprep.subr.bf16.mxu0 %v9805_v8  ;;  %6486 = vmatprep.subr.bf16.mxu1 %v9805_v8  ;;  %v9847_v20 = vpack.c.bf16 %v53_v18, %v51_v17  ;;  %v52_v22 = vld [vmem:[%s14977_s1 + $0x70] sm:$0xff]  ;;  %v55_v23 = vld [vmem:[%s14977_s1 + $0x88] sm:$0xff]  ;;  %v57_v24 = vld [vmem:[%s14977_s1 + $0x98] sm:$0xff] }
   0x7   :  { %v9863_v25 = vpack.c.bf16 %v52_v22, %v50_v21  ;;  %v9867_v26 = vpack.c.bf16 %v57_v24, %v55_v23  ;;  %v54_v27 = vld [vmem:[%s14977_s1 + $0x80] sm:$0xff]  ;;  %v56_v28 = vld [vmem:[%s14977_s1 + $0x90] sm:$0xff]  ;;  %v59_v29 = vld [vmem:[%s14977_s1 + $0xa8] sm:$0xff] }
   0x8   :  { %v61_v30 = vld [vmem:[%s14977_s1 + $0xb8] sm:$0xff]  ;;  %v9883_v31 = vpack.c.bf16 %v56_v28, %v54_v27  ;;  %v58_v33 = vld [vmem:[%s14977_s1 + $0xa0] sm:$0xff]  ;;  %v60_v34 = vld [vmem:[%s14977_s1 + $0xb0] sm:$0xff] }
   0x9   :  { %6200 = vmatpush1.bf16.msra.mxu0 %v9823_v13  ;;  %6488 = vmatpush1.bf16.msra.mxu1 %v9823_v13  ;;  %v9887_v32 = vpack.c.bf16 %v61_v30, %v59_v29  ;;  %v63_v35 = vld [vmem:[%s14977_s1 + $0xc8] sm:$0xff]  ;;  %v65_v36 = vld [vmem:[%s14977_s1 + $0xd8] sm:$0xff]  ;;  %v9903_v37 = vpack.c.bf16 %v60_v34, %v58_v33  ;;  %v62_v39 = vld [vmem:[%s14977_s1 + $0xc0] sm:$0xff] }
   0xa   :  { %6202 = vmatprep.subr.bf16.mxu0 %v9827_v14  ;;  %6490 = vmatprep.subr.bf16.mxu1 %v9827_v14  ;;  %v9907_v38 = vpack.c.bf16 %v65_v36, %v63_v35  ;;  %v64_v40 = vld [vmem:[%s14977_s1 + $0xd0] sm:$0xff]  ;;  %v328_v41 = vld [vmem:[%s14978_s0 + $0x8] sm:$0xff]  ;;  %v69_v43 = vld [vmem:[%s14977_s1 + $0xf8] sm:$0xff] }
   0xb   :  { %v67_v42 = vld [vmem:[%s14977_s1 + $0xe8] sm:$0xff]  ;;  %411 = vmatprep.mubr.f32.mxu0 %v328_v41  ;;  %v5628_v44 = vld [vmem:[%s14978_s0 + $0x50] sm:$0xff]  ;;  %v9929_v45 = vpack.c.bf16 %v64_v40, %v62_v39  ;;  %v66_v47 = vld [vmem:[%s14977_s1 + $0xe0] sm:$0xff] }
   0xc   :  { %778 = vmatprep.mubr.f32.mxu1 %v5628_v44  ;;  %v9933_v46 = vpack.c.bf16 %v69_v43, %v67_v42  ;;  %v68_v48 = vld [vmem:[%s14977_s1 + $0xf0] sm:$0xff]  ;;  %v71_v49 = vld [vmem:[%s14977_s1 + $0x108] sm:$0xff]  ;;  %v73_v50 = vld [vmem:[%s14977_s1 + $0x118] sm:$0xff] }
   0xd   :  { %6204 = vmatpush1.bf16.msra.mxu0 %v9843_v19  ;;  %6492 = vmatpush1.bf16.msra.mxu1 %v9843_v19  ;;  %v9949_v51 = vpack.c.bf16 %v68_v48, %v66_v47  ;;  %v9953_v52 = vpack.c.bf16 %v73_v50, %v71_v49  ;;  %v70_v53 = vld [vmem:[%s14977_s1 + $0x100] sm:$0xff]  ;;  %v72_v54 = vld [vmem:[%s14977_s1 + $0x110] sm:$0xff]  ;;  %v75_v55 = vld [vmem:[%s14977_s1 + $0x128] sm:$0xff] }
   0xe   :  { %6206 = vmatprep.subr.bf16.mxu0 %v9847_v20  ;;  %6494 = vmatprep.subr.bf16.mxu1 %v9847_v20  ;;  %v77_v56 = vld [vmem:[%s14977_s1 + $0x138] sm:$0xff]  ;;  %v9969_v57 = vpack.c.bf16 %v72_v54, %v70_v53  ;;  %v74_v59 = vld [vmem:[%s14977_s1 + $0x120] sm:$0xff]  ;;  %v76_v60 = vld [vmem:[%s14977_s1 + $0x130] sm:$0xff] }
   0xf   :  { %v9973_v58 = vpack.c.bf16 %v77_v56, %v75_v55  ;;  %v79_v61 = vld [vmem:[%s14977_s1 + $0x148] sm:$0xff]  ;;  %v81_v62 = vld [vmem:[%s14977_s1 + $0x158] sm:$0xff]  ;;  %v9989_v63 = vpack.c.bf16 %v76_v60, %v74_v59  ;;  %v78_v1 = vld [vmem:[%s14977_s1 + $0x140] sm:$0xff] }
  0x10   :  { %v9993_v0 = vpack.c.bf16 %v81_v62, %v79_v61  ;;  %v80_v2 = vld [vmem:[%s14977_s1 + $0x150] sm:$0xff]  ;;  %v83_v4 = vld [vmem:[%s14977_s1 + $0x168] sm:$0xff]  ;;  %v85_v5 = vld [vmem:[%s14977_s1 + $0x178] sm:$0xff] }
  0x11   :  { %6208 = vmatpush1.bf16.msra.mxu0 %v9863_v25  ;;  %6496 = vmatpush1.bf16.msra.mxu1 %v9863_v25  ;;  %v10009_v6 = vpack.c.bf16 %v80_v2, %v78_v1  ;;  %v10013_v9 = vpack.c.bf16 %v85_v5, %v83_v4  ;;  %v82_v10 = vld [vmem:[%s14977_s1 + $0x160] sm:$0xff]  ;;  %v84_v11 = vld [vmem:[%s14977_s1 + $0x170] sm:$0xff]  ;;  %v87_v12 = vld [vmem:[%s14977_s1 + $0x188] sm:$0xff] }
  0x12   :  { %6210 = vmatprep.subr.bf16.mxu0 %v9867_v26  ;;  %6498 = vmatprep.subr.bf16.mxu1 %v9867_v26  ;;  %v89_v15 = vld [vmem:[%s14977_s1 + $0x198] sm:$0xff]  ;;  %v10029_v16 = vpack.c.bf16 %v84_v11, %v82_v10  ;;  %v86_v18 = vld [vmem:[%s14977_s1 + $0x180] sm:$0xff]  ;;  %v88_v21 = vld [vmem:[%s14977_s1 + $0x190] sm:$0xff] }
  0x13   :  { %v10033_v17 = vpack.c.bf16 %v89_v15, %v87_v12  ;;  %v91_v22 = vld [vmem:[%s14977_s1 + $0x1a8] sm:$0xff]  ;;  %v93_v23 = vld [vmem:[%s14977_s1 + $0x1b8] sm:$0xff]  ;;  %v10049_v24 = vpack.c.bf16 %v88_v21, %v86_v18  ;;  %v90_v28 = vld [vmem:[%s14977_s1 + $0x1a0] sm:$0xff] }
  0x14   :  { %v10053_v27 = vpack.c.bf16 %v93_v23, %v91_v22  ;;  %v92_v29 = vld [vmem:[%s14977_s1 + $0x1b0] sm:$0xff]  ;;  %v95_v30 = vld [vmem:[%s14977_s1 + $0x1c8] sm:$0xff]  ;;  %v97_v33 = vld [vmem:[%s14977_s1 + $0x1d8] sm:$0xff] }
  0x15   :  { %6212 = vmatpush1.bf16.msra.mxu0 %v9883_v31  ;;  %6500 = vmatpush1.bf16.msra.mxu1 %v9883_v31  ;;  %v10069_v34 = vpack.c.bf16 %v92_v29, %v90_v28  ;;  %v10073_v35 = vpack.c.bf16 %v97_v33, %v95_v30  ;;  %v94_v36 = vld [vmem:[%s14977_s1 + $0x1c0] sm:$0xff]  ;;  %v96_v39 = vld [vmem:[%s14977_s1 + $0x1d0] sm:$0xff]  ;;  %v99_v40 = vld [vmem:[%s14977_s1 + $0x1e8] sm:$0xff] }
  0x16   :  { %6214 = vmatprep.subr.bf16.mxu0 %v9887_v32  ;;  %6502 = vmatprep.subr.bf16.mxu1 %v9887_v32  ;;  %v101_v41 = vld [vmem:[%s14977_s1 + $0x1f8] sm:$0xff]  ;;  %v10089_v42 = vpack.c.bf16 %v96_v39, %v94_v36  ;;  %v98_v44 = vld [vmem:[%s14977_s1 + $0x1e0] sm:$0xff]  ;;  %v100_v47 = vld [vmem:[%s14977_s1 + $0x1f0] sm:$0xff] }
  0x17   :  { %v10093_v43 = vpack.c.bf16 %v101_v41, %v99_v40  ;;  %v103_v48 = vld [vmem:[%s14977_s1 + $0x208] sm:$0xff]  ;;  %v105_v49 = vld [vmem:[%s14977_s1 + $0x218] sm:$0xff]  ;;  %v10109_v50 = vpack.c.bf16 %v100_v47, %v98_v44  ;;  %v102_v54 = vld [vmem:[%s14977_s1 + $0x200] sm:$0xff] }
  0x18   :  { %v10113_v53 = vpack.c.bf16 %v105_v49, %v103_v48  ;;  %v104_v55 = vld [vmem:[%s14977_s1 + $0x210] sm:$0xff]  ;;  %v107_v56 = vld [vmem:[%s14977_s1 + $0x228] sm:$0xff]  ;;  %v109_v59 = vld [vmem:[%s14977_s1 + $0x238] sm:$0xff] }
  0x19   :  { %6216 = vmatpush1.bf16.msra.mxu0 %v9903_v37  ;;  %6504 = vmatpush1.bf16.msra.mxu1 %v9903_v37  ;;  %v327_v60 = vld [vmem:[%s14978_s0] sm:$0xff]  ;;  %v10132_v61 = vpack.c.bf16 %v104_v55, %v102_v54  ;;  %v5627_v62 = vld [vmem:[%s14978_s0 + $0x48] sm:$0xff]  ;;  %v10139_v1 = vpack.c.bf16 %v109_v59, %v107_v56  ;;  %v108_v4 = vld [vmem:[%s14977_s1 + $0x230] sm:$0xff] }
  0x1a   :  { %6218 = vmatprep.subr.bf16.mxu0 %v9907_v38  ;;  %6506 = vmatprep.subr.bf16.mxu1 %v9907_v38  ;;  %v106_v2 = vld [vmem:[%s14977_s1 + $0x220] sm:$0xff]  ;;  %v111_v5 = vld [vmem:[%s14977_s1 + $0x248] sm:$0xff]  ;;  %v113_v10 = vld [vmem:[%s14977_s1 + $0x258] sm:$0xff] }
  0x1b   :  { %v330_v11 = vld [vmem:[%s14978_s0 + $0x18] sm:$0xff]  ;;  %v5630_v12 = vld [vmem:[%s14978_s0 + $0x60] sm:$0xff]  ;;  %v10161_v15 = vpack.c.bf16 %v108_v4, %v106_v2  ;;  %v10165_v18 = vpack.c.bf16 %v113_v10, %v111_v5  ;;  %v112_v22 = vld [vmem:[%s14977_s1 + $0x250] sm:$0xff] }
  0x1c   :  { %v110_v21 = vld [vmem:[%s14977_s1 + $0x240] sm:$0xff]  ;;  %v115_v23 = vld [vmem:[%s14977_s1 + $0x268] sm:$0xff]  ;;  %v117_v28 = vld [vmem:[%s14977_s1 + $0x278] sm:$0xff] }
  0x1d   :  { %6220 = vmatpush1.bf16.msra.mxu0 %v9929_v45  ;;  %6508 = vmatpush1.bf16.msra.mxu1 %v9929_v45  ;;  %v10181_v29 = vpack.c.bf16 %v112_v22, %v110_v21  ;;  %v10185_v30 = vpack.c.bf16 %v117_v28, %v115_v23  ;;  %v114_v33 = vld [vmem:[%s14977_s1 + $0x260] sm:$0xff]  ;;  %v116_v36 = vld [vmem:[%s14977_s1 + $0x270] sm:$0xff]  ;;  %v119_v39 = vld [vmem:[%s14977_s1 + $0x288] sm:$0xff] }
  0x1e   :  { %6222 = vmatprep.subr.bf16.mxu0 %v9933_v46  ;;  %6510 = vmatprep.subr.bf16.mxu1 %v9933_v46  ;;  %v121_v40 = vld [vmem:[%s14977_s1 + $0x298] sm:$0xff]  ;;  %v10201_v41 = vpack.c.bf16 %v116_v36, %v114_v33  ;;  %v118_v47 = vld [vmem:[%s14977_s1 + $0x280] sm:$0xff]  ;;  %v120_v48 = vld [vmem:[%s14977_s1 + $0x290] sm:$0xff] }
  0x1f   :  { %v10205_v44 = vpack.c.bf16 %v121_v40, %v119_v39  ;;  %v123_v49 = vld [vmem:[%s14977_s1 + $0x2a8] sm:$0xff]  ;;  %v125_v54 = vld [vmem:[%s14977_s1 + $0x2b8] sm:$0xff]  ;;  %v10221_v55 = vpack.c.bf16 %v120_v48, %v118_v47  ;;  %v122_v59 = vld [vmem:[%s14977_s1 + $0x2a0] sm:$0xff] }
  0x20   :  { %v10225_v56 = vpack.c.bf16 %v125_v54, %v123_v49  ;;  %v129_v2 = vld [vmem:[%s14977_s1 + $0x2d8] sm:$0xff]  ;;  %v126_v10 = vld [vmem:[%s14977_s1 + $0x2c0] sm:$0xff]  ;;  %v132_v33 = vld [vmem:[%s14977_s1 + $0x2f0] sm:$0xff] }
  0x21   :  { %6224 = vmatpush1.bf16.msra.mxu0 %v9949_v51  ;;  %6512 = vmatpush1.bf16.msra.mxu1 %v9949_v51  ;;  %v133_v21 = vld [vmem:[%s14977_s1 + $0x2f8] sm:$0xff]  ;;  %v130_v28 = vld [vmem:[%s14977_s1 + $0x2e0] sm:$0xff]  ;;  %v135_v36 = vld [vmem:[%s14977_s1 + $0x308] sm:$0xff] }
  0x22   :  { %6226 = vmatprep.subr.bf16.mxu0 %v9953_v52  ;;  %6514 = vmatprep.subr.bf16.mxu1 %v9953_v52  ;;  %v137_v39 = vld [vmem:[%s14977_s1 + $0x318] sm:$0xff]  ;;  %v10281_v40 = vpack.c.bf16 %v132_v33, %v130_v28  ;;  %v134_v48 = vld [vmem:[%s14977_s1 + $0x300] sm:$0xff]  ;;  %v136_v49 = vld [vmem:[%s14977_s1 + $0x310] sm:$0xff] }
  0x23   :  { %v10285_v47 = vpack.c.bf16 %v137_v39, %v135_v36  ;;  %v139_v54 = vld [vmem:[%s14977_s1 + $0x328] sm:$0xff]  ;;  %v142_v33 = vld [vmem:[%s14977_s1 + $0x340] sm:$0xff]  ;;  %v144_v36 = vld [vmem:[%s14977_s1 + $0x350] sm:$0xff] }
  0x24   :  { %15435 = vst [vmem:[#allocation3_spill] sm:$0xff] %v10281_v40  ;;  %v147_v39 = vld [vmem:[%s14977_s1 + $0x368] sm:$0xff] }
  0x25   :  { %6228 = vmatpush1.bf16.msra.mxu0 %v9969_v57  ;;  %6516 = vmatpush1.bf16.msra.mxu1 %v9969_v57  ;;  %15436 = vst [vmem:[#allocation4_spill] sm:$0xff] %v10285_v47 }
  0x26   :  { %6230 = vmatprep.subr.bf16.mxu0 %v9973_v58  ;;  %6518 = vmatprep.subr.bf16.mxu1 %v9973_v58 }
  0x29   :  { %6232 = vmatpush1.bf16.msra.mxu0 %v9989_v63  ;;  %6520 = vmatpush1.bf16.msra.mxu1 %v9989_v63 }
  0x2a   :  { %6234 = vmatprep.subr.bf16.mxu0 %v9993_v0  ;;  %6522 = vmatprep.subr.bf16.mxu1 %v9993_v0 }
  0x2d   :  { %6236 = vmatpush1.bf16.msra.mxu0 %v10009_v6  ;;  %6524 = vmatpush1.bf16.msra.mxu1 %v10009_v6 }
  0x2e   :  { %6238 = vmatprep.subr.bf16.mxu0 %v10013_v9  ;;  %6526 = vmatprep.subr.bf16.mxu1 %v10013_v9 }
  0x31   :  { %6240 = vmatpush1.bf16.msra.mxu0 %v10029_v16  ;;  %6528 = vmatpush1.bf16.msra.mxu1 %v10029_v16 }
  0x32   :  { %6242 = vmatprep.subr.bf16.mxu0 %v10033_v17  ;;  %6530 = vmatprep.subr.bf16.mxu1 %v10033_v17 }
  0x35   :  { %6244 = vmatpush1.bf16.msra.mxu0 %v10049_v24  ;;  %6532 = vmatpush1.bf16.msra.mxu1 %v10049_v24 }
  0x36   :  { %6246 = vmatprep.subr.bf16.mxu0 %v10053_v27  ;;  %6534 = vmatprep.subr.bf16.mxu1 %v10053_v27 }
  0x39   :  { %6248 = vmatpush1.bf16.msra.mxu0 %v10069_v34  ;;  %6536 = vmatpush1.bf16.msra.mxu1 %v10069_v34 }
  0x3a   :  { %6250 = vmatprep.subr.bf16.mxu0 %v10073_v35  ;;  %6538 = vmatprep.subr.bf16.mxu1 %v10073_v35 }
  0x3d   :  { %6252 = vmatpush1.bf16.msra.mxu0 %v10089_v42  ;;  %6540 = vmatpush1.bf16.msra.mxu1 %v10089_v42 }
  0x3e   :  { %6254 = vmatprep.subr.bf16.mxu0 %v10093_v43  ;;  %6542 = vmatprep.subr.bf16.mxu1 %v10093_v43 }
  0x41   :  { %6256 = vmatpush1.bf16.msra.mxu0 %v10109_v50  ;;  %6544 = vmatpush1.bf16.msra.mxu1 %v10109_v50 }
  0x42   :  { %6258 = vmatprep.subr.bf16.mxu0 %v10113_v53  ;;  %6546 = vmatprep.subr.bf16.mxu1 %v10113_v53 }
  0x44   :  { %412 = vmatmul.mubr.f32.vlgmr.msra.gmra.mrb[0].mxu0 %v327_v60  ;;  %779 = vmatmul.mubr.f32.vlgmr.msra.gmra.mrb[0].mxu1 %v5627_v62  ;;  %v124_v60 = vld [vmem:[%s14977_s1 + $0x2b0] sm:$0xff]  ;;  %v127_v62 = vld [vmem:[%s14977_s1 + $0x2c8] sm:$0xff] }
  0x45   :  { %6260 = vmatpush1.bf16.msra.mxu0 %v10132_v61  ;;  %6548 = vmatpush1.bf16.msra.mxu1 %v10132_v61  ;;  %v10241_v4 = vpack.c.bf16 %v124_v60, %v122_v59  ;;  %v10245_v5 = vpack.c.bf16 %v129_v2, %v127_v62  ;;  %v141_v59 = vld [vmem:[%s14977_s1 + $0x338] sm:$0xff]  ;;  %v10301_v60 = vpack.c.bf16 %v136_v49, %v134_v48  ;;  %v138_v2 = vld [vmem:[%s14977_s1 + $0x320] sm:$0xff] }
  0x46   :  { %6262 = vmatprep.subr.bf16.mxu0 %v10139_v1  ;;  %6550 = vmatprep.subr.bf16.mxu1 %v10139_v1  ;;  %v10305_v62 = vpack.c.bf16 %v141_v59, %v139_v54  ;;  %v149_v48 = vld [vmem:[%s14977_s1 + $0x378] sm:$0xff]  ;;  %v10341_v49 = vpack.c.bf16 %v144_v36, %v142_v33  ;;  %v146_v59 = vld [vmem:[%s14977_s1 + $0x360] sm:$0xff] }
  0x47   :  { %482 = vmatprep.mubr.f32.mxu0 %v330_v11  ;;  %849 = vmatprep.mubr.f32.mxu1 %v5630_v12  ;;  %v128_v11 = vld [vmem:[%s14977_s1 + $0x2d0] sm:$0xff]  ;;  %v131_v12 = vld [vmem:[%s14977_s1 + $0x2e8] sm:$0xff]  ;;  %15437 = vst [vmem:[#allocation5_spill] sm:$0xff] %v10301_v60  ;;  %v10345_v54 = vpack.c.bf16 %v149_v48, %v147_v39  ;;  %v150_v36 = vld [vmem:[%s14977_s1 + $0x380] sm:$0xff] }
  0x48   :  { %v10261_v22 = vpack.c.bf16 %v128_v11, %v126_v10  ;;  %v10265_v23 = vpack.c.bf16 %v133_v21, %v131_v12  ;;  %15438 = vst [vmem:[#allocation6_spill] sm:$0xff] %v10305_v62  ;;  %v140_v10 = vld [vmem:[%s14977_s1 + $0x330] sm:$0xff]  ;;  %v143_v11 = vld [vmem:[%s14977_s1 + $0x348] sm:$0xff]  ;;  %v145_v12 = vld [vmem:[%s14977_s1 + $0x358] sm:$0xff] }
  0x49   :  { %6264 = vmatpush1.bf16.msra.mxu0 %v10161_v15  ;;  %6552 = vmatpush1.bf16.msra.mxu1 %v10161_v15  ;;  %v10321_v21 = vpack.c.bf16 %v140_v10, %v138_v2  ;;  %v10325_v28 = vpack.c.bf16 %v145_v12, %v143_v11  ;;  %15441 = vst [vmem:[#allocation9_spill] sm:$0xff] %v10341_v49  ;;  %15442 = vst [vmem:[#allocation10_spill] sm:$0xff] %v10345_v54  ;;  %v148_v2 = vld [vmem:[%s14977_s1 + $0x370] sm:$0xff]  ;;  %v151_v10 = vld [vmem:[%s14977_s1 + $0x388] sm:$0xff] }
  0x4a   :  { %6266 = vmatprep.subr.bf16.mxu0 %v10165_v18  ;;  %6554 = vmatprep.subr.bf16.mxu1 %v10165_v18  ;;  %15434 = vst [vmem:[#allocation2_spill] sm:$0xff] %v10265_v23  ;;  %v153_v11 = vld [vmem:[%s14977_s1 + $0x398] sm:$0xff]  ;;  %v10361_v12 = vpack.c.bf16 %v148_v2, %v146_v59  ;;  %v152_v39 = vld [vmem:[%s14977_s1 + $0x390] sm:$0xff]  ;;  %v155_v48 = vld [vmem:[%s14977_s1 + $0x3a8] sm:$0xff] }
  0x4b   :  { %15439 = vst [vmem:[#allocation7_spill] sm:$0xff] %v10321_v21  ;;  %15440 = vst [vmem:[#allocation8_spill] sm:$0xff] %v10325_v28  ;;  %v10365_v33 = vpack.c.bf16 %v153_v11, %v151_v10  ;;  %v157_v59 = vld [vmem:[%s14977_s1 + $0x3b8] sm:$0xff]  ;;  %v10381_v2 = vpack.c.bf16 %v152_v39, %v150_v36  ;;  %v154_v11 = vld [vmem:[%s14977_s1 + $0x3a0] sm:$0xff] }
  0x4c   :  { %15443 = vst [vmem:[#allocation11_spill] sm:$0xff] %v10361_v12  ;;  %v10385_v10 = vpack.c.bf16 %v157_v59, %v155_v48  ;;  %v161_v36 = vld [vmem:[%s14977_s1 + $0x3d8] sm:$0xff]  ;;  %v158_v59 = vld [vmem:[%s14977_s1 + $0x3c0] sm:$0xff] }
  0x4d   :  { %6268 = vmatpush1.bf16.msra.mxu0 %v10181_v29  ;;  %6556 = vmatpush1.bf16.msra.mxu1 %v10181_v29  ;;  %15444 = vst [vmem:[#allocation12_spill] sm:$0xff] %v10365_v33  ;;  %15445 = vst [vmem:[#allocation13_spill] sm:$0xff] %v10381_v2 }
  0x4e   :  { %6270 = vmatprep.subr.bf16.mxu0 %v10185_v30  ;;  %6558 = vmatprep.subr.bf16.mxu1 %v10185_v30  ;;  %15446 = vst [vmem:[#allocation14_spill] sm:$0xff] %v10385_v10 }
  0x51   :  { %6272 = vmatpush1.bf16.msra.mxu0 %v10201_v41  ;;  %6560 = vmatpush1.bf16.msra.mxu1 %v10201_v41 }
  0x52   :  { %6274 = vmatprep.subr.bf16.mxu0 %v10205_v44  ;;  %6562 = vmatprep.subr.bf16.mxu1 %v10205_v44 }
  0x55   :  { %6276 = vmatpush1.bf16.msra.mxu0 %v10221_v55  ;;  %6564 = vmatpush1.bf16.msra.mxu1 %v10221_v55 }
  0x56   :  { %6278 = vmatprep.subr.bf16.mxu0 %v10225_v56  ;;  %6566 = vmatprep.subr.bf16.mxu1 %v10225_v56 }
  0x59   :  { %6280 = vmatpush1.bf16.msra.mxu0 %v10241_v4  ;;  %6568 = vmatpush1.bf16.msra.mxu1 %v10241_v4 }
  0x5a   :  { %6282 = vmatprep.subr.bf16.mxu0 %v10245_v5  ;;  %6570 = vmatprep.subr.bf16.mxu1 %v10245_v5 }
  0x5d   :  { %6284 = vmatpush1.bf16.msra.mxu0 %v10261_v22  ;;  %6572 = vmatpush1.bf16.msra.mxu1 %v10261_v22 }
  0x5e   :  { %6286 = vmatprep.subr.bf16.mxu0 %v10265_v23  ;;  %6574 = vmatprep.subr.bf16.mxu1 %v10265_v23 }
  0x61   :  { %6288 = vmatpush1.bf16.msra.mxu0 %v10281_v40  ;;  %6576 = vmatpush1.bf16.msra.mxu1 %v10281_v40 }
  0x62   :  { %6290 = vmatprep.subr.bf16.mxu0 %v10285_v47  ;;  %6578 = vmatprep.subr.bf16.mxu1 %v10285_v47 }
  0x65   :  { %6292 = vmatpush1.bf16.msra.mxu0 %v10301_v60  ;;  %6580 = vmatpush1.bf16.msra.mxu1 %v10301_v60 }
  0x66   :  { %6294 = vmatprep.subr.bf16.mxu0 %v10305_v62  ;;  %6582 = vmatprep.subr.bf16.mxu1 %v10305_v62 }
  0x69   :  { %6296 = vmatpush1.bf16.msra.mxu0 %v10321_v21  ;;  %6584 = vmatpush1.bf16.msra.mxu1 %v10321_v21 }
  0x6a   :  { %6298 = vmatprep.subr.bf16.mxu0 %v10325_v28  ;;  %6586 = vmatprep.subr.bf16.mxu1 %v10325_v28  ;;  %v176_v28 = vld [vmem:[%s14977_s1 + $0x450] sm:$0xff] }
  0x6d   :  { %6300 = vmatpush1.bf16.msra.mxu0 %v10341_v49  ;;  %6588 = vmatpush1.bf16.msra.mxu1 %v10341_v49  ;;  %v172_v49 = vld [vmem:[%s14977_s1 + $0x430] sm:$0xff] }
  0x6e   :  { %6302 = vmatprep.subr.bf16.mxu0 %v10345_v54  ;;  %6590 = vmatprep.subr.bf16.mxu1 %v10345_v54  ;;  %v156_v54 = vld [vmem:[%s14977_s1 + $0x3b0] sm:$0xff] }
  0x6f   :  { %v10401_v39 = vpack.c.bf16 %v156_v54, %v154_v11  ;;  %v165_v54 = vld [vmem:[%s14977_s1 + $0x3f8] sm:$0xff] }
  0x71   :  { %6304 = vmatpush1.bf16.msra.mxu0 %v10361_v12  ;;  %6592 = vmatpush1.bf16.msra.mxu1 %v10361_v12  ;;  %v159_v12 = vld [vmem:[%s14977_s1 + $0x3c8] sm:$0xff]  ;;  %15447 = vst [vmem:[#allocation15_spill] sm:$0xff] %v10401_v39 }
  0x72   :  { %6306 = vmatprep.subr.bf16.mxu0 %v10365_v33  ;;  %6594 = vmatprep.subr.bf16.mxu1 %v10365_v33  ;;  %v10405_v48 = vpack.c.bf16 %v161_v36, %v159_v12  ;;  %v160_v33 = vld [vmem:[%s14977_s1 + $0x3d0] sm:$0xff]  ;;  %v162_v36 = vld [vmem:[%s14977_s1 + $0x3e0] sm:$0xff] }
  0x73   :  { %v10421_v12 = vpack.c.bf16 %v160_v33, %v158_v59  ;;  %v169_v33 = vld [vmem:[%s14977_s1 + $0x418] sm:$0xff] }
  0x74   :  { %15448 = vst [vmem:[#allocation16_spill] sm:$0xff] %v10405_v48 }
  0x75   :  { %6308 = vmatpush1.bf16.msra.mxu0 %v10381_v2  ;;  %6596 = vmatpush1.bf16.msra.mxu1 %v10381_v2  ;;  %v163_v2 = vld [vmem:[%s14977_s1 + $0x3e8] sm:$0xff]  ;;  %15449 = vst [vmem:[#allocation17_spill] sm:$0xff] %v10421_v12 }
  0x76   :  { %6310 = vmatprep.subr.bf16.mxu0 %v10385_v10  ;;  %6598 = vmatprep.subr.bf16.mxu1 %v10385_v10  ;;  %v10425_v11 = vpack.c.bf16 %v165_v54, %v163_v2  ;;  %v164_v10 = vld [vmem:[%s14977_s1 + $0x3f0] sm:$0xff]  ;;  %v166_v54 = vld [vmem:[%s14977_s1 + $0x400] sm:$0xff] }
  0x77   :  { %v10441_v2 = vpack.c.bf16 %v164_v10, %v162_v36  ;;  %v173_v10 = vld [vmem:[%s14977_s1 + $0x438] sm:$0xff] }
  0x78   :  { %15450 = vst [vmem:[#allocation18_spill] sm:$0xff] %v10425_v11 }
  0x79   :  { %6312 = vmatpush1.bf16.msra.mxu0 %v10401_v39  ;;  %6600 = vmatpush1.bf16.msra.mxu1 %v10401_v39  ;;  %v167_v39 = vld [vmem:[%s14977_s1 + $0x408] sm:$0xff]  ;;  %15451 = vst [vmem:[#allocation19_spill] sm:$0xff] %v10441_v2 }
  0x7a   :  { %6314 = vmatprep.subr.bf16.mxu0 %v10405_v48  ;;  %6602 = vmatprep.subr.bf16.mxu1 %v10405_v48  ;;  %v10445_v59 = vpack.c.bf16 %v169_v33, %v167_v39  ;;  %v168_v48 = vld [vmem:[%s14977_s1 + $0x410] sm:$0xff]  ;;  %v5629_v33 = vld [vmem:[%s14978_s0 + $0x58] sm:$0xff] }
  0x7b   :  { %v329_v39 = vld [vmem:[%s14978_s0 + $0x10] sm:$0xff]  ;;  %v10464_v36 = vpack.c.bf16 %v168_v48, %v166_v54  ;;  %v175_v48 = vld [vmem:[%s14977_s1 + $0x448] sm:$0xff]  ;;  %v177_v54 = vld [vmem:[%s14977_s1 + $0x458] sm:$0xff] }
  0x7c   :  { %15452 = vst [vmem:[#allocation20_spill] sm:$0xff] %v10445_v59 }
  0x7d   :  { %6316 = vmatpush1.bf16.msra.mxu0 %v10421_v12  ;;  %6604 = vmatpush1.bf16.msra.mxu1 %v10421_v12  ;;  %v171_v12 = vld [vmem:[%s14977_s1 + $0x428] sm:$0xff]  ;;  %15453 = vst [vmem:[#allocation21_spill] sm:$0xff] %v10464_v36 }
  0x7e   :  { %6318 = vmatprep.subr.bf16.mxu0 %v10425_v11  ;;  %6606 = vmatprep.subr.bf16.mxu1 %v10425_v11  ;;  %v10471_v11 = vpack.c.bf16 %v173_v10, %v171_v12  ;;  %v332_v12 = vld [vmem:[%s14978_s0 + $0x28] sm:$0xff]  ;;  %v5632_v10 = vld [vmem:[%s14978_s0 + $0x70] sm:$0xff] }
  0x80   :  { %15454 = vst [vmem:[#allocation22_spill] sm:$0xff] %v10471_v11 }
  0x81   :  { %6320 = vmatpush1.bf16.msra.mxu0 %v10441_v2  ;;  %6608 = vmatpush1.bf16.msra.mxu1 %v10441_v2  ;;  %v170_v2 = vld [vmem:[%s14977_s1 + $0x420] sm:$0xff] }
  0x82   :  { %6322 = vmatprep.subr.bf16.mxu0 %v10445_v59  ;;  %6610 = vmatprep.subr.bf16.mxu1 %v10445_v59  ;;  %v10493_v59 = vpack.c.bf16 %v172_v49, %v170_v2  ;;  %v181_v49 = vld [vmem:[%s14977_s1 + $0x478] sm:$0xff] }
  0x84   :  { %483 = vmatmul.mubr.f32.vlgmr.msra.gmra.mrb[0].mxu0 %v329_v39  ;;  %850 = vmatmul.mubr.f32.vlgmr.msra.gmra.mrb[0].mxu1 %v5629_v33  ;;  %15455 = vst [vmem:[#allocation23_spill] sm:$0xff] %v10493_v59  ;;  %v10497_v39 = vpack.c.bf16 %v177_v54, %v175_v48  ;;  %v174_v33 = vld [vmem:[%s14977_s1 + $0x440] sm:$0xff] }
  0x85   :  { %6324 = vmatpush1.bf16.msra.mxu0 %v10464_v36  ;;  %6612 = vmatpush1.bf16.msra.mxu1 %v10464_v36  ;;  %v179_v36 = vld [vmem:[%s14977_s1 + $0x468] sm:$0xff]  ;;  %v10513_v2 = vpack.c.bf16 %v176_v28, %v174_v33  ;;  %v178_v54 = vld [vmem:[%s14977_s1 + $0x460] sm:$0xff]  ;;  %v185_v28 = vld [vmem:[%s14977_s1 + $0x498] sm:$0xff] }
  0x86   :  { %6326 = vmatprep.subr.bf16.mxu0 %v10471_v11  ;;  %6614 = vmatprep.subr.bf16.mxu1 %v10471_v11  ;;  %15456 = vst [vmem:[#allocation24_spill] sm:$0xff] %v10497_v39  ;;  %v10517_v48 = vpack.c.bf16 %v181_v49, %v179_v36  ;;  %v182_v49 = vld [vmem:[%s14977_s1 + $0x480] sm:$0xff]  ;;  %v240_v11 = vld [vmem:[%s14977_s1 + $0x650] sm:$0xff] }
  0x87   :  { %553 = vmatprep.mubr.f32.mxu0 %v332_v12  ;;  %920 = vmatprep.mubr.f32.mxu1 %v5632_v10  ;;  %15457 = vst [vmem:[#allocation25_spill] sm:$0xff] %v10513_v2  ;;  %v180_v12 = vld [vmem:[%s14977_s1 + $0x470] sm:$0xff]  ;;  %v183_v10 = vld [vmem:[%s14977_s1 + $0x488] sm:$0xff] }
  0x88   :  { %15458 = vst [vmem:[#allocation26_spill] sm:$0xff] %v10517_v48  ;;  %v10533_v36 = vpack.c.bf16 %v180_v12, %v178_v54  ;;  %v10537_v33 = vpack.c.bf16 %v185_v28, %v183_v10  ;;  %v189_v54 = vld [vmem:[%s14977_s1 + $0x4b8] sm:$0xff]  ;;  %v186_v28 = vld [vmem:[%s14977_s1 + $0x4a0] sm:$0xff] }
  0x89   :  { %6328 = vmatpush1.bf16.msra.mxu0 %v10493_v59  ;;  %6616 = vmatpush1.bf16.msra.mxu1 %v10493_v59  ;;  %v236_v59 = vld [vmem:[%s14977_s1 + $0x630] sm:$0xff] }
  0x8a   :  { %6330 = vmatprep.subr.bf16.mxu0 %v10497_v39  ;;  %6618 = vmatprep.subr.bf16.mxu1 %v10497_v39  ;;  %15459 = vst [vmem:[#allocation27_spill] sm:$0xff] %v10533_v36  ;;  %15460 = vst [vmem:[#allocation28_spill] sm:$0xff] %v10537_v33  ;;  %v184_v39 = vld [vmem:[%s14977_s1 + $0x490] sm:$0xff] }
  0x8b   :  { %v10553_v12 = vpack.c.bf16 %v184_v39, %v182_v49  ;;  %v193_v39 = vld [vmem:[%s14977_s1 + $0x4d8] sm:$0xff] }
  0x8d   :  { %6332 = vmatpush1.bf16.msra.mxu0 %v10513_v2  ;;  %6620 = vmatpush1.bf16.msra.mxu1 %v10513_v2  ;;  %v187_v2 = vld [vmem:[%s14977_s1 + $0x4a8] sm:$0xff]  ;;  %15461 = vst [vmem:[#allocation29_spill] sm:$0xff] %v10553_v12 }
  0x8e   :  { %6334 = vmatprep.subr.bf16.mxu0 %v10517_v48  ;;  %6622 = vmatprep.subr.bf16.mxu1 %v10517_v48  ;;  %v10557_v10 = vpack.c.bf16 %v189_v54, %v187_v2  ;;  %v188_v48 = vld [vmem:[%s14977_s1 + $0x4b0] sm:$0xff]  ;;  %v190_v54 = vld [vmem:[%s14977_s1 + $0x4c0] sm:$0xff] }
  0x8f   :  { %v10573_v2 = vpack.c.bf16 %v188_v48, %v186_v28  ;;  %v197_v48 = vld [vmem:[%s14977_s1 + $0x4f8] sm:$0xff] }
  0x90   :  { %15462 = vst [vmem:[#allocation30_spill] sm:$0xff] %v10557_v10 }
  0x91   :  { %6336 = vmatpush1.bf16.msra.mxu0 %v10533_v36  ;;  %6624 = vmatpush1.bf16.msra.mxu1 %v10533_v36  ;;  %v191_v36 = vld [vmem:[%s14977_s1 + $0x4c8] sm:$0xff]  ;;  %15463 = vst [vmem:[#allocation31_spill] sm:$0xff] %v10573_v2 }
  0x92   :  { %6338 = vmatprep.subr.bf16.mxu0 %v10537_v33  ;;  %6626 = vmatprep.subr.bf16.mxu1 %v10537_v33  ;;  %v10577_v49 = vpack.c.bf16 %v193_v39, %v191_v36  ;;  %v192_v33 = vld [vmem:[%s14977_s1 + $0x4d0] sm:$0xff]  ;;  %v194_v39 = vld [vmem:[%s14977_s1 + $0x4e0] sm:$0xff] }
  0x93   :  { %v10593_v36 = vpack.c.bf16 %v192_v33, %v190_v54  ;;  %v201_v33 = vld [vmem:[%s14977_s1 + $0x518] sm:$0xff] }
  0x94   :  { %15464 = vst [vmem:[#allocation32_spill] sm:$0xff] %v10577_v49 }
  0x95   :  { %6340 = vmatpush1.bf16.msra.mxu0 %v10553_v12  ;;  %6628 = vmatpush1.bf16.msra.mxu1 %v10553_v12  ;;  %v195_v12 = vld [vmem:[%s14977_s1 + $0x4e8] sm:$0xff]  ;;  %15465 = vst [vmem:[#allocation33_spill] sm:$0xff] %v10593_v36 }
  0x96   :  { %6342 = vmatprep.subr.bf16.mxu0 %v10557_v10  ;;  %6630 = vmatprep.subr.bf16.mxu1 %v10557_v10  ;;  %v10597_v28 = vpack.c.bf16 %v197_v48, %v195_v12  ;;  %v196_v10 = vld [vmem:[%s14977_s1 + $0x4f0] sm:$0xff]  ;;  %v198_v48 = vld [vmem:[%s14977_s1 + $0x500] sm:$0xff] }
  0x97   :  { %v10613_v12 = vpack.c.bf16 %v196_v10, %v194_v39  ;;  %v205_v10 = vld [vmem:[%s14977_s1 + $0x538] sm:$0xff] }
  0x98   :  { %15466 = vst [vmem:[#allocation34_spill] sm:$0xff] %v10597_v28 }
  0x99   :  { %6344 = vmatpush1.bf16.msra.mxu0 %v10573_v2  ;;  %6632 = vmatpush1.bf16.msra.mxu1 %v10573_v2  ;;  %v199_v2 = vld [vmem:[%s14977_s1 + $0x508] sm:$0xff]  ;;  %15467 = vst [vmem:[#allocation35_spill] sm:$0xff] %v10613_v12 }
  0x9a   :  { %6346 = vmatprep.subr.bf16.mxu0 %v10577_v49  ;;  %6634 = vmatprep.subr.bf16.mxu1 %v10577_v49  ;;  %v10617_v54 = vpack.c.bf16 %v201_v33, %v199_v2  ;;  %v200_v49 = vld [vmem:[%s14977_s1 + $0x510] sm:$0xff]  ;;  %v202_v33 = vld [vmem:[%s14977_s1 + $0x520] sm:$0xff] }
  0x9b   :  { %v10633_v2 = vpack.c.bf16 %v200_v49, %v198_v48  ;;  %v209_v49 = vld [vmem:[%s14977_s1 + $0x558] sm:$0xff] }
  0x9c   :  { %15468 = vst [vmem:[#allocation36_spill] sm:$0xff] %v10617_v54 }
  0x9d   :  { %6348 = vmatpush1.bf16.msra.mxu0 %v10593_v36  ;;  %6636 = vmatpush1.bf16.msra.mxu1 %v10593_v36  ;;  %v203_v36 = vld [vmem:[%s14977_s1 + $0x528] sm:$0xff]  ;;  %15469 = vst [vmem:[#allocation37_spill] sm:$0xff] %v10633_v2 }
  0x9e   :  { %6350 = vmatprep.subr.bf16.mxu0 %v10597_v28  ;;  %6638 = vmatprep.subr.bf16.mxu1 %v10597_v28  ;;  %v10637_v39 = vpack.c.bf16 %v205_v10, %v203_v36  ;;  %v204_v28 = vld [vmem:[%s14977_s1 + $0x530] sm:$0xff]  ;;  %v206_v10 = vld [vmem:[%s14977_s1 + $0x540] sm:$0xff] }
  0x9f   :  { %v10653_v36 = vpack.c.bf16 %v204_v28, %v202_v33  ;;  %v213_v28 = vld [vmem:[%s14977_s1 + $0x578] sm:$0xff] }
  0xa0   :  { %15470 = vst [vmem:[#allocation38_spill] sm:$0xff] %v10637_v39 }
  0xa1   :  { %6352 = vmatpush1.bf16.msra.mxu0 %v10613_v12  ;;  %6640 = vmatpush1.bf16.msra.mxu1 %v10613_v12  ;;  %v207_v12 = vld [vmem:[%s14977_s1 + $0x548] sm:$0xff]  ;;  %15471 = vst [vmem:[#allocation39_spill] sm:$0xff] %v10653_v36 }
  0xa2   :  { %6354 = vmatprep.subr.bf16.mxu0 %v10617_v54  ;;  %6642 = vmatprep.subr.bf16.mxu1 %v10617_v54  ;;  %v10657_v48 = vpack.c.bf16 %v209_v49, %v207_v12  ;;  %v208_v54 = vld [vmem:[%s14977_s1 + $0x550] sm:$0xff]  ;;  %v210_v49 = vld [vmem:[%s14977_s1 + $0x560] sm:$0xff] }
  0xa3   :  { %v10673_v12 = vpack.c.bf16 %v208_v54, %v206_v10  ;;  %v217_v54 = vld [vmem:[%s14977_s1 + $0x598] sm:$0xff] }
  0xa4   :  { %15472 = vst [vmem:[#allocation40_spill] sm:$0xff] %v10657_v48 }
  0xa5   :  { %6356 = vmatpush1.bf16.msra.mxu0 %v10633_v2  ;;  %6644 = vmatpush1.bf16.msra.mxu1 %v10633_v2  ;;  %v211_v2 = vld [vmem:[%s14977_s1 + $0x568] sm:$0xff]  ;;  %15473 = vst [vmem:[#allocation41_spill] sm:$0xff] %v10673_v12 }
  0xa6   :  { %6358 = vmatprep.subr.bf16.mxu0 %v10637_v39  ;;  %6646 = vmatprep.subr.bf16.mxu1 %v10637_v39  ;;  %v10677_v33 = vpack.c.bf16 %v213_v28, %v211_v2  ;;  %v212_v39 = vld [vmem:[%s14977_s1 + $0x570] sm:$0xff]  ;;  %v214_v28 = vld [vmem:[%s14977_s1 + $0x580] sm:$0xff] }
  0xa7   :  { %v10693_v2 = vpack.c.bf16 %v212_v39, %v210_v49  ;;  %v221_v39 = vld [vmem:[%s14977_s1 + $0x5b8] sm:$0xff] }
  0xa8   :  { %15474 = vst [vmem:[#allocation42_spill] sm:$0xff] %v10677_v33 }
  0xa9   :  { %6360 = vmatpush1.bf16.msra.mxu0 %v10653_v36  ;;  %6648 = vmatpush1.bf16.msra.mxu1 %v10653_v36  ;;  %v215_v36 = vld [vmem:[%s14977_s1 + $0x588] sm:$0xff]  ;;  %15475 = vst [vmem:[#allocation43_spill] sm:$0xff] %v10693_v2 }
  0xaa   :  { %6362 = vmatprep.subr.bf16.mxu0 %v10657_v48  ;;  %6650 = vmatprep.subr.bf16.mxu1 %v10657_v48  ;;  %v10697_v10 = vpack.c.bf16 %v217_v54, %v215_v36  ;;  %v216_v48 = vld [vmem:[%s14977_s1 + $0x590] sm:$0xff]  ;;  %v218_v54 = vld [vmem:[%s14977_s1 + $0x5a0] sm:$0xff] }
  0xab   :  { %v10713_v36 = vpack.c.bf16 %v216_v48, %v214_v28  ;;  %v225_v48 = vld [vmem:[%s14977_s1 + $0x5d8] sm:$0xff] }
  0xac   :  { %15476 = vst [vmem:[#allocation44_spill] sm:$0xff] %v10697_v10 }
  0xad   :  { %6364 = vmatpush1.bf16.msra.mxu0 %v10673_v12  ;;  %6652 = vmatpush1.bf16.msra.mxu1 %v10673_v12  ;;  %v219_v12 = vld [vmem:[%s14977_s1 + $0x5a8] sm:$0xff]  ;;  %15477 = vst [vmem:[#allocation45_spill] sm:$0xff] %v10713_v36 }
  0xae   :  { %6366 = vmatprep.subr.bf16.mxu0 %v10677_v33  ;;  %6654 = vmatprep.subr.bf16.mxu1 %v10677_v33  ;;  %v10717_v49 = vpack.c.bf16 %v221_v39, %v219_v12  ;;  %v220_v33 = vld [vmem:[%s14977_s1 + $0x5b0] sm:$0xff]  ;;  %v222_v39 = vld [vmem:[%s14977_s1 + $0x5c0] sm:$0xff] }
  0xaf   :  { %v10733_v12 = vpack.c.bf16 %v220_v33, %v218_v54  ;;  %v229_v33 = vld [vmem:[%s14977_s1 + $0x5f8] sm:$0xff] }
  0xb0   :  { %15478 = vst [vmem:[#allocation46_spill] sm:$0xff] %v10717_v49 }
  0xb1   :  { %6368 = vmatpush1.bf16.msra.mxu0 %v10693_v2  ;;  %6656 = vmatpush1.bf16.msra.mxu1 %v10693_v2  ;;  %v223_v2 = vld [vmem:[%s14977_s1 + $0x5c8] sm:$0xff]  ;;  %15479 = vst [vmem:[#allocation47_spill] sm:$0xff] %v10733_v12 }
  0xb2   :  { %6370 = vmatprep.subr.bf16.mxu0 %v10697_v10  ;;  %6658 = vmatprep.subr.bf16.mxu1 %v10697_v10  ;;  %v10737_v28 = vpack.c.bf16 %v225_v48, %v223_v2  ;;  %v224_v10 = vld [vmem:[%s14977_s1 + $0x5d0] sm:$0xff]  ;;  %v226_v48 = vld [vmem:[%s14977_s1 + $0x5e0] sm:$0xff] }
  0xb3   :  { %v10753_v2 = vpack.c.bf16 %v224_v10, %v222_v39  ;;  %v233_v10 = vld [vmem:[%s14977_s1 + $0x618] sm:$0xff] }
  0xb4   :  { %15480 = vst [vmem:[#allocation48_spill] sm:$0xff] %v10737_v28 }
  0xb5   :  { %6372 = vmatpush1.bf16.msra.mxu0 %v10713_v36  ;;  %6660 = vmatpush1.bf16.msra.mxu1 %v10713_v36  ;;  %v227_v36 = vld [vmem:[%s14977_s1 + $0x5e8] sm:$0xff]  ;;  %15481 = vst [vmem:[#allocation49_spill] sm:$0xff] %v10753_v2 }
  0xb6   :  { %6374 = vmatprep.subr.bf16.mxu0 %v10717_v49  ;;  %6662 = vmatprep.subr.bf16.mxu1 %v10717_v49  ;;  %v10757_v54 = vpack.c.bf16 %v229_v33, %v227_v36  ;;  %v228_v49 = vld [vmem:[%s14977_s1 + $0x5f0] sm:$0xff]  ;;  %v230_v33 = vld [vmem:[%s14977_s1 + $0x600] sm:$0xff] }
  0xb7   :  { %v10773_v36 = vpack.c.bf16 %v228_v49, %v226_v48  ;;  %v237_v49 = vld [vmem:[%s14977_s1 + $0x638] sm:$0xff] }
  0xb8   :  { %15482 = vst [vmem:[#allocation50_spill] sm:$0xff] %v10757_v54 }
  0xb9   :  { %6376 = vmatpush1.bf16.msra.mxu0 %v10733_v12  ;;  %6664 = vmatpush1.bf16.msra.mxu1 %v10733_v12  ;;  %v231_v12 = vld [vmem:[%s14977_s1 + $0x608] sm:$0xff]  ;;  %15483 = vst [vmem:[#allocation51_spill] sm:$0xff] %v10773_v36 }
  0xba   :  { %6378 = vmatprep.subr.bf16.mxu0 %v10737_v28  ;;  %6666 = vmatprep.subr.bf16.mxu1 %v10737_v28  ;;  %v10777_v39 = vpack.c.bf16 %v233_v10, %v231_v12  ;;  %v232_v28 = vld [vmem:[%s14977_s1 + $0x610] sm:$0xff]  ;;  %v331_v12 = vld [vmem:[%s14978_s0 + $0x20] sm:$0xff]  ;;  %v5631_v10 = vld [vmem:[%s14978_s0 + $0x68] sm:$0xff] }
  0xbb   :  { %v10796_v48 = vpack.c.bf16 %v232_v28, %v230_v33  ;;  %v239_v28 = vld [vmem:[%s14977_s1 + $0x648] sm:$0xff]  ;;  %v241_v33 = vld [vmem:[%s14977_s1 + $0x658] sm:$0xff] }
  0xbc   :  { %15484 = vst [vmem:[#allocation52_spill] sm:$0xff] %v10777_v39 }
  0xbd   :  { %6380 = vmatpush1.bf16.msra.mxu0 %v10753_v2  ;;  %6668 = vmatpush1.bf16.msra.mxu1 %v10753_v2  ;;  %v235_v2 = vld [vmem:[%s14977_s1 + $0x628] sm:$0xff]  ;;  %15485 = vst [vmem:[#allocation53_spill] sm:$0xff] %v10796_v48 }
  0xbe   :  { %6382 = vmatprep.subr.bf16.mxu0 %v10757_v54  ;;  %6670 = vmatprep.subr.bf16.mxu1 %v10757_v54  ;;  %v10803_v54 = vpack.c.bf16 %v237_v49, %v235_v2  ;;  %v334_v2 = vld [vmem:[%s14978_s0 + $0x38] sm:$0xff]  ;;  %v5634_v49 = vld [vmem:[%s14978_s0 + $0x80] sm:$0xff] }
  0xc0   :  { %15486 = vst [vmem:[#allocation54_spill] sm:$0xff] %v10803_v54 }
  0xc1   :  { %6384 = vmatpush1.bf16.msra.mxu0 %v10773_v36  ;;  %6672 = vmatpush1.bf16.msra.mxu1 %v10773_v36  ;;  %v234_v36 = vld [vmem:[%s14977_s1 + $0x620] sm:$0xff] }
  0xc2   :  { %6386 = vmatprep.subr.bf16.mxu0 %v10777_v39  ;;  %6674 = vmatprep.subr.bf16.mxu1 %v10777_v39  ;;  %v10825_v39 = vpack.c.bf16 %v236_v59, %v234_v36  ;;  %v245_v59 = vld [vmem:[%s14977_s1 + $0x678] sm:$0xff] }
  0xc4   :  { %554 = vmatmul.mubr.f32.vlgmr.msra.gmra.mrb[0].mxu0 %v331_v12  ;;  %921 = vmatmul.mubr.f32.vlgmr.msra.gmra.mrb[0].mxu1 %v5631_v10  ;;  %15487 = vst [vmem:[#allocation55_spill] sm:$0xff] %v10825_v39  ;;  %v10829_v12 = vpack.c.bf16 %v241_v33, %v239_v28  ;;  %v238_v10 = vld [vmem:[%s14977_s1 + $0x640] sm:$0xff] }
  0xc5   :  { %6388 = vmatpush1.bf16.msra.mxu0 %v10796_v48  ;;  %6676 = vmatpush1.bf16.msra.mxu1 %v10796_v48  ;;  %v243_v48 = vld [vmem:[%s14977_s1 + $0x668] sm:$0xff]  ;;  %v10845_v36 = vpack.c.bf16 %v240_v11, %v238_v10  ;;  %v242_v33 = vld [vmem:[%s14977_s1 + $0x660] sm:$0xff]  ;;  %v249_v11 = vld [vmem:[%s14977_s1 + $0x698] sm:$0xff] }
  0xc6   :  { %6390 = vmatprep.subr.bf16.mxu0 %v10803_v54  ;;  %6678 = vmatprep.subr.bf16.mxu1 %v10803_v54  ;;  %15488 = vst [vmem:[#allocation56_spill] sm:$0xff] %v10829_v12  ;;  %v10849_v28 = vpack.c.bf16 %v245_v59, %v243_v48  ;;  %v246_v59 = vld [vmem:[%s14977_s1 + $0x680] sm:$0xff] }
  0xc7   :  { %624 = vmatprep.mubr.f32.mxu0 %v334_v2  ;;  %991 = vmatprep.mubr.f32.mxu1 %v5634_v49  ;;  %15489 = vst [vmem:[#allocation57_spill] sm:$0xff] %v10845_v36  ;;  %v244_v2 = vld [vmem:[%s14977_s1 + $0x670] sm:$0xff]  ;;  %v247_v49 = vld [vmem:[%s14977_s1 + $0x688] sm:$0xff] }
  0xc8   :  { %15490 = vst [vmem:[#allocation58_spill] sm:$0xff] %v10849_v28  ;;  %v10865_v48 = vpack.c.bf16 %v244_v2, %v242_v33  ;;  %v10869_v10 = vpack.c.bf16 %v249_v11, %v247_v49  ;;  %v253_v33 = vld [vmem:[%s14977_s1 + $0x6b8] sm:$0xff]  ;;  %v250_v11 = vld [vmem:[%s14977_s1 + $0x6a0] sm:$0xff] }
  0xc9   :  { %6392 = vmatpush1.bf16.msra.mxu0 %v10825_v39  ;;  %6680 = vmatpush1.bf16.msra.mxu1 %v10825_v39  ;;  %v300_v39 = vld [vmem:[%s14977_s1 + $0x830] sm:$0xff] }
  0xca   :  { %6394 = vmatprep.subr.bf16.mxu0 %v10829_v12  ;;  %6682 = vmatprep.subr.bf16.mxu1 %v10829_v12  ;;  %15491 = vst [vmem:[#allocation59_spill] sm:$0xff] %v10865_v48  ;;  %15492 = vst [vmem:[#allocation60_spill] sm:$0xff] %v10869_v10  ;;  %v248_v12 = vld [vmem:[%s14977_s1 + $0x690] sm:$0xff] }
  0xcb   :  { %v10885_v2 = vpack.c.bf16 %v248_v12, %v246_v59  ;;  %v257_v12 = vld [vmem:[%s14977_s1 + $0x6d8] sm:$0xff] }
  0xcd   :  { %6396 = vmatpush1.bf16.msra.mxu0 %v10845_v36  ;;  %6684 = vmatpush1.bf16.msra.mxu1 %v10845_v36  ;;  %v251_v36 = vld [vmem:[%s14977_s1 + $0x6a8] sm:$0xff]  ;;  %15493 = vst [vmem:[#allocation61_spill] sm:$0xff] %v10885_v2 }
  0xce   :  { %6398 = vmatprep.subr.bf16.mxu0 %v10849_v28  ;;  %6686 = vmatprep.subr.bf16.mxu1 %v10849_v28  ;;  %v10889_v49 = vpack.c.bf16 %v253_v33, %v251_v36  ;;  %v252_v28 = vld [vmem:[%s14977_s1 + $0x6b0] sm:$0xff]  ;;  %v254_v33 = vld [vmem:[%s14977_s1 + $0x6c0] sm:$0xff] }
  0xcf   :  { %v10905_v36 = vpack.c.bf16 %v252_v28, %v250_v11  ;;  %v261_v28 = vld [vmem:[%s14977_s1 + $0x6f8] sm:$0xff] }
  0xd0   :  { %15494 = vst [vmem:[#allocation62_spill] sm:$0xff] %v10889_v49 }
  0xd1   :  { %6400 = vmatpush1.bf16.msra.mxu0 %v10865_v48  ;;  %6688 = vmatpush1.bf16.msra.mxu1 %v10865_v48  ;;  %v255_v48 = vld [vmem:[%s14977_s1 + $0x6c8] sm:$0xff]  ;;  %15495 = vst [vmem:[#allocation63_spill] sm:$0xff] %v10905_v36 }
  0xd2   :  { %6402 = vmatprep.subr.bf16.mxu0 %v10869_v10  ;;  %6690 = vmatprep.subr.bf16.mxu1 %v10869_v10  ;;  %v10909_v59 = vpack.c.bf16 %v257_v12, %v255_v48  ;;  %v256_v10 = vld [vmem:[%s14977_s1 + $0x6d0] sm:$0xff]  ;;  %v258_v12 = vld [vmem:[%s14977_s1 + $0x6e0] sm:$0xff] }
  0xd3   :  { %v10925_v48 = vpack.c.bf16 %v256_v10, %v254_v33  ;;  %v265_v10 = vld [vmem:[%s14977_s1 + $0x718] sm:$0xff] }
  0xd4   :  { %15496 = vst [vmem:[#allocation64_spill] sm:$0xff] %v10909_v59 }
  0xd5   :  { %6404 = vmatpush1.bf16.msra.mxu0 %v10885_v2  ;;  %6692 = vmatpush1.bf16.msra.mxu1 %v10885_v2  ;;  %v259_v2 = vld [vmem:[%s14977_s1 + $0x6e8] sm:$0xff]  ;;  %15497 = vst [vmem:[#allocation65_spill] sm:$0xff] %v10925_v48 }
  0xd6   :  { %6406 = vmatprep.subr.bf16.mxu0 %v10889_v49  ;;  %6694 = vmatprep.subr.bf16.mxu1 %v10889_v49  ;;  %v10929_v11 = vpack.c.bf16 %v261_v28, %v259_v2  ;;  %v260_v49 = vld [vmem:[%s14977_s1 + $0x6f0] sm:$0xff]  ;;  %v262_v28 = vld [vmem:[%s14977_s1 + $0x700] sm:$0xff] }
  0xd7   :  { %v10945_v2 = vpack.c.bf16 %v260_v49, %v258_v12  ;;  %v269_v49 = vld [vmem:[%s14977_s1 + $0x738] sm:$0xff] }
  0xd8   :  { %15498 = vst [vmem:[#allocation66_spill] sm:$0xff] %v10929_v11 }
  0xd9   :  { %6408 = vmatpush1.bf16.msra.mxu0 %v10905_v36  ;;  %6696 = vmatpush1.bf16.msra.mxu1 %v10905_v36  ;;  %v263_v36 = vld [vmem:[%s14977_s1 + $0x708] sm:$0xff]  ;;  %15499 = vst [vmem:[#allocation67_spill] sm:$0xff] %v10945_v2 }
  0xda   :  { %6410 = vmatprep.subr.bf16.mxu0 %v10909_v59  ;;  %6698 = vmatprep.subr.bf16.mxu1 %v10909_v59  ;;  %v10949_v33 = vpack.c.bf16 %v265_v10, %v263_v36  ;;  %v264_v59 = vld [vmem:[%s14977_s1 + $0x710] sm:$0xff]  ;;  %v266_v10 = vld [vmem:[%s14977_s1 + $0x720] sm:$0xff] }
  0xdb   :  { %v10965_v36 = vpack.c.bf16 %v264_v59, %v262_v28  ;;  %v273_v59 = vld [vmem:[%s14977_s1 + $0x758] sm:$0xff] }
  0xdc   :  { %15500 = vst [vmem:[#allocation68_spill] sm:$0xff] %v10949_v33 }
  0xdd   :  { %6412 = vmatpush1.bf16.msra.mxu0 %v10925_v48  ;;  %6700 = vmatpush1.bf16.msra.mxu1 %v10925_v48  ;;  %v267_v48 = vld [vmem:[%s14977_s1 + $0x728] sm:$0xff]  ;;  %15501 = vst [vmem:[#allocation69_spill] sm:$0xff] %v10965_v36 }
  0xde   :  { %6414 = vmatprep.subr.bf16.mxu0 %v10929_v11  ;;  %6702 = vmatprep.subr.bf16.mxu1 %v10929_v11  ;;  %v10969_v12 = vpack.c.bf16 %v269_v49, %v267_v48  ;;  %v268_v11 = vld [vmem:[%s14977_s1 + $0x730] sm:$0xff]  ;;  %v270_v49 = vld [vmem:[%s14977_s1 + $0x740] sm:$0xff] }
  0xdf   :  { %v10985_v48 = vpack.c.bf16 %v268_v11, %v266_v10  ;;  %v277_v11 = vld [vmem:[%s14977_s1 + $0x778] sm:$0xff] }
  0xe0   :  { %15502 = vst [vmem:[#allocation70_spill] sm:$0xff] %v10969_v12 }
  0xe1   :  { %6416 = vmatpush1.bf16.msra.mxu0 %v10945_v2  ;;  %6704 = vmatpush1.bf16.msra.mxu1 %v10945_v2  ;;  %v271_v2 = vld [vmem:[%s14977_s1 + $0x748] sm:$0xff]  ;;  %15503 = vst [vmem:[#allocation71_spill] sm:$0xff] %v10985_v48 }
  0xe2   :  { %6418 = vmatprep.subr.bf16.mxu0 %v10949_v33  ;;  %6706 = vmatprep.subr.bf16.mxu1 %v10949_v33  ;;  %v10989_v28 = vpack.c.bf16 %v273_v59, %v271_v2  ;;  %v272_v33 = vld [vmem:[%s14977_s1 + $0x750] sm:$0xff]  ;;  %v274_v59 = vld [vmem:[%s14977_s1 + $0x760] sm:$0xff] }
  0xe3   :  { %v11005_v2 = vpack.c.bf16 %v272_v33, %v270_v49  ;;  %v281_v33 = vld [vmem:[%s14977_s1 + $0x798] sm:$0xff] }
  0xe4   :  { %15504 = vst [vmem:[#allocation72_spill] sm:$0xff] %v10989_v28 }
  0xe5   :  { %6420 = vmatpush1.bf16.msra.mxu0 %v10965_v36  ;;  %6708 = vmatpush1.bf16.msra.mxu1 %v10965_v36  ;;  %v275_v36 = vld [vmem:[%s14977_s1 + $0x768] sm:$0xff]  ;;  %15505 = vst [vmem:[#allocation73_spill] sm:$0xff] %v11005_v2 }
  0xe6   :  { %6422 = vmatprep.subr.bf16.mxu0 %v10969_v12  ;;  %6710 = vmatprep.subr.bf16.mxu1 %v10969_v12  ;;  %v11009_v10 = vpack.c.bf16 %v277_v11, %v275_v36  ;;  %v276_v12 = vld [vmem:[%s14977_s1 + $0x770] sm:$0xff]  ;;  %v278_v11 = vld [vmem:[%s14977_s1 + $0x780] sm:$0xff] }
  0xe7   :  { %v11025_v36 = vpack.c.bf16 %v276_v12, %v274_v59  ;;  %v285_v12 = vld [vmem:[%s14977_s1 + $0x7b8] sm:$0xff] }
  0xe8   :  { %15506 = vst [vmem:[#allocation74_spill] sm:$0xff] %v11009_v10 }
  0xe9   :  { %6424 = vmatpush1.bf16.msra.mxu0 %v10985_v48  ;;  %6712 = vmatpush1.bf16.msra.mxu1 %v10985_v48  ;;  %v279_v48 = vld [vmem:[%s14977_s1 + $0x788] sm:$0xff]  ;;  %15507 = vst [vmem:[#allocation75_spill] sm:$0xff] %v11025_v36 }
  0xea   :  { %6426 = vmatprep.subr.bf16.mxu0 %v10989_v28  ;;  %6714 = vmatprep.subr.bf16.mxu1 %v10989_v28  ;;  %v11029_v49 = vpack.c.bf16 %v281_v33, %v279_v48  ;;  %v280_v28 = vld [vmem:[%s14977_s1 + $0x790] sm:$0xff]  ;;  %v282_v33 = vld [vmem:[%s14977_s1 + $0x7a0] sm:$0xff] }
  0xeb   :  { %v11045_v48 = vpack.c.bf16 %v280_v28, %v278_v11  ;;  %v289_v28 = vld [vmem:[%s14977_s1 + $0x7d8] sm:$0xff] }
  0xec   :  { %15508 = vst [vmem:[#allocation76_spill] sm:$0xff] %v11029_v49 }
  0xed   :  { %6428 = vmatpush1.bf16.msra.mxu0 %v11005_v2  ;;  %6716 = vmatpush1.bf16.msra.mxu1 %v11005_v2  ;;  %v283_v2 = vld [vmem:[%s14977_s1 + $0x7a8] sm:$0xff]  ;;  %15509 = vst [vmem:[#allocation77_spill] sm:$0xff] %v11045_v48 }
  0xee   :  { %6430 = vmatprep.subr.bf16.mxu0 %v11009_v10  ;;  %6718 = vmatprep.subr.bf16.mxu1 %v11009_v10  ;;  %v11049_v59 = vpack.c.bf16 %v285_v12, %v283_v2  ;;  %v284_v10 = vld [vmem:[%s14977_s1 + $0x7b0] sm:$0xff]  ;;  %v286_v12 = vld [vmem:[%s14977_s1 + $0x7c0] sm:$0xff] }
  0xef   :  { %v11065_v2 = vpack.c.bf16 %v284_v10, %v282_v33  ;;  %v293_v10 = vld [vmem:[%s14977_s1 + $0x7f8] sm:$0xff] }
  0xf0   :  { %15510 = vst [vmem:[#allocation78_spill] sm:$0xff] %v11049_v59 }
  0xf1   :  { %6432 = vmatpush1.bf16.msra.mxu0 %v11025_v36  ;;  %6720 = vmatpush1.bf16.msra.mxu1 %v11025_v36  ;;  %v287_v36 = vld [vmem:[%s14977_s1 + $0x7c8] sm:$0xff]  ;;  %15511 = vst [vmem:[#allocation79_spill] sm:$0xff] %v11065_v2 }
  0xf2   :  { %6434 = vmatprep.subr.bf16.mxu0 %v11029_v49  ;;  %6722 = vmatprep.subr.bf16.mxu1 %v11029_v49  ;;  %v11069_v11 = vpack.c.bf16 %v289_v28, %v287_v36  ;;  %v288_v49 = vld [vmem:[%s14977_s1 + $0x7d0] sm:$0xff]  ;;  %v290_v28 = vld [vmem:[%s14977_s1 + $0x7e0] sm:$0xff] }
  0xf3   :  { %v11085_v36 = vpack.c.bf16 %v288_v49, %v286_v12  ;;  %v297_v49 = vld [vmem:[%s14977_s1 + $0x818] sm:$0xff] }
  0xf4   :  { %15512 = vst [vmem:[#allocation80_spill] sm:$0xff] %v11069_v11 }
  0xf5   :  { %6436 = vmatpush1.bf16.msra.mxu0 %v11045_v48  ;;  %6724 = vmatpush1.bf16.msra.mxu1 %v11045_v48  ;;  %v291_v48 = vld [vmem:[%s14977_s1 + $0x7e8] sm:$0xff]  ;;  %15513 = vst [vmem:[#allocation81_spill] sm:$0xff] %v11085_v36 }
  0xf6   :  { %6438 = vmatprep.subr.bf16.mxu0 %v11049_v59  ;;  %6726 = vmatprep.subr.bf16.mxu1 %v11049_v59  ;;  %v11089_v33 = vpack.c.bf16 %v293_v10, %v291_v48  ;;  %v292_v59 = vld [vmem:[%s14977_s1 + $0x7f0] sm:$0xff]  ;;  %v294_v10 = vld [vmem:[%s14977_s1 + $0x800] sm:$0xff] }
  0xf7   :  { %v11105_v48 = vpack.c.bf16 %v292_v59, %v290_v28  ;;  %v301_v59 = vld [vmem:[%s14977_s1 + $0x838] sm:$0xff] }
  0xf8   :  { %15514 = vst [vmem:[#allocation82_spill] sm:$0xff] %v11089_v33 }
  0xf9   :  { %6440 = vmatpush1.bf16.msra.mxu0 %v11065_v2  ;;  %6728 = vmatpush1.bf16.msra.mxu1 %v11065_v2  ;;  %v295_v2 = vld [vmem:[%s14977_s1 + $0x808] sm:$0xff]  ;;  %15515 = vst [vmem:[#allocation83_spill] sm:$0xff] %v11105_v48 }
  0xfa   :  { %6442 = vmatprep.subr.bf16.mxu0 %v11069_v11  ;;  %6730 = vmatprep.subr.bf16.mxu1 %v11069_v11  ;;  %v11109_v12 = vpack.c.bf16 %v297_v49, %v295_v2  ;;  %v296_v11 = vld [vmem:[%s14977_s1 + $0x810] sm:$0xff]  ;;  %v5633_v49 = vld [vmem:[%s14978_s0 + $0x78] sm:$0xff] }
  0xfb   :  { %v333_v2 = vld [vmem:[%s14978_s0 + $0x30] sm:$0xff]  ;;  %v11128_v28 = vpack.c.bf16 %v296_v11, %v294_v10  ;;  %v303_v11 = vld [vmem:[%s14977_s1 + $0x848] sm:$0xff]  ;;  %v305_v10 = vld [vmem:[%s14977_s1 + $0x858] sm:$0xff] }
  0xfc   :  { %15516 = vst [vmem:[#allocation84_spill] sm:$0xff] %v11109_v12 }
  0xfd   :  { %6444 = vmatpush1.bf16.msra.mxu0 %v11085_v36  ;;  %6732 = vmatpush1.bf16.msra.mxu1 %v11085_v36  ;;  %v299_v36 = vld [vmem:[%s14977_s1 + $0x828] sm:$0xff] }
  0xfe   :  { %6446 = vmatprep.subr.bf16.mxu0 %v11089_v33  ;;  %6734 = vmatprep.subr.bf16.mxu1 %v11089_v33  ;;  %v11135_v33 = vpack.c.bf16 %v301_v59, %v299_v36  ;;  %v11155_v59 = vpack.c.bf16 %v305_v10, %v303_v11 }
 0x100   :  { %15517 = vst [vmem:[#allocation85_spill] sm:$0xff] %v11135_v33  ;;  %15519 = vst [vmem:[#allocation87_spill] sm:$0xff] %v11155_v59 }
 0x101   :  { %6448 = vmatpush1.bf16.msra.mxu0 %v11105_v48  ;;  %6736 = vmatpush1.bf16.msra.mxu1 %v11105_v48  ;;  %v298_v48 = vld [vmem:[%s14977_s1 + $0x820] sm:$0xff] }
 0x102   :  { %6450 = vmatprep.subr.bf16.mxu0 %v11109_v12  ;;  %6738 = vmatprep.subr.bf16.mxu1 %v11109_v12  ;;  %v11151_v36 = vpack.c.bf16 %v300_v39, %v298_v48  ;;  %v302_v12 = vld [vmem:[%s14977_s1 + $0x840] sm:$0xff]  ;;  %v309_v39 = vld [vmem:[%s14977_s1 + $0x878] sm:$0xff]  ;;  %v15143_v48 = vmov 0.0  }
 0x104   :  { %625 = vmatmul.mubr.f32.vlgmr.msra.gmra.mrb[0].mxu0 %v333_v2  ;;  %992 = vmatmul.mubr.f32.vlgmr.msra.gmra.mrb[0].mxu1 %v5633_v49  ;;  %15518 = vst [vmem:[#allocation86_spill] sm:$0xff] %v11151_v36  ;;  %v304_v2 = vld [vmem:[%s14977_s1 + $0x850] sm:$0xff]  ;;  %v307_v49 = vld [vmem:[%s14977_s1 + $0x868] sm:$0xff] }
 0x105   :  { %6452 = vmatpush1.bf16.msra.mxu0 %v11128_v28  ;;  %6740 = vmatpush1.bf16.msra.mxu1 %v11128_v28  ;;  %v11173_v11 = vpack.c.bf16 %v304_v2, %v302_v12  ;;  %v11177_v10 = vpack.c.bf16 %v309_v39, %v307_v49  ;;  %v313_v12 = vld [vmem:[%s14977_s1 + $0x898] sm:$0xff]  ;;  %v310_v39 = vld [vmem:[%s14977_s1 + $0x880] sm:$0xff] }
 0x106   :  { %6454 = vmatprep.subr.bf16.mxu0 %v11135_v33  ;;  %6742 = vmatprep.subr.bf16.mxu1 %v11135_v33  ;;  %v306_v33 = vld [vmem:[%s14977_s1 + $0x860] sm:$0xff] }
 0x107   :  { %695 = vmatprep.mubr.f32.mxu0 %v15143_v48  ;;  %1062 = vmatprep.mubr.f32.mxu1 %v15143_v48  ;;  %15520 = vst [vmem:[#allocation88_spill] sm:$0xff] %v11173_v11  ;;  %15521 = vst [vmem:[#allocation89_spill] sm:$0xff] %v11177_v10  ;;  %v308_v48 = vld [vmem:[%s14977_s1 + $0x870] sm:$0xff] }
 0x108   :  { %v11193_v2 = vpack.c.bf16 %v308_v48, %v306_v33  ;;  %v317_v33 = vld [vmem:[%s14977_s1 + $0x8b8] sm:$0xff] }
 0x109   :  { %6456 = vmatpush1.bf16.msra.mxu0 %v11151_v36  ;;  %6744 = vmatpush1.bf16.msra.mxu1 %v11151_v36  ;;  %v311_v36 = vld [vmem:[%s14977_s1 + $0x888] sm:$0xff] }
 0x10a   :  { %6458 = vmatprep.subr.bf16.mxu0 %v11155_v59  ;;  %6746 = vmatprep.subr.bf16.mxu1 %v11155_v59  ;;  %15522 = vst [vmem:[#allocation90_spill] sm:$0xff] %v11193_v2  ;;  %v11197_v49 = vpack.c.bf16 %v313_v12, %v311_v36  ;;  %v312_v59 = vld [vmem:[%s14977_s1 + $0x890] sm:$0xff]  ;;  %v314_v12 = vld [vmem:[%s14977_s1 + $0x8a0] sm:$0xff] }
 0x10b   :  { %v11213_v36 = vpack.c.bf16 %v312_v59, %v310_v39  ;;  %v321_v59 = vld [vmem:[%s14977_s1 + $0x8d8] sm:$0xff] }
 0x10c   :  { %15523 = vst [vmem:[#allocation91_spill] sm:$0xff] %v11197_v49 }
 0x10d   :  { %6460 = vmatpush1.bf16.msra.mxu0 %v11173_v11  ;;  %6748 = vmatpush1.bf16.msra.mxu1 %v11173_v11  ;;  %v315_v11 = vld [vmem:[%s14977_s1 + $0x8a8] sm:$0xff]  ;;  %15524 = vst [vmem:[#allocation92_spill] sm:$0xff] %v11213_v36 }
 0x10e   :  { %6462 = vmatprep.subr.bf16.mxu0 %v11177_v10  ;;  %6750 = vmatprep.subr.bf16.mxu1 %v11177_v10  ;;  %v11217_v48 = vpack.c.bf16 %v317_v33, %v315_v11  ;;  %v316_v10 = vld [vmem:[%s14977_s1 + $0x8b0] sm:$0xff]  ;;  %v318_v33 = vld [vmem:[%s14977_s1 + $0x8c0] sm:$0xff] }
 0x10f   :  { %v11233_v11 = vpack.c.bf16 %v316_v10, %v314_v12  ;;  %v325_v10 = vld [vmem:[%s14977_s1 + $0x8f8] sm:$0xff] }
 0x110   :  { %15525 = vst [vmem:[#allocation93_spill] sm:$0xff] %v11217_v48 }
 0x111   :  { %6464 = vmatpush1.bf16.msra.mxu0 %v11193_v2  ;;  %6752 = vmatpush1.bf16.msra.mxu1 %v11193_v2  ;;  %v319_v2 = vld [vmem:[%s14977_s1 + $0x8c8] sm:$0xff]  ;;  %15526 = vst [vmem:[#allocation94_spill] sm:$0xff] %v11233_v11 }
 0x112   :  { %6466 = vmatprep.subr.bf16.mxu0 %v11197_v49  ;;  %6754 = vmatprep.subr.bf16.mxu1 %v11197_v49  ;;  %v11237_v39 = vpack.c.bf16 %v321_v59, %v319_v2  ;;  %v320_v49 = vld [vmem:[%s14977_s1 + $0x8d0] sm:$0xff]  ;;  %v322_v59 = vld [vmem:[%s14977_s1 + $0x8e0] sm:$0xff] }
 0x113   :  { %v11253_v2 = vpack.c.bf16 %v320_v49, %v318_v33  ;;  %v5635_v33 = vld [vmem:[%s14978_s0 + $0x88] sm:$0xff] }
 0x114   :  { %15527 = vst [vmem:[#allocation95_spill] sm:$0xff] %v11237_v39 }
 0x115   :  { %6468 = vmatpush1.bf16.msra.mxu0 %v11213_v36  ;;  %6756 = vmatpush1.bf16.msra.mxu1 %v11213_v36  ;;  %v323_v36 = vld [vmem:[%s14977_s1 + $0x8e8] sm:$0xff] }
 0x116   :  { %6470 = vmatprep.subr.bf16.mxu0 %v11217_v48  ;;  %6758 = vmatprep.subr.bf16.mxu1 %v11217_v48  ;;  %v11257_v12 = vpack.c.bf16 %v325_v10, %v323_v36  ;;  %v324_v48 = vld [vmem:[%s14977_s1 + $0x8f0] sm:$0xff]  ;;  %v335_v36 = vld [vmem:[%s14978_s0 + $0x40] sm:$0xff] }
 0x117   :  { %v11267_v49 = vpack.c.bf16 %v324_v48, %v322_v59  ;;  %v5637_v48 = vld [vmem:[%s14978_s0 + $0x98] sm:$0xff]  ;;  %v5646_v10 = vld [vmem:[%s14978_s0 + $0xe0] sm:$0xff]  ;;  %v5636_v59 = vld [vmem:[%s14978_s0 + $0x90] sm:$0xff] }
 0x118   :  { %15528 = vst [vmem:[#allocation96_spill] sm:$0xff] %v11257_v12 }
 0x119   :  { %6472 = vmatpush1.bf16.msra.mxu0 %v11233_v11  ;;  %6760 = vmatpush1.bf16.msra.mxu1 %v11233_v11  ;;  %15529 = vst [vmem:[#allocation97_spill] sm:$0xff] %v11267_v49 }
 0x11a   :  { %6474 = vmatprep.subr.bf16.mxu0 %v11237_v39  ;;  %6762 = vmatprep.subr.bf16.mxu1 %v11237_v39 }
 0x11d   :  { %6476 = vmatpush1.bf16.msra.mxu0 %v11253_v2  ;;  %6764 = vmatpush1.bf16.msra.mxu1 %v11253_v2 }
 0x11e   :  { %6478 = vmatprep.subr.bf16.mxu0 %v11257_v12  ;;  %6766 = vmatprep.subr.bf16.mxu1 %v11257_v12 }
 0x121   :  { %6480 = vmatpush1.bf16.msra.mxu0 %v11267_v49  ;;  %6768 = vmatpush1.bf16.msra.mxu1 %v11267_v49 }
 0x122   :  { %6770 = vmatprep.subr.bf16.mxu0 %v9792_v3  ;;  %7058 = vmatprep.subr.bf16.mxu1 %v9792_v3 }
 0x124   :  { %696 = vmatmul.mubr.f32.vlgmr.msra.gmra.mrb[0].mxu0 %v335_v36  ;;  %1063 = vmatmul.mubr.f32.vlgmr.msra.gmra.mrb[0].mxu1 %v5635_v33  ;;  %v5645_v36 = vld [vmem:[%s14978_s0 + $0xd8] sm:$0xff]  ;;  %v5639_v33 = vld [vmem:[%s14978_s0 + $0xa8] sm:$0xff] }
 0x125   :  { %6772 = vmatpush1.bf16.msra.mxu0 %v9803_v7  ;;  %7060 = vmatpush1.bf16.msra.mxu1 %v9803_v7 }
 0x126   :  { %6774 = vmatprep.subr.bf16.mxu0 %v9805_v8  ;;  %7062 = vmatprep.subr.bf16.mxu1 %v9805_v8 }
 0x127   :  { %1145 = vmatprep.mubr.f32.mxu0 %v5637_v48  ;;  %1512 = vmatprep.mubr.f32.mxu1 %v5646_v10  ;;  %v5648_v48 = vld [vmem:[%s14978_s0 + $0xf0] sm:$0xff] }
 0x128   :  { %v15530_v10 = vld [vmem:[#allocation8_spill] sm:$0xff] }
 0x129   :  { %6776 = vmatpush1.bf16.msra.mxu0 %v9823_v13  ;;  %7064 = vmatpush1.bf16.msra.mxu1 %v9823_v13 }
 0x12a   :  { %6778 = vmatprep.subr.bf16.mxu0 %v9827_v14  ;;  %7066 = vmatprep.subr.bf16.mxu1 %v9827_v14 }
 0x12d   :  { %6780 = vmatpush1.bf16.msra.mxu0 %v9843_v19  ;;  %7068 = vmatpush1.bf16.msra.mxu1 %v9843_v19 }
 0x12e   :  { %6782 = vmatprep.subr.bf16.mxu0 %v9847_v20  ;;  %7070 = vmatprep.subr.bf16.mxu1 %v9847_v20 }
 0x131   :  { %6784 = vmatpush1.bf16.msra.mxu0 %v9863_v25  ;;  %7072 = vmatpush1.bf16.msra.mxu1 %v9863_v25 }
 0x132   :  { %6786 = vmatprep.subr.bf16.mxu0 %v9867_v26  ;;  %7074 = vmatprep.subr.bf16.mxu1 %v9867_v26 }
 0x135   :  { %6788 = vmatpush1.bf16.msra.mxu0 %v9883_v31  ;;  %7076 = vmatpush1.bf16.msra.mxu1 %v9883_v31 }
 0x136   :  { %6790 = vmatprep.subr.bf16.mxu0 %v9887_v32  ;;  %7078 = vmatprep.subr.bf16.mxu1 %v9887_v32 }
 0x139   :  { %6792 = vmatpush1.bf16.msra.mxu0 %v9903_v37  ;;  %7080 = vmatpush1.bf16.msra.mxu1 %v9903_v37 }
 0x13a   :  { %6794 = vmatprep.subr.bf16.mxu0 %v9907_v38  ;;  %7082 = vmatprep.subr.bf16.mxu1 %v9907_v38 }
 0x13d   :  { %6796 = vmatpush1.bf16.msra.mxu0 %v9929_v45  ;;  %7084 = vmatpush1.bf16.msra.mxu1 %v9929_v45 }
 0x13e   :  { %6798 = vmatprep.subr.bf16.mxu0 %v9933_v46  ;;  %7086 = vmatprep.subr.bf16.mxu1 %v9933_v46 }
 0x141   :  { %6800 = vmatpush1.bf16.msra.mxu0 %v9949_v51  ;;  %7088 = vmatpush1.bf16.msra.mxu1 %v9949_v51 }
 0x142   :  { %6802 = vmatprep.subr.bf16.mxu0 %v9953_v52  ;;  %7090 = vmatprep.subr.bf16.mxu1 %v9953_v52 }
 0x145   :  { %6804 = vmatpush1.bf16.msra.mxu0 %v9969_v57  ;;  %7092 = vmatpush1.bf16.msra.mxu1 %v9969_v57 }
 0x146   :  { %6806 = vmatprep.subr.bf16.mxu0 %v9973_v58  ;;  %7094 = vmatprep.subr.bf16.mxu1 %v9973_v58 }
 0x149   :  { %6808 = vmatpush1.bf16.msra.mxu0 %v9989_v63  ;;  %7096 = vmatpush1.bf16.msra.mxu1 %v9989_v63 }
 0x14a   :  { %6810 = vmatprep.subr.bf16.mxu0 %v9993_v0  ;;  %7098 = vmatprep.subr.bf16.mxu1 %v9993_v0 }
 0x14d   :  { %6812 = vmatpush1.bf16.msra.mxu0 %v10009_v6  ;;  %7100 = vmatpush1.bf16.msra.mxu1 %v10009_v6 }
 0x14e   :  { %6814 = vmatprep.subr.bf16.mxu0 %v10013_v9  ;;  %7102 = vmatprep.subr.bf16.mxu1 %v10013_v9 }
 0x151   :  { %6816 = vmatpush1.bf16.msra.mxu0 %v10029_v16  ;;  %7104 = vmatpush1.bf16.msra.mxu1 %v10029_v16 }
 0x152   :  { %6818 = vmatprep.subr.bf16.mxu0 %v10033_v17  ;;  %7106 = vmatprep.subr.bf16.mxu1 %v10033_v17 }
 0x155   :  { %6820 = vmatpush1.bf16.msra.mxu0 %v10049_v24  ;;  %7108 = vmatpush1.bf16.msra.mxu1 %v10049_v24 }
 0x156   :  { %6822 = vmatprep.subr.bf16.mxu0 %v10053_v27  ;;  %7110 = vmatprep.subr.bf16.mxu1 %v10053_v27 }
 0x159   :  { %6824 = vmatpush1.bf16.msra.mxu0 %v10069_v34  ;;  %7112 = vmatpush1.bf16.msra.mxu1 %v10069_v34 }
 0x15a   :  { %6826 = vmatprep.subr.bf16.mxu0 %v10073_v35  ;;  %7114 = vmatprep.subr.bf16.mxu1 %v10073_v35 }
 0x15d   :  { %6828 = vmatpush1.bf16.msra.mxu0 %v10089_v42  ;;  %7116 = vmatpush1.bf16.msra.mxu1 %v10089_v42 }
 0x15e   :  { %6830 = vmatprep.subr.bf16.mxu0 %v10093_v43  ;;  %7118 = vmatprep.subr.bf16.mxu1 %v10093_v43 }
 0x161   :  { %6832 = vmatpush1.bf16.msra.mxu0 %v10109_v50  ;;  %7120 = vmatpush1.bf16.msra.mxu1 %v10109_v50 }
 0x162   :  { %6834 = vmatprep.subr.bf16.mxu0 %v10113_v53  ;;  %7122 = vmatprep.subr.bf16.mxu1 %v10113_v53 }
 0x164   :  { %1146 = vmatmul.mubr.f32.vlgmr.msra.gmra.mrb[2].mxu0 %v5636_v59  ;;  %1513 = vmatmul.mubr.f32.vlgmr.msra.gmra.mrb[2].mxu1 %v5645_v36  ;;  %v15531_v59 = vld [vmem:[#allocation9_spill] sm:$0xff]  ;;  %v15532_v36 = vld [vmem:[#allocation10_spill] sm:$0xff] }
 0x165   :  { %6836 = vmatpush1.bf16.msra.mxu0 %v10132_v61  ;;  %7124 = vmatpush1.bf16.msra.mxu1 %v10132_v61 }
 0x166   :  { %6838 = vmatprep.subr.bf16.mxu0 %v10139_v1  ;;  %7126 = vmatprep.subr.bf16.mxu1 %v10139_v1 }
 0x167   :  { %1216 = vmatprep.mubr.f32.mxu0 %v5639_v33  ;;  %1583 = vmatprep.mubr.f32.mxu1 %v5648_v48  ;;  %v15533_v33 = vld [vmem:[#allocation11_spill] sm:$0xff]  ;;  %v15534_v48 = vld [vmem:[#allocation12_spill] sm:$0xff] }
 0x169   :  { %6840 = vmatpush1.bf16.msra.mxu0 %v10161_v15  ;;  %7128 = vmatpush1.bf16.msra.mxu1 %v10161_v15 }
 0x16a   :  { %6842 = vmatprep.subr.bf16.mxu0 %v10165_v18  ;;  %7130 = vmatprep.subr.bf16.mxu1 %v10165_v18 }
 0x16d   :  { %6844 = vmatpush1.bf16.msra.mxu0 %v10181_v29  ;;  %7132 = vmatpush1.bf16.msra.mxu1 %v10181_v29 }
 0x16e   :  { %6846 = vmatprep.subr.bf16.mxu0 %v10185_v30  ;;  %7134 = vmatprep.subr.bf16.mxu1 %v10185_v30 }
 0x171   :  { %6848 = vmatpush1.bf16.msra.mxu0 %v10201_v41  ;;  %7136 = vmatpush1.bf16.msra.mxu1 %v10201_v41 }
 0x172   :  { %6850 = vmatprep.subr.bf16.mxu0 %v10205_v44  ;;  %7138 = vmatprep.subr.bf16.mxu1 %v10205_v44 }
 0x175   :  { %6852 = vmatpush1.bf16.msra.mxu0 %v10221_v55  ;;  %7140 = vmatpush1.bf16.msra.mxu1 %v10221_v55 }
 0x176   :  { %6854 = vmatprep.subr.bf16.mxu0 %v10225_v56  ;;  %7142 = vmatprep.subr.bf16.mxu1 %v10225_v56 }
 0x179   :  { %6856 = vmatpush1.bf16.msra.mxu0 %v10241_v4  ;;  %7144 = vmatpush1.bf16.msra.mxu1 %v10241_v4 }
 0x17a   :  { %6858 = vmatprep.subr.bf16.mxu0 %v10245_v5  ;;  %7146 = vmatprep.subr.bf16.mxu1 %v10245_v5 }
 0x17d   :  { %6860 = vmatpush1.bf16.msra.mxu0 %v10261_v22  ;;  %7148 = vmatpush1.bf16.msra.mxu1 %v10261_v22 }
 0x17e   :  { %6862 = vmatprep.subr.bf16.mxu0 %v10265_v23  ;;  %7150 = vmatprep.subr.bf16.mxu1 %v10265_v23 }
 0x181   :  { %6864 = vmatpush1.bf16.msra.mxu0 %v10281_v40  ;;  %7152 = vmatpush1.bf16.msra.mxu1 %v10281_v40 }
 0x182   :  { %6866 = vmatprep.subr.bf16.mxu0 %v10285_v47  ;;  %7154 = vmatprep.subr.bf16.mxu1 %v10285_v47 }
 0x185   :  { %6868 = vmatpush1.bf16.msra.mxu0 %v10301_v60  ;;  %7156 = vmatpush1.bf16.msra.mxu1 %v10301_v60  ;;  %v15548_v60 = vld [vmem:[#allocation26_spill] sm:$0xff] }
 0x186   :  { %6870 = vmatprep.subr.bf16.mxu0 %v10305_v62  ;;  %7158 = vmatprep.subr.bf16.mxu1 %v10305_v62  ;;  %v15544_v62 = vld [vmem:[#allocation22_spill] sm:$0xff] }
 0x189   :  { %6872 = vmatpush1.bf16.msra.mxu0 %v10321_v21  ;;  %7160 = vmatpush1.bf16.msra.mxu1 %v10321_v21  ;;  %v15535_v21 = vld [vmem:[#allocation13_spill] sm:$0xff] }
 0x18a   :  { %6874 = vmatprep.subr.bf16.mxu0 %v15530_v10  ;;  %7162 = vmatprep.subr.bf16.mxu1 %v15530_v10  ;;  %v15536_v10 = vld [vmem:[#allocation14_spill] sm:$0xff] }
 0x18d   :  { %6876 = vmatpush1.bf16.msra.mxu0 %v15531_v59  ;;  %7164 = vmatpush1.bf16.msra.mxu1 %v15531_v59  ;;  %v15537_v59 = vld [vmem:[#allocation15_spill] sm:$0xff] }
 0x18e   :  { %6878 = vmatprep.subr.bf16.mxu0 %v15532_v36  ;;  %7166 = vmatprep.subr.bf16.mxu1 %v15532_v36  ;;  %v15538_v36 = vld [vmem:[#allocation16_spill] sm:$0xff] }
 0x191   :  { %6880 = vmatpush1.bf16.msra.mxu0 %v15533_v33  ;;  %7168 = vmatpush1.bf16.msra.mxu1 %v15533_v33  ;;  %v15539_v33 = vld [vmem:[#allocation17_spill] sm:$0xff] }
 0x192   :  { %6882 = vmatprep.subr.bf16.mxu0 %v15534_v48  ;;  %7170 = vmatprep.subr.bf16.mxu1 %v15534_v48  ;;  %v15540_v48 = vld [vmem:[#allocation18_spill] sm:$0xff] }
 0x195   :  { %6884 = vmatpush1.bf16.msra.mxu0 %v15535_v21  ;;  %7172 = vmatpush1.bf16.msra.mxu1 %v15535_v21  ;;  %v15541_v21 = vld [vmem:[#allocation19_spill] sm:$0xff] }
 0x196   :  { %6886 = vmatprep.subr.bf16.mxu0 %v15536_v10  ;;  %7174 = vmatprep.subr.bf16.mxu1 %v15536_v10  ;;  %v15542_v10 = vld [vmem:[#allocation20_spill] sm:$0xff] }
 0x199   :  { %6888 = vmatpush1.bf16.msra.mxu0 %v15537_v59  ;;  %7176 = vmatpush1.bf16.msra.mxu1 %v15537_v59  ;;  %v5638_v59 = vld [vmem:[%s14978_s0 + $0xa0] sm:$0xff] }
 0x19a   :  { %6890 = vmatprep.subr.bf16.mxu0 %v15538_v36  ;;  %7178 = vmatprep.subr.bf16.mxu1 %v15538_v36  ;;  %v5647_v36 = vld [vmem:[%s14978_s0 + $0xe8] sm:$0xff] }
 0x19d   :  { %6892 = vmatpush1.bf16.msra.mxu0 %v15539_v33  ;;  %7180 = vmatpush1.bf16.msra.mxu1 %v15539_v33  ;;  %v15543_v33 = vld [vmem:[#allocation21_spill] sm:$0xff] }
 0x19e   :  { %6894 = vmatprep.subr.bf16.mxu0 %v15540_v48  ;;  %7182 = vmatprep.subr.bf16.mxu1 %v15540_v48  ;;  %v5641_v48 = vld [vmem:[%s14978_s0 + $0xb8] sm:$0xff] }
 0x1a1   :  { %6896 = vmatpush1.bf16.msra.mxu0 %v15541_v21  ;;  %7184 = vmatpush1.bf16.msra.mxu1 %v15541_v21  ;;  %v5650_v21 = vld [vmem:[%s14978_s0 + $0x100] sm:$0xff] }
 0x1a2   :  { %6898 = vmatprep.subr.bf16.mxu0 %v15542_v10  ;;  %7186 = vmatprep.subr.bf16.mxu1 %v15542_v10  ;;  %v15547_v10 = vld [vmem:[#allocation25_spill] sm:$0xff] }
 0x1a4   :  { %1217 = vmatmul.mubr.f32.vlgmr.msra.gmra.mrb[2].mxu0 %v5638_v59  ;;  %1584 = vmatmul.mubr.f32.vlgmr.msra.gmra.mrb[2].mxu1 %v5647_v36  ;;  %v15545_v59 = vld [vmem:[#allocation23_spill] sm:$0xff]  ;;  %v15546_v36 = vld [vmem:[#allocation24_spill] sm:$0xff] }
 0x1a5   :  { %6900 = vmatpush1.bf16.msra.mxu0 %v15543_v33  ;;  %7188 = vmatpush1.bf16.msra.mxu1 %v15543_v33  ;;  %v15549_v33 = vld [vmem:[#allocation27_spill] sm:$0xff] }
 0x1a6   :  { %6902 = vmatprep.subr.bf16.mxu0 %v15544_v62  ;;  %7190 = vmatprep.subr.bf16.mxu1 %v15544_v62 }
 0x1a7   :  { %1287 = vmatprep.mubr.f32.mxu0 %v5641_v48  ;;  %1654 = vmatprep.mubr.f32.mxu1 %v5650_v21  ;;  %v15550_v21 = vld [vmem:[#allocation28_spill] sm:$0xff]  ;;  %v15551_v48 = vld [vmem:[#allocation29_spill] sm:$0xff] }
 0x1a9   :  { %6904 = vmatpush1.bf16.msra.mxu0 %v15545_v59  ;;  %7192 = vmatpush1.bf16.msra.mxu1 %v15545_v59  ;;  %v15579_v59 = vld [vmem:[#allocation58_spill] sm:$0xff] }
 0x1aa   :  { %6906 = vmatprep.subr.bf16.mxu0 %v15546_v36  ;;  %7194 = vmatprep.subr.bf16.mxu1 %v15546_v36  ;;  %v15552_v36 = vld [vmem:[#allocation30_spill] sm:$0xff] }
 0x1ad   :  { %6908 = vmatpush1.bf16.msra.mxu0 %v15547_v10  ;;  %7196 = vmatpush1.bf16.msra.mxu1 %v15547_v10  ;;  %v15553_v10 = vld [vmem:[#allocation31_spill] sm:$0xff] }
 0x1ae   :  { %6910 = vmatprep.subr.bf16.mxu0 %v15548_v60  ;;  %7198 = vmatprep.subr.bf16.mxu1 %v15548_v60  ;;  %v15554_v60 = vld [vmem:[#allocation32_spill] sm:$0xff] }
 0x1b1   :  { %6912 = vmatpush1.bf16.msra.mxu0 %v15549_v33  ;;  %7200 = vmatpush1.bf16.msra.mxu1 %v15549_v33  ;;  %v15555_v33 = vld [vmem:[#allocation33_spill] sm:$0xff] }
 0x1b2   :  { %6914 = vmatprep.subr.bf16.mxu0 %v15550_v21  ;;  %7202 = vmatprep.subr.bf16.mxu1 %v15550_v21  ;;  %v15556_v21 = vld [vmem:[#allocation34_spill] sm:$0xff] }
 0x1b5   :  { %6916 = vmatpush1.bf16.msra.mxu0 %v15551_v48  ;;  %7204 = vmatpush1.bf16.msra.mxu1 %v15551_v48  ;;  %v15557_v48 = vld [vmem:[#allocation35_spill] sm:$0xff] }
 0x1b6   :  { %6918 = vmatprep.subr.bf16.mxu0 %v15552_v36  ;;  %7206 = vmatprep.subr.bf16.mxu1 %v15552_v36  ;;  %v15558_v36 = vld [vmem:[#allocation36_spill] sm:$0xff] }
 0x1b9   :  { %6920 = vmatpush1.bf16.msra.mxu0 %v15553_v10  ;;  %7208 = vmatpush1.bf16.msra.mxu1 %v15553_v10  ;;  %v15559_v10 = vld [vmem:[#allocation37_spill] sm:$0xff] }
 0x1ba   :  { %6922 = vmatprep.subr.bf16.mxu0 %v15554_v60  ;;  %7210 = vmatprep.subr.bf16.mxu1 %v15554_v60  ;;  %v15560_v60 = vld [vmem:[#allocation38_spill] sm:$0xff] }
 0x1bd   :  { %6924 = vmatpush1.bf16.msra.mxu0 %v15555_v33  ;;  %7212 = vmatpush1.bf16.msra.mxu1 %v15555_v33  ;;  %v15561_v33 = vld [vmem:[#allocation39_spill] sm:$0xff] }
 0x1be   :  { %6926 = vmatprep.subr.bf16.mxu0 %v15556_v21  ;;  %7214 = vmatprep.subr.bf16.mxu1 %v15556_v21  ;;  %v15562_v21 = vld [vmem:[#allocation40_spill] sm:$0xff] }
 0x1c1   :  { %6928 = vmatpush1.bf16.msra.mxu0 %v15557_v48  ;;  %7216 = vmatpush1.bf16.msra.mxu1 %v15557_v48  ;;  %v15563_v48 = vld [vmem:[#allocation41_spill] sm:$0xff] }
 0x1c2   :  { %6930 = vmatprep.subr.bf16.mxu0 %v15558_v36  ;;  %7218 = vmatprep.subr.bf16.mxu1 %v15558_v36  ;;  %v15564_v36 = vld [vmem:[#allocation42_spill] sm:$0xff] }
 0x1c5   :  { %6932 = vmatpush1.bf16.msra.mxu0 %v15559_v10  ;;  %7220 = vmatpush1.bf16.msra.mxu1 %v15559_v10  ;;  %v15565_v10 = vld [vmem:[#allocation43_spill] sm:$0xff] }
 0x1c6   :  { %6934 = vmatprep.subr.bf16.mxu0 %v15560_v60  ;;  %7222 = vmatprep.subr.bf16.mxu1 %v15560_v60  ;;  %v15566_v60 = vld [vmem:[#allocation44_spill] sm:$0xff] }
 0x1c9   :  { %6936 = vmatpush1.bf16.msra.mxu0 %v15561_v33  ;;  %7224 = vmatpush1.bf16.msra.mxu1 %v15561_v33  ;;  %v15567_v33 = vld [vmem:[#allocation45_spill] sm:$0xff] }
 0x1ca   :  { %6938 = vmatprep.subr.bf16.mxu0 %v15562_v21  ;;  %7226 = vmatprep.subr.bf16.mxu1 %v15562_v21  ;;  %v15568_v21 = vld [vmem:[#allocation46_spill] sm:$0xff] }
 0x1cd   :  { %6940 = vmatpush1.bf16.msra.mxu0 %v15563_v48  ;;  %7228 = vmatpush1.bf16.msra.mxu1 %v15563_v48  ;;  %v15569_v48 = vld [vmem:[#allocation47_spill] sm:$0xff] }
 0x1ce   :  { %6942 = vmatprep.subr.bf16.mxu0 %v15564_v36  ;;  %7230 = vmatprep.subr.bf16.mxu1 %v15564_v36  ;;  %v15570_v36 = vld [vmem:[#allocation48_spill] sm:$0xff] }
 0x1d1   :  { %6944 = vmatpush1.bf16.msra.mxu0 %v15565_v10  ;;  %7232 = vmatpush1.bf16.msra.mxu1 %v15565_v10  ;;  %v15571_v10 = vld [vmem:[#allocation49_spill] sm:$0xff] }
 0x1d2   :  { %6946 = vmatprep.subr.bf16.mxu0 %v15566_v60  ;;  %7234 = vmatprep.subr.bf16.mxu1 %v15566_v60  ;;  %v15572_v60 = vld [vmem:[#allocation50_spill] sm:$0xff] }
 0x1d5   :  { %6948 = vmatpush1.bf16.msra.mxu0 %v15567_v33  ;;  %7236 = vmatpush1.bf16.msra.mxu1 %v15567_v33  ;;  %v15573_v33 = vld [vmem:[#allocation51_spill] sm:$0xff] }
 0x1d6   :  { %6950 = vmatprep.subr.bf16.mxu0 %v15568_v21  ;;  %7238 = vmatprep.subr.bf16.mxu1 %v15568_v21  ;;  %v15574_v21 = vld [vmem:[#allocation52_spill] sm:$0xff] }
 0x1d9   :  { %6952 = vmatpush1.bf16.msra.mxu0 %v15569_v48  ;;  %7240 = vmatpush1.bf16.msra.mxu1 %v15569_v48  ;;  %v5640_v48 = vld [vmem:[%s14978_s0 + $0xb0] sm:$0xff] }
 0x1da   :  { %6954 = vmatprep.subr.bf16.mxu0 %v15570_v36  ;;  %7242 = vmatprep.subr.bf16.mxu1 %v15570_v36  ;;  %v5649_v36 = vld [vmem:[%s14978_s0 + $0xf8] sm:$0xff] }
 0x1dd   :  { %6956 = vmatpush1.bf16.msra.mxu0 %v15571_v10  ;;  %7244 = vmatpush1.bf16.msra.mxu1 %v15571_v10  ;;  %v15575_v10 = vld [vmem:[#allocation53_spill] sm:$0xff] }
 0x1de   :  { %6958 = vmatprep.subr.bf16.mxu0 %v15572_v60  ;;  %7246 = vmatprep.subr.bf16.mxu1 %v15572_v60  ;;  %v5643_v60 = vld [vmem:[%s14978_s0 + $0xc8] sm:$0xff] }
 0x1e1   :  { %6960 = vmatpush1.bf16.msra.mxu0 %v15573_v33  ;;  %7248 = vmatpush1.bf16.msra.mxu1 %v15573_v33  ;;  %v5652_v33 = vld [vmem:[%s14978_s0 + $0x110] sm:$0xff] }
 0x1e2   :  { %6962 = vmatprep.subr.bf16.mxu0 %v15574_v21  ;;  %7250 = vmatprep.subr.bf16.mxu1 %v15574_v21  ;;  %v15578_v21 = vld [vmem:[#allocation57_spill] sm:$0xff] }
 0x1e4   :  { %1288 = vmatmul.mubr.f32.vlgmr.msra.gmra.mrb[2].mxu0 %v5640_v48  ;;  %1655 = vmatmul.mubr.f32.vlgmr.msra.gmra.mrb[2].mxu1 %v5649_v36  ;;  %v15576_v48 = vld [vmem:[#allocation55_spill] sm:$0xff]  ;;  %v15577_v36 = vld [vmem:[#allocation56_spill] sm:$0xff] }
 0x1e5   :  { %6964 = vmatpush1.bf16.msra.mxu0 %v15575_v10  ;;  %7252 = vmatpush1.bf16.msra.mxu1 %v15575_v10  ;;  %v15580_v10 = vld [vmem:[#allocation59_spill] sm:$0xff] }
 0x1e6   :  { %6966 = vmatprep.subr.bf16.mxu0 %v10803_v54  ;;  %7254 = vmatprep.subr.bf16.mxu1 %v10803_v54 }
 0x1e7   :  { %1358 = vmatprep.mubr.f32.mxu0 %v5643_v60  ;;  %1725 = vmatprep.mubr.f32.mxu1 %v5652_v33  ;;  %v15581_v60 = vld [vmem:[#allocation60_spill] sm:$0xff]  ;;  %v15582_v33 = vld [vmem:[#allocation61_spill] sm:$0xff] }
 0x1e9   :  { %6968 = vmatpush1.bf16.msra.mxu0 %v15576_v48  ;;  %7256 = vmatpush1.bf16.msra.mxu1 %v15576_v48 }
 0x1ea   :  { %6970 = vmatprep.subr.bf16.mxu0 %v15577_v36  ;;  %7258 = vmatprep.subr.bf16.mxu1 %v15577_v36  ;;  %v15583_v36 = vld [vmem:[#allocation62_spill] sm:$0xff] }
 0x1ed   :  { %6972 = vmatpush1.bf16.msra.mxu0 %v15578_v21  ;;  %7260 = vmatpush1.bf16.msra.mxu1 %v15578_v21 }
 0x1ee   :  { %6974 = vmatprep.subr.bf16.mxu0 %v15579_v59  ;;  %7262 = vmatprep.subr.bf16.mxu1 %v15579_v59 }
 0x1f1   :  { %6976 = vmatpush1.bf16.msra.mxu0 %v15580_v10  ;;  %7264 = vmatpush1.bf16.msra.mxu1 %v15580_v10  ;;  %v15588_v10 = vld [vmem:[#allocation63_spill] sm:$0xff] }
 0x1f2   :  { %6978 = vmatprep.subr.bf16.mxu0 %v15581_v60  ;;  %7266 = vmatprep.subr.bf16.mxu1 %v15581_v60  ;;  %v15589_v60 = vld [vmem:[#allocation64_spill] sm:$0xff] }
 0x1f5   :  { %6980 = vmatpush1.bf16.msra.mxu0 %v15582_v33  ;;  %7268 = vmatpush1.bf16.msra.mxu1 %v15582_v33  ;;  %v15590_v33 = vld [vmem:[#allocation65_spill] sm:$0xff] }
 0x1f6   :  { %6982 = vmatprep.subr.bf16.mxu0 %v15583_v36  ;;  %7270 = vmatprep.subr.bf16.mxu1 %v15583_v36  ;;  %v15591_v36 = vld [vmem:[#allocation66_spill] sm:$0xff] }
 0x1f7   :  { %v11535_v21 = vpop.f32.mrb[0].mxu0  ;;  %v11537_v48 = vpop.f32.mrb[0].mxu1 }
 0x1f8   :  { %15584 = vst [vmem:[#allocation98_spill] sm:$0xff] %v11535_v21  ;;  %15585 = vst [vmem:[#allocation99_spill] sm:$0xff] %v11537_v48  ;;  %v11539_v59 = vpop.f32.mrb[1].mxu0  ;;  %v11541_v54 = vpop.f32.mrb[1].mxu1  ;;  %v15592_v48 = vld [vmem:[#allocation67_spill] sm:$0xff]  ;;  %v15594_v21 = vld [vmem:[#allocation69_spill] sm:$0xff] }
 0x1f9   :  { %15586 = vst [vmem:[#allocation100_spill] sm:$0xff] %v11539_v59  ;;  %15587 = vst [vmem:[#allocation101_spill] sm:$0xff] %v11541_v54  ;;  %6984 = vmatpush1.bf16.msra.mxu0 %v15588_v10  ;;  %7272 = vmatpush1.bf16.msra.mxu1 %v15588_v10  ;;  %v15593_v54 = vld [vmem:[#allocation68_spill] sm:$0xff]  ;;  %v15595_v59 = vld [vmem:[#allocation70_spill] sm:$0xff] }
 0x1fa   :  { %6986 = vmatprep.subr.bf16.mxu0 %v15589_v60  ;;  %7274 = vmatprep.subr.bf16.mxu1 %v15589_v60  ;;  %v15613_v60 = vld [vmem:[#allocation87_spill] sm:$0xff] }
 0x1fd   :  { %6988 = vmatpush1.bf16.msra.mxu0 %v15590_v33  ;;  %7276 = vmatpush1.bf16.msra.mxu1 %v15590_v33  ;;  %v15596_v33 = vld [vmem:[#allocation71_spill] sm:$0xff] }
 0x1fe   :  { %6990 = vmatprep.subr.bf16.mxu0 %v15591_v36  ;;  %7278 = vmatprep.subr.bf16.mxu1 %v15591_v36  ;;  %v15597_v36 = vld [vmem:[#allocation72_spill] sm:$0xff] }
 0x201   :  { %6992 = vmatpush1.bf16.msra.mxu0 %v15592_v48  ;;  %7280 = vmatpush1.bf16.msra.mxu1 %v15592_v48  ;;  %v15598_v48 = vld [vmem:[#allocation73_spill] sm:$0xff] }
 0x202   :  { %6994 = vmatprep.subr.bf16.mxu0 %v15593_v54  ;;  %7282 = vmatprep.subr.bf16.mxu1 %v15593_v54  ;;  %v15599_v54 = vld [vmem:[#allocation74_spill] sm:$0xff] }
 0x205   :  { %6996 = vmatpush1.bf16.msra.mxu0 %v15594_v21  ;;  %7284 = vmatpush1.bf16.msra.mxu1 %v15594_v21  ;;  %v15600_v21 = vld [vmem:[#allocation75_spill] sm:$0xff] }
 0x206   :  { %6998 = vmatprep.subr.bf16.mxu0 %v15595_v59  ;;  %7286 = vmatprep.subr.bf16.mxu1 %v15595_v59  ;;  %v15601_v59 = vld [vmem:[#allocation76_spill] sm:$0xff] }
 0x209   :  { %7000 = vmatpush1.bf16.msra.mxu0 %v15596_v33  ;;  %7288 = vmatpush1.bf16.msra.mxu1 %v15596_v33  ;;  %v15602_v33 = vld [vmem:[#allocation77_spill] sm:$0xff] }
 0x20a   :  { %7002 = vmatprep.subr.bf16.mxu0 %v15597_v36  ;;  %7290 = vmatprep.subr.bf16.mxu1 %v15597_v36  ;;  %v15603_v36 = vld [vmem:[#allocation78_spill] sm:$0xff] }
 0x20d   :  { %7004 = vmatpush1.bf16.msra.mxu0 %v15598_v48  ;;  %7292 = vmatpush1.bf16.msra.mxu1 %v15598_v48  ;;  %v15604_v48 = vld [vmem:[#allocation79_spill] sm:$0xff] }
 0x20e   :  { %7006 = vmatprep.subr.bf16.mxu0 %v15599_v54  ;;  %7294 = vmatprep.subr.bf16.mxu1 %v15599_v54  ;;  %v15605_v54 = vld [vmem:[#allocation80_spill] sm:$0xff] }
 0x211   :  { %7008 = vmatpush1.bf16.msra.mxu0 %v15600_v21  ;;  %7296 = vmatpush1.bf16.msra.mxu1 %v15600_v21  ;;  %v15606_v21 = vld [vmem:[#allocation81_spill] sm:$0xff] }
 0x212   :  { %7010 = vmatprep.subr.bf16.mxu0 %v15601_v59  ;;  %7298 = vmatprep.subr.bf16.mxu1 %v15601_v59  ;;  %v15607_v59 = vld [vmem:[#allocation82_spill] sm:$0xff] }
 0x215   :  { %7012 = vmatpush1.bf16.msra.mxu0 %v15602_v33  ;;  %7300 = vmatpush1.bf16.msra.mxu1 %v15602_v33  ;;  %v15608_v33 = vld [vmem:[#allocation83_spill] sm:$0xff] }
 0x216   :  { %7014 = vmatprep.subr.bf16.mxu0 %v15603_v36  ;;  %7302 = vmatprep.subr.bf16.mxu1 %v15603_v36  ;;  %v15609_v36 = vld [vmem:[#allocation84_spill] sm:$0xff] }
 0x219   :  { %7016 = vmatpush1.bf16.msra.mxu0 %v15604_v48  ;;  %7304 = vmatpush1.bf16.msra.mxu1 %v15604_v48  ;;  %v5642_v48 = vld [vmem:[%s14978_s0 + $0xc0] sm:$0xff] }
 0x21a   :  { %7018 = vmatprep.subr.bf16.mxu0 %v15605_v54  ;;  %7306 = vmatprep.subr.bf16.mxu1 %v15605_v54  ;;  %v5651_v54 = vld [vmem:[%s14978_s0 + $0x108] sm:$0xff] }
 0x21d   :  { %7020 = vmatpush1.bf16.msra.mxu0 %v15606_v21  ;;  %7308 = vmatpush1.bf16.msra.mxu1 %v15606_v21  ;;  %v15612_v21 = vld [vmem:[#allocation86_spill] sm:$0xff] }
 0x21e   :  { %7022 = vmatprep.subr.bf16.mxu0 %v15607_v59  ;;  %7310 = vmatprep.subr.bf16.mxu1 %v15607_v59  ;;  %v15610_v59 = vld [vmem:[#allocation85_spill] sm:$0xff] }
 0x221   :  { %7024 = vmatpush1.bf16.msra.mxu0 %v15608_v33  ;;  %7312 = vmatpush1.bf16.msra.mxu1 %v15608_v33  ;;  %v15611_v33 = vmov 0.0  }
 0x222   :  { %7026 = vmatprep.subr.bf16.mxu0 %v15609_v36  ;;  %7314 = vmatprep.subr.bf16.mxu1 %v15609_v36 }
 0x224   :  { %1359 = vmatmul.mubr.f32.vlgmr.msra.gmra.mrb[2].mxu0 %v5642_v48  ;;  %1726 = vmatmul.mubr.f32.vlgmr.msra.gmra.mrb[2].mxu1 %v5651_v54  ;;  %v15614_v54 = vld [vmem:[#allocation88_spill] sm:$0xff]  ;;  %v15615_v48 = vld [vmem:[#allocation89_spill] sm:$0xff] }
 0x225   :  { %7028 = vmatpush1.bf16.msra.mxu0 %v11128_v28  ;;  %7316 = vmatpush1.bf16.msra.mxu1 %v11128_v28 }
 0x226   :  { %7030 = vmatprep.subr.bf16.mxu0 %v15610_v59  ;;  %7318 = vmatprep.subr.bf16.mxu1 %v15610_v59  ;;  %v15616_v59 = vld [vmem:[#allocation90_spill] sm:$0xff] }
 0x227   :  { %1429 = vmatprep.mubr.f32.mxu0 %v15611_v33  ;;  %1796 = vmatprep.mubr.f32.mxu1 %v15611_v33  ;;  %v15617_v33 = vld [vmem:[#allocation91_spill] sm:$0xff] }
 0x229   :  { %7032 = vmatpush1.bf16.msra.mxu0 %v15612_v21  ;;  %7320 = vmatpush1.bf16.msra.mxu1 %v15612_v21  ;;  %v15618_v21 = vld [vmem:[#allocation92_spill] sm:$0xff] }
 0x22a   :  { %7034 = vmatprep.subr.bf16.mxu0 %v15613_v60  ;;  %7322 = vmatprep.subr.bf16.mxu1 %v15613_v60  ;;  %v15619_v60 = vld [vmem:[#allocation93_spill] sm:$0xff] }
 0x22d   :  { %7036 = vmatpush1.bf16.msra.mxu0 %v15614_v54  ;;  %7324 = vmatpush1.bf16.msra.mxu1 %v15614_v54 }
 0x22e   :  { %7038 = vmatprep.subr.bf16.mxu0 %v15615_v48  ;;  %7326 = vmatprep.subr.bf16.mxu1 %v15615_v48 }
 0x231   :  { %7040 = vmatpush1.bf16.msra.mxu0 %v15616_v59  ;;  %7328 = vmatpush1.bf16.msra.mxu1 %v15616_v59 }
 0x232   :  { %7042 = vmatprep.subr.bf16.mxu0 %v15617_v33  ;;  %7330 = vmatprep.subr.bf16.mxu1 %v15617_v33 }
 0x235   :  { %7044 = vmatpush1.bf16.msra.mxu0 %v15618_v21  ;;  %7332 = vmatpush1.bf16.msra.mxu1 %v15618_v21 }
 0x236   :  { %7046 = vmatprep.subr.bf16.mxu0 %v15619_v60  ;;  %7334 = vmatprep.subr.bf16.mxu1 %v15619_v60 }
 0x239   :  { %7048 = vmatpush1.bf16.msra.mxu0 %v11233_v11  ;;  %7336 = vmatpush1.bf16.msra.mxu1 %v11233_v11  ;;  %v5644_v11 = vld [vmem:[%s14978_s0 + $0xd0] sm:$0xff] }
 0x23a   :  { %7050 = vmatprep.subr.bf16.mxu0 %v11237_v39  ;;  %7338 = vmatprep.subr.bf16.mxu1 %v11237_v39  ;;  %v5653_v39 = vld [vmem:[%s14978_s0 + $0x118] sm:$0xff] }
 0x23d   :  { %7052 = vmatpush1.bf16.msra.mxu0 %v11253_v2  ;;  %7340 = vmatpush1.bf16.msra.mxu1 %v11253_v2 }
 0x23e   :  { %7054 = vmatprep.subr.bf16.mxu0 %v11257_v12  ;;  %7342 = vmatprep.subr.bf16.mxu1 %v11257_v12  ;;  %v5655_v12 = vld [vmem:[%s14978_s0 + $0x128] sm:$0xff] }
 0x241   :  { %7056 = vmatpush1.bf16.msra.mxu0 %v11267_v49  ;;  %7344 = vmatpush1.bf16.msra.mxu1 %v11267_v49  ;;  %v5664_v49 = vld [vmem:[%s14978_s0 + $0x170] sm:$0xff] }
 0x242   :  { %7346 = vmatprep.subr.bf16.mxu0 %v9792_v3  ;;  %7634 = vmatprep.subr.bf16.mxu1 %v9792_v3 }
 0x244   :  { %1430 = vmatmul.mubr.f32.vlgmr.msra.gmra.mrb[2].mxu0 %v5644_v11  ;;  %1797 = vmatmul.mubr.f32.vlgmr.msra.gmra.mrb[2].mxu1 %v5653_v39  ;;  %v5654_v11 = vld [vmem:[%s14978_s0 + $0x120] sm:$0xff]  ;;  %v5663_v39 = vld [vmem:[%s14978_s0 + $0x168] sm:$0xff] }
 0x245   :  { %7348 = vmatpush1.bf16.msra.mxu0 %v9803_v7  ;;  %7636 = vmatpush1.bf16.msra.mxu1 %v9803_v7 }
 0x246   :  { %7350 = vmatprep.subr.bf16.mxu0 %v9805_v8  ;;  %7638 = vmatprep.subr.bf16.mxu1 %v9805_v8 }
 0x247   :  { %1879 = vmatprep.mubr.f32.mxu0 %v5655_v12  ;;  %2246 = vmatprep.mubr.f32.mxu1 %v5664_v49  ;;  %v5657_v12 = vld [vmem:[%s14978_s0 + $0x138] sm:$0xff]  ;;  %v5666_v49 = vld [vmem:[%s14978_s0 + $0x180] sm:$0xff] }
 0x249   :  { %7352 = vmatpush1.bf16.msra.mxu0 %v9823_v13  ;;  %7640 = vmatpush1.bf16.msra.mxu1 %v9823_v13 }
 0x24a   :  { %7354 = vmatprep.subr.bf16.mxu0 %v9827_v14  ;;  %7642 = vmatprep.subr.bf16.mxu1 %v9827_v14 }
 0x24d   :  { %7356 = vmatpush1.bf16.msra.mxu0 %v9843_v19  ;;  %7644 = vmatpush1.bf16.msra.mxu1 %v9843_v19 }
 0x24e   :  { %7358 = vmatprep.subr.bf16.mxu0 %v9847_v20  ;;  %7646 = vmatprep.subr.bf16.mxu1 %v9847_v20 }
 0x251   :  { %7360 = vmatpush1.bf16.msra.mxu0 %v9863_v25  ;;  %7648 = vmatpush1.bf16.msra.mxu1 %v9863_v25 }
 0x252   :  { %7362 = vmatprep.subr.bf16.mxu0 %v9867_v26  ;;  %7650 = vmatprep.subr.bf16.mxu1 %v9867_v26 }
 0x255   :  { %7364 = vmatpush1.bf16.msra.mxu0 %v9883_v31  ;;  %7652 = vmatpush1.bf16.msra.mxu1 %v9883_v31 }
 0x256   :  { %7366 = vmatprep.subr.bf16.mxu0 %v9887_v32  ;;  %7654 = vmatprep.subr.bf16.mxu1 %v9887_v32 }
 0x259   :  { %7368 = vmatpush1.bf16.msra.mxu0 %v9903_v37  ;;  %7656 = vmatpush1.bf16.msra.mxu1 %v9903_v37 }
 0x25a   :  { %7370 = vmatprep.subr.bf16.mxu0 %v9907_v38  ;;  %7658 = vmatprep.subr.bf16.mxu1 %v9907_v38 }
 0x25d   :  { %7372 = vmatpush1.bf16.msra.mxu0 %v9929_v45  ;;  %7660 = vmatpush1.bf16.msra.mxu1 %v9929_v45 }
 0x25e   :  { %7374 = vmatprep.subr.bf16.mxu0 %v9933_v46  ;;  %7662 = vmatprep.subr.bf16.mxu1 %v9933_v46 }
 0x261   :  { %7376 = vmatpush1.bf16.msra.mxu0 %v9949_v51  ;;  %7664 = vmatpush1.bf16.msra.mxu1 %v9949_v51 }
 0x262   :  { %7378 = vmatprep.subr.bf16.mxu0 %v9953_v52  ;;  %7666 = vmatprep.subr.bf16.mxu1 %v9953_v52 }
 0x265   :  { %7380 = vmatpush1.bf16.msra.mxu0 %v9969_v57  ;;  %7668 = vmatpush1.bf16.msra.mxu1 %v9969_v57 }
 0x266   :  { %7382 = vmatprep.subr.bf16.mxu0 %v9973_v58  ;;  %7670 = vmatprep.subr.bf16.mxu1 %v9973_v58 }
 0x269   :  { %7384 = vmatpush1.bf16.msra.mxu0 %v9989_v63  ;;  %7672 = vmatpush1.bf16.msra.mxu1 %v9989_v63 }
 0x26a   :  { %7386 = vmatprep.subr.bf16.mxu0 %v9993_v0  ;;  %7674 = vmatprep.subr.bf16.mxu1 %v9993_v0 }
 0x26d   :  { %7388 = vmatpush1.bf16.msra.mxu0 %v10009_v6  ;;  %7676 = vmatpush1.bf16.msra.mxu1 %v10009_v6 }
 0x26e   :  { %7390 = vmatprep.subr.bf16.mxu0 %v10013_v9  ;;  %7678 = vmatprep.subr.bf16.mxu1 %v10013_v9 }
 0x271   :  { %7392 = vmatpush1.bf16.msra.mxu0 %v10029_v16  ;;  %7680 = vmatpush1.bf16.msra.mxu1 %v10029_v16 }
 0x272   :  { %7394 = vmatprep.subr.bf16.mxu0 %v10033_v17  ;;  %7682 = vmatprep.subr.bf16.mxu1 %v10033_v17 }
 0x275   :  { %7396 = vmatpush1.bf16.msra.mxu0 %v10049_v24  ;;  %7684 = vmatpush1.bf16.msra.mxu1 %v10049_v24 }
 0x276   :  { %7398 = vmatprep.subr.bf16.mxu0 %v10053_v27  ;;  %7686 = vmatprep.subr.bf16.mxu1 %v10053_v27 }
 0x279   :  { %7400 = vmatpush1.bf16.msra.mxu0 %v10069_v34  ;;  %7688 = vmatpush1.bf16.msra.mxu1 %v10069_v34 }
 0x27a   :  { %7402 = vmatprep.subr.bf16.mxu0 %v10073_v35  ;;  %7690 = vmatprep.subr.bf16.mxu1 %v10073_v35 }
 0x27d   :  { %7404 = vmatpush1.bf16.msra.mxu0 %v10089_v42  ;;  %7692 = vmatpush1.bf16.msra.mxu1 %v10089_v42 }
 0x27e   :  { %7406 = vmatprep.subr.bf16.mxu0 %v10093_v43  ;;  %7694 = vmatprep.subr.bf16.mxu1 %v10093_v43 }
 0x281   :  { %7408 = vmatpush1.bf16.msra.mxu0 %v10109_v50  ;;  %7696 = vmatpush1.bf16.msra.mxu1 %v10109_v50 }
 0x282   :  { %7410 = vmatprep.subr.bf16.mxu0 %v10113_v53  ;;  %7698 = vmatprep.subr.bf16.mxu1 %v10113_v53 }
 0x284   :  { %1880 = vmatmul.mubr.f32.vlgmr.msra.gmra.mrb[4].mxu0 %v5654_v11  ;;  %2247 = vmatmul.mubr.f32.vlgmr.msra.gmra.mrb[4].mxu1 %v5663_v39  ;;  %v15620_v11 = vld [vmem:[#allocation5_spill] sm:$0xff]  ;;  %v15621_v39 = vld [vmem:[#allocation6_spill] sm:$0xff] }
 0x285   :  { %7412 = vmatpush1.bf16.msra.mxu0 %v10132_v61  ;;  %7700 = vmatpush1.bf16.msra.mxu1 %v10132_v61 }
 0x286   :  { %7414 = vmatprep.subr.bf16.mxu0 %v10139_v1  ;;  %7702 = vmatprep.subr.bf16.mxu1 %v10139_v1 }
 0x287   :  { %1950 = vmatprep.mubr.f32.mxu0 %v5657_v12  ;;  %2317 = vmatprep.mubr.f32.mxu1 %v5666_v49  ;;  %v15622_v12 = vld [vmem:[#allocation7_spill] sm:$0xff]  ;;  %v15623_v49 = vld [vmem:[#allocation8_spill] sm:$0xff] }
 0x289   :  { %7416 = vmatpush1.bf16.msra.mxu0 %v10161_v15  ;;  %7704 = vmatpush1.bf16.msra.mxu1 %v10161_v15 }
 0x28a   :  { %7418 = vmatprep.subr.bf16.mxu0 %v10165_v18  ;;  %7706 = vmatprep.subr.bf16.mxu1 %v10165_v18 }
 0x28d   :  { %7420 = vmatpush1.bf16.msra.mxu0 %v10181_v29  ;;  %7708 = vmatpush1.bf16.msra.mxu1 %v10181_v29 }
 0x28e   :  { %7422 = vmatprep.subr.bf16.mxu0 %v10185_v30  ;;  %7710 = vmatprep.subr.bf16.mxu1 %v10185_v30 }
 0x291   :  { %7424 = vmatpush1.bf16.msra.mxu0 %v10201_v41  ;;  %7712 = vmatpush1.bf16.msra.mxu1 %v10201_v41 }
 0x292   :  { %7426 = vmatprep.subr.bf16.mxu0 %v10205_v44  ;;  %7714 = vmatprep.subr.bf16.mxu1 %v10205_v44 }
 0x295   :  { %7428 = vmatpush1.bf16.msra.mxu0 %v10221_v55  ;;  %7716 = vmatpush1.bf16.msra.mxu1 %v10221_v55 }
 0x296   :  { %7430 = vmatprep.subr.bf16.mxu0 %v10225_v56  ;;  %7718 = vmatprep.subr.bf16.mxu1 %v10225_v56 }
 0x299   :  { %7432 = vmatpush1.bf16.msra.mxu0 %v10241_v4  ;;  %7720 = vmatpush1.bf16.msra.mxu1 %v10241_v4 }
 0x29a   :  { %7434 = vmatprep.subr.bf16.mxu0 %v10245_v5  ;;  %7722 = vmatprep.subr.bf16.mxu1 %v10245_v5 }
 0x29d   :  { %7436 = vmatpush1.bf16.msra.mxu0 %v10261_v22  ;;  %7724 = vmatpush1.bf16.msra.mxu1 %v10261_v22 }
 0x29e   :  { %7438 = vmatprep.subr.bf16.mxu0 %v10265_v23  ;;  %7726 = vmatprep.subr.bf16.mxu1 %v10265_v23  ;;  %v15640_v23 = vld [vmem:[#allocation26_spill] sm:$0xff] }
 0x2a1   :  { %7440 = vmatpush1.bf16.msra.mxu0 %v10281_v40  ;;  %7728 = vmatpush1.bf16.msra.mxu1 %v10281_v40  ;;  %v15624_v40 = vld [vmem:[#allocation9_spill] sm:$0xff] }
 0x2a2   :  { %7442 = vmatprep.subr.bf16.mxu0 %v10285_v47  ;;  %7730 = vmatprep.subr.bf16.mxu1 %v10285_v47  ;;  %v15625_v47 = vld [vmem:[#allocation10_spill] sm:$0xff] }
 0x2a5   :  { %7444 = vmatpush1.bf16.msra.mxu0 %v15620_v11  ;;  %7732 = vmatpush1.bf16.msra.mxu1 %v15620_v11  ;;  %v15626_v11 = vld [vmem:[#allocation11_spill] sm:$0xff] }
 0x2a6   :  { %7446 = vmatprep.subr.bf16.mxu0 %v15621_v39  ;;  %7734 = vmatprep.subr.bf16.mxu1 %v15621_v39  ;;  %v15627_v39 = vld [vmem:[#allocation12_spill] sm:$0xff] }
 0x2a9   :  { %7448 = vmatpush1.bf16.msra.mxu0 %v15622_v12  ;;  %7736 = vmatpush1.bf16.msra.mxu1 %v15622_v12  ;;  %v15628_v12 = vld [vmem:[#allocation13_spill] sm:$0xff] }
 0x2aa   :  { %7450 = vmatprep.subr.bf16.mxu0 %v15623_v49  ;;  %7738 = vmatprep.subr.bf16.mxu1 %v15623_v49  ;;  %v15629_v49 = vld [vmem:[#allocation14_spill] sm:$0xff] }
 0x2ad   :  { %7452 = vmatpush1.bf16.msra.mxu0 %v15624_v40  ;;  %7740 = vmatpush1.bf16.msra.mxu1 %v15624_v40  ;;  %v15630_v40 = vld [vmem:[#allocation15_spill] sm:$0xff] }
 0x2ae   :  { %7454 = vmatprep.subr.bf16.mxu0 %v15625_v47  ;;  %7742 = vmatprep.subr.bf16.mxu1 %v15625_v47  ;;  %v15631_v47 = vld [vmem:[#allocation16_spill] sm:$0xff] }
 0x2b1   :  { %7456 = vmatpush1.bf16.msra.mxu0 %v15626_v11  ;;  %7744 = vmatpush1.bf16.msra.mxu1 %v15626_v11  ;;  %v15632_v11 = vld [vmem:[#allocation17_spill] sm:$0xff] }
 0x2b2   :  { %7458 = vmatprep.subr.bf16.mxu0 %v15627_v39  ;;  %7746 = vmatprep.subr.bf16.mxu1 %v15627_v39  ;;  %v15633_v39 = vld [vmem:[#allocation18_spill] sm:$0xff] }
 0x2b5   :  { %7460 = vmatpush1.bf16.msra.mxu0 %v15628_v12  ;;  %7748 = vmatpush1.bf16.msra.mxu1 %v15628_v12  ;;  %v15634_v12 = vld [vmem:[#allocation19_spill] sm:$0xff] }
 0x2b6   :  { %7462 = vmatprep.subr.bf16.mxu0 %v15629_v49  ;;  %7750 = vmatprep.subr.bf16.mxu1 %v15629_v49  ;;  %v15635_v49 = vld [vmem:[#allocation20_spill] sm:$0xff] }
 0x2b9   :  { %7464 = vmatpush1.bf16.msra.mxu0 %v15630_v40  ;;  %7752 = vmatpush1.bf16.msra.mxu1 %v15630_v40  ;;  %v5656_v40 = vld [vmem:[%s14978_s0 + $0x130] sm:$0xff] }
 0x2ba   :  { %7466 = vmatprep.subr.bf16.mxu0 %v15631_v47  ;;  %7754 = vmatprep.subr.bf16.mxu1 %v15631_v47  ;;  %v5665_v47 = vld [vmem:[%s14978_s0 + $0x178] sm:$0xff] }
 0x2bd   :  { %7468 = vmatpush1.bf16.msra.mxu0 %v15632_v11  ;;  %7756 = vmatpush1.bf16.msra.mxu1 %v15632_v11  ;;  %v15636_v11 = vld [vmem:[#allocation21_spill] sm:$0xff] }
 0x2be   :  { %7470 = vmatprep.subr.bf16.mxu0 %v15633_v39  ;;  %7758 = vmatprep.subr.bf16.mxu1 %v15633_v39  ;;  %v5659_v39 = vld [vmem:[%s14978_s0 + $0x148] sm:$0xff] }
 0x2c1   :  { %7472 = vmatpush1.bf16.msra.mxu0 %v15634_v12  ;;  %7760 = vmatpush1.bf16.msra.mxu1 %v15634_v12  ;;  %v5668_v12 = vld [vmem:[%s14978_s0 + $0x190] sm:$0xff] }
 0x2c2   :  { %7474 = vmatprep.subr.bf16.mxu0 %v15635_v49  ;;  %7762 = vmatprep.subr.bf16.mxu1 %v15635_v49  ;;  %v15639_v49 = vld [vmem:[#allocation25_spill] sm:$0xff] }
 0x2c4   :  { %1951 = vmatmul.mubr.f32.vlgmr.msra.gmra.mrb[4].mxu0 %v5656_v40  ;;  %2318 = vmatmul.mubr.f32.vlgmr.msra.gmra.mrb[4].mxu1 %v5665_v47  ;;  %v15637_v40 = vld [vmem:[#allocation23_spill] sm:$0xff]  ;;  %v15638_v47 = vld [vmem:[#allocation24_spill] sm:$0xff] }
 0x2c5   :  { %7476 = vmatpush1.bf16.msra.mxu0 %v15636_v11  ;;  %7764 = vmatpush1.bf16.msra.mxu1 %v15636_v11  ;;  %v15641_v11 = vld [vmem:[#allocation27_spill] sm:$0xff] }
 0x2c6   :  { %7478 = vmatprep.subr.bf16.mxu0 %v15544_v62  ;;  %7766 = vmatprep.subr.bf16.mxu1 %v15544_v62  ;;  %v15672_v62 = vld [vmem:[#allocation58_spill] sm:$0xff] }
 0x2c7   :  { %2021 = vmatprep.mubr.f32.mxu0 %v5659_v39  ;;  %2388 = vmatprep.mubr.f32.mxu1 %v5668_v12  ;;  %v15642_v39 = vld [vmem:[#allocation28_spill] sm:$0xff]  ;;  %v15643_v12 = vld [vmem:[#allocation29_spill] sm:$0xff] }
 0x2c9   :  { %7480 = vmatpush1.bf16.msra.mxu0 %v15637_v40  ;;  %7768 = vmatpush1.bf16.msra.mxu1 %v15637_v40  ;;  %v15668_v40 = vld [vmem:[#allocation54_spill] sm:$0xff] }
 0x2ca   :  { %7482 = vmatprep.subr.bf16.mxu0 %v15638_v47  ;;  %7770 = vmatprep.subr.bf16.mxu1 %v15638_v47  ;;  %v15644_v47 = vld [vmem:[#allocation30_spill] sm:$0xff] }
 0x2cd   :  { %7484 = vmatpush1.bf16.msra.mxu0 %v15639_v49  ;;  %7772 = vmatpush1.bf16.msra.mxu1 %v15639_v49  ;;  %v15645_v49 = vld [vmem:[#allocation31_spill] sm:$0xff] }
 0x2ce   :  { %7486 = vmatprep.subr.bf16.mxu0 %v15640_v23  ;;  %7774 = vmatprep.subr.bf16.mxu1 %v15640_v23  ;;  %v15646_v23 = vld [vmem:[#allocation32_spill] sm:$0xff] }
 0x2d1   :  { %7488 = vmatpush1.bf16.msra.mxu0 %v15641_v11  ;;  %7776 = vmatpush1.bf16.msra.mxu1 %v15641_v11  ;;  %v15647_v11 = vld [vmem:[#allocation33_spill] sm:$0xff] }
 0x2d2   :  { %7490 = vmatprep.subr.bf16.mxu0 %v15642_v39  ;;  %7778 = vmatprep.subr.bf16.mxu1 %v15642_v39  ;;  %v15648_v39 = vld [vmem:[#allocation34_spill] sm:$0xff] }
 0x2d5   :  { %7492 = vmatpush1.bf16.msra.mxu0 %v15643_v12  ;;  %7780 = vmatpush1.bf16.msra.mxu1 %v15643_v12  ;;  %v15649_v12 = vld [vmem:[#allocation35_spill] sm:$0xff] }
 0x2d6   :  { %7494 = vmatprep.subr.bf16.mxu0 %v15644_v47  ;;  %7782 = vmatprep.subr.bf16.mxu1 %v15644_v47  ;;  %v15650_v47 = vld [vmem:[#allocation36_spill] sm:$0xff] }
 0x2d9   :  { %7496 = vmatpush1.bf16.msra.mxu0 %v15645_v49  ;;  %7784 = vmatpush1.bf16.msra.mxu1 %v15645_v49  ;;  %v15651_v49 = vld [vmem:[#allocation37_spill] sm:$0xff] }
 0x2da   :  { %7498 = vmatprep.subr.bf16.mxu0 %v15646_v23  ;;  %7786 = vmatprep.subr.bf16.mxu1 %v15646_v23  ;;  %v15652_v23 = vld [vmem:[#allocation38_spill] sm:$0xff] }
 0x2dd   :  { %7500 = vmatpush1.bf16.msra.mxu0 %v15647_v11  ;;  %7788 = vmatpush1.bf16.msra.mxu1 %v15647_v11  ;;  %v15653_v11 = vld [vmem:[#allocation39_spill] sm:$0xff] }
 0x2de   :  { %7502 = vmatprep.subr.bf16.mxu0 %v15648_v39  ;;  %7790 = vmatprep.subr.bf16.mxu1 %v15648_v39  ;;  %v15654_v39 = vld [vmem:[#allocation40_spill] sm:$0xff] }
 0x2e1   :  { %7504 = vmatpush1.bf16.msra.mxu0 %v15649_v12  ;;  %7792 = vmatpush1.bf16.msra.mxu1 %v15649_v12  ;;  %v15655_v12 = vld [vmem:[#allocation41_spill] sm:$0xff] }
 0x2e2   :  { %7506 = vmatprep.subr.bf16.mxu0 %v15650_v47  ;;  %7794 = vmatprep.subr.bf16.mxu1 %v15650_v47  ;;  %v15656_v47 = vld [vmem:[#allocation42_spill] sm:$0xff] }
 0x2e5   :  { %7508 = vmatpush1.bf16.msra.mxu0 %v15651_v49  ;;  %7796 = vmatpush1.bf16.msra.mxu1 %v15651_v49  ;;  %v15657_v49 = vld [vmem:[#allocation43_spill] sm:$0xff] }
 0x2e6   :  { %7510 = vmatprep.subr.bf16.mxu0 %v15652_v23  ;;  %7798 = vmatprep.subr.bf16.mxu1 %v15652_v23  ;;  %v15658_v23 = vld [vmem:[#allocation44_spill] sm:$0xff] }
 0x2e9   :  { %7512 = vmatpush1.bf16.msra.mxu0 %v15653_v11  ;;  %7800 = vmatpush1.bf16.msra.mxu1 %v15653_v11  ;;  %v15659_v11 = vld [vmem:[#allocation45_spill] sm:$0xff] }
 0x2ea   :  { %7514 = vmatprep.subr.bf16.mxu0 %v15654_v39  ;;  %7802 = vmatprep.subr.bf16.mxu1 %v15654_v39  ;;  %v15660_v39 = vld [vmem:[#allocation46_spill] sm:$0xff] }
 0x2ed   :  { %7516 = vmatpush1.bf16.msra.mxu0 %v15655_v12  ;;  %7804 = vmatpush1.bf16.msra.mxu1 %v15655_v12  ;;  %v15661_v12 = vld [vmem:[#allocation47_spill] sm:$0xff] }
 0x2ee   :  { %7518 = vmatprep.subr.bf16.mxu0 %v15656_v47  ;;  %7806 = vmatprep.subr.bf16.mxu1 %v15656_v47  ;;  %v15662_v47 = vld [vmem:[#allocation48_spill] sm:$0xff] }
 0x2f1   :  { %7520 = vmatpush1.bf16.msra.mxu0 %v15657_v49  ;;  %7808 = vmatpush1.bf16.msra.mxu1 %v15657_v49  ;;  %v15663_v49 = vld [vmem:[#allocation49_spill] sm:$0xff] }
 0x2f2   :  { %7522 = vmatprep.subr.bf16.mxu0 %v15658_v23  ;;  %7810 = vmatprep.subr.bf16.mxu1 %v15658_v23  ;;  %v15664_v23 = vld [vmem:[#allocation50_spill] sm:$0xff] }
 0x2f5   :  { %7524 = vmatpush1.bf16.msra.mxu0 %v15659_v11  ;;  %7812 = vmatpush1.bf16.msra.mxu1 %v15659_v11  ;;  %v15665_v11 = vld [vmem:[#allocation51_spill] sm:$0xff] }
 0x2f6   :  { %7526 = vmatprep.subr.bf16.mxu0 %v15660_v39  ;;  %7814 = vmatprep.subr.bf16.mxu1 %v15660_v39  ;;  %v15666_v39 = vld [vmem:[#allocation52_spill] sm:$0xff] }
 0x2f9   :  { %7528 = vmatpush1.bf16.msra.mxu0 %v15661_v12  ;;  %7816 = vmatpush1.bf16.msra.mxu1 %v15661_v12  ;;  %v5658_v12 = vld [vmem:[%s14978_s0 + $0x140] sm:$0xff] }
 0x2fa   :  { %7530 = vmatprep.subr.bf16.mxu0 %v15662_v47  ;;  %7818 = vmatprep.subr.bf16.mxu1 %v15662_v47  ;;  %v5667_v47 = vld [vmem:[%s14978_s0 + $0x188] sm:$0xff] }
 0x2fd   :  { %7532 = vmatpush1.bf16.msra.mxu0 %v15663_v49  ;;  %7820 = vmatpush1.bf16.msra.mxu1 %v15663_v49  ;;  %v15667_v49 = vld [vmem:[#allocation53_spill] sm:$0xff] }
 0x2fe   :  { %7534 = vmatprep.subr.bf16.mxu0 %v15664_v23  ;;  %7822 = vmatprep.subr.bf16.mxu1 %v15664_v23  ;;  %v5661_v23 = vld [vmem:[%s14978_s0 + $0x158] sm:$0xff] }
 0x301   :  { %7536 = vmatpush1.bf16.msra.mxu0 %v15665_v11  ;;  %7824 = vmatpush1.bf16.msra.mxu1 %v15665_v11  ;;  %v5670_v11 = vld [vmem:[%s14978_s0 + $0x1a0] sm:$0xff] }
 0x302   :  { %7538 = vmatprep.subr.bf16.mxu0 %v15666_v39  ;;  %7826 = vmatprep.subr.bf16.mxu1 %v15666_v39  ;;  %v15671_v39 = vld [vmem:[#allocation57_spill] sm:$0xff] }
 0x304   :  { %2022 = vmatmul.mubr.f32.vlgmr.msra.gmra.mrb[4].mxu0 %v5658_v12  ;;  %2389 = vmatmul.mubr.f32.vlgmr.msra.gmra.mrb[4].mxu1 %v5667_v47  ;;  %v15669_v12 = vld [vmem:[#allocation55_spill] sm:$0xff]  ;;  %v15670_v47 = vld [vmem:[#allocation56_spill] sm:$0xff] }
 0x305   :  { %7540 = vmatpush1.bf16.msra.mxu0 %v15667_v49  ;;  %7828 = vmatpush1.bf16.msra.mxu1 %v15667_v49  ;;  %v15673_v49 = vld [vmem:[#allocation59_spill] sm:$0xff] }
 0x306   :  { %7542 = vmatprep.subr.bf16.mxu0 %v15668_v40  ;;  %7830 = vmatprep.subr.bf16.mxu1 %v15668_v40 }
 0x307   :  { %2092 = vmatprep.mubr.f32.mxu0 %v5661_v23  ;;  %2459 = vmatprep.mubr.f32.mxu1 %v5670_v11  ;;  %v15674_v23 = vld [vmem:[#allocation60_spill] sm:$0xff]  ;;  %v15675_v11 = vld [vmem:[#allocation61_spill] sm:$0xff] }
 0x309   :  { %7544 = vmatpush1.bf16.msra.mxu0 %v15669_v12  ;;  %7832 = vmatpush1.bf16.msra.mxu1 %v15669_v12 }
 0x30a   :  { %7546 = vmatprep.subr.bf16.mxu0 %v15670_v47  ;;  %7834 = vmatprep.subr.bf16.mxu1 %v15670_v47  ;;  %v15676_v47 = vld [vmem:[#allocation62_spill] sm:$0xff] }
 0x30d   :  { %7548 = vmatpush1.bf16.msra.mxu0 %v15671_v39  ;;  %7836 = vmatpush1.bf16.msra.mxu1 %v15671_v39 }
 0x30e   :  { %7550 = vmatprep.subr.bf16.mxu0 %v15672_v62  ;;  %7838 = vmatprep.subr.bf16.mxu1 %v15672_v62 }
 0x311   :  { %7552 = vmatpush1.bf16.msra.mxu0 %v15673_v49  ;;  %7840 = vmatpush1.bf16.msra.mxu1 %v15673_v49 }
 0x312   :  { %7554 = vmatprep.subr.bf16.mxu0 %v15674_v23  ;;  %7842 = vmatprep.subr.bf16.mxu1 %v15674_v23  ;;  %v15681_v23 = vld [vmem:[#allocation64_spill] sm:$0xff] }
 0x315   :  { %7556 = vmatpush1.bf16.msra.mxu0 %v15675_v11  ;;  %7844 = vmatpush1.bf16.msra.mxu1 %v15675_v11  ;;  %v15682_v11 = vld [vmem:[#allocation65_spill] sm:$0xff] }
 0x316   :  { %7558 = vmatprep.subr.bf16.mxu0 %v15676_v47  ;;  %7846 = vmatprep.subr.bf16.mxu1 %v15676_v47  ;;  %v15683_v47 = vld [vmem:[#allocation66_spill] sm:$0xff] }
 0x317   :  { %v11887_v39 = vpop.f32.mrb[2].mxu0  ;;  %v11889_v12 = vpop.f32.mrb[2].mxu1 }
 0x318   :  { %15677 = vst [vmem:[#allocation63_spill] sm:$0xff] %v11887_v39  ;;  %15678 = vst [vmem:[#allocation84_spill] sm:$0xff] %v11889_v12  ;;  %v11891_v62 = vpop.f32.mrb[3].mxu0  ;;  %v11893_v40 = vpop.f32.mrb[3].mxu1  ;;  %v15684_v12 = vld [vmem:[#allocation67_spill] sm:$0xff]  ;;  %v15686_v39 = vld [vmem:[#allocation69_spill] sm:$0xff] }
 0x319   :  { %15679 = vst [vmem:[#allocation88_spill] sm:$0xff] %v11891_v62  ;;  %15680 = vst [vmem:[#allocation89_spill] sm:$0xff] %v11893_v40  ;;  %7560 = vmatpush1.bf16.msra.mxu0 %v15588_v10  ;;  %7848 = vmatpush1.bf16.msra.mxu1 %v15588_v10  ;;  %v15685_v40 = vld [vmem:[#allocation68_spill] sm:$0xff]  ;;  %v15687_v62 = vld [vmem:[#allocation70_spill] sm:$0xff] }
 0x31a   :  { %7562 = vmatprep.subr.bf16.mxu0 %v15681_v23  ;;  %7850 = vmatprep.subr.bf16.mxu1 %v15681_v23 }
 0x31d   :  { %7564 = vmatpush1.bf16.msra.mxu0 %v15682_v11  ;;  %7852 = vmatpush1.bf16.msra.mxu1 %v15682_v11  ;;  %v15688_v11 = vld [vmem:[#allocation71_spill] sm:$0xff] }
 0x31e   :  { %7566 = vmatprep.subr.bf16.mxu0 %v15683_v47  ;;  %7854 = vmatprep.subr.bf16.mxu1 %v15683_v47  ;;  %v15689_v47 = vld [vmem:[#allocation72_spill] sm:$0xff] }
 0x321   :  { %7568 = vmatpush1.bf16.msra.mxu0 %v15684_v12  ;;  %7856 = vmatpush1.bf16.msra.mxu1 %v15684_v12  ;;  %v15690_v12 = vld [vmem:[#allocation73_spill] sm:$0xff] }
 0x322   :  { %7570 = vmatprep.subr.bf16.mxu0 %v15685_v40  ;;  %7858 = vmatprep.subr.bf16.mxu1 %v15685_v40  ;;  %v15691_v40 = vld [vmem:[#allocation74_spill] sm:$0xff] }
 0x325   :  { %7572 = vmatpush1.bf16.msra.mxu0 %v15686_v39  ;;  %7860 = vmatpush1.bf16.msra.mxu1 %v15686_v39  ;;  %v15692_v39 = vld [vmem:[#allocation75_spill] sm:$0xff] }
 0x326   :  { %7574 = vmatprep.subr.bf16.mxu0 %v15687_v62  ;;  %7862 = vmatprep.subr.bf16.mxu1 %v15687_v62  ;;  %v15693_v62 = vld [vmem:[#allocation76_spill] sm:$0xff] }
 0x329   :  { %7576 = vmatpush1.bf16.msra.mxu0 %v15688_v11  ;;  %7864 = vmatpush1.bf16.msra.mxu1 %v15688_v11  ;;  %v15694_v11 = vld [vmem:[#allocation77_spill] sm:$0xff] }
 0x32a   :  { %7578 = vmatprep.subr.bf16.mxu0 %v15689_v47  ;;  %7866 = vmatprep.subr.bf16.mxu1 %v15689_v47  ;;  %v15695_v47 = vld [vmem:[#allocation78_spill] sm:$0xff] }
 0x32d   :  { %7580 = vmatpush1.bf16.msra.mxu0 %v15690_v12  ;;  %7868 = vmatpush1.bf16.msra.mxu1 %v15690_v12  ;;  %v15696_v12 = vld [vmem:[#allocation79_spill] sm:$0xff] }
 0x32e   :  { %7582 = vmatprep.subr.bf16.mxu0 %v15691_v40  ;;  %7870 = vmatprep.subr.bf16.mxu1 %v15691_v40  ;;  %v15697_v40 = vld [vmem:[#allocation80_spill] sm:$0xff] }
 0x331   :  { %7584 = vmatpush1.bf16.msra.mxu0 %v15692_v39  ;;  %7872 = vmatpush1.bf16.msra.mxu1 %v15692_v39  ;;  %v15698_v39 = vld [vmem:[#allocation81_spill] sm:$0xff] }
 0x332   :  { %7586 = vmatprep.subr.bf16.mxu0 %v15693_v62  ;;  %7874 = vmatprep.subr.bf16.mxu1 %v15693_v62  ;;  %v15699_v62 = vld [vmem:[#allocation82_spill] sm:$0xff] }
 0x335   :  { %7588 = vmatpush1.bf16.msra.mxu0 %v15694_v11  ;;  %7876 = vmatpush1.bf16.msra.mxu1 %v15694_v11  ;;  %v15700_v11 = vld [vmem:[#allocation83_spill] sm:$0xff] }
 0x336   :  { %7590 = vmatprep.subr.bf16.mxu0 %v15695_v47  ;;  %7878 = vmatprep.subr.bf16.mxu1 %v15695_v47  ;;  %v15704_v47 = vld [vmem:[#allocation87_spill] sm:$0xff] }
 0x339   :  { %7592 = vmatpush1.bf16.msra.mxu0 %v15696_v12  ;;  %7880 = vmatpush1.bf16.msra.mxu1 %v15696_v12  ;;  %v5660_v12 = vld [vmem:[%s14978_s0 + $0x150] sm:$0xff] }
 0x33a   :  { %7594 = vmatprep.subr.bf16.mxu0 %v15697_v40  ;;  %7882 = vmatprep.subr.bf16.mxu1 %v15697_v40  ;;  %v5669_v40 = vld [vmem:[%s14978_s0 + $0x198] sm:$0xff] }
 0x33d   :  { %7596 = vmatpush1.bf16.msra.mxu0 %v15698_v39  ;;  %7884 = vmatpush1.bf16.msra.mxu1 %v15698_v39  ;;  %v15703_v39 = vld [vmem:[#allocation86_spill] sm:$0xff] }
 0x33e   :  { %7598 = vmatprep.subr.bf16.mxu0 %v15699_v62  ;;  %7886 = vmatprep.subr.bf16.mxu1 %v15699_v62  ;;  %v15701_v62 = vld [vmem:[#allocation85_spill] sm:$0xff] }
 0x341   :  { %7600 = vmatpush1.bf16.msra.mxu0 %v15700_v11  ;;  %7888 = vmatpush1.bf16.msra.mxu1 %v15700_v11  ;;  %v15702_v11 = vmov 0.0  }
 0x342   :  { %7602 = vmatprep.subr.bf16.mxu0 %v15609_v36  ;;  %7890 = vmatprep.subr.bf16.mxu1 %v15609_v36 }
 0x344   :  { %2093 = vmatmul.mubr.f32.vlgmr.msra.gmra.mrb[4].mxu0 %v5660_v12  ;;  %2460 = vmatmul.mubr.f32.vlgmr.msra.gmra.mrb[4].mxu1 %v5669_v40  ;;  %v15705_v40 = vld [vmem:[#allocation94_spill] sm:$0xff]  ;;  %v15706_v12 = vld [vmem:[#allocation95_spill] sm:$0xff] }
 0x345   :  { %7604 = vmatpush1.bf16.msra.mxu0 %v11128_v28  ;;  %7892 = vmatpush1.bf16.msra.mxu1 %v11128_v28 }
 0x346   :  { %7606 = vmatprep.subr.bf16.mxu0 %v15701_v62  ;;  %7894 = vmatprep.subr.bf16.mxu1 %v15701_v62 }
 0x347   :  { %2163 = vmatprep.mubr.f32.mxu0 %v15702_v11  ;;  %2530 = vmatprep.mubr.f32.mxu1 %v15702_v11 }
 0x349   :  { %7608 = vmatpush1.bf16.msra.mxu0 %v15703_v39  ;;  %7896 = vmatpush1.bf16.msra.mxu1 %v15703_v39 }
 0x34a   :  { %7610 = vmatprep.subr.bf16.mxu0 %v15704_v47  ;;  %7898 = vmatprep.subr.bf16.mxu1 %v15704_v47 }
 0x34d   :  { %7612 = vmatpush1.bf16.msra.mxu0 %v15614_v54  ;;  %7900 = vmatpush1.bf16.msra.mxu1 %v15614_v54 }
 0x34e   :  { %7614 = vmatprep.subr.bf16.mxu0 %v15615_v48  ;;  %7902 = vmatprep.subr.bf16.mxu1 %v15615_v48 }
 0x351   :  { %7616 = vmatpush1.bf16.msra.mxu0 %v15616_v59  ;;  %7904 = vmatpush1.bf16.msra.mxu1 %v15616_v59 }
 0x352   :  { %7618 = vmatprep.subr.bf16.mxu0 %v15617_v33  ;;  %7906 = vmatprep.subr.bf16.mxu1 %v15617_v33  ;;  %v15707_v33 = vld [vmem:[#allocation96_spill] sm:$0xff] }
 0x355   :  { %7620 = vmatpush1.bf16.msra.mxu0 %v15618_v21  ;;  %7908 = vmatpush1.bf16.msra.mxu1 %v15618_v21  ;;  %v15708_v21 = vld [vmem:[#allocation97_spill] sm:$0xff] }
 0x356   :  { %7622 = vmatprep.subr.bf16.mxu0 %v15619_v60  ;;  %7910 = vmatprep.subr.bf16.mxu1 %v15619_v60 }
 0x359   :  { %7624 = vmatpush1.bf16.msra.mxu0 %v15705_v40  ;;  %7912 = vmatpush1.bf16.msra.mxu1 %v15705_v40  ;;  %v5662_v40 = vld [vmem:[%s14978_s0 + $0x160] sm:$0xff] }
 0x35a   :  { %7626 = vmatprep.subr.bf16.mxu0 %v15706_v12  ;;  %7914 = vmatprep.subr.bf16.mxu1 %v15706_v12  ;;  %v5671_v12 = vld [vmem:[%s14978_s0 + $0x1a8] sm:$0xff] }
 0x35d   :  { %7628 = vmatpush1.bf16.msra.mxu0 %v11253_v2  ;;  %7916 = vmatpush1.bf16.msra.mxu1 %v11253_v2 }
 0x35e   :  { %7630 = vmatprep.subr.bf16.mxu0 %v15707_v33  ;;  %7918 = vmatprep.subr.bf16.mxu1 %v15707_v33  ;;  %v5673_v33 = vld [vmem:[%s14978_s0 + $0x1b8] sm:$0xff] }
 0x361   :  { %7632 = vmatpush1.bf16.msra.mxu0 %v15708_v21  ;;  %7920 = vmatpush1.bf16.msra.mxu1 %v15708_v21  ;;  %v5682_v21 = vld [vmem:[%s14978_s0 + $0x200] sm:$0xff] }
 0x362   :  { %7922 = vmatprep.subr.bf16.mxu0 %v9792_v3  ;;  %8210 = vmatprep.subr.bf16.mxu1 %v9792_v3  ;;  %v5672_v3 = vld [vmem:[%s14978_s0 + $0x1b0] sm:$0xff] }
 0x364   :  { %2164 = vmatmul.mubr.f32.vlgmr.msra.gmra.mrb[4].mxu0 %v5662_v40  ;;  %2531 = vmatmul.mubr.f32.vlgmr.msra.gmra.mrb[4].mxu1 %v5671_v12  ;;  %v15749_v40 = vld [vmem:[#allocation42_spill] sm:$0xff]  ;;  %v15750_v12 = vld [vmem:[#allocation43_spill] sm:$0xff] }
 0x365   :  { %7924 = vmatpush1.bf16.msra.mxu0 %v9803_v7  ;;  %8212 = vmatpush1.bf16.msra.mxu1 %v9803_v7  ;;  %v5681_v7 = vld [vmem:[%s14978_s0 + $0x1f8] sm:$0xff] }
 0x366   :  { %7926 = vmatprep.subr.bf16.mxu0 %v9805_v8  ;;  %8214 = vmatprep.subr.bf16.mxu1 %v9805_v8  ;;  %v5675_v8 = vld [vmem:[%s14978_s0 + $0x1c8] sm:$0xff] }
 0x367   :  { %2613 = vmatprep.mubr.f32.mxu0 %v5673_v33  ;;  %2980 = vmatprep.mubr.f32.mxu1 %v5682_v21  ;;  %v15747_v21 = vld [vmem:[#allocation40_spill] sm:$0xff]  ;;  %v15748_v33 = vld [vmem:[#allocation41_spill] sm:$0xff] }
 0x369   :  { %7928 = vmatpush1.bf16.msra.mxu0 %v9823_v13  ;;  %8216 = vmatpush1.bf16.msra.mxu1 %v9823_v13  ;;  %v5684_v13 = vld [vmem:[%s14978_s0 + $0x210] sm:$0xff] }
 0x36a   :  { %7930 = vmatprep.subr.bf16.mxu0 %v9827_v14  ;;  %8218 = vmatprep.subr.bf16.mxu1 %v9827_v14  ;;  %v15709_v14 = vld [vmem:[#allocation2_spill] sm:$0xff] }
 0x36d   :  { %7932 = vmatpush1.bf16.msra.mxu0 %v9843_v19  ;;  %8220 = vmatpush1.bf16.msra.mxu1 %v9843_v19  ;;  %v15710_v19 = vld [vmem:[#allocation3_spill] sm:$0xff] }
 0x36e   :  { %7934 = vmatprep.subr.bf16.mxu0 %v9847_v20  ;;  %8222 = vmatprep.subr.bf16.mxu1 %v9847_v20  ;;  %v15711_v20 = vld [vmem:[#allocation4_spill] sm:$0xff] }
 0x371   :  { %7936 = vmatpush1.bf16.msra.mxu0 %v9863_v25  ;;  %8224 = vmatpush1.bf16.msra.mxu1 %v9863_v25  ;;  %v15712_v25 = vld [vmem:[#allocation5_spill] sm:$0xff] }
 0x372   :  { %7938 = vmatprep.subr.bf16.mxu0 %v9867_v26  ;;  %8226 = vmatprep.subr.bf16.mxu1 %v9867_v26  ;;  %v15713_v26 = vld [vmem:[#allocation6_spill] sm:$0xff] }
 0x375   :  { %7940 = vmatpush1.bf16.msra.mxu0 %v9883_v31  ;;  %8228 = vmatpush1.bf16.msra.mxu1 %v9883_v31  ;;  %v15714_v31 = vld [vmem:[#allocation7_spill] sm:$0xff] }
 0x376   :  { %7942 = vmatprep.subr.bf16.mxu0 %v9887_v32  ;;  %8230 = vmatprep.subr.bf16.mxu1 %v9887_v32  ;;  %v15715_v32 = vld [vmem:[#allocation8_spill] sm:$0xff] }
 0x379   :  { %7944 = vmatpush1.bf16.msra.mxu0 %v9903_v37  ;;  %8232 = vmatpush1.bf16.msra.mxu1 %v9903_v37  ;;  %v15716_v37 = vld [vmem:[#allocation9_spill] sm:$0xff] }
 0x37a   :  { %7946 = vmatprep.subr.bf16.mxu0 %v9907_v38  ;;  %8234 = vmatprep.subr.bf16.mxu1 %v9907_v38  ;;  %v15717_v38 = vld [vmem:[#allocation10_spill] sm:$0xff] }
 0x37d   :  { %7948 = vmatpush1.bf16.msra.mxu0 %v9929_v45  ;;  %8236 = vmatpush1.bf16.msra.mxu1 %v9929_v45  ;;  %v15718_v45 = vld [vmem:[#allocation11_spill] sm:$0xff] }
 0x37e   :  { %7950 = vmatprep.subr.bf16.mxu0 %v9933_v46  ;;  %8238 = vmatprep.subr.bf16.mxu1 %v9933_v46  ;;  %v15719_v46 = vld [vmem:[#allocation12_spill] sm:$0xff] }
 0x381   :  { %7952 = vmatpush1.bf16.msra.mxu0 %v9949_v51  ;;  %8240 = vmatpush1.bf16.msra.mxu1 %v9949_v51  ;;  %v15720_v51 = vld [vmem:[#allocation13_spill] sm:$0xff] }
 0x382   :  { %7954 = vmatprep.subr.bf16.mxu0 %v9953_v52  ;;  %8242 = vmatprep.subr.bf16.mxu1 %v9953_v52  ;;  %v15721_v52 = vld [vmem:[#allocation14_spill] sm:$0xff] }
 0x385   :  { %7956 = vmatpush1.bf16.msra.mxu0 %v9969_v57  ;;  %8244 = vmatpush1.bf16.msra.mxu1 %v9969_v57  ;;  %v15722_v57 = vld [vmem:[#allocation15_spill] sm:$0xff] }
 0x386   :  { %7958 = vmatprep.subr.bf16.mxu0 %v9973_v58  ;;  %8246 = vmatprep.subr.bf16.mxu1 %v9973_v58  ;;  %v15723_v58 = vld [vmem:[#allocation16_spill] sm:$0xff] }
 0x389   :  { %7960 = vmatpush1.bf16.msra.mxu0 %v9989_v63  ;;  %8248 = vmatpush1.bf16.msra.mxu1 %v9989_v63  ;;  %v15724_v63 = vld [vmem:[#allocation17_spill] sm:$0xff] }
 0x38a   :  { %7962 = vmatprep.subr.bf16.mxu0 %v9993_v0  ;;  %8250 = vmatprep.subr.bf16.mxu1 %v9993_v0  ;;  %v15725_v0 = vld [vmem:[#allocation18_spill] sm:$0xff] }
 0x38d   :  { %7964 = vmatpush1.bf16.msra.mxu0 %v10009_v6  ;;  %8252 = vmatpush1.bf16.msra.mxu1 %v10009_v6  ;;  %v15726_v6 = vld [vmem:[#allocation19_spill] sm:$0xff] }
 0x38e   :  { %7966 = vmatprep.subr.bf16.mxu0 %v10013_v9  ;;  %8254 = vmatprep.subr.bf16.mxu1 %v10013_v9  ;;  %v5674_v9 = vld [vmem:[%s14978_s0 + $0x1c0] sm:$0xff] }
 0x391   :  { %7968 = vmatpush1.bf16.msra.mxu0 %v10029_v16  ;;  %8256 = vmatpush1.bf16.msra.mxu1 %v10029_v16  ;;  %v5683_v16 = vld [vmem:[%s14978_s0 + $0x208] sm:$0xff] }
 0x392   :  { %7970 = vmatprep.subr.bf16.mxu0 %v10033_v17  ;;  %8258 = vmatprep.subr.bf16.mxu1 %v10033_v17  ;;  %v15727_v17 = vld [vmem:[#allocation20_spill] sm:$0xff] }
 0x395   :  { %7972 = vmatpush1.bf16.msra.mxu0 %v10049_v24  ;;  %8260 = vmatpush1.bf16.msra.mxu1 %v10049_v24  ;;  %v5677_v24 = vld [vmem:[%s14978_s0 + $0x1d8] sm:$0xff] }
 0x396   :  { %7974 = vmatprep.subr.bf16.mxu0 %v10053_v27  ;;  %8262 = vmatprep.subr.bf16.mxu1 %v10053_v27  ;;  %v5686_v27 = vld [vmem:[%s14978_s0 + $0x220] sm:$0xff] }
 0x399   :  { %7976 = vmatpush1.bf16.msra.mxu0 %v10069_v34  ;;  %8264 = vmatpush1.bf16.msra.mxu1 %v10069_v34  ;;  %v15728_v34 = vld [vmem:[#allocation21_spill] sm:$0xff] }
 0x39a   :  { %7978 = vmatprep.subr.bf16.mxu0 %v10073_v35  ;;  %8266 = vmatprep.subr.bf16.mxu1 %v10073_v35  ;;  %v15729_v35 = vld [vmem:[#allocation22_spill] sm:$0xff] }
 0x39d   :  { %7980 = vmatpush1.bf16.msra.mxu0 %v10089_v42  ;;  %8268 = vmatpush1.bf16.msra.mxu1 %v10089_v42  ;;  %v15730_v42 = vld [vmem:[#allocation23_spill] sm:$0xff] }
 0x39e   :  { %7982 = vmatprep.subr.bf16.mxu0 %v10093_v43  ;;  %8270 = vmatprep.subr.bf16.mxu1 %v10093_v43  ;;  %v15731_v43 = vld [vmem:[#allocation24_spill] sm:$0xff] }
 0x3a1   :  { %7984 = vmatpush1.bf16.msra.mxu0 %v10109_v50  ;;  %8272 = vmatpush1.bf16.msra.mxu1 %v10109_v50  ;;  %v15732_v50 = vld [vmem:[#allocation25_spill] sm:$0xff] }
 0x3a2   :  { %7986 = vmatprep.subr.bf16.mxu0 %v10113_v53  ;;  %8274 = vmatprep.subr.bf16.mxu1 %v10113_v53  ;;  %v15733_v53 = vld [vmem:[#allocation26_spill] sm:$0xff] }
 0x3a4   :  { %2614 = vmatmul.mubr.f32.vlgmr.msra.gmra.mrb[6].mxu0 %v5672_v3  ;;  %2981 = vmatmul.mubr.f32.vlgmr.msra.gmra.mrb[6].mxu1 %v5681_v7  ;;  %v15751_v3 = vld [vmem:[#allocation44_spill] sm:$0xff]  ;;  %v15752_v7 = vld [vmem:[#allocation45_spill] sm:$0xff] }
 0x3a5   :  { %7988 = vmatpush1.bf16.msra.mxu0 %v10132_v61  ;;  %8276 = vmatpush1.bf16.msra.mxu1 %v10132_v61  ;;  %v15734_v61 = vld [vmem:[#allocation27_spill] sm:$0xff] }
 0x3a6   :  { %7990 = vmatprep.subr.bf16.mxu0 %v10139_v1  ;;  %8278 = vmatprep.subr.bf16.mxu1 %v10139_v1  ;;  %v15735_v1 = vld [vmem:[#allocation28_spill] sm:$0xff] }
 0x3a7   :  { %2684 = vmatprep.mubr.f32.mxu0 %v5675_v8  ;;  %3051 = vmatprep.mubr.f32.mxu1 %v5684_v13  ;;  %v15753_v8 = vld [vmem:[#allocation46_spill] sm:$0xff]  ;;  %v15754_v13 = vld [vmem:[#allocation47_spill] sm:$0xff] }
 0x3a9   :  { %7992 = vmatpush1.bf16.msra.mxu0 %v10161_v15  ;;  %8280 = vmatpush1.bf16.msra.mxu1 %v10161_v15  ;;  %v15736_v15 = vld [vmem:[#allocation29_spill] sm:$0xff] }
 0x3aa   :  { %7994 = vmatprep.subr.bf16.mxu0 %v10165_v18  ;;  %8282 = vmatprep.subr.bf16.mxu1 %v10165_v18  ;;  %v15737_v18 = vld [vmem:[#allocation30_spill] sm:$0xff] }
 0x3ad   :  { %7996 = vmatpush1.bf16.msra.mxu0 %v10181_v29  ;;  %8284 = vmatpush1.bf16.msra.mxu1 %v10181_v29  ;;  %v15738_v29 = vld [vmem:[#allocation31_spill] sm:$0xff] }
 0x3ae   :  { %7998 = vmatprep.subr.bf16.mxu0 %v10185_v30  ;;  %8286 = vmatprep.subr.bf16.mxu1 %v10185_v30  ;;  %v15739_v30 = vld [vmem:[#allocation32_spill] sm:$0xff] }
 0x3b1   :  { %8000 = vmatpush1.bf16.msra.mxu0 %v10201_v41  ;;  %8288 = vmatpush1.bf16.msra.mxu1 %v10201_v41  ;;  %v15740_v41 = vld [vmem:[#allocation33_spill] sm:$0xff] }
 0x3b2   :  { %8002 = vmatprep.subr.bf16.mxu0 %v10205_v44  ;;  %8290 = vmatprep.subr.bf16.mxu1 %v10205_v44  ;;  %v15741_v44 = vld [vmem:[#allocation34_spill] sm:$0xff] }
 0x3b5   :  { %8004 = vmatpush1.bf16.msra.mxu0 %v10221_v55  ;;  %8292 = vmatpush1.bf16.msra.mxu1 %v10221_v55  ;;  %v15742_v55 = vld [vmem:[#allocation35_spill] sm:$0xff] }
 0x3b6   :  { %8006 = vmatprep.subr.bf16.mxu0 %v10225_v56  ;;  %8294 = vmatprep.subr.bf16.mxu1 %v10225_v56  ;;  %v15743_v56 = vld [vmem:[#allocation36_spill] sm:$0xff] }
 0x3b9   :  { %8008 = vmatpush1.bf16.msra.mxu0 %v10241_v4  ;;  %8296 = vmatpush1.bf16.msra.mxu1 %v10241_v4  ;;  %v15744_v4 = vld [vmem:[#allocation37_spill] sm:$0xff] }
 0x3ba   :  { %8010 = vmatprep.subr.bf16.mxu0 %v10245_v5  ;;  %8298 = vmatprep.subr.bf16.mxu1 %v10245_v5  ;;  %v15745_v5 = vld [vmem:[#allocation38_spill] sm:$0xff] }
 0x3bd   :  { %8012 = vmatpush1.bf16.msra.mxu0 %v10261_v22  ;;  %8300 = vmatpush1.bf16.msra.mxu1 %v10261_v22  ;;  %v15746_v22 = vld [vmem:[#allocation39_spill] sm:$0xff] }
 0x3be   :  { %8014 = vmatprep.subr.bf16.mxu0 %v15709_v14  ;;  %8302 = vmatprep.subr.bf16.mxu1 %v15709_v14  ;;  %v15755_v14 = vld [vmem:[#allocation48_spill] sm:$0xff] }
 0x3c1   :  { %8016 = vmatpush1.bf16.msra.mxu0 %v15710_v19  ;;  %8304 = vmatpush1.bf16.msra.mxu1 %v15710_v19  ;;  %v15756_v19 = vld [vmem:[#allocation49_spill] sm:$0xff] }
 0x3c2   :  { %8018 = vmatprep.subr.bf16.mxu0 %v15711_v20  ;;  %8306 = vmatprep.subr.bf16.mxu1 %v15711_v20  ;;  %v15757_v20 = vld [vmem:[#allocation50_spill] sm:$0xff] }
 0x3c5   :  { %8020 = vmatpush1.bf16.msra.mxu0 %v15712_v25  ;;  %8308 = vmatpush1.bf16.msra.mxu1 %v15712_v25  ;;  %v15758_v25 = vld [vmem:[#allocation51_spill] sm:$0xff] }
 0x3c6   :  { %8022 = vmatprep.subr.bf16.mxu0 %v15713_v26  ;;  %8310 = vmatprep.subr.bf16.mxu1 %v15713_v26  ;;  %v5676_v26 = vld [vmem:[%s14978_s0 + $0x1d0] sm:$0xff] }
 0x3c9   :  { %8024 = vmatpush1.bf16.msra.mxu0 %v15714_v31  ;;  %8312 = vmatpush1.bf16.msra.mxu1 %v15714_v31  ;;  %v5685_v31 = vld [vmem:[%s14978_s0 + $0x218] sm:$0xff] }
 0x3ca   :  { %8026 = vmatprep.subr.bf16.mxu0 %v15715_v32  ;;  %8314 = vmatprep.subr.bf16.mxu1 %v15715_v32  ;;  %v15759_v32 = vld [vmem:[#allocation52_spill] sm:$0xff] }
 0x3cd   :  { %8028 = vmatpush1.bf16.msra.mxu0 %v15716_v37  ;;  %8316 = vmatpush1.bf16.msra.mxu1 %v15716_v37  ;;  %v5679_v37 = vld [vmem:[%s14978_s0 + $0x1e8] sm:$0xff] }
 0x3ce   :  { %8030 = vmatprep.subr.bf16.mxu0 %v15717_v38  ;;  %8318 = vmatprep.subr.bf16.mxu1 %v15717_v38  ;;  %v5688_v38 = vld [vmem:[%s14978_s0 + $0x230] sm:$0xff] }
 0x3d1   :  { %8032 = vmatpush1.bf16.msra.mxu0 %v15718_v45  ;;  %8320 = vmatpush1.bf16.msra.mxu1 %v15718_v45  ;;  %v15760_v45 = vld [vmem:[#allocation53_spill] sm:$0xff] }
 0x3d2   :  { %8034 = vmatprep.subr.bf16.mxu0 %v15719_v46  ;;  %8322 = vmatprep.subr.bf16.mxu1 %v15719_v46  ;;  %v15761_v46 = vld [vmem:[#allocation54_spill] sm:$0xff] }
 0x3d5   :  { %8036 = vmatpush1.bf16.msra.mxu0 %v15720_v51  ;;  %8324 = vmatpush1.bf16.msra.mxu1 %v15720_v51  ;;  %v15762_v51 = vld [vmem:[#allocation55_spill] sm:$0xff] }
 0x3d6   :  { %8038 = vmatprep.subr.bf16.mxu0 %v15721_v52  ;;  %8326 = vmatprep.subr.bf16.mxu1 %v15721_v52  ;;  %v15763_v52 = vld [vmem:[#allocation56_spill] sm:$0xff] }
 0x3d9   :  { %8040 = vmatpush1.bf16.msra.mxu0 %v15722_v57  ;;  %8328 = vmatpush1.bf16.msra.mxu1 %v15722_v57  ;;  %v15764_v57 = vld [vmem:[#allocation57_spill] sm:$0xff] }
 0x3da   :  { %8042 = vmatprep.subr.bf16.mxu0 %v15723_v58  ;;  %8330 = vmatprep.subr.bf16.mxu1 %v15723_v58  ;;  %v15765_v58 = vld [vmem:[#allocation58_spill] sm:$0xff] }
 0x3dd   :  { %8044 = vmatpush1.bf16.msra.mxu0 %v15724_v63  ;;  %8332 = vmatpush1.bf16.msra.mxu1 %v15724_v63  ;;  %v15766_v63 = vld [vmem:[#allocation60_spill] sm:$0xff] }
 0x3de   :  { %8046 = vmatprep.subr.bf16.mxu0 %v15725_v0  ;;  %8334 = vmatprep.subr.bf16.mxu1 %v15725_v0  ;;  %v15767_v0 = vld [vmem:[#allocation61_spill] sm:$0xff] }
 0x3e1   :  { %8048 = vmatpush1.bf16.msra.mxu0 %v15726_v6  ;;  %8336 = vmatpush1.bf16.msra.mxu1 %v15726_v6  ;;  %v15768_v6 = vld [vmem:[#allocation62_spill] sm:$0xff] }
 0x3e2   :  { %8050 = vmatprep.subr.bf16.mxu0 %v15727_v17  ;;  %8338 = vmatprep.subr.bf16.mxu1 %v15727_v17 }
 0x3e4   :  { %2685 = vmatmul.mubr.f32.vlgmr.msra.gmra.mrb[6].mxu0 %v5674_v9  ;;  %3052 = vmatmul.mubr.f32.vlgmr.msra.gmra.mrb[6].mxu1 %v5683_v16 }
 0x3e5   :  { %8052 = vmatpush1.bf16.msra.mxu0 %v15728_v34  ;;  %8340 = vmatpush1.bf16.msra.mxu1 %v15728_v34  ;;  %v15771_v34 = vld [vmem:[#allocation67_spill] sm:$0xff] }
 0x3e6   :  { %8054 = vmatprep.subr.bf16.mxu0 %v15729_v35  ;;  %8342 = vmatprep.subr.bf16.mxu1 %v15729_v35  ;;  %v15772_v35 = vld [vmem:[#allocation68_spill] sm:$0xff] }
 0x3e7   :  { %2755 = vmatprep.mubr.f32.mxu0 %v5677_v24  ;;  %3122 = vmatprep.mubr.f32.mxu1 %v5686_v27  ;;  %v15770_v27 = vld [vmem:[#allocation66_spill] sm:$0xff] }
 0x3e9   :  { %8056 = vmatpush1.bf16.msra.mxu0 %v15730_v42  ;;  %8344 = vmatpush1.bf16.msra.mxu1 %v15730_v42  ;;  %v15775_v42 = vld [vmem:[#allocation71_spill] sm:$0xff] }
 0x3ea   :  { %8058 = vmatprep.subr.bf16.mxu0 %v15731_v43  ;;  %8346 = vmatprep.subr.bf16.mxu1 %v15731_v43  ;;  %v15776_v43 = vld [vmem:[#allocation72_spill] sm:$0xff] }
 0x3ed   :  { %8060 = vmatpush1.bf16.msra.mxu0 %v15732_v50  ;;  %8348 = vmatpush1.bf16.msra.mxu1 %v15732_v50  ;;  %v15777_v50 = vld [vmem:[#allocation73_spill] sm:$0xff] }
 0x3ee   :  { %8062 = vmatprep.subr.bf16.mxu0 %v15733_v53  ;;  %8350 = vmatprep.subr.bf16.mxu1 %v15733_v53  ;;  %v15778_v53 = vld [vmem:[#allocation74_spill] sm:$0xff] }
 0x3f1   :  { %8064 = vmatpush1.bf16.msra.mxu0 %v15734_v61  ;;  %8352 = vmatpush1.bf16.msra.mxu1 %v15734_v61  ;;  %v15779_v61 = vld [vmem:[#allocation75_spill] sm:$0xff] }
 0x3f2   :  { %8066 = vmatprep.subr.bf16.mxu0 %v15735_v1  ;;  %8354 = vmatprep.subr.bf16.mxu1 %v15735_v1  ;;  %v15780_v1 = vld [vmem:[#allocation76_spill] sm:$0xff] }
 0x3f5   :  { %8068 = vmatpush1.bf16.msra.mxu0 %v15736_v15  ;;  %8356 = vmatpush1.bf16.msra.mxu1 %v15736_v15  ;;  %v15781_v15 = vld [vmem:[#allocation77_spill] sm:$0xff] }
 0x3f6   :  { %8070 = vmatprep.subr.bf16.mxu0 %v15737_v18  ;;  %8358 = vmatprep.subr.bf16.mxu1 %v15737_v18  ;;  %v15782_v18 = vld [vmem:[#allocation78_spill] sm:$0xff] }
 0x3f9   :  { %8072 = vmatpush1.bf16.msra.mxu0 %v15738_v29  ;;  %8360 = vmatpush1.bf16.msra.mxu1 %v15738_v29  ;;  %v15783_v29 = vld [vmem:[#allocation79_spill] sm:$0xff] }
 0x3fa   :  { %8074 = vmatprep.subr.bf16.mxu0 %v15739_v30  ;;  %8362 = vmatprep.subr.bf16.mxu1 %v15739_v30  ;;  %v15784_v30 = vld [vmem:[#allocation80_spill] sm:$0xff] }
 0x3fd   :  { %8076 = vmatpush1.bf16.msra.mxu0 %v15740_v41  ;;  %8364 = vmatpush1.bf16.msra.mxu1 %v15740_v41  ;;  %v15785_v41 = vld [vmem:[#allocation81_spill] sm:$0xff] }
 0x3fe   :  { %8078 = vmatprep.subr.bf16.mxu0 %v15741_v44  ;;  %8366 = vmatprep.subr.bf16.mxu1 %v15741_v44  ;;  %v15786_v44 = vld [vmem:[#allocation82_spill] sm:$0xff] }
 0x401   :  { %8080 = vmatpush1.bf16.msra.mxu0 %v15742_v55  ;;  %8368 = vmatpush1.bf16.msra.mxu1 %v15742_v55  ;;  %v15787_v55 = vld [vmem:[#allocation83_spill] sm:$0xff] }
 0x402   :  { %8082 = vmatprep.subr.bf16.mxu0 %v15743_v56  ;;  %8370 = vmatprep.subr.bf16.mxu1 %v15743_v56  ;;  %v5678_v56 = vld [vmem:[%s14978_s0 + $0x1e0] sm:$0xff] }
 0x405   :  { %8084 = vmatpush1.bf16.msra.mxu0 %v15744_v4  ;;  %8372 = vmatpush1.bf16.msra.mxu1 %v15744_v4  ;;  %v5687_v4 = vld [vmem:[%s14978_s0 + $0x228] sm:$0xff] }
 0x406   :  { %8086 = vmatprep.subr.bf16.mxu0 %v15745_v5  ;;  %8374 = vmatprep.subr.bf16.mxu1 %v15745_v5 }
 0x409   :  { %8088 = vmatpush1.bf16.msra.mxu0 %v15746_v22  ;;  %8376 = vmatpush1.bf16.msra.mxu1 %v15746_v22  ;;  %v3276_v22 = vld [vmem:[%s14980_s3 + $0x18] sm:$0xff] }
 0x40a   :  { %8090 = vmatprep.subr.bf16.mxu0 %v15747_v21  ;;  %8378 = vmatprep.subr.bf16.mxu1 %v15747_v21  ;;  %v15794_v21 = vld [vmem:[#allocation96_spill] sm:$0xff] }
 0x40d   :  { %8092 = vmatpush1.bf16.msra.mxu0 %v15748_v33  ;;  %8380 = vmatpush1.bf16.msra.mxu1 %v15748_v33 }
 0x40e   :  { %8094 = vmatprep.subr.bf16.mxu0 %v15749_v40  ;;  %8382 = vmatprep.subr.bf16.mxu1 %v15749_v40  ;;  %v3273_v40 = vld [vmem:[%s14980_s3] sm:$0xff] }
 0x411   :  { %8096 = vmatpush1.bf16.msra.mxu0 %v15750_v12  ;;  %8384 = vmatpush1.bf16.msra.mxu1 %v15750_v12  ;;  %v3275_v12 = vld [vmem:[%s14980_s3 + $0x10] sm:$0xff] }
 0x412   :  { %8098 = vmatprep.subr.bf16.mxu0 %v15751_v3  ;;  %8386 = vmatprep.subr.bf16.mxu1 %v15751_v3  ;;  %v15795_v3 = vld [vmem:[#allocation100_spill] sm:$0xff] }
 0x415   :  { %8100 = vmatpush1.bf16.msra.mxu0 %v15752_v7  ;;  %8388 = vmatpush1.bf16.msra.mxu1 %v15752_v7 }
 0x416   :  { %8102 = vmatprep.subr.bf16.mxu0 %v15753_v8  ;;  %8390 = vmatprep.subr.bf16.mxu1 %v15753_v8  ;;  %v15796_v8 = vld [vmem:[#allocation88_spill] sm:$0xff] }
 0x419   :  { %8104 = vmatpush1.bf16.msra.mxu0 %v15754_v13  ;;  %8392 = vmatpush1.bf16.msra.mxu1 %v15754_v13  ;;  %v3278_v13 = vld [vmem:[%s14980_s3 + $0x28] sm:$0xff] }
 0x41a   :  { %8106 = vmatprep.subr.bf16.mxu0 %v15755_v14  ;;  %8394 = vmatprep.subr.bf16.mxu1 %v15755_v14  ;;  %v3280_v14 = vld [vmem:[%s14980_s3 + $0x38] sm:$0xff] }
 0x41d   :  { %8108 = vmatpush1.bf16.msra.mxu0 %v15756_v19  ;;  %8396 = vmatpush1.bf16.msra.mxu1 %v15756_v19  ;;  %v15797_v19 = vld [vmem:[#allocation97_spill] sm:$0xff] }
 0x41e   :  { %8110 = vmatprep.subr.bf16.mxu0 %v15757_v20  ;;  %8398 = vmatprep.subr.bf16.mxu1 %v15757_v20  ;;  %v5680_v20 = vld [vmem:[%s14978_s0 + $0x1f0] sm:$0xff] }
 0x421   :  { %8112 = vmatpush1.bf16.msra.mxu0 %v15758_v25  ;;  %8400 = vmatpush1.bf16.msra.mxu1 %v15758_v25  ;;  %v5689_v25 = vld [vmem:[%s14978_s0 + $0x238] sm:$0xff] }
 0x422   :  { %8114 = vmatprep.subr.bf16.mxu0 %v15759_v32  ;;  %8402 = vmatprep.subr.bf16.mxu1 %v15759_v32  ;;  %v3279_v32 = vld [vmem:[%s14980_s3 + $0x30] sm:$0xff] }
 0x424   :  { %2756 = vmatmul.mubr.f32.vlgmr.msra.gmra.mrb[6].mxu0 %v5676_v26  ;;  %3123 = vmatmul.mubr.f32.vlgmr.msra.gmra.mrb[6].mxu1 %v5685_v31  ;;  %v12375_v26 = vpack.c.bf16 %v3275_v12, %v3273_v40  ;;  %v3277_v31 = vld [vmem:[%s14980_s3 + $0x20] sm:$0xff]  ;;  %v3308_v40 = vld [vmem:[%s14980_s3 + $0x118] sm:$0xff] }
 0x425   :  { %8116 = vmatpush1.bf16.msra.mxu0 %v15760_v45  ;;  %8404 = vmatpush1.bf16.msra.mxu1 %v15760_v45  ;;  %v3282_v45 = vld [vmem:[%s14980_s3 + $0x48] sm:$0xff] }
 0x426   :  { %8118 = vmatprep.subr.bf16.mxu0 %v15761_v46  ;;  %8406 = vmatprep.subr.bf16.mxu1 %v15761_v46  ;;  %v3284_v46 = vld [vmem:[%s14980_s3 + $0x58] sm:$0xff] }
 0x427   :  { %2826 = vmatprep.mubr.f32.mxu0 %v5679_v37  ;;  %3193 = vmatprep.mubr.f32.mxu1 %v5688_v38  ;;  %v12385_v38 = vpack.c.bf16 %v3280_v14, %v3278_v13  ;;  %v3310_v13 = vld [vmem:[%s14980_s3 + $0x128] sm:$0xff]  ;;  %v3312_v14 = vld [vmem:[%s14980_s3 + $0x138] sm:$0xff] }
 0x429   :  { %8120 = vmatpush1.bf16.msra.mxu0 %v15762_v51  ;;  %8408 = vmatpush1.bf16.msra.mxu1 %v15762_v51 }
 0x42a   :  { %8122 = vmatprep.subr.bf16.mxu0 %v15763_v52  ;;  %8410 = vmatprep.subr.bf16.mxu1 %v15763_v52  ;;  %v12395_v52 = vpack.c.bf16 %v3279_v32, %v3277_v31  ;;  %v3311_v31 = vld [vmem:[%s14980_s3 + $0x130] sm:$0xff]  ;;  %v3314_v32 = vld [vmem:[%s14980_s3 + $0x148] sm:$0xff] }
 0x42d   :  { %8124 = vmatpush1.bf16.msra.mxu0 %v15764_v57  ;;  %8412 = vmatpush1.bf16.msra.mxu1 %v15764_v57  ;;  %v12400_v57 = vpack.c.bf16 %v3284_v46, %v3282_v45 }
 0x42e   :  { %8126 = vmatprep.subr.bf16.mxu0 %v15765_v58  ;;  %8414 = vmatprep.subr.bf16.mxu1 %v15765_v58  ;;  %v3281_v58 = vld [vmem:[%s14980_s3 + $0x40] sm:$0xff] }
 0x431   :  { %8128 = vmatpush1.bf16.msra.mxu0 %v15673_v49  ;;  %8416 = vmatpush1.bf16.msra.mxu1 %v15673_v49  ;;  %v15769_v49 = vld [vmem:[#allocation65_spill] sm:$0xff] }
 0x432   :  { %8130 = vmatprep.subr.bf16.mxu0 %v15766_v63  ;;  %8418 = vmatprep.subr.bf16.mxu1 %v15766_v63  ;;  %v3283_v63 = vld [vmem:[%s14980_s3 + $0x50] sm:$0xff] }
 0x435   :  { %8132 = vmatpush1.bf16.msra.mxu0 %v15767_v0  ;;  %8420 = vmatpush1.bf16.msra.mxu1 %v15767_v0  ;;  %v3286_v0 = vld [vmem:[%s14980_s3 + $0x68] sm:$0xff] }
 0x436   :  { %8134 = vmatprep.subr.bf16.mxu0 %v15768_v6  ;;  %8422 = vmatprep.subr.bf16.mxu1 %v15768_v6  ;;  %v3288_v6 = vld [vmem:[%s14980_s3 + $0x78] sm:$0xff] }
 0x437   :  { %v12239_v9 = vpop.f32.mrb[4].mxu0  ;;  %v12241_v16 = vpop.f32.mrb[4].mxu1 }
 0x438   :  { %v12243_v17 = vpop.f32.mrb[5].mxu0  ;;  %v12245_v24 = vpop.f32.mrb[5].mxu1 }
 0x439   :  { %8136 = vmatpush1.bf16.msra.mxu0 %v15588_v10  ;;  %8424 = vmatpush1.bf16.msra.mxu1 %v15588_v10  ;;  %v15773_v10 = vld [vmem:[#allocation69_spill] sm:$0xff] }
 0x43a   :  { %8138 = vmatprep.subr.bf16.mxu0 %v15681_v23  ;;  %8426 = vmatprep.subr.bf16.mxu1 %v15681_v23  ;;  %v15774_v23 = vld [vmem:[#allocation70_spill] sm:$0xff] }
 0x43d   :  { %8140 = vmatpush1.bf16.msra.mxu0 %v15769_v49  ;;  %8428 = vmatpush1.bf16.msra.mxu1 %v15769_v49  ;;  %v12417_v49 = vpack.c.bf16 %v3283_v63, %v3281_v58  ;;  %v3313_v58 = vld [vmem:[%s14980_s3 + $0x140] sm:$0xff]  ;;  %v3315_v63 = vld [vmem:[%s14980_s3 + $0x150] sm:$0xff] }
 0x43e   :  { %8142 = vmatprep.subr.bf16.mxu0 %v15770_v27  ;;  %8430 = vmatprep.subr.bf16.mxu1 %v15770_v27  ;;  %v12421_v27 = vpack.c.bf16 %v3288_v6, %v3286_v0  ;;  %v3318_v0 = vld [vmem:[%s14980_s3 + $0x168] sm:$0xff]  ;;  %v3320_v6 = vld [vmem:[%s14980_s3 + $0x178] sm:$0xff] }
 0x441   :  { %8144 = vmatpush1.bf16.msra.mxu0 %v15771_v34  ;;  %8432 = vmatpush1.bf16.msra.mxu1 %v15771_v34  ;;  %v3285_v34 = vld [vmem:[%s14980_s3 + $0x60] sm:$0xff] }
 0x442   :  { %8146 = vmatprep.subr.bf16.mxu0 %v15772_v35  ;;  %8434 = vmatprep.subr.bf16.mxu1 %v15772_v35  ;;  %v3287_v35 = vld [vmem:[%s14980_s3 + $0x70] sm:$0xff] }
 0x445   :  { %8148 = vmatpush1.bf16.msra.mxu0 %v15773_v10  ;;  %8436 = vmatpush1.bf16.msra.mxu1 %v15773_v10  ;;  %v3290_v10 = vld [vmem:[%s14980_s3 + $0x88] sm:$0xff] }
 0x446   :  { %8150 = vmatprep.subr.bf16.mxu0 %v15774_v23  ;;  %8438 = vmatprep.subr.bf16.mxu1 %v15774_v23  ;;  %v3292_v23 = vld [vmem:[%s14980_s3 + $0x98] sm:$0xff] }
 0x449   :  { %8152 = vmatpush1.bf16.msra.mxu0 %v15775_v42  ;;  %8440 = vmatpush1.bf16.msra.mxu1 %v15775_v42  ;;  %v12437_v42 = vpack.c.bf16 %v3287_v35, %v3285_v34  ;;  %v12577_v34 = vpack.c.bf16 %v3315_v63, %v3313_v58  ;;  %v12581_v35 = vpack.c.bf16 %v3320_v6, %v3318_v0  ;;  %v3333_v58 = vld [vmem:[%s14980_s3 + $0x1e0] sm:$0xff]  ;;  %v3335_v63 = vld [vmem:[%s14980_s3 + $0x1f0] sm:$0xff]  ;;  %v5693_v0 = vld [vmem:[%s14980_s3 + $0x218] sm:$0xff] }
 0x44a   :  { %8154 = vmatprep.subr.bf16.mxu0 %v15776_v43  ;;  %8442 = vmatprep.subr.bf16.mxu1 %v15776_v43  ;;  %v12441_v43 = vpack.c.bf16 %v3292_v23, %v3290_v10  ;;  %v3317_v10 = vld [vmem:[%s14980_s3 + $0x160] sm:$0xff]  ;;  %v3319_v23 = vld [vmem:[%s14980_s3 + $0x170] sm:$0xff]  ;;  %v12684_v6 = vpack.c.bf16 %v3335_v63, %v3333_v58 }
 0x44b   :  { %v5696_v58 = vld [vmem:[%s14980_s3 + $0x230] sm:$0xff] }
 0x44d   :  { %8156 = vmatpush1.bf16.msra.mxu0 %v15777_v50  ;;  %8444 = vmatpush1.bf16.msra.mxu1 %v15777_v50  ;;  %v3289_v50 = vld [vmem:[%s14980_s3 + $0x80] sm:$0xff] }
 0x44e   :  { %8158 = vmatprep.subr.bf16.mxu0 %v15778_v53  ;;  %8446 = vmatprep.subr.bf16.mxu1 %v15778_v53  ;;  %v3291_v53 = vld [vmem:[%s14980_s3 + $0x90] sm:$0xff] }
 0x451   :  { %8160 = vmatpush1.bf16.msra.mxu0 %v15779_v61  ;;  %8448 = vmatpush1.bf16.msra.mxu1 %v15779_v61  ;;  %v3294_v61 = vld [vmem:[%s14980_s3 + $0xa8] sm:$0xff] }
 0x452   :  { %8162 = vmatprep.subr.bf16.mxu0 %v15780_v1  ;;  %8450 = vmatprep.subr.bf16.mxu1 %v15780_v1  ;;  %v3296_v1 = vld [vmem:[%s14980_s3 + $0xb8] sm:$0xff] }
 0x455   :  { %8164 = vmatpush1.bf16.msra.mxu0 %v15781_v15  ;;  %8452 = vmatpush1.bf16.msra.mxu1 %v15781_v15  ;;  %v12457_v15 = vpack.c.bf16 %v3291_v53, %v3289_v50  ;;  %v3322_v50 = vld [vmem:[%s14980_s3 + $0x188] sm:$0xff]  ;;  %v3324_v53 = vld [vmem:[%s14980_s3 + $0x198] sm:$0xff] }
 0x456   :  { %8166 = vmatprep.subr.bf16.mxu0 %v15782_v18  ;;  %8454 = vmatprep.subr.bf16.mxu1 %v15782_v18  ;;  %v12461_v18 = vpack.c.bf16 %v3296_v1, %v3294_v61  ;;  %v12597_v61 = vpack.c.bf16 %v3319_v23, %v3317_v10  ;;  %v12601_v1 = vpack.c.bf16 %v3324_v53, %v3322_v50  ;;  %v15799_v10 = vld [vmem:[#allocation98_spill] sm:$0xff] }
 0x457   :  { %v5690_v53 = vld [vmem:[%s14980_s3 + $0x200] sm:$0xff] }
 0x459   :  { %8168 = vmatpush1.bf16.msra.mxu0 %v15783_v29  ;;  %8456 = vmatpush1.bf16.msra.mxu1 %v15783_v29  ;;  %v3293_v29 = vld [vmem:[%s14980_s3 + $0xa0] sm:$0xff] }
 0x45a   :  { %8170 = vmatprep.subr.bf16.mxu0 %v15784_v30  ;;  %8458 = vmatprep.subr.bf16.mxu1 %v15784_v30  ;;  %v3295_v30 = vld [vmem:[%s14980_s3 + $0xb0] sm:$0xff] }
 0x45d   :  { %8172 = vmatpush1.bf16.msra.mxu0 %v15785_v41  ;;  %8460 = vmatpush1.bf16.msra.mxu1 %v15785_v41  ;;  %v3298_v41 = vld [vmem:[%s14980_s3 + $0xc8] sm:$0xff] }
 0x45e   :  { %8174 = vmatprep.subr.bf16.mxu0 %v15786_v44  ;;  %8462 = vmatprep.subr.bf16.mxu1 %v15786_v44  ;;  %v3300_v44 = vld [vmem:[%s14980_s3 + $0xd8] sm:$0xff] }
 0x461   :  { %8176 = vmatpush1.bf16.msra.mxu0 %v15787_v55  ;;  %8464 = vmatpush1.bf16.msra.mxu1 %v15787_v55  ;;  %v12477_v55 = vpack.c.bf16 %v3295_v30, %v3293_v29  ;;  %v3321_v29 = vld [vmem:[%s14980_s3 + $0x180] sm:$0xff]  ;;  %v3323_v30 = vld [vmem:[%s14980_s3 + $0x190] sm:$0xff] }
 0x462   :  { %8178 = vmatprep.subr.bf16.mxu0 %v15609_v36  ;;  %8466 = vmatprep.subr.bf16.mxu1 %v15609_v36 }
 0x464   :  { %2827 = vmatmul.mubr.f32.vlgmr.msra.gmra.mrb[6].mxu0 %v5678_v56  ;;  %3194 = vmatmul.mubr.f32.vlgmr.msra.gmra.mrb[6].mxu1 %v5687_v4  ;;  %v12481_v56 = vpack.c.bf16 %v3300_v44, %v3298_v41  ;;  %v3297_v4 = vld [vmem:[%s14980_s3 + $0xc0] sm:$0xff]  ;;  %v3326_v41 = vld [vmem:[%s14980_s3 + $0x1a8] sm:$0xff]  ;;  %v3328_v44 = vld [vmem:[%s14980_s3 + $0x1b8] sm:$0xff] }
 0x465   :  { %8180 = vmatpush1.bf16.msra.mxu0 %v11128_v28  ;;  %8468 = vmatpush1.bf16.msra.mxu1 %v11128_v28  ;;  %v15788_v28 = vld [vmem:[#allocation91_spill] sm:$0xff] }
 0x466   :  { %8182 = vmatprep.subr.bf16.mxu0 %v15701_v62  ;;  %8470 = vmatprep.subr.bf16.mxu1 %v15701_v62  ;;  %v337_v62 = vlaneseq }
 0x467   :  { %2897 = vmatprep.mubr.f32.mxu0 %v15702_v11  ;;  %3264 = vmatprep.mubr.f32.mxu1 %v15702_v11  ;;  %v5720_v11 = vld [vmem:[%s14980_s3 + $0x2f0] sm:$0xff] }
 0x468   :  { %v12315_v36 = vshrl.u32 %v337_v62, 7  ;;  %v3299_v62 = vld [vmem:[%s14980_s3 + $0xd0] sm:$0xff] }
 0x469   :  { %8184 = vmatpush1.bf16.msra.mxu0 %v15703_v39  ;;  %8472 = vmatpush1.bf16.msra.mxu1 %v15703_v39  ;;  %v15790_v39 = vld [vmem:[#allocation92_spill] sm:$0xff] }
 0x46a   :  { %8186 = vmatprep.subr.bf16.mxu0 %v15704_v47  ;;  %8474 = vmatprep.subr.bf16.mxu1 %v15704_v47  ;;  %15789 = vst [vmem:[#allocation90_spill] sm:$0xff] %v12315_v36  ;;  %v15793_v47 = vld [vmem:[#allocation95_spill] sm:$0xff] }
 0x46d   :  { %8188 = vmatpush1.bf16.msra.mxu0 %v15614_v54  ;;  %8476 = vmatpush1.bf16.msra.mxu1 %v15614_v54  ;;  %v12322_v54 = vsub.s32 1, %v12315_v36 }
 0x46e   :  { %8190 = vmatprep.subr.bf16.mxu0 %v15615_v48  ;;  %8478 = vmatprep.subr.bf16.mxu1 %v15615_v48  ;;  %v15792_v48 = vld [vmem:[#allocation94_spill] sm:$0xff] }
 0x46f   :  { %15791 = vst [vmem:[#allocation93_spill] sm:$0xff] %v12322_v54 }
 0x471   :  { %8192 = vmatpush1.bf16.msra.mxu0 %v15616_v59  ;;  %8480 = vmatpush1.bf16.msra.mxu1 %v15616_v59  ;;  %v12327_v59 = vld [vmem:[%s14979_s2] sm:$0x3] }
 0x472   :  { %8194 = vmatprep.subr.bf16.mxu0 %v15788_v28  ;;  %8482 = vmatprep.subr.bf16.mxu1 %v15788_v28  ;;  %v12335_v5 = vrot.slane %v12327_v59, %v12322_v54  ;;  %v3302_v28 = vld [vmem:[%s14980_s3 + $0xe8] sm:$0xff]  ;;  %v5722_v54 = vld [vmem:[%s14980_s3 + $0x300] sm:$0xff] }
 0x474   :  { %v9618_v7 = vadd.f32 %v15795_v3, %v12335_v5 }
 0x475   :  { %8196 = vmatpush1.bf16.msra.mxu0 %v15790_v39  ;;  %8484 = vmatpush1.bf16.msra.mxu1 %v15790_v39  ;;  %v3304_v39 = vld [vmem:[%s14980_s3 + $0xf8] sm:$0xff] }
 0x476   :  { %8198 = vmatprep.subr.bf16.mxu0 %v15619_v60  ;;  %8486 = vmatprep.subr.bf16.mxu1 %v15619_v60  ;;  %v3274_v60 = vld [vmem:[%s14980_s3 + $0x8] sm:$0xff]  ;;  %v703_v37 = vmax.f32 %v9618_v7, 0.0  ;;  %v3305_v7 = vld [vmem:[%s14980_s3 + $0x100] sm:$0xff] }
 0x477   :  { %v12347_v33 = vpack.c.bf16 %v3276_v22, %v3274_v60  ;;  %v3301_v60 = vld [vmem:[%s14980_s3 + $0xe0] sm:$0xff]  ;;  %v3303_v22 = vld [vmem:[%s14980_s3 + $0xf0] sm:$0xff] }
 0x478   :  { %v12517_v12 = vpack.c.bf16 %v3303_v22, %v3301_v60  ;;  %v3330_v60 = vld [vmem:[%s14980_s3 + $0x1c8] sm:$0xff]  ;;  %v3332_v22 = vld [vmem:[%s14980_s3 + $0x1d8] sm:$0xff] }
 0x479   :  { %8200 = vmatpush1.bf16.msra.mxu0 %v15792_v48  ;;  %8488 = vmatpush1.bf16.msra.mxu1 %v15792_v48  ;;  %v12497_v48 = vpack.c.bf16 %v3299_v62, %v3297_v4  ;;  %v12617_v4 = vpack.c.bf16 %v3323_v30, %v3321_v29  ;;  %v12621_v62 = vpack.c.bf16 %v3328_v44, %v3326_v41  ;;  %v5692_v29 = vld [vmem:[%s14980_s3 + $0x210] sm:$0xff]  ;;  %v15800_v30 = vld [vmem:[#allocation63_spill] sm:$0xff]  ;;  %v15801_v44 = vld [vmem:[#allocation101_spill] sm:$0xff] }
 0x47a   :  { %8202 = vmatprep.subr.bf16.mxu0 %v15793_v47  ;;  %8490 = vmatprep.subr.bf16.mxu1 %v15793_v47  ;;  %v12501_v47 = vpack.c.bf16 %v3304_v39, %v3302_v28  ;;  %v3325_v28 = vld [vmem:[%s14980_s3 + $0x1a0] sm:$0xff]  ;;  %v3327_v39 = vld [vmem:[%s14980_s3 + $0x1b0] sm:$0xff] }
 0x47d   :  { %8204 = vmatpush1.bf16.msra.mxu0 %v11253_v2  ;;  %8492 = vmatpush1.bf16.msra.mxu1 %v11253_v2  ;;  %v12359_v2 = vadd.f32 %v15796_v8, %v12335_v5  ;;  %v3307_v8 = vld [vmem:[%s14980_s3 + $0x110] sm:$0xff] }
 0x47e   :  { %8206 = vmatprep.subr.bf16.mxu0 %v15794_v21  ;;  %8494 = vmatprep.subr.bf16.mxu1 %v15794_v21  ;;  %v3306_v21 = vld [vmem:[%s14980_s3 + $0x108] sm:$0xff] }
 0x47f   :  { %v15344_v51 = vmax.f32 %v12359_v2, 0.0  ;;  %v12521_v3 = vpack.c.bf16 %v3308_v40, %v3306_v21  ;;  %v12637_v21 = vpack.c.bf16 %v3327_v39, %v3325_v28  ;;  %v12640_v40 = vsub.s32 0, %v12315_v36  ;;  %v5695_v39 = vld [vmem:[%s14980_s3 + $0x228] sm:$0xff]  ;;  %v5718_v36 = vld [vmem:[%s14980_s3 + $0x2e0] sm:$0xff] }
 0x480   :  { %v9620_v28 = vadd.f32 %v15801_v44, %v12335_v5  ;;  %v5698_v44 = vld [vmem:[%s14980_s3 + $0x240] sm:$0xff] }
 0x481   :  { %8208 = vmatpush1.bf16.msra.mxu0 %v15797_v19  ;;  %8496 = vmatpush1.bf16.msra.mxu1 %v15797_v19  ;;  %v12537_v19 = vpack.c.bf16 %v3307_v8, %v3305_v7  ;;  %15798 = vst [vmem:[#allocation59_spill] sm:$0xff] %v12640_v40  ;;  %v12644_v7 = vpack.c.bf16 %v3332_v22, %v3330_v60  ;;  %v3329_v8 = vld [vmem:[%s14980_s3 + $0x1c0] sm:$0xff]  ;;  %v5697_v60 = vld [vmem:[%s14980_s3 + $0x238] sm:$0xff] }
 0x482   :  { %8498 = vmatprep.subr.bf16.mxu0 %v12347_v33  ;;  %8754 = vmatprep.subr.bf16.mxu1 %v12347_v33  ;;  %v15802_v22 = vld [vmem:[#allocation89_spill] sm:$0xff] }
 0x484   :  { %2898 = vmatmul.mubr.f32.vlgmr.msra.gmra.mrb[6].mxu0 %v5680_v20  ;;  %3265 = vmatmul.mubr.f32.vlgmr.msra.gmra.mrb[6].mxu1 %v5689_v25  ;;  %v12541_v20 = vpack.c.bf16 %v3312_v14, %v3310_v13  ;;  %v3309_v25 = vld [vmem:[%s14980_s3 + $0x120] sm:$0xff]  ;;  %v3331_v13 = vld [vmem:[%s14980_s3 + $0x1d0] sm:$0xff]  ;;  %v3334_v14 = vld [vmem:[%s14980_s3 + $0x1e8] sm:$0xff] }
 0x485   :  { %8500 = vmatpush1.bf16.msra.mxu0 %v12375_v26  ;;  %3597 = vmatprep.mubr.f32.mxu0 %v703_v37  ;;  %v3316_v37 = vld [vmem:[%s14980_s3 + $0x158] sm:$0xff]  ;;  %v12557_v45 = vpack.c.bf16 %v3311_v31, %v3309_v25  ;;  %v12660_v31 = vpack.c.bf16 %v3331_v13, %v3329_v8  ;;  %v12713_v8 = vadd.f32 %v15802_v22, %v12335_v5 }
 0x486   :  { %8756 = vmatpush1.bf16.msra.mxu1 %v12375_v26  ;;  %3902 = vmatprep.mubr.f32.mxu1 %v15344_v51  ;;  %v12561_v46 = vpack.c.bf16 %v3316_v37, %v3314_v32  ;;  %v3336_v25 = vld [vmem:[%s14980_s3 + $0x1f8] sm:$0xff]  ;;  %v12664_v32 = vrot.slane %v12327_v59, %v12640_v40  ;;  %v5691_v59 = vld [vmem:[%s14980_s3 + $0x208] sm:$0xff]  ;;  %v12716_v13 = vpack.c.bf16 %v5692_v29, %v5690_v53  ;;  %v5716_v51 = vld [vmem:[%s14980_s3 + $0x2d0] sm:$0xff] }
 0x487   :  { %8502 = vmatprep.subr.bf16.mxu0 %v12385_v38  ;;  %8758 = vmatprep.subr.bf16.mxu1 %v12385_v38  ;;  %v12668_v37 = vpack.c.bf16 %v3336_v25, %v3334_v14  ;;  %v12690_v50 = vpack.c.bf16 %v5693_v0, %v5691_v59  ;;  %v5694_v25 = vld [vmem:[%s14980_s3 + $0x220] sm:$0xff]  ;;  %v12728_v59 = vpack.c.bf16 %v5697_v60, %v5695_v39  ;;  %v5699_v0 = vld [vmem:[%s14980_s3 + $0x248] sm:$0xff]  ;;  %v15342_v53 = vmax.f32 %v12713_v8, 0.0  ;;  %v5705_v60 = vld [vmem:[%s14980_s3 + $0x278] sm:$0xff] }
 0x488   :  { %v9617_v23 = vadd.f32 %v15799_v10, %v12664_v32  ;;  %v12700_v41 = vadd.f32 %v15800_v30, %v12664_v32  ;;  %v5701_v10 = vld [vmem:[%s14980_s3 + $0x258] sm:$0xff]  ;;  %v12740_v29 = vpack.c.bf16 %v5696_v58, %v5694_v25  ;;  %v5703_v39 = vld [vmem:[%s14980_s3 + $0x268] sm:$0xff]  ;;  %v5702_v25 = vld [vmem:[%s14980_s3 + $0x260] sm:$0xff] }
 0x489   :  { %8504 = vmatpush1.bf16.msra.mxu0 %v12395_v52  ;;  %v12743_v30 = vpack.c.bf16 %v5701_v10, %v5699_v0  ;;  %v5704_v58 = vld [vmem:[%s14980_s3 + $0x270] sm:$0xff]  ;;  %v5707_v0 = vld [vmem:[%s14980_s3 + $0x288] sm:$0xff]  ;;  %v5709_v10 = vld [vmem:[%s14980_s3 + $0x298] sm:$0xff] }
 0x48a   :  { %8760 = vmatpush1.bf16.msra.mxu1 %v12395_v52  ;;  %8506 = vmatprep.subr.bf16.mxu0 %v12400_v57  ;;  %v702_v14 = vmax.f32 %v9617_v23, 0.0  ;;  %v15343_v63 = vmax.f32 %v12700_v41, 0.0  ;;  %v1070_v23 = vmax.f32 %v9620_v28, 0.0  ;;  %v5700_v28 = vld [vmem:[%s14980_s3 + $0x250] sm:$0xff] }
 0x48b   :  { %8762 = vmatprep.subr.bf16.mxu1 %v12400_v57  ;;  %v12762_v22 = vpack.c.bf16 %v5700_v28, %v5698_v44  ;;  %v12786_v44 = vpack.c.bf16 %v5709_v10, %v5707_v0  ;;  %v5706_v28 = vld [vmem:[%s14980_s3 + $0x280] sm:$0xff]  ;;  %v5724_v40 = vld [vmem:[%s14980_s3 + $0x310] sm:$0xff] }
 0x48c   :  { %v5710_v10 = vld [vmem:[%s14980_s3 + $0x2a0] sm:$0xff] }
 0x48d   :  { %8508 = vmatpush1.bf16.msra.mxu0 %v12417_v49 }
 0x48e   :  { %8764 = vmatpush1.bf16.msra.mxu1 %v12417_v49  ;;  %8510 = vmatprep.subr.bf16.mxu0 %v12421_v27 }
 0x48f   :  { %8766 = vmatprep.subr.bf16.mxu1 %v12421_v27 }
 0x491   :  { %8512 = vmatpush1.bf16.msra.mxu0 %v12437_v42 }
 0x492   :  { %8768 = vmatpush1.bf16.msra.mxu1 %v12437_v42  ;;  %8514 = vmatprep.subr.bf16.mxu0 %v12441_v43 }
 0x493   :  { %8770 = vmatprep.subr.bf16.mxu1 %v12441_v43 }
 0x495   :  { %8516 = vmatpush1.bf16.msra.mxu0 %v12457_v15 }
 0x496   :  { %8772 = vmatpush1.bf16.msra.mxu1 %v12457_v15  ;;  %8518 = vmatprep.subr.bf16.mxu0 %v12461_v18 }
 0x497   :  { %8774 = vmatprep.subr.bf16.mxu1 %v12461_v18 }
 0x499   :  { %8520 = vmatpush1.bf16.msra.mxu0 %v12477_v55 }
 0x49a   :  { %8776 = vmatpush1.bf16.msra.mxu1 %v12477_v55  ;;  %8522 = vmatprep.subr.bf16.mxu0 %v12481_v56 }
 0x49b   :  { %8778 = vmatprep.subr.bf16.mxu1 %v12481_v56 }
 0x49d   :  { %8524 = vmatpush1.bf16.msra.mxu0 %v12497_v48 }
 0x49e   :  { %8780 = vmatpush1.bf16.msra.mxu1 %v12497_v48  ;;  %8526 = vmatprep.subr.bf16.mxu0 %v12501_v47 }
 0x49f   :  { %8782 = vmatprep.subr.bf16.mxu1 %v12501_v47 }
 0x4a1   :  { %8528 = vmatpush1.bf16.msra.mxu0 %v12517_v12 }
 0x4a2   :  { %8784 = vmatpush1.bf16.msra.mxu1 %v12517_v12  ;;  %8530 = vmatprep.subr.bf16.mxu0 %v12521_v3 }
 0x4a3   :  { %8786 = vmatprep.subr.bf16.mxu1 %v12521_v3 }
 0x4a5   :  { %8532 = vmatpush1.bf16.msra.mxu0 %v12537_v19 }
 0x4a6   :  { %8788 = vmatpush1.bf16.msra.mxu1 %v12537_v19  ;;  %8534 = vmatprep.subr.bf16.mxu0 %v12541_v20 }
 0x4a7   :  { %8790 = vmatprep.subr.bf16.mxu1 %v12541_v20 }
 0x4a9   :  { %8536 = vmatpush1.bf16.msra.mxu0 %v12557_v45 }
 0x4aa   :  { %8792 = vmatpush1.bf16.msra.mxu1 %v12557_v45  ;;  %8538 = vmatprep.subr.bf16.mxu0 %v12561_v46 }
 0x4ab   :  { %8794 = vmatprep.subr.bf16.mxu1 %v12561_v46 }
 0x4ad   :  { %8540 = vmatpush1.bf16.msra.mxu0 %v12577_v34 }
 0x4ae   :  { %8796 = vmatpush1.bf16.msra.mxu1 %v12577_v34  ;;  %8542 = vmatprep.subr.bf16.mxu0 %v12581_v35 }
 0x4af   :  { %8798 = vmatprep.subr.bf16.mxu1 %v12581_v35 }
 0x4b1   :  { %8544 = vmatpush1.bf16.msra.mxu0 %v12597_v61 }
 0x4b2   :  { %8800 = vmatpush1.bf16.msra.mxu1 %v12597_v61  ;;  %8546 = vmatprep.subr.bf16.mxu0 %v12601_v1 }
 0x4b3   :  { %8802 = vmatprep.subr.bf16.mxu1 %v12601_v1 }
 0x4b5   :  { %8548 = vmatpush1.bf16.msra.mxu0 %v12617_v4 }
 0x4b6   :  { %8804 = vmatpush1.bf16.msra.mxu1 %v12617_v4  ;;  %8550 = vmatprep.subr.bf16.mxu0 %v12621_v62 }
 0x4b7   :  { %8806 = vmatprep.subr.bf16.mxu1 %v12621_v62 }
 0x4b9   :  { %8552 = vmatpush1.bf16.msra.mxu0 %v12637_v21 }
 0x4ba   :  { %8808 = vmatpush1.bf16.msra.mxu1 %v12637_v21  ;;  %8554 = vmatprep.subr.bf16.mxu0 %v12644_v7 }
 0x4bb   :  { %8810 = vmatprep.subr.bf16.mxu1 %v12644_v7 }
 0x4bd   :  { %8556 = vmatpush1.bf16.msra.mxu0 %v12660_v31 }
 0x4be   :  { %8812 = vmatpush1.bf16.msra.mxu1 %v12660_v31  ;;  %8558 = vmatprep.subr.bf16.mxu0 %v12668_v37 }
 0x4bf   :  { %8814 = vmatprep.subr.bf16.mxu1 %v12668_v37 }
 0x4c1   :  { %8560 = vmatpush1.bf16.msra.mxu0 %v12684_v6 }
 0x4c2   :  { %8816 = vmatpush1.bf16.msra.mxu1 %v12684_v6  ;;  %8562 = vmatprep.subr.bf16.mxu0 %v12690_v50 }
 0x4c3   :  { %8818 = vmatprep.subr.bf16.mxu1 %v12690_v50 }
 0x4c4   :  { %3598 = vmatmul.mubr.f32.vlgmr.msra.gmra.mrb[8].mxu0 %v702_v14  ;;  %v12766_v14 = vpack.c.bf16 %v5705_v60, %v5703_v39  ;;  %v5708_v39 = vld [vmem:[%s14980_s3 + $0x290] sm:$0xff]  ;;  %v5711_v60 = vld [vmem:[%s14980_s3 + $0x2a8] sm:$0xff] }
 0x4c5   :  { %3903 = vmatmul.mubr.f32.vlgmr.msra.gmra.mrb[8].mxu1 %v15343_v63  ;;  %8564 = vmatpush1.bf16.msra.mxu0 %v12716_v13  ;;  %v5714_v63 = vld [vmem:[%s14980_s3 + $0x2c0] sm:$0xff] }
 0x4c6   :  { %3681 = vmatprep.mubr.f32.mxu0 %v1070_v23  ;;  %8820 = vmatpush1.bf16.msra.mxu1 %v12716_v13  ;;  %v12782_v23 = vpack.c.bf16 %v5704_v58, %v5702_v25  ;;  %v5713_v25 = vld [vmem:[%s14980_s3 + $0x2b8] sm:$0xff]  ;;  %v12802_v58 = vpack.c.bf16 %v5708_v39, %v5706_v28  ;;  %v5715_v28 = vld [vmem:[%s14980_s3 + $0x2c8] sm:$0xff] }
 0x4c7   :  { %3975 = vmatprep.mubr.f32.mxu1 %v15342_v53  ;;  %8566 = vmatprep.subr.bf16.mxu0 %v12728_v59  ;;  %v12806_v0 = vpack.c.bf16 %v5713_v25, %v5711_v60  ;;  %v5712_v53 = vld [vmem:[%s14980_s3 + $0x2b0] sm:$0xff]  ;;  %v5717_v39 = vld [vmem:[%s14980_s3 + $0x2d8] sm:$0xff] }
 0x4c8   :  { %8822 = vmatprep.subr.bf16.mxu1 %v12728_v59  ;;  %15803 = vst [vmem:[#allocation64_spill] sm:$0xff] %v12802_v58  ;;  %v12822_v60 = vpack.c.bf16 %v5712_v53, %v5710_v10  ;;  %v12826_v25 = vpack.c.bf16 %v5717_v39, %v5715_v28  ;;  %v5719_v53 = vld [vmem:[%s14980_s3 + $0x2e8] sm:$0xff]  ;;  %v5721_v10 = vld [vmem:[%s14980_s3 + $0x2f8] sm:$0xff]  ;;  %v12842_v28 = vpack.c.bf16 %v5716_v51, %v5714_v63 }
 0x4c9   :  { %8568 = vmatpush1.bf16.msra.mxu0 %v12740_v29  ;;  %15804 = vst [vmem:[#allocation85_spill] sm:$0xff] %v12806_v0  ;;  %v12846_v39 = vpack.c.bf16 %v5721_v10, %v5719_v53  ;;  %v5723_v51 = vld [vmem:[%s14980_s3 + $0x308] sm:$0xff]  ;;  %v5725_v63 = vld [vmem:[%s14980_s3 + $0x318] sm:$0xff]  ;;  %v12862_v53 = vpack.c.bf16 %v5720_v11, %v5718_v36 }
 0x4ca   :  { %8824 = vmatpush1.bf16.msra.mxu1 %v12740_v29  ;;  %8570 = vmatprep.subr.bf16.mxu0 %v12743_v30  ;;  %15805 = vst [vmem:[#allocation86_spill] sm:$0xff] %v12822_v60  ;;  %15806 = vst [vmem:[#allocation87_spill] sm:$0xff] %v12826_v25  ;;  %v12866_v10 = vpack.c.bf16 %v5725_v63, %v5723_v51  ;;  %v5727_v11 = vld [vmem:[%s14980_s3 + $0x328] sm:$0xff]  ;;  %v5729_v36 = vld [vmem:[%s14980_s3 + $0x338] sm:$0xff]  ;;  %v12882_v51 = vpack.c.bf16 %v5724_v40, %v5722_v54 }
 0x4cb   :  { %8826 = vmatprep.subr.bf16.mxu1 %v12743_v30  ;;  %15807 = vst [vmem:[#allocation2_spill] sm:$0xff] %v12842_v28  ;;  %15808 = vst [vmem:[#allocation3_spill] sm:$0xff] %v12846_v39  ;;  %v12886_v63 = vpack.c.bf16 %v5729_v36, %v5727_v11  ;;  %v5731_v54 = vld [vmem:[%s14980_s3 + $0x348] sm:$0xff]  ;;  %v5733_v40 = vld [vmem:[%s14980_s3 + $0x358] sm:$0xff] }
 0x4cc   :  { %15809 = vst [vmem:[#allocation4_spill] sm:$0xff] %v12862_v53  ;;  %15810 = vst [vmem:[#allocation5_spill] sm:$0xff] %v12866_v10  ;;  %v12906_v36 = vpack.c.bf16 %v5733_v40, %v5731_v54 }
 0x4cd   :  { %8572 = vmatpush1.bf16.msra.mxu0 %v12762_v22  ;;  %15811 = vst [vmem:[#allocation6_spill] sm:$0xff] %v12882_v51  ;;  %15812 = vst [vmem:[#allocation7_spill] sm:$0xff] %v12886_v63 }
 0x4ce   :  { %8828 = vmatpush1.bf16.msra.mxu1 %v12762_v22  ;;  %8574 = vmatprep.subr.bf16.mxu0 %v12766_v14  ;;  %15814 = vst [vmem:[#allocation9_spill] sm:$0xff] %v12906_v36 }
 0x4cf   :  { %8830 = vmatprep.subr.bf16.mxu1 %v12766_v14 }
 0x4d1   :  { %8576 = vmatpush1.bf16.msra.mxu0 %v12782_v23 }
 0x4d2   :  { %8832 = vmatpush1.bf16.msra.mxu1 %v12782_v23  ;;  %8578 = vmatprep.subr.bf16.mxu0 %v12786_v44 }
 0x4d3   :  { %8834 = vmatprep.subr.bf16.mxu1 %v12786_v44 }
 0x4d5   :  { %8580 = vmatpush1.bf16.msra.mxu0 %v12802_v58 }
 0x4d6   :  { %8836 = vmatpush1.bf16.msra.mxu1 %v12802_v58  ;;  %8582 = vmatprep.subr.bf16.mxu0 %v12806_v0 }
 0x4d7   :  { %8838 = vmatprep.subr.bf16.mxu1 %v12806_v0  ;;  %v5760_v0 = vld [vmem:[%s14980_s3 + $0x430] sm:$0xff] }
 0x4d9   :  { %8584 = vmatpush1.bf16.msra.mxu0 %v12822_v60 }
 0x4da   :  { %8840 = vmatpush1.bf16.msra.mxu1 %v12822_v60  ;;  %8586 = vmatprep.subr.bf16.mxu0 %v12826_v25  ;;  %v5756_v60 = vld [vmem:[%s14980_s3 + $0x410] sm:$0xff] }
 0x4db   :  { %8842 = vmatprep.subr.bf16.mxu1 %v12826_v25  ;;  %v5754_v25 = vld [vmem:[%s14980_s3 + $0x400] sm:$0xff] }
 0x4dd   :  { %8588 = vmatpush1.bf16.msra.mxu0 %v12842_v28 }
 0x4de   :  { %8844 = vmatpush1.bf16.msra.mxu1 %v12842_v28  ;;  %8590 = vmatprep.subr.bf16.mxu0 %v12846_v39  ;;  %v5728_v28 = vld [vmem:[%s14980_s3 + $0x330] sm:$0xff] }
 0x4df   :  { %8846 = vmatprep.subr.bf16.mxu1 %v12846_v39  ;;  %v5726_v39 = vld [vmem:[%s14980_s3 + $0x320] sm:$0xff] }
 0x4e0   :  { %v12902_v11 = vpack.c.bf16 %v5728_v28, %v5726_v39  ;;  %v5735_v28 = vld [vmem:[%s14980_s3 + $0x368] sm:$0xff]  ;;  %v5737_v39 = vld [vmem:[%s14980_s3 + $0x378] sm:$0xff] }
 0x4e1   :  { %8592 = vmatpush1.bf16.msra.mxu0 %v12862_v53  ;;  %v12926_v40 = vpack.c.bf16 %v5737_v39, %v5735_v28 }
 0x4e2   :  { %8848 = vmatpush1.bf16.msra.mxu1 %v12862_v53  ;;  %8594 = vmatprep.subr.bf16.mxu0 %v12866_v10  ;;  %15813 = vst [vmem:[#allocation8_spill] sm:$0xff] %v12902_v11  ;;  %v5732_v53 = vld [vmem:[%s14980_s3 + $0x350] sm:$0xff] }
 0x4e3   :  { %8850 = vmatprep.subr.bf16.mxu1 %v12866_v10  ;;  %v5730_v10 = vld [vmem:[%s14980_s3 + $0x340] sm:$0xff]  ;;  %15816 = vst [vmem:[#allocation11_spill] sm:$0xff] %v12926_v40 }
 0x4e4   :  { %v12922_v54 = vpack.c.bf16 %v5732_v53, %v5730_v10  ;;  %v5739_v53 = vld [vmem:[%s14980_s3 + $0x388] sm:$0xff]  ;;  %v5741_v10 = vld [vmem:[%s14980_s3 + $0x398] sm:$0xff] }
 0x4e5   :  { %8596 = vmatpush1.bf16.msra.mxu0 %v12882_v51  ;;  %v12946_v39 = vpack.c.bf16 %v5741_v10, %v5739_v53 }
 0x4e6   :  { %8852 = vmatpush1.bf16.msra.mxu1 %v12882_v51  ;;  %8598 = vmatprep.subr.bf16.mxu0 %v12886_v63  ;;  %15815 = vst [vmem:[#allocation10_spill] sm:$0xff] %v12922_v54  ;;  %v5736_v51 = vld [vmem:[%s14980_s3 + $0x370] sm:$0xff] }
 0x4e7   :  { %8854 = vmatprep.subr.bf16.mxu1 %v12886_v63  ;;  %v5734_v63 = vld [vmem:[%s14980_s3 + $0x360] sm:$0xff]  ;;  %15818 = vst [vmem:[#allocation13_spill] sm:$0xff] %v12946_v39 }
 0x4e8   :  { %v12942_v28 = vpack.c.bf16 %v5736_v51, %v5734_v63  ;;  %v5743_v51 = vld [vmem:[%s14980_s3 + $0x3a8] sm:$0xff]  ;;  %v5745_v63 = vld [vmem:[%s14980_s3 + $0x3b8] sm:$0xff] }
 0x4e9   :  { %8600 = vmatpush1.bf16.msra.mxu0 %v12902_v11  ;;  %v12966_v10 = vpack.c.bf16 %v5745_v63, %v5743_v51 }
 0x4ea   :  { %8856 = vmatpush1.bf16.msra.mxu1 %v12902_v11  ;;  %8602 = vmatprep.subr.bf16.mxu0 %v12906_v36  ;;  %15817 = vst [vmem:[#allocation12_spill] sm:$0xff] %v12942_v28  ;;  %v5740_v11 = vld [vmem:[%s14980_s3 + $0x390] sm:$0xff] }
 0x4eb   :  { %8858 = vmatprep.subr.bf16.mxu1 %v12906_v36  ;;  %v5738_v36 = vld [vmem:[%s14980_s3 + $0x380] sm:$0xff]  ;;  %15820 = vst [vmem:[#allocation15_spill] sm:$0xff] %v12966_v10 }
 0x4ec   :  { %v12962_v53 = vpack.c.bf16 %v5740_v11, %v5738_v36  ;;  %v5747_v11 = vld [vmem:[%s14980_s3 + $0x3c8] sm:$0xff]  ;;  %v5749_v36 = vld [vmem:[%s14980_s3 + $0x3d8] sm:$0xff] }
 0x4ed   :  { %8604 = vmatpush1.bf16.msra.mxu0 %v12922_v54  ;;  %v12986_v63 = vpack.c.bf16 %v5749_v36, %v5747_v11 }
 0x4ee   :  { %8860 = vmatpush1.bf16.msra.mxu1 %v12922_v54  ;;  %8606 = vmatprep.subr.bf16.mxu0 %v12926_v40  ;;  %15819 = vst [vmem:[#allocation14_spill] sm:$0xff] %v12962_v53  ;;  %v5744_v54 = vld [vmem:[%s14980_s3 + $0x3b0] sm:$0xff] }
 0x4ef   :  { %8862 = vmatprep.subr.bf16.mxu1 %v12926_v40  ;;  %v5742_v40 = vld [vmem:[%s14980_s3 + $0x3a0] sm:$0xff]  ;;  %15822 = vst [vmem:[#allocation17_spill] sm:$0xff] %v12986_v63 }
 0x4f0   :  { %v12982_v51 = vpack.c.bf16 %v5744_v54, %v5742_v40  ;;  %v5751_v54 = vld [vmem:[%s14980_s3 + $0x3e8] sm:$0xff]  ;;  %v5753_v40 = vld [vmem:[%s14980_s3 + $0x3f8] sm:$0xff] }
 0x4f1   :  { %8608 = vmatpush1.bf16.msra.mxu0 %v12942_v28  ;;  %v13006_v36 = vpack.c.bf16 %v5753_v40, %v5751_v54  ;;  %v15826_v40 = vld [vmem:[#allocation99_spill] sm:$0xff] }
 0x4f2   :  { %8864 = vmatpush1.bf16.msra.mxu1 %v12942_v28  ;;  %8610 = vmatprep.subr.bf16.mxu0 %v12946_v39  ;;  %15821 = vst [vmem:[#allocation16_spill] sm:$0xff] %v12982_v51  ;;  %v5748_v28 = vld [vmem:[%s14980_s3 + $0x3d0] sm:$0xff] }
 0x4f3   :  { %8866 = vmatprep.subr.bf16.mxu1 %v12946_v39  ;;  %v5746_v39 = vld [vmem:[%s14980_s3 + $0x3c0] sm:$0xff]  ;;  %15824 = vst [vmem:[#allocation19_spill] sm:$0xff] %v13006_v36 }
 0x4f4   :  { %v13002_v11 = vpack.c.bf16 %v5748_v28, %v5746_v39  ;;  %v5755_v28 = vld [vmem:[%s14980_s3 + $0x408] sm:$0xff]  ;;  %v5757_v39 = vld [vmem:[%s14980_s3 + $0x418] sm:$0xff] }
 0x4f5   :  { %8612 = vmatpush1.bf16.msra.mxu0 %v12962_v53 }
 0x4f6   :  { %8868 = vmatpush1.bf16.msra.mxu1 %v12962_v53  ;;  %8614 = vmatprep.subr.bf16.mxu0 %v12966_v10  ;;  %15823 = vst [vmem:[#allocation18_spill] sm:$0xff] %v13002_v11  ;;  %v5752_v53 = vld [vmem:[%s14980_s3 + $0x3f0] sm:$0xff] }
 0x4f7   :  { %8870 = vmatprep.subr.bf16.mxu1 %v12966_v10  ;;  %v5750_v10 = vld [vmem:[%s14980_s3 + $0x3e0] sm:$0xff] }
 0x4f8   :  { %v13022_v54 = vpack.c.bf16 %v5752_v53, %v5750_v10  ;;  %v15827_v53 = vld [vmem:[#allocation84_spill] sm:$0xff] }
 0x4f9   :  { %8616 = vmatpush1.bf16.msra.mxu0 %v12982_v51  ;;  %v13038_v10 = vadd.f32 %v15827_v53, %v12664_v32 }
 0x4fa   :  { %8872 = vmatpush1.bf16.msra.mxu1 %v12982_v51  ;;  %8618 = vmatprep.subr.bf16.mxu0 %v12986_v63  ;;  %15825 = vst [vmem:[#allocation20_spill] sm:$0xff] %v13022_v54  ;;  %v9619_v51 = vadd.f32 %v15826_v40, %v12664_v32  ;;  %v5759_v40 = vld [vmem:[%s14980_s3 + $0x428] sm:$0xff] }
 0x4fb   :  { %8874 = vmatprep.subr.bf16.mxu1 %v12986_v63  ;;  %v13028_v63 = vpack.c.bf16 %v5757_v39, %v5755_v28  ;;  %v5761_v28 = vld [vmem:[%s14980_s3 + $0x438] sm:$0xff]  ;;  %v13049_v39 = vadd.f32 %v12243_v17, %v12335_v5  ;;  %v15375_v17 = vmax.f32 %v13038_v10, 0.0 }
 0x4fc   :  { %v1069_v53 = vmax.f32 %v9619_v51, 0.0  ;;  %v13064_v58 = vpack.c.bf16 %v5761_v28, %v5759_v40  ;;  %v15830_v40 = vmax.f32 %v12359_v2, 0.0  ;;  %v5764_v51 = vld [vmem:[%s14980_s3 + $0x450] sm:$0xff]  ;;  %v5767_v2 = vld [vmem:[%s14980_s3 + $0x468] sm:$0xff] }
 0x4fd   :  { %8620 = vmatpush1.bf16.msra.mxu0 %v13002_v11 }
 0x4fe   :  { %8876 = vmatpush1.bf16.msra.mxu1 %v13002_v11  ;;  %8622 = vmatprep.subr.bf16.mxu0 %v13006_v36  ;;  %v13052_v11 = vpack.c.bf16 %v5756_v60, %v5754_v25  ;;  %15828 = vst [vmem:[#allocation21_spill] sm:$0xff] %v13064_v58  ;;  %v5763_v60 = vld [vmem:[%s14980_s3 + $0x448] sm:$0xff]  ;;  %v5765_v25 = vld [vmem:[%s14980_s3 + $0x458] sm:$0xff] }
 0x4ff   :  { %8878 = vmatprep.subr.bf16.mxu1 %v13006_v36  ;;  %v5758_v36 = vld [vmem:[%s14980_s3 + $0x420] sm:$0xff]  ;;  %v13081_v28 = vpack.c.bf16 %v5765_v25, %v5763_v60  ;;  %v5768_v25 = vld [vmem:[%s14980_s3 + $0x470] sm:$0xff] }
 0x500   :  { %v5766_v60 = vld [vmem:[%s14980_s3 + $0x460] sm:$0xff] }
 0x501   :  { %8624 = vmatpush1.bf16.msra.mxu0 %v13022_v54  ;;  %15831 = vst [vmem:[#allocation23_spill] sm:$0xff] %v13081_v28 }
 0x502   :  { %8880 = vmatpush1.bf16.msra.mxu1 %v13022_v54  ;;  %8626 = vmatprep.subr.bf16.mxu0 %v13028_v63  ;;  %v13076_v54 = vpack.c.bf16 %v5760_v0, %v5758_v36  ;;  %v5769_v0 = vld [vmem:[%s14980_s3 + $0x478] sm:$0xff] }
 0x503   :  { %8882 = vmatprep.subr.bf16.mxu1 %v13028_v63 }
 0x504   :  { %3682 = vmatmul.mubr.f32.vlgmr.msra.gmra.mrb[8].mxu0 %v1069_v53  ;;  %15829 = vst [vmem:[#allocation22_spill] sm:$0xff] %v13076_v54  ;;  %v5762_v53 = vld [vmem:[%s14980_s3 + $0x440] sm:$0xff] }
 0x505   :  { %3976 = vmatmul.mubr.f32.vlgmr.msra.gmra.mrb[8].mxu1 %v15375_v17  ;;  %8628 = vmatpush1.bf16.msra.mxu0 %v13052_v11  ;;  %v15832_v17 = vmax.f32 %v13049_v39, 0.0  ;;  %v13100_v36 = vpack.c.bf16 %v5764_v51, %v5762_v53  ;;  %v5771_v51 = vld [vmem:[%s14980_s3 + $0x488] sm:$0xff]  ;;  %v13120_v53 = vpack.c.bf16 %v5768_v25, %v5766_v60  ;;  %v5777_v25 = vld [vmem:[%s14980_s3 + $0x4b8] sm:$0xff] }
 0x506   :  { %3754 = vmatprep.mubr.f32.mxu0 %v15830_v40  ;;  %8884 = vmatpush1.bf16.msra.mxu1 %v13052_v11  ;;  %v5773_v40 = vld [vmem:[%s14980_s3 + $0x498] sm:$0xff]  ;;  %v5775_v60 = vld [vmem:[%s14980_s3 + $0x4a8] sm:$0xff] }
 0x507   :  { %4048 = vmatprep.mubr.f32.mxu1 %v15832_v17  ;;  %8630 = vmatprep.subr.bf16.mxu0 %v13064_v58  ;;  %15833 = vst [vmem:[#allocation24_spill] sm:$0xff] %v13100_v36  ;;  %v13104_v17 = vpack.c.bf16 %v5769_v0, %v5767_v2  ;;  %15835 = vst [vmem:[#allocation26_spill] sm:$0xff] %v13120_v53  ;;  %v13124_v2 = vpack.c.bf16 %v5773_v40, %v5771_v51  ;;  %v5770_v0 = vld [vmem:[%s14980_s3 + $0x480] sm:$0xff] }
 0x508   :  { %8886 = vmatprep.subr.bf16.mxu1 %v13064_v58  ;;  %v13144_v40 = vpack.c.bf16 %v5777_v25, %v5775_v60 }
 0x509   :  { %8632 = vmatpush1.bf16.msra.mxu0 %v13076_v54  ;;  %15834 = vst [vmem:[#allocation25_spill] sm:$0xff] %v13104_v17  ;;  %15836 = vst [vmem:[#allocation27_spill] sm:$0xff] %v13124_v2 }
 0x50a   :  { %8888 = vmatpush1.bf16.msra.mxu1 %v13076_v54  ;;  %8634 = vmatprep.subr.bf16.mxu0 %v13081_v28  ;;  %15838 = vst [vmem:[#allocation29_spill] sm:$0xff] %v13144_v40  ;;  %v13374_v54 = vadd.f32 %v12239_v9, %v12664_v32  ;;  %v5822_v9 = vld [vmem:[%s14980_s3 + $0x620] sm:$0xff] }
 0x50b   :  { %8890 = vmatprep.subr.bf16.mxu1 %v13081_v28  ;;  %v5772_v28 = vld [vmem:[%s14980_s3 + $0x490] sm:$0xff] }
 0x50c   :  { %v13140_v51 = vpack.c.bf16 %v5772_v28, %v5770_v0  ;;  %v5779_v28 = vld [vmem:[%s14980_s3 + $0x4c8] sm:$0xff]  ;;  %v5781_v0 = vld [vmem:[%s14980_s3 + $0x4d8] sm:$0xff] }
 0x50d   :  { %8636 = vmatpush1.bf16.msra.mxu0 %v13100_v36  ;;  %v13164_v25 = vpack.c.bf16 %v5781_v0, %v5779_v28 }
 0x50e   :  { %8892 = vmatpush1.bf16.msra.mxu1 %v13100_v36  ;;  %8638 = vmatprep.subr.bf16.mxu0 %v13104_v17  ;;  %15837 = vst [vmem:[#allocation28_spill] sm:$0xff] %v13140_v51  ;;  %v5776_v36 = vld [vmem:[%s14980_s3 + $0x4b0] sm:$0xff] }
 0x50f   :  { %8894 = vmatprep.subr.bf16.mxu1 %v13104_v17  ;;  %v5774_v17 = vld [vmem:[%s14980_s3 + $0x4a0] sm:$0xff]  ;;  %15840 = vst [vmem:[#allocation31_spill] sm:$0xff] %v13164_v25 }
 0x510   :  { %v13160_v60 = vpack.c.bf16 %v5776_v36, %v5774_v17  ;;  %v5783_v36 = vld [vmem:[%s14980_s3 + $0x4e8] sm:$0xff]  ;;  %v5785_v17 = vld [vmem:[%s14980_s3 + $0x4f8] sm:$0xff] }
 0x511   :  { %8640 = vmatpush1.bf16.msra.mxu0 %v13120_v53  ;;  %v13184_v0 = vpack.c.bf16 %v5785_v17, %v5783_v36 }
 0x512   :  { %8896 = vmatpush1.bf16.msra.mxu1 %v13120_v53  ;;  %8642 = vmatprep.subr.bf16.mxu0 %v13124_v2  ;;  %15839 = vst [vmem:[#allocation30_spill] sm:$0xff] %v13160_v60  ;;  %v5780_v53 = vld [vmem:[%s14980_s3 + $0x4d0] sm:$0xff] }
 0x513   :  { %8898 = vmatprep.subr.bf16.mxu1 %v13124_v2  ;;  %v5778_v2 = vld [vmem:[%s14980_s3 + $0x4c0] sm:$0xff]  ;;  %15842 = vst [vmem:[#allocation33_spill] sm:$0xff] %v13184_v0 }
 0x514   :  { %v13180_v28 = vpack.c.bf16 %v5780_v53, %v5778_v2  ;;  %v5787_v53 = vld [vmem:[%s14980_s3 + $0x508] sm:$0xff]  ;;  %v5789_v2 = vld [vmem:[%s14980_s3 + $0x518] sm:$0xff] }
 0x515   :  { %8644 = vmatpush1.bf16.msra.mxu0 %v13140_v51  ;;  %v13204_v17 = vpack.c.bf16 %v5789_v2, %v5787_v53 }
 0x516   :  { %8900 = vmatpush1.bf16.msra.mxu1 %v13140_v51  ;;  %8646 = vmatprep.subr.bf16.mxu0 %v13144_v40  ;;  %15841 = vst [vmem:[#allocation32_spill] sm:$0xff] %v13180_v28  ;;  %v5784_v51 = vld [vmem:[%s14980_s3 + $0x4f0] sm:$0xff] }
 0x517   :  { %8902 = vmatprep.subr.bf16.mxu1 %v13144_v40  ;;  %v5782_v40 = vld [vmem:[%s14980_s3 + $0x4e0] sm:$0xff]  ;;  %15844 = vst [vmem:[#allocation35_spill] sm:$0xff] %v13204_v17 }
 0x518   :  { %v13200_v36 = vpack.c.bf16 %v5784_v51, %v5782_v40  ;;  %v5791_v51 = vld [vmem:[%s14980_s3 + $0x528] sm:$0xff]  ;;  %v5793_v40 = vld [vmem:[%s14980_s3 + $0x538] sm:$0xff] }
 0x519   :  { %8648 = vmatpush1.bf16.msra.mxu0 %v13160_v60  ;;  %v13224_v2 = vpack.c.bf16 %v5793_v40, %v5791_v51 }
 0x51a   :  { %8904 = vmatpush1.bf16.msra.mxu1 %v13160_v60  ;;  %8650 = vmatprep.subr.bf16.mxu0 %v13164_v25  ;;  %15843 = vst [vmem:[#allocation34_spill] sm:$0xff] %v13200_v36  ;;  %v5788_v60 = vld [vmem:[%s14980_s3 + $0x510] sm:$0xff] }
 0x51b   :  { %8906 = vmatprep.subr.bf16.mxu1 %v13164_v25  ;;  %v5786_v25 = vld [vmem:[%s14980_s3 + $0x500] sm:$0xff]  ;;  %15846 = vst [vmem:[#allocation37_spill] sm:$0xff] %v13224_v2 }
 0x51c   :  { %v13220_v53 = vpack.c.bf16 %v5788_v60, %v5786_v25  ;;  %v5795_v60 = vld [vmem:[%s14980_s3 + $0x548] sm:$0xff]  ;;  %v5797_v25 = vld [vmem:[%s14980_s3 + $0x558] sm:$0xff] }
 0x51d   :  { %8652 = vmatpush1.bf16.msra.mxu0 %v13180_v28  ;;  %v13244_v40 = vpack.c.bf16 %v5797_v25, %v5795_v60 }
 0x51e   :  { %8908 = vmatpush1.bf16.msra.mxu1 %v13180_v28  ;;  %8654 = vmatprep.subr.bf16.mxu0 %v13184_v0  ;;  %15845 = vst [vmem:[#allocation36_spill] sm:$0xff] %v13220_v53  ;;  %v5792_v28 = vld [vmem:[%s14980_s3 + $0x530] sm:$0xff] }
 0x51f   :  { %8910 = vmatprep.subr.bf16.mxu1 %v13184_v0  ;;  %v5790_v0 = vld [vmem:[%s14980_s3 + $0x520] sm:$0xff]  ;;  %15848 = vst [vmem:[#allocation39_spill] sm:$0xff] %v13244_v40 }
 0x520   :  { %v13240_v51 = vpack.c.bf16 %v5792_v28, %v5790_v0  ;;  %v5799_v28 = vld [vmem:[%s14980_s3 + $0x568] sm:$0xff]  ;;  %v5801_v0 = vld [vmem:[%s14980_s3 + $0x578] sm:$0xff] }
 0x521   :  { %8656 = vmatpush1.bf16.msra.mxu0 %v13200_v36  ;;  %v13264_v25 = vpack.c.bf16 %v5801_v0, %v5799_v28 }
 0x522   :  { %8912 = vmatpush1.bf16.msra.mxu1 %v13200_v36  ;;  %8658 = vmatprep.subr.bf16.mxu0 %v13204_v17  ;;  %15847 = vst [vmem:[#allocation38_spill] sm:$0xff] %v13240_v51  ;;  %v5796_v36 = vld [vmem:[%s14980_s3 + $0x550] sm:$0xff] }
 0x523   :  { %8914 = vmatprep.subr.bf16.mxu1 %v13204_v17  ;;  %v5794_v17 = vld [vmem:[%s14980_s3 + $0x540] sm:$0xff]  ;;  %15850 = vst [vmem:[#allocation41_spill] sm:$0xff] %v13264_v25 }
 0x524   :  { %v13260_v60 = vpack.c.bf16 %v5796_v36, %v5794_v17  ;;  %v5803_v36 = vld [vmem:[%s14980_s3 + $0x588] sm:$0xff]  ;;  %v5805_v17 = vld [vmem:[%s14980_s3 + $0x598] sm:$0xff] }
 0x525   :  { %8660 = vmatpush1.bf16.msra.mxu0 %v13220_v53  ;;  %v13284_v0 = vpack.c.bf16 %v5805_v17, %v5803_v36 }
 0x526   :  { %8916 = vmatpush1.bf16.msra.mxu1 %v13220_v53  ;;  %8662 = vmatprep.subr.bf16.mxu0 %v13224_v2  ;;  %15849 = vst [vmem:[#allocation40_spill] sm:$0xff] %v13260_v60  ;;  %v5800_v53 = vld [vmem:[%s14980_s3 + $0x570] sm:$0xff] }
 0x527   :  { %8918 = vmatprep.subr.bf16.mxu1 %v13224_v2  ;;  %v5798_v2 = vld [vmem:[%s14980_s3 + $0x560] sm:$0xff]  ;;  %15852 = vst [vmem:[#allocation43_spill] sm:$0xff] %v13284_v0 }
 0x528   :  { %v13280_v28 = vpack.c.bf16 %v5800_v53, %v5798_v2  ;;  %v5807_v53 = vld [vmem:[%s14980_s3 + $0x5a8] sm:$0xff]  ;;  %v5809_v2 = vld [vmem:[%s14980_s3 + $0x5b8] sm:$0xff] }
 0x529   :  { %8664 = vmatpush1.bf16.msra.mxu0 %v13240_v51  ;;  %v13304_v17 = vpack.c.bf16 %v5809_v2, %v5807_v53 }
 0x52a   :  { %8920 = vmatpush1.bf16.msra.mxu1 %v13240_v51  ;;  %8666 = vmatprep.subr.bf16.mxu0 %v13244_v40  ;;  %15851 = vst [vmem:[#allocation42_spill] sm:$0xff] %v13280_v28  ;;  %v5804_v51 = vld [vmem:[%s14980_s3 + $0x590] sm:$0xff] }
 0x52b   :  { %8922 = vmatprep.subr.bf16.mxu1 %v13244_v40  ;;  %v5802_v40 = vld [vmem:[%s14980_s3 + $0x580] sm:$0xff]  ;;  %15854 = vst [vmem:[#allocation45_spill] sm:$0xff] %v13304_v17 }
 0x52c   :  { %v13300_v36 = vpack.c.bf16 %v5804_v51, %v5802_v40  ;;  %v5811_v51 = vld [vmem:[%s14980_s3 + $0x5c8] sm:$0xff]  ;;  %v5813_v40 = vld [vmem:[%s14980_s3 + $0x5d8] sm:$0xff] }
 0x52d   :  { %8668 = vmatpush1.bf16.msra.mxu0 %v13260_v60  ;;  %v13324_v2 = vpack.c.bf16 %v5813_v40, %v5811_v51 }
 0x52e   :  { %8924 = vmatpush1.bf16.msra.mxu1 %v13260_v60  ;;  %8670 = vmatprep.subr.bf16.mxu0 %v13264_v25  ;;  %15853 = vst [vmem:[#allocation44_spill] sm:$0xff] %v13300_v36  ;;  %v5808_v60 = vld [vmem:[%s14980_s3 + $0x5b0] sm:$0xff] }
 0x52f   :  { %8926 = vmatprep.subr.bf16.mxu1 %v13264_v25  ;;  %v5806_v25 = vld [vmem:[%s14980_s3 + $0x5a0] sm:$0xff]  ;;  %15856 = vst [vmem:[#allocation47_spill] sm:$0xff] %v13324_v2 }
 0x530   :  { %v13320_v53 = vpack.c.bf16 %v5808_v60, %v5806_v25  ;;  %v5815_v60 = vld [vmem:[%s14980_s3 + $0x5e8] sm:$0xff]  ;;  %v5817_v25 = vld [vmem:[%s14980_s3 + $0x5f8] sm:$0xff] }
 0x531   :  { %8672 = vmatpush1.bf16.msra.mxu0 %v13280_v28  ;;  %v13344_v40 = vpack.c.bf16 %v5817_v25, %v5815_v60 }
 0x532   :  { %8928 = vmatpush1.bf16.msra.mxu1 %v13280_v28  ;;  %8674 = vmatprep.subr.bf16.mxu0 %v13284_v0  ;;  %15855 = vst [vmem:[#allocation46_spill] sm:$0xff] %v13320_v53  ;;  %v5812_v28 = vld [vmem:[%s14980_s3 + $0x5d0] sm:$0xff] }
 0x533   :  { %8930 = vmatprep.subr.bf16.mxu1 %v13284_v0  ;;  %v5810_v0 = vld [vmem:[%s14980_s3 + $0x5c0] sm:$0xff]  ;;  %15858 = vst [vmem:[#allocation49_spill] sm:$0xff] %v13344_v40 }
 0x534   :  { %v13340_v51 = vpack.c.bf16 %v5812_v28, %v5810_v0  ;;  %v5819_v28 = vld [vmem:[%s14980_s3 + $0x608] sm:$0xff]  ;;  %v5821_v0 = vld [vmem:[%s14980_s3 + $0x618] sm:$0xff] }
 0x535   :  { %8676 = vmatpush1.bf16.msra.mxu0 %v13300_v36  ;;  %v13364_v25 = vpack.c.bf16 %v5821_v0, %v5819_v28  ;;  %v13385_v28 = vadd.f32 %v12245_v24, %v12335_v5 }
 0x536   :  { %8932 = vmatpush1.bf16.msra.mxu1 %v13300_v36  ;;  %8678 = vmatprep.subr.bf16.mxu0 %v13304_v17  ;;  %15857 = vst [vmem:[#allocation48_spill] sm:$0xff] %v13340_v51  ;;  %v5816_v36 = vld [vmem:[%s14980_s3 + $0x5f0] sm:$0xff] }
 0x537   :  { %8934 = vmatprep.subr.bf16.mxu1 %v13304_v17  ;;  %v5814_v17 = vld [vmem:[%s14980_s3 + $0x5e0] sm:$0xff]  ;;  %15860 = vst [vmem:[#allocation51_spill] sm:$0xff] %v13364_v25  ;;  %v15407_v58 = vmax.f32 %v13385_v28, 0.0 }
 0x538   :  { %v13360_v60 = vpack.c.bf16 %v5816_v36, %v5814_v17  ;;  %v5823_v36 = vld [vmem:[%s14980_s3 + $0x628] sm:$0xff]  ;;  %v5825_v17 = vld [vmem:[%s14980_s3 + $0x638] sm:$0xff] }
 0x539   :  { %8680 = vmatpush1.bf16.msra.mxu0 %v13320_v53  ;;  %v13400_v24 = vpack.c.bf16 %v5825_v17, %v5823_v36  ;;  %v15864_v17 = vmax.f32 %v12713_v8, 0.0  ;;  %v5831_v8 = vld [vmem:[%s14980_s3 + $0x668] sm:$0xff] }
 0x53a   :  { %8936 = vmatpush1.bf16.msra.mxu1 %v13320_v53  ;;  %8682 = vmatprep.subr.bf16.mxu0 %v13324_v2  ;;  %15859 = vst [vmem:[#allocation50_spill] sm:$0xff] %v13360_v60  ;;  %v5820_v53 = vld [vmem:[%s14980_s3 + $0x610] sm:$0xff] }
 0x53b   :  { %8938 = vmatprep.subr.bf16.mxu1 %v13324_v2  ;;  %v5818_v2 = vld [vmem:[%s14980_s3 + $0x600] sm:$0xff]  ;;  %15861 = vst [vmem:[#allocation52_spill] sm:$0xff] %v13400_v24 }
 0x53c   :  { %v13388_v0 = vpack.c.bf16 %v5820_v53, %v5818_v2  ;;  %v5827_v53 = vld [vmem:[%s14980_s3 + $0x648] sm:$0xff]  ;;  %v5829_v2 = vld [vmem:[%s14980_s3 + $0x658] sm:$0xff] }
 0x53d   :  { %8684 = vmatpush1.bf16.msra.mxu0 %v13340_v51 }
 0x53e   :  { %8940 = vmatpush1.bf16.msra.mxu1 %v13340_v51  ;;  %8686 = vmatprep.subr.bf16.mxu0 %v13344_v40  ;;  %v15408_v51 = vmax.f32 %v13374_v54, 0.0 }
 0x53f   :  { %8942 = vmatprep.subr.bf16.mxu1 %v13344_v40  ;;  %v5824_v40 = vld [vmem:[%s14980_s3 + $0x630] sm:$0xff] }
 0x540   :  { %v13414_v36 = vpack.c.bf16 %v5824_v40, %v5822_v9  ;;  %v5833_v40 = vld [vmem:[%s14980_s3 + $0x678] sm:$0xff] }
 0x541   :  { %8688 = vmatpush1.bf16.msra.mxu0 %v13360_v60 }
 0x542   :  { %8944 = vmatpush1.bf16.msra.mxu1 %v13360_v60  ;;  %8690 = vmatprep.subr.bf16.mxu0 %v13364_v25  ;;  %v15862_v60 = vmax.f32 %v12700_v41, 0.0  ;;  %15863 = vst [vmem:[#allocation53_spill] sm:$0xff] %v13414_v36  ;;  %v5826_v41 = vld [vmem:[%s14980_s3 + $0x640] sm:$0xff] }
 0x543   :  { %8946 = vmatprep.subr.bf16.mxu1 %v13364_v25  ;;  %v13419_v25 = vpack.c.bf16 %v5829_v2, %v5827_v53  ;;  %v13442_v53 = vpack.c.bf16 %v5833_v40, %v5831_v8  ;;  %v5830_v2 = vld [vmem:[%s14980_s3 + $0x660] sm:$0xff] }
 0x544   :  { %3755 = vmatmul.mubr.f32.vlgmr.msra.gmra.mrb[8].mxu0 %v15862_v60  ;;  %v5828_v60 = vld [vmem:[%s14980_s3 + $0x650] sm:$0xff] }
 0x545   :  { %4049 = vmatmul.mubr.f32.vlgmr.msra.gmra.mrb[8].mxu1 %v15408_v51  ;;  %8692 = vmatpush1.bf16.msra.mxu0 %v13388_v0  ;;  %15865 = vst [vmem:[#allocation54_spill] sm:$0xff] %v13419_v25  ;;  %v13438_v9 = vpack.c.bf16 %v5828_v60, %v5826_v41  ;;  %15867 = vst [vmem:[#allocation56_spill] sm:$0xff] %v13442_v53  ;;  %v5835_v41 = vld [vmem:[%s14980_s3 + $0x688] sm:$0xff]  ;;  %v5837_v60 = vld [vmem:[%s14980_s3 + $0x698] sm:$0xff] }
 0x546   :  { %3827 = vmatprep.mubr.f32.mxu0 %v15864_v17  ;;  %8948 = vmatpush1.bf16.msra.mxu1 %v13388_v0  ;;  %v5832_v17 = vld [vmem:[%s14980_s3 + $0x670] sm:$0xff]  ;;  %v13462_v40 = vpack.c.bf16 %v5837_v60, %v5835_v41 }
 0x547   :  { %4121 = vmatprep.mubr.f32.mxu1 %v15407_v58  ;;  %8694 = vmatprep.subr.bf16.mxu0 %v13400_v24  ;;  %15866 = vst [vmem:[#allocation55_spill] sm:$0xff] %v13438_v9  ;;  %v13458_v8 = vpack.c.bf16 %v5832_v17, %v5830_v2  ;;  %v5834_v58 = vld [vmem:[%s14980_s3 + $0x680] sm:$0xff]  ;;  %v5836_v51 = vld [vmem:[%s14980_s3 + $0x690] sm:$0xff]  ;;  %v5839_v2 = vld [vmem:[%s14980_s3 + $0x6a8] sm:$0xff] }
 0x548   :  { %8950 = vmatprep.subr.bf16.mxu1 %v13400_v24  ;;  %15869 = vst [vmem:[#allocation58_spill] sm:$0xff] %v13462_v40  ;;  %v5841_v17 = vld [vmem:[%s14980_s3 + $0x6b8] sm:$0xff]  ;;  %v13478_v41 = vpack.c.bf16 %v5836_v51, %v5834_v58  ;;  %v5843_v58 = vld [vmem:[%s14980_s3 + $0x6c8] sm:$0xff]  ;;  %v5848_v24 = vld [vmem:[%s14980_s3 + $0x6f0] sm:$0xff] }
 0x549   :  { %8696 = vmatpush1.bf16.msra.mxu0 %v13414_v36  ;;  %15868 = vst [vmem:[#allocation57_spill] sm:$0xff] %v13458_v8  ;;  %v13482_v60 = vpack.c.bf16 %v5841_v17, %v5839_v2  ;;  %v5845_v51 = vld [vmem:[%s14980_s3 + $0x6d8] sm:$0xff] }
 0x54a   :  { %8952 = vmatpush1.bf16.msra.mxu1 %v13414_v36  ;;  %8698 = vmatprep.subr.bf16.mxu0 %v13419_v25  ;;  %15870 = vst [vmem:[#allocation60_spill] sm:$0xff] %v13478_v41  ;;  %v13502_v17 = vpack.c.bf16 %v5845_v51, %v5843_v58 }
 0x54b   :  { %8954 = vmatprep.subr.bf16.mxu1 %v13419_v25  ;;  %15871 = vst [vmem:[#allocation61_spill] sm:$0xff] %v13482_v60 }
 0x54c   :  { %15873 = vst [vmem:[#allocation65_spill] sm:$0xff] %v13502_v17 }
 0x54d   :  { %8700 = vmatpush1.bf16.msra.mxu0 %v13438_v9 }
 0x54e   :  { %8956 = vmatpush1.bf16.msra.mxu1 %v13438_v9  ;;  %8702 = vmatprep.subr.bf16.mxu0 %v13442_v53  ;;  %v5840_v9 = vld [vmem:[%s14980_s3 + $0x6b0] sm:$0xff] }
 0x54f   :  { %8958 = vmatprep.subr.bf16.mxu1 %v13442_v53  ;;  %v5838_v53 = vld [vmem:[%s14980_s3 + $0x6a0] sm:$0xff] }
 0x550   :  { %v13498_v2 = vpack.c.bf16 %v5840_v9, %v5838_v53  ;;  %v5847_v9 = vld [vmem:[%s14980_s3 + $0x6e8] sm:$0xff]  ;;  %v5849_v53 = vld [vmem:[%s14980_s3 + $0x6f8] sm:$0xff] }
 0x551   :  { %8704 = vmatpush1.bf16.msra.mxu0 %v13458_v8 }
 0x552   :  { %8960 = vmatpush1.bf16.msra.mxu1 %v13458_v8  ;;  %8706 = vmatprep.subr.bf16.mxu0 %v13462_v40  ;;  %15872 = vst [vmem:[#allocation62_spill] sm:$0xff] %v13498_v2  ;;  %v5844_v8 = vld [vmem:[%s14980_s3 + $0x6d0] sm:$0xff] }
 0x553   :  { %8962 = vmatprep.subr.bf16.mxu1 %v13462_v40  ;;  %v5842_v40 = vld [vmem:[%s14980_s3 + $0x6c0] sm:$0xff] }
 0x555   :  { %8708 = vmatpush1.bf16.msra.mxu0 %v13478_v41 }
 0x556   :  { %8964 = vmatpush1.bf16.msra.mxu1 %v13478_v41  ;;  %8710 = vmatprep.subr.bf16.mxu0 %v13482_v60  ;;  %v13526_v41 = vpack.c.bf16 %v5844_v8, %v5842_v40  ;;  %v5851_v8 = vld [vmem:[%s14980_s3 + $0x708] sm:$0xff]  ;;  %v5853_v40 = vld [vmem:[%s14980_s3 + $0x718] sm:$0xff] }
 0x557   :  { %v13510_v25 = vpop.f32.mrb[6].mxu0  ;;  %v13512_v36 = vpop.f32.mrb[6].mxu1  ;;  %8966 = vmatprep.subr.bf16.mxu1 %v13482_v60  ;;  %v5846_v60 = vld [vmem:[%s14980_s3 + $0x6e0] sm:$0xff] }
 0x558   :  { %15874 = vst [vmem:[#allocation66_spill] sm:$0xff] %v13512_v36  ;;  %v13521_v58 = vpop.f32.mrb[7].mxu0  ;;  %v13523_v51 = vpop.f32.mrb[7].mxu1  ;;  %15875 = vst [vmem:[#allocation67_spill] sm:$0xff] %v13526_v41  ;;  %v13530_v36 = vpack.c.bf16 %v5849_v53, %v5847_v9  ;;  %v13546_v9 = vpack.c.bf16 %v5848_v24, %v5846_v60  ;;  %v13550_v53 = vpack.c.bf16 %v5853_v40, %v5851_v8  ;;  %v5855_v24 = vld [vmem:[%s14980_s3 + $0x728] sm:$0xff]  ;;  %v5857_v60 = vld [vmem:[%s14980_s3 + $0x738] sm:$0xff] }
 0x559   :  { %8712 = vmatpush1.bf16.msra.mxu0 %v13498_v2  ;;  %v13570_v40 = vpack.c.bf16 %v5857_v60, %v5855_v24 }
 0x55a   :  { %8968 = vmatpush1.bf16.msra.mxu1 %v13498_v2  ;;  %8714 = vmatprep.subr.bf16.mxu0 %v13502_v17  ;;  %15876 = vst [vmem:[#allocation68_spill] sm:$0xff] %v13530_v36  ;;  %15877 = vst [vmem:[#allocation69_spill] sm:$0xff] %v13546_v9  ;;  %v5852_v2 = vld [vmem:[%s14980_s3 + $0x710] sm:$0xff] }
 0x55b   :  { %8970 = vmatprep.subr.bf16.mxu1 %v13502_v17  ;;  %15878 = vst [vmem:[#allocation70_spill] sm:$0xff] %v13550_v53  ;;  %v5850_v17 = vld [vmem:[%s14980_s3 + $0x700] sm:$0xff]  ;;  %15880 = vst [vmem:[#allocation72_spill] sm:$0xff] %v13570_v40 }
 0x55c   :  { %v13566_v8 = vpack.c.bf16 %v5852_v2, %v5850_v17  ;;  %v5859_v2 = vld [vmem:[%s14980_s3 + $0x748] sm:$0xff]  ;;  %v5861_v17 = vld [vmem:[%s14980_s3 + $0x758] sm:$0xff] }
 0x55d   :  { %8716 = vmatpush1.bf16.msra.mxu0 %v13526_v41  ;;  %v13590_v60 = vpack.c.bf16 %v5861_v17, %v5859_v2 }
 0x55e   :  { %8972 = vmatpush1.bf16.msra.mxu1 %v13526_v41  ;;  %8718 = vmatprep.subr.bf16.mxu0 %v13530_v36  ;;  %15879 = vst [vmem:[#allocation71_spill] sm:$0xff] %v13566_v8  ;;  %v5856_v41 = vld [vmem:[%s14980_s3 + $0x730] sm:$0xff] }
 0x55f   :  { %8974 = vmatprep.subr.bf16.mxu1 %v13530_v36  ;;  %v5854_v36 = vld [vmem:[%s14980_s3 + $0x720] sm:$0xff]  ;;  %15882 = vst [vmem:[#allocation74_spill] sm:$0xff] %v13590_v60 }
 0x560   :  { %v13586_v24 = vpack.c.bf16 %v5856_v41, %v5854_v36  ;;  %v5863_v36 = vld [vmem:[%s14980_s3 + $0x768] sm:$0xff]  ;;  %v5865_v41 = vld [vmem:[%s14980_s3 + $0x778] sm:$0xff] }
 0x561   :  { %8720 = vmatpush1.bf16.msra.mxu0 %v13546_v9  ;;  %v13610_v17 = vpack.c.bf16 %v5865_v41, %v5863_v36 }
 0x562   :  { %8976 = vmatpush1.bf16.msra.mxu1 %v13546_v9  ;;  %8722 = vmatprep.subr.bf16.mxu0 %v13550_v53  ;;  %15881 = vst [vmem:[#allocation73_spill] sm:$0xff] %v13586_v24  ;;  %v5860_v9 = vld [vmem:[%s14980_s3 + $0x750] sm:$0xff] }
 0x563   :  { %8978 = vmatprep.subr.bf16.mxu1 %v13550_v53  ;;  %v5858_v53 = vld [vmem:[%s14980_s3 + $0x740] sm:$0xff]  ;;  %15884 = vst [vmem:[#allocation76_spill] sm:$0xff] %v13610_v17 }
 0x564   :  { %v13606_v2 = vpack.c.bf16 %v5860_v9, %v5858_v53  ;;  %v5867_v9 = vld [vmem:[%s14980_s3 + $0x788] sm:$0xff]  ;;  %v5869_v53 = vld [vmem:[%s14980_s3 + $0x798] sm:$0xff] }
 0x565   :  { %8724 = vmatpush1.bf16.msra.mxu0 %v13566_v8  ;;  %v13630_v41 = vpack.c.bf16 %v5869_v53, %v5867_v9 }
 0x566   :  { %8980 = vmatpush1.bf16.msra.mxu1 %v13566_v8  ;;  %8726 = vmatprep.subr.bf16.mxu0 %v13570_v40  ;;  %15883 = vst [vmem:[#allocation75_spill] sm:$0xff] %v13606_v2  ;;  %v5864_v8 = vld [vmem:[%s14980_s3 + $0x770] sm:$0xff] }
 0x567   :  { %8982 = vmatprep.subr.bf16.mxu1 %v13570_v40  ;;  %v5862_v40 = vld [vmem:[%s14980_s3 + $0x760] sm:$0xff]  ;;  %15886 = vst [vmem:[#allocation78_spill] sm:$0xff] %v13630_v41 }
 0x568   :  { %v13626_v36 = vpack.c.bf16 %v5864_v8, %v5862_v40  ;;  %v5871_v8 = vld [vmem:[%s14980_s3 + $0x7a8] sm:$0xff]  ;;  %v5873_v40 = vld [vmem:[%s14980_s3 + $0x7b8] sm:$0xff] }
 0x569   :  { %8728 = vmatpush1.bf16.msra.mxu0 %v13586_v24  ;;  %v13650_v53 = vpack.c.bf16 %v5873_v40, %v5871_v8 }
 0x56a   :  { %8984 = vmatpush1.bf16.msra.mxu1 %v13586_v24  ;;  %8730 = vmatprep.subr.bf16.mxu0 %v13590_v60  ;;  %15885 = vst [vmem:[#allocation77_spill] sm:$0xff] %v13626_v36  ;;  %v5868_v24 = vld [vmem:[%s14980_s3 + $0x790] sm:$0xff] }
 0x56b   :  { %8986 = vmatprep.subr.bf16.mxu1 %v13590_v60  ;;  %v5866_v60 = vld [vmem:[%s14980_s3 + $0x780] sm:$0xff]  ;;  %15888 = vst [vmem:[#allocation80_spill] sm:$0xff] %v13650_v53 }
 0x56c   :  { %v13646_v9 = vpack.c.bf16 %v5868_v24, %v5866_v60  ;;  %v5875_v24 = vld [vmem:[%s14980_s3 + $0x7c8] sm:$0xff]  ;;  %v5877_v60 = vld [vmem:[%s14980_s3 + $0x7d8] sm:$0xff] }
 0x56d   :  { %8732 = vmatpush1.bf16.msra.mxu0 %v13606_v2  ;;  %v13670_v40 = vpack.c.bf16 %v5877_v60, %v5875_v24 }
 0x56e   :  { %8988 = vmatpush1.bf16.msra.mxu1 %v13606_v2  ;;  %8734 = vmatprep.subr.bf16.mxu0 %v13610_v17  ;;  %15887 = vst [vmem:[#allocation79_spill] sm:$0xff] %v13646_v9  ;;  %v5872_v2 = vld [vmem:[%s14980_s3 + $0x7b0] sm:$0xff] }
 0x56f   :  { %8990 = vmatprep.subr.bf16.mxu1 %v13610_v17  ;;  %v5870_v17 = vld [vmem:[%s14980_s3 + $0x7a0] sm:$0xff] }
 0x570   :  { %v13666_v8 = vpack.c.bf16 %v5872_v2, %v5870_v17  ;;  %v5879_v2 = vld [vmem:[%s14980_s3 + $0x7e8] sm:$0xff]  ;;  %v5881_v17 = vld [vmem:[%s14980_s3 + $0x7f8] sm:$0xff] }
 0x571   :  { %8736 = vmatpush1.bf16.msra.mxu0 %v13626_v36  ;;  %v13690_v60 = vpack.c.bf16 %v5881_v17, %v5879_v2  ;;  %v4457_v17 = vld [vmem:[%s14981_s5 + $0xf0] sm:$0xff] }
 0x572   :  { %8992 = vmatpush1.bf16.msra.mxu1 %v13626_v36  ;;  %8738 = vmatprep.subr.bf16.mxu0 %v13630_v41  ;;  %v5876_v36 = vld [vmem:[%s14980_s3 + $0x7d0] sm:$0xff] }
 0x573   :  { %8994 = vmatprep.subr.bf16.mxu1 %v13630_v41  ;;  %v5874_v41 = vld [vmem:[%s14980_s3 + $0x7c0] sm:$0xff] }
 0x574   :  { %v13686_v24 = vpack.c.bf16 %v5876_v36, %v5874_v41  ;;  %v13706_v41 = vadd.f32 %v12241_v16, %v12664_v32  ;;  %v15890_v16 = vmax.f32 %v13049_v39, 0.0  ;;  %v4439_v39 = vld [vmem:[%s14981_s5 + $0x60] sm:$0xff] }
 0x575   :  { %8740 = vmatpush1.bf16.msra.mxu0 %v13646_v9 }
 0x576   :  { %8996 = vmatpush1.bf16.msra.mxu1 %v13646_v9  ;;  %8742 = vmatprep.subr.bf16.mxu0 %v13650_v53  ;;  %v5880_v9 = vld [vmem:[%s14980_s3 + $0x7f0] sm:$0xff]  ;;  %v2537_v2 = vmax.f32 %v13706_v41, 0.0  ;;  %v15924_v41 = vld [vmem:[#allocation29_spill] sm:$0xff] }
 0x577   :  { %8998 = vmatprep.subr.bf16.mxu1 %v13650_v53  ;;  %v5878_v53 = vld [vmem:[%s14980_s3 + $0x7e0] sm:$0xff] }
 0x578   :  { %v13700_v36 = vpack.c.bf16 %v5880_v9, %v5878_v53  ;;  %v15889_v9 = vmax.f32 %v13038_v10, 0.0 }
 0x579   :  { %8744 = vmatpush1.bf16.msra.mxu0 %v13666_v8 }
 0x57a   :  { %9000 = vmatpush1.bf16.msra.mxu1 %v13666_v8  ;;  %8746 = vmatprep.subr.bf16.mxu0 %v13670_v40 }
 0x57b   :  { %9002 = vmatprep.subr.bf16.mxu1 %v13670_v40 }
 0x57d   :  { %8748 = vmatpush1.bf16.msra.mxu0 %v13686_v24 }
 0x57e   :  { %9004 = vmatpush1.bf16.msra.mxu1 %v13686_v24  ;;  %8750 = vmatprep.subr.bf16.mxu0 %v13690_v60 }
 0x57f   :  { %9006 = vmatprep.subr.bf16.mxu1 %v13690_v60 }
 0x581   :  { %8752 = vmatpush1.bf16.msra.mxu0 %v13700_v36 }
 0x582   :  { %9008 = vmatpush1.bf16.msra.mxu1 %v13700_v36  ;;  %9010 = vmatprep.subr.bf16.mxu0 %v12347_v33  ;;  %v4443_v33 = vld [vmem:[%s14981_s5 + $0x80] sm:$0xff] }
 0x584   :  { %3828 = vmatmul.mubr.f32.vlgmr.msra.gmra.mrb[8].mxu0 %v15889_v9  ;;  %v4458_v9 = vld [vmem:[%s14981_s5 + $0xf8] sm:$0xff] }
 0x585   :  { %4122 = vmatmul.mubr.f32.vlgmr.msra.gmra.mrb[8].mxu1 %v2537_v2  ;;  %9012 = vmatpush1.bf16.msra.mxu0 %v12375_v26  ;;  %v4444_v26 = vld [vmem:[%s14981_s5 + $0x88] sm:$0xff] }
 0x586   :  { %4196 = vmatprep.mubr.f32.mxu0 %v15890_v16  ;;  %9014 = vmatprep.subr.bf16.mxu0 %v12385_v38  ;;  %v9265_v38 = vpack.c.bf16 %v4444_v26, %v4443_v33  ;;  %v15895_v16 = vld [vmem:[#allocation86_spill] sm:$0xff]  ;;  %v9293_v33 = vpack.c.bf16 %v4458_v9, %v4457_v17  ;;  %v4441_v26 = vld [vmem:[%s14981_s5 + $0x70] sm:$0xff]  ;;  %v15938_v17 = vld [vmem:[#allocation43_spill] sm:$0xff] }
 0x587   :  { %v15939_v9 = vld [vmem:[#allocation44_spill] sm:$0xff] }
 0x588   :  { %9266 = vmatprep.subr.bf16.mxu1 %v9265_v38  ;;  %v4442_v38 = vld [vmem:[%s14981_s5 + $0x78] sm:$0xff] }
 0x589   :  { %9016 = vmatpush1.bf16.msra.mxu0 %v12395_v52  ;;  %v4427_v52 = vld [vmem:[%s14981_s5] sm:$0xff] }
 0x58a   :  { %9018 = vmatprep.subr.bf16.mxu0 %v12400_v57  ;;  %v4428_v57 = vld [vmem:[%s14981_s5 + $0x8] sm:$0xff] }
 0x58d   :  { %9020 = vmatpush1.bf16.msra.mxu0 %v12417_v49  ;;  %v9267_v49 = vpack.c.bf16 %v4428_v57, %v4427_v52  ;;  %v15896_v52 = vld [vmem:[#allocation87_spill] sm:$0xff]  ;;  %v9295_v57 = vpack.c.bf16 %v4442_v38, %v4441_v26  ;;  %v15943_v38 = vld [vmem:[#allocation48_spill] sm:$0xff] }
 0x58e   :  { %9022 = vmatprep.subr.bf16.mxu0 %v12421_v27  ;;  %v4445_v27 = vld [vmem:[%s14981_s5 + $0x90] sm:$0xff]  ;;  %v15942_v26 = vld [vmem:[#allocation47_spill] sm:$0xff] }
 0x58f   :  { %9268 = vmatpush3.bf16.msra.mxu1 %v9267_v49  ;;  %v5899_v49 = vld [vmem:[%s14981_s5 + $0x180] sm:$0xff] }
 0x591   :  { %9024 = vmatpush1.bf16.msra.mxu0 %v12437_v42  ;;  %v4446_v42 = vld [vmem:[%s14981_s5 + $0x98] sm:$0xff] }
 0x592   :  { %9026 = vmatprep.subr.bf16.mxu0 %v12441_v43  ;;  %v9269_v43 = vpack.c.bf16 %v4446_v42, %v4445_v27  ;;  %v5900_v27 = vld [vmem:[%s14981_s5 + $0x188] sm:$0xff]  ;;  %v15897_v42 = vld [vmem:[#allocation2_spill] sm:$0xff] }
 0x594   :  { %9270 = vmatprep.subr.bf16.mxu1 %v9269_v43  ;;  %v9297_v43 = vpack.c.bf16 %v5900_v27, %v5899_v49  ;;  %v9632_v49 = vadd.f32 %v13523_v51, %v12335_v5  ;;  %v15945_v27 = vld [vmem:[#allocation50_spill] sm:$0xff] }
 0x595   :  { %9028 = vmatpush1.bf16.msra.mxu0 %v12457_v15  ;;  %v4429_v15 = vld [vmem:[%s14981_s5 + $0x10] sm:$0xff]  ;;  %v3532_v51 = vld [vmem:[%s14982_s4] sm:$0x3] }
 0x596   :  { %9030 = vmatprep.subr.bf16.mxu0 %v12461_v18  ;;  %v4430_v18 = vld [vmem:[%s14981_s5 + $0x18] sm:$0xff] }
 0x599   :  { %9032 = vmatpush1.bf16.msra.mxu0 %v12477_v55  ;;  %v9271_v55 = vpack.c.bf16 %v4430_v18, %v4429_v15  ;;  %v15898_v15 = vld [vmem:[#allocation3_spill] sm:$0xff]  ;;  %v15899_v18 = vld [vmem:[#allocation4_spill] sm:$0xff] }
 0x59a   :  { %9034 = vmatprep.subr.bf16.mxu0 %v12481_v56  ;;  %v15891_v56 = vmax.f32 %v13374_v54, 0.0  ;;  %v15893_v54 = vld [vmem:[#allocation64_spill] sm:$0xff] }
 0x59b   :  { %9272 = vmatpush3.bf16.msra.mxu1 %v9271_v55  ;;  %v15900_v55 = vld [vmem:[#allocation5_spill] sm:$0xff] }
 0x59d   :  { %9036 = vmatpush1.bf16.msra.mxu0 %v12497_v48  ;;  %v4447_v48 = vld [vmem:[%s14981_s5 + $0xa0] sm:$0xff] }
 0x59e   :  { %9038 = vmatprep.subr.bf16.mxu0 %v12501_v47  ;;  %v4448_v47 = vld [vmem:[%s14981_s5 + $0xa8] sm:$0xff] }
 0x5a1   :  { %9040 = vmatpush1.bf16.msra.mxu0 %v12517_v12  ;;  %v15892_v12 = vmax.f32 %v13385_v28, 0.0  ;;  %v15894_v28 = vld [vmem:[#allocation85_spill] sm:$0xff] }
 0x5a2   :  { %9042 = vmatprep.subr.bf16.mxu0 %v12521_v3  ;;  %v9273_v3 = vpack.c.bf16 %v4448_v47, %v4447_v48  ;;  %v15902_v48 = vld [vmem:[#allocation7_spill] sm:$0xff]  ;;  %v15903_v47 = vld [vmem:[#allocation8_spill] sm:$0xff] }
 0x5a4   :  { %9274 = vmatprep.subr.bf16.mxu1 %v9273_v3  ;;  %v15905_v3 = vld [vmem:[#allocation10_spill] sm:$0xff] }
 0x5a5   :  { %9044 = vmatpush1.bf16.msra.mxu0 %v12537_v19  ;;  %v4431_v19 = vld [vmem:[%s14981_s5 + $0x20] sm:$0xff] }
 0x5a6   :  { %9046 = vmatprep.subr.bf16.mxu0 %v12541_v20  ;;  %v4432_v20 = vld [vmem:[%s14981_s5 + $0x28] sm:$0xff] }
 0x5a9   :  { %9048 = vmatpush1.bf16.msra.mxu0 %v12557_v45  ;;  %v9275_v45 = vpack.c.bf16 %v4432_v20, %v4431_v19  ;;  %v15906_v19 = vld [vmem:[#allocation11_spill] sm:$0xff]  ;;  %v15907_v20 = vld [vmem:[#allocation12_spill] sm:$0xff] }
 0x5aa   :  { %9050 = vmatprep.subr.bf16.mxu0 %v12561_v46  ;;  %v4449_v46 = vld [vmem:[%s14981_s5 + $0xb0] sm:$0xff] }
 0x5ab   :  { %9276 = vmatpush3.bf16.msra.mxu1 %v9275_v45  ;;  %v15908_v45 = vld [vmem:[#allocation13_spill] sm:$0xff] }
 0x5ad   :  { %9052 = vmatpush1.bf16.msra.mxu0 %v12577_v34  ;;  %v4450_v34 = vld [vmem:[%s14981_s5 + $0xb8] sm:$0xff] }
 0x5ae   :  { %9054 = vmatprep.subr.bf16.mxu0 %v12581_v35  ;;  %v9277_v35 = vpack.c.bf16 %v4450_v34, %v4449_v46  ;;  %v15909_v46 = vld [vmem:[#allocation14_spill] sm:$0xff]  ;;  %v15910_v34 = vld [vmem:[#allocation15_spill] sm:$0xff] }
 0x5b0   :  { %9278 = vmatprep.subr.bf16.mxu1 %v9277_v35  ;;  %v15911_v35 = vld [vmem:[#allocation16_spill] sm:$0xff] }
 0x5b1   :  { %9056 = vmatpush1.bf16.msra.mxu0 %v12597_v61  ;;  %v4433_v61 = vld [vmem:[%s14981_s5 + $0x30] sm:$0xff] }
 0x5b2   :  { %9058 = vmatprep.subr.bf16.mxu0 %v12601_v1  ;;  %v4434_v1 = vld [vmem:[%s14981_s5 + $0x38] sm:$0xff] }
 0x5b5   :  { %9060 = vmatpush1.bf16.msra.mxu0 %v12617_v4  ;;  %v9279_v4 = vpack.c.bf16 %v4434_v1, %v4433_v61  ;;  %v15912_v61 = vld [vmem:[#allocation17_spill] sm:$0xff]  ;;  %v15913_v1 = vld [vmem:[#allocation18_spill] sm:$0xff] }
 0x5b6   :  { %9062 = vmatprep.subr.bf16.mxu0 %v12621_v62  ;;  %v4451_v62 = vld [vmem:[%s14981_s5 + $0xc0] sm:$0xff] }
 0x5b7   :  { %9280 = vmatpush3.bf16.msra.mxu1 %v9279_v4  ;;  %v15914_v4 = vld [vmem:[#allocation19_spill] sm:$0xff] }
 0x5b9   :  { %9064 = vmatpush1.bf16.msra.mxu0 %v12637_v21  ;;  %v4452_v21 = vld [vmem:[%s14981_s5 + $0xc8] sm:$0xff] }
 0x5ba   :  { %9066 = vmatprep.subr.bf16.mxu0 %v12644_v7  ;;  %v9281_v7 = vpack.c.bf16 %v4452_v21, %v4451_v62  ;;  %v9630_v62 = vadd.f32 %v13521_v58, %v12335_v5  ;;  %v15915_v21 = vld [vmem:[#allocation20_spill] sm:$0xff]  ;;  %v15920_v58 = vld [vmem:[#allocation25_spill] sm:$0xff] }
 0x5bb   :  { %v15952_v5 = vld [vmem:[#allocation57_spill] sm:$0xff] }
 0x5bc   :  { %9282 = vmatprep.subr.bf16.mxu1 %v9281_v7  ;;  %v2905_v7 = vmax.f32 %v9630_v62, 0.0 }
 0x5bd   :  { %9068 = vmatpush1.bf16.msra.mxu0 %v12660_v31  ;;  %v4435_v31 = vld [vmem:[%s14981_s5 + $0x40] sm:$0xff] }
 0x5be   :  { %9070 = vmatprep.subr.bf16.mxu0 %v12668_v37  ;;  %v4436_v37 = vld [vmem:[%s14981_s5 + $0x48] sm:$0xff] }
 0x5c1   :  { %9072 = vmatpush1.bf16.msra.mxu0 %v12684_v6  ;;  %v9283_v6 = vpack.c.bf16 %v4436_v37, %v4435_v31  ;;  %v15916_v31 = vld [vmem:[#allocation21_spill] sm:$0xff]  ;;  %v15917_v37 = vld [vmem:[#allocation22_spill] sm:$0xff] }
 0x5c2   :  { %9074 = vmatprep.subr.bf16.mxu0 %v12690_v50  ;;  %v4453_v50 = vld [vmem:[%s14981_s5 + $0xd0] sm:$0xff] }
 0x5c3   :  { %9284 = vmatpush3.bf16.msra.mxu1 %v9283_v6  ;;  %v15918_v6 = vld [vmem:[#allocation23_spill] sm:$0xff] }
 0x5c4   :  { %4197 = vmatmul.mubr.f32.vlgmr.msra.gmra.mrb[10].mxu0 %v15891_v56  ;;  %v15901_v56 = vld [vmem:[#allocation6_spill] sm:$0xff] }
 0x5c5   :  { %9076 = vmatpush1.bf16.msra.mxu0 %v12716_v13  ;;  %4269 = vmatprep.mubr.f32.mxu0 %v15892_v12  ;;  %v4454_v13 = vld [vmem:[%s14981_s5 + $0xd8] sm:$0xff] }
 0x5c6   :  { %9078 = vmatprep.subr.bf16.mxu0 %v12728_v59  ;;  %v9285_v59 = vpack.c.bf16 %v4454_v13, %v4453_v50  ;;  %v15904_v12 = vld [vmem:[#allocation9_spill] sm:$0xff]  ;;  %v15919_v50 = vld [vmem:[#allocation24_spill] sm:$0xff]  ;;  %v15921_v13 = vld [vmem:[#allocation26_spill] sm:$0xff] }
 0x5c8   :  { %9286 = vmatprep.subr.bf16.mxu1 %v9285_v59  ;;  %v15923_v59 = vld [vmem:[#allocation28_spill] sm:$0xff] }
 0x5c9   :  { %9080 = vmatpush1.bf16.msra.mxu0 %v12740_v29  ;;  %v4437_v29 = vld [vmem:[%s14981_s5 + $0x50] sm:$0xff] }
 0x5ca   :  { %9082 = vmatprep.subr.bf16.mxu0 %v12743_v30  ;;  %v4438_v30 = vld [vmem:[%s14981_s5 + $0x58] sm:$0xff] }
 0x5cd   :  { %9084 = vmatpush1.bf16.msra.mxu0 %v12762_v22  ;;  %v9287_v22 = vpack.c.bf16 %v4438_v30, %v4437_v29  ;;  %v15927_v29 = vld [vmem:[#allocation32_spill] sm:$0xff]  ;;  %v15928_v30 = vld [vmem:[#allocation33_spill] sm:$0xff] }
 0x5ce   :  { %9086 = vmatprep.subr.bf16.mxu0 %v12766_v14  ;;  %v4455_v14 = vld [vmem:[%s14981_s5 + $0xe0] sm:$0xff] }
 0x5cf   :  { %9288 = vmatpush3.bf16.msra.mxu1 %v9287_v22  ;;  %v15929_v22 = vld [vmem:[#allocation34_spill] sm:$0xff] }
 0x5d1   :  { %9088 = vmatpush1.bf16.msra.mxu0 %v12782_v23  ;;  %v4456_v23 = vld [vmem:[%s14981_s5 + $0xe8] sm:$0xff] }
 0x5d2   :  { %9090 = vmatprep.subr.bf16.mxu0 %v12786_v44  ;;  %v9289_v10 = vpack.c.bf16 %v4456_v23, %v4455_v14  ;;  %v4440_v44 = vld [vmem:[%s14981_s5 + $0x68] sm:$0xff]  ;;  %v15931_v23 = vld [vmem:[#allocation36_spill] sm:$0xff] }
 0x5d3   :  { %v9291_v53 = vpack.c.bf16 %v4440_v44, %v4439_v39  ;;  %v15930_v14 = vld [vmem:[#allocation35_spill] sm:$0xff]  ;;  %v15935_v44 = vld [vmem:[#allocation40_spill] sm:$0xff] }
 0x5d4   :  { %9290 = vmatprep.subr.bf16.mxu1 %v9289_v10  ;;  %v15933_v10 = vld [vmem:[#allocation38_spill] sm:$0xff]  ;;  %v15934_v39 = vld [vmem:[#allocation39_spill] sm:$0xff] }
 0x5d5   :  { %9092 = vmatpush1.bf16.msra.mxu0 %v15893_v54  ;;  %9292 = vmatpush3.bf16.msra.mxu1 %v9291_v53  ;;  %v15932_v54 = vld [vmem:[#allocation37_spill] sm:$0xff]  ;;  %v15937_v53 = vld [vmem:[#allocation42_spill] sm:$0xff] }
 0x5d6   :  { %9094 = vmatprep.subr.bf16.mxu0 %v15894_v28  ;;  %9294 = vmatprep.subr.bf16.mxu1 %v9293_v33  ;;  %v15936_v28 = vld [vmem:[#allocation41_spill] sm:$0xff]  ;;  %v15941_v33 = vld [vmem:[#allocation46_spill] sm:$0xff] }
 0x5d9   :  { %9096 = vmatpush1.bf16.msra.mxu0 %v15895_v16  ;;  %9296 = vmatpush3.bf16.msra.mxu1 %v9295_v57  ;;  %v15940_v16 = vld [vmem:[#allocation45_spill] sm:$0xff] }
 0x5da   :  { %9098 = vmatprep.subr.bf16.mxu0 %v15896_v52  ;;  %9298 = vmatprep.subr.bf16.mxu1 %v9297_v43  ;;  %v9629_v52 = vadd.f32 %v13510_v25, %v12664_v32  ;;  %v15944_v57 = vld [vmem:[#allocation49_spill] sm:$0xff]  ;;  %v15946_v43 = vld [vmem:[#allocation51_spill] sm:$0xff]  ;;  %v15949_v25 = vld [vmem:[#allocation54_spill] sm:$0xff] }
 0x5dd   :  { %9100 = vmatpush1.bf16.msra.mxu0 %v15897_v42  ;;  %v2904_v42 = vmax.f32 %v9629_v52, 0.0  ;;  %v5907_v52 = vld [vmem:[%s14981_s5 + $0x1c0] sm:$0xff] }
 0x5de   :  { %9102 = vmatprep.subr.bf16.mxu0 %v15898_v15  ;;  %v3272_v15 = vmax.f32 %v9632_v49, 0.0  ;;  %v15965_v49 = vld [vmem:[#allocation72_spill] sm:$0xff] }
 0x5e1   :  { %9104 = vmatpush1.bf16.msra.mxu0 %v15899_v18  ;;  %v15947_v18 = vld [vmem:[#allocation52_spill] sm:$0xff] }
 0x5e2   :  { %9106 = vmatprep.subr.bf16.mxu0 %v15900_v55  ;;  %v15948_v55 = vld [vmem:[#allocation53_spill] sm:$0xff] }
 0x5e5   :  { %9108 = vmatpush1.bf16.msra.mxu0 %v15901_v56  ;;  %v15950_v56 = vld [vmem:[#allocation55_spill] sm:$0xff] }
 0x5e6   :  { %9110 = vmatprep.subr.bf16.mxu0 %v15902_v48  ;;  %v15951_v48 = vld [vmem:[#allocation56_spill] sm:$0xff] }
 0x5e9   :  { %9112 = vmatpush1.bf16.msra.mxu0 %v15903_v47  ;;  %v15953_v47 = vld [vmem:[#allocation58_spill] sm:$0xff] }
 0x5ea   :  { %9114 = vmatprep.subr.bf16.mxu0 %v15904_v12 }
 0x5ed   :  { %9116 = vmatpush1.bf16.msra.mxu0 %v15905_v3  ;;  %v15955_v3 = vld [vmem:[#allocation60_spill] sm:$0xff] }
 0x5ee   :  { %9118 = vmatprep.subr.bf16.mxu0 %v15906_v19  ;;  %v15956_v19 = vld [vmem:[#allocation93_spill] sm:$0xff] }
 0x5f1   :  { %9120 = vmatpush1.bf16.msra.mxu0 %v15907_v20  ;;  %v13945_v20 = vrot.slane %v3532_v51, %v15956_v19 }
 0x5f2   :  { %9122 = vmatprep.subr.bf16.mxu0 %v15908_v45  ;;  %v15957_v45 = vld [vmem:[#allocation61_spill] sm:$0xff] }
 0x5f5   :  { %9124 = vmatpush1.bf16.msra.mxu0 %v15909_v46 }
 0x5f6   :  { %9126 = vmatprep.subr.bf16.mxu0 %v15910_v34 }
 0x5f9   :  { %9128 = vmatpush1.bf16.msra.mxu0 %v15911_v35 }
 0x5fa   :  { %9130 = vmatprep.subr.bf16.mxu0 %v15912_v61 }
 0x5fd   :  { %9132 = vmatpush1.bf16.msra.mxu0 %v15913_v1  ;;  %v5883_v1 = vld [vmem:[%s14981_s5 + $0x100] sm:$0xff] }
 0x5fe   :  { %9134 = vmatprep.subr.bf16.mxu0 %v15914_v4  ;;  %v5884_v4 = vld [vmem:[%s14981_s5 + $0x108] sm:$0xff] }
 0x601   :  { %9136 = vmatpush1.bf16.msra.mxu0 %v15915_v21 }
 0x602   :  { %9138 = vmatprep.subr.bf16.mxu0 %v13028_v63  ;;  %v15922_v63 = vld [vmem:[#allocation27_spill] sm:$0xff] }
 0x604   :  { %4270 = vmatmul.mubr.f32.vlgmr.msra.gmra.mrb[10].mxu0 %v2537_v2  ;;  %v15926_v2 = vld [vmem:[#allocation31_spill] sm:$0xff] }
 0x605   :  { %9140 = vmatpush1.bf16.msra.mxu0 %v13052_v11  ;;  %4342 = vmatprep.mubr.f32.mxu0 %v2905_v7  ;;  %v15925_v11 = vld [vmem:[#allocation30_spill] sm:$0xff] }
 0x606   :  { %9142 = vmatprep.subr.bf16.mxu0 %v15916_v31  ;;  %v15958_v7 = vld [vmem:[#allocation62_spill] sm:$0xff]  ;;  %v5901_v31 = vld [vmem:[%s14981_s5 + $0x190] sm:$0xff] }
 0x609   :  { %9144 = vmatpush1.bf16.msra.mxu0 %v15917_v37  ;;  %v5902_v37 = vld [vmem:[%s14981_s5 + $0x198] sm:$0xff] }
 0x60a   :  { %9146 = vmatprep.subr.bf16.mxu0 %v15918_v6 }
 0x60d   :  { %9148 = vmatpush1.bf16.msra.mxu0 %v15919_v50  ;;  %v15959_v50 = vld [vmem:[#allocation65_spill] sm:$0xff] }
 0x60e   :  { %9150 = vmatprep.subr.bf16.mxu0 %v15920_v58 }
 0x611   :  { %9152 = vmatpush1.bf16.msra.mxu0 %v15921_v13  ;;  %v9299_v13 = vpack.c.bf16 %v5884_v4, %v5883_v1  ;;  %v5895_v4 = vld [vmem:[%s14981_s5 + $0x160] sm:$0xff] }
 0x612   :  { %9154 = vmatprep.subr.bf16.mxu0 %v15922_v63 }
 0x615   :  { %9156 = vmatpush1.bf16.msra.mxu0 %v15923_v59  ;;  %v9301_v59 = vpack.c.bf16 %v5902_v37, %v5901_v31  ;;  %v5914_v31 = vld [vmem:[%s14981_s5 + $0x1f8] sm:$0xff]  ;;  %v15971_v37 = vld [vmem:[#allocation78_spill] sm:$0xff] }
 0x616   :  { %9158 = vmatprep.subr.bf16.mxu0 %v15924_v41  ;;  %v5885_v41 = vld [vmem:[%s14981_s5 + $0x110] sm:$0xff] }
 0x619   :  { %9160 = vmatpush1.bf16.msra.mxu0 %v15925_v11  ;;  %v5886_v11 = vld [vmem:[%s14981_s5 + $0x118] sm:$0xff] }
 0x61a   :  { %9162 = vmatprep.subr.bf16.mxu0 %v15926_v2 }
 0x61d   :  { %9164 = vmatpush1.bf16.msra.mxu0 %v15927_v29  ;;  %v15960_v29 = vld [vmem:[#allocation67_spill] sm:$0xff] }
 0x61e   :  { %9166 = vmatprep.subr.bf16.mxu0 %v15928_v30  ;;  %v5903_v30 = vld [vmem:[%s14981_s5 + $0x1a0] sm:$0xff] }
 0x621   :  { %9168 = vmatpush1.bf16.msra.mxu0 %v15929_v22  ;;  %v5904_v22 = vld [vmem:[%s14981_s5 + $0x1a8] sm:$0xff] }
 0x622   :  { %9170 = vmatprep.subr.bf16.mxu0 %v15930_v14  ;;  %v15961_v14 = vld [vmem:[#allocation68_spill] sm:$0xff] }
 0x625   :  { %9172 = vmatpush1.bf16.msra.mxu0 %v15931_v23  ;;  %v9303_v23 = vpack.c.bf16 %v5886_v11, %v5885_v41 }
 0x626   :  { %9174 = vmatprep.subr.bf16.mxu0 %v15932_v54  ;;  %v9305_v54 = vpack.c.bf16 %v5904_v22, %v5903_v30 }
 0x629   :  { %9176 = vmatpush1.bf16.msra.mxu0 %v15933_v10  ;;  %v5887_v10 = vld [vmem:[%s14981_s5 + $0x120] sm:$0xff] }
 0x62a   :  { %9178 = vmatprep.subr.bf16.mxu0 %v15934_v39  ;;  %v5888_v39 = vld [vmem:[%s14981_s5 + $0x128] sm:$0xff] }
 0x62d   :  { %9180 = vmatpush1.bf16.msra.mxu0 %v15935_v44  ;;  %v15962_v44 = vld [vmem:[#allocation69_spill] sm:$0xff] }
 0x62e   :  { %9182 = vmatprep.subr.bf16.mxu0 %v15936_v28  ;;  %v5905_v28 = vld [vmem:[%s14981_s5 + $0x1b0] sm:$0xff] }
 0x631   :  { %9184 = vmatpush1.bf16.msra.mxu0 %v15937_v53  ;;  %v5906_v53 = vld [vmem:[%s14981_s5 + $0x1b8] sm:$0xff] }
 0x632   :  { %9186 = vmatprep.subr.bf16.mxu0 %v15938_v17  ;;  %v15963_v17 = vld [vmem:[#allocation70_spill] sm:$0xff] }
 0x635   :  { %9188 = vmatpush1.bf16.msra.mxu0 %v15939_v9  ;;  %v9307_v9 = vpack.c.bf16 %v5888_v39, %v5887_v10  ;;  %v5918_v10 = vld [vmem:[%s14981_s5 + $0x218] sm:$0xff]  ;;  %v5935_v39 = vld [vmem:[%s14981_s5 + $0x2a0] sm:$0xff] }
 0x636   :  { %9190 = vmatprep.subr.bf16.mxu0 %v15940_v16  ;;  %v9309_v16 = vpack.c.bf16 %v5906_v53, %v5905_v28 }
 0x639   :  { %9192 = vmatpush1.bf16.msra.mxu0 %v15941_v33  ;;  %v5889_v33 = vld [vmem:[%s14981_s5 + $0x130] sm:$0xff] }
 0x63a   :  { %9194 = vmatprep.subr.bf16.mxu0 %v15942_v26  ;;  %v5890_v26 = vld [vmem:[%s14981_s5 + $0x138] sm:$0xff] }
 0x63d   :  { %9196 = vmatpush1.bf16.msra.mxu0 %v15943_v38  ;;  %v15964_v38 = vld [vmem:[#allocation71_spill] sm:$0xff] }
 0x63e   :  { %9198 = vmatprep.subr.bf16.mxu0 %v15944_v57  ;;  %v5908_v57 = vld [vmem:[%s14981_s5 + $0x1c8] sm:$0xff] }
 0x641   :  { %9200 = vmatpush1.bf16.msra.mxu0 %v15945_v27  ;;  %v9311_v27 = vpack.c.bf16 %v5890_v26, %v5889_v33  ;;  %v5938_v33 = vld [vmem:[%s14981_s5 + $0x2b8] sm:$0xff] }
 0x642   :  { %9202 = vmatprep.subr.bf16.mxu0 %v15946_v43  ;;  %v5891_v43 = vld [vmem:[%s14981_s5 + $0x140] sm:$0xff] }
 0x644   :  { %4343 = vmatmul.mubr.f32.vlgmr.msra.gmra.mrb[10].mxu0 %v2904_v42  ;;  %v9313_v42 = vpack.c.bf16 %v5908_v57, %v5907_v52  ;;  %v5921_v52 = vld [vmem:[%s14981_s5 + $0x230] sm:$0xff]  ;;  %v5922_v57 = vld [vmem:[%s14981_s5 + $0x238] sm:$0xff] }
 0x645   :  { %9204 = vmatpush1.bf16.msra.mxu0 %v13388_v0  ;;  %4415 = vmatprep.mubr.f32.mxu0 %v3272_v15  ;;  %v15954_v0 = vld [vmem:[#allocation59_spill] sm:$0xff] }
 0x646   :  { %9206 = vmatprep.subr.bf16.mxu0 %v15947_v18  ;;  %v13941_v12 = vrot.slane %v3532_v51, %v15954_v0  ;;  %v5892_v15 = vld [vmem:[%s14981_s5 + $0x148] sm:$0xff]  ;;  %v15966_v18 = vld [vmem:[#allocation73_spill] sm:$0xff]  ;;  %v5893_v51 = vld [vmem:[%s14981_s5 + $0x150] sm:$0xff] }
 0x649   :  { %9208 = vmatpush1.bf16.msra.mxu0 %v15948_v55  ;;  %v5909_v55 = vld [vmem:[%s14981_s5 + $0x1d0] sm:$0xff] }
 0x64a   :  { %9210 = vmatprep.subr.bf16.mxu0 %v15949_v25  ;;  %v5910_v25 = vld [vmem:[%s14981_s5 + $0x1d8] sm:$0xff] }
 0x64d   :  { %9212 = vmatpush1.bf16.msra.mxu0 %v15950_v56  ;;  %v15967_v56 = vld [vmem:[#allocation74_spill] sm:$0xff] }
 0x64e   :  { %9214 = vmatprep.subr.bf16.mxu0 %v15951_v48  ;;  %v9315_v48 = vpack.c.bf16 %v5892_v15, %v5891_v43  ;;  %v5923_v15 = vld [vmem:[%s14981_s5 + $0x240] sm:$0xff] }
 0x651   :  { %9216 = vmatpush1.bf16.msra.mxu0 %v15952_v5  ;;  %v9317_v5 = vpack.c.bf16 %v5910_v25, %v5909_v55  ;;  %v5941_v25 = vld [vmem:[%s14981_s5 + $0x2d0] sm:$0xff] }
 0x652   :  { %9218 = vmatprep.subr.bf16.mxu0 %v15953_v47  ;;  %v5894_v47 = vld [vmem:[%s14981_s5 + $0x158] sm:$0xff] }
 0x655   :  { %9220 = vmatpush1.bf16.msra.mxu0 %v15955_v3  ;;  %v15968_v3 = vld [vmem:[#allocation75_spill] sm:$0xff] }
 0x656   :  { %9222 = vmatprep.subr.bf16.mxu0 %v15957_v45  ;;  %v5911_v45 = vld [vmem:[%s14981_s5 + $0x1e0] sm:$0xff] }
 0x657   :  { %v3829_v46 = vpop.f32.mrb[8].mxu0 }
 0x658   :  { %v9633_v34 = vadd.f32 %v3829_v46, %v13941_v12  ;;  %v13949_v35 = vpop.f32.mrb[8].mxu1  ;;  %v3831_v61 = vpop.f32.mrb[9].mxu0  ;;  %v5912_v46 = vld [vmem:[%s14981_s5 + $0x1e8] sm:$0xff] }
 0x659   :  { %v9634_v62 = vadd.f32 %v3831_v61, %v13945_v20  ;;  %v4125_v21 = vpop.f32.mrb[9].mxu1  ;;  %9224 = vmatpush1.bf16.msra.mxu0 %v15958_v7  ;;  %v9319_v61 = vpack.c.bf16 %v5894_v47, %v5893_v51  ;;  %v9321_v1 = vpack.c.bf16 %v5912_v46, %v5911_v45  ;;  %v5913_v7 = vld [vmem:[%s14981_s5 + $0x1f0] sm:$0xff]  ;;  %v9635_v11 = vadd.f32 %v13949_v35, %v13941_v12  ;;  %v5934_v35 = vld [vmem:[%s14981_s5 + $0x298] sm:$0xff]  ;;  %v5944_v45 = vld [vmem:[%s14981_s5 + $0x2e8] sm:$0xff] }
 0x65a   :  { %v9636_v6 = vadd.f32 %v4125_v21, %v13945_v20  ;;  %9226 = vmatprep.subr.bf16.mxu0 %v15959_v50  ;;  %v3836_v63 = vmax.f32 %v9633_v34, 0.0  ;;  %v15969_v34 = vld [vmem:[#allocation76_spill] sm:$0xff]  ;;  %v15970_v21 = vld [vmem:[#allocation77_spill] sm:$0xff]  ;;  %v9325_v50 = vpack.c.bf16 %v5914_v31, %v5913_v7 }
 0x65b   :  { %v3837_v58 = vmax.f32 %v9634_v62, 0.0  ;;  %v5896_v62 = vld [vmem:[%s14981_s5 + $0x168] sm:$0xff]  ;;  %v5926_v51 = vld [vmem:[%s14981_s5 + $0x258] sm:$0xff]  ;;  %v5929_v7 = vld [vmem:[%s14981_s5 + $0x270] sm:$0xff] }
 0x65c   :  { %v4131_v2 = vmax.f32 %v9636_v6, 0.0  ;;  %v9323_v6 = vpack.c.bf16 %v5896_v62, %v5895_v4  ;;  %v5945_v4 = vld [vmem:[%s14981_s5 + $0x2f0] sm:$0xff]  ;;  %v5946_v62 = vld [vmem:[%s14981_s5 + $0x2f8] sm:$0xff] }
 0x65d   :  { %9228 = vmatpush1.bf16.msra.mxu0 %v15960_v29  ;;  %4523 = vmatprep.mubr.f32.mxu1 %v3837_v58  ;;  %v5897_v58 = vld [vmem:[%s14981_s5 + $0x170] sm:$0xff]  ;;  %v15974_v29 = vld [vmem:[#allocation66_spill] sm:$0xff]  ;;  %v5930_v31 = vld [vmem:[%s14981_s5 + $0x278] sm:$0xff] }
 0x65e   :  { %4524 = vmatmul.mubr.f32.vlgmr.msra.gmra.mrb[10].mxu1 %v3836_v63  ;;  %9230 = vmatprep.subr.bf16.mxu0 %v15961_v14  ;;  %v15972_v63 = vld [vmem:[#allocation79_spill] sm:$0xff]  ;;  %v9631_v30 = vadd.f32 %v15974_v29, %v12664_v32 }
 0x65f   :  { %9300 = vmatpush3.bf16.msra.mxu1 %v9299_v13  ;;  %4633 = vmatprep.mubr.f32.mxu1 %v4131_v2  ;;  %v5898_v13 = vld [vmem:[%s14981_s5 + $0x178] sm:$0xff]  ;;  %v4130_v2 = vmax.f32 %v9635_v11, 0.0 }
 0x660   :  { %9302 = vmatprep.subr.bf16.mxu1 %v9301_v59  ;;  %v15973_v59 = vld [vmem:[#allocation80_spill] sm:$0xff]  ;;  %v9327_v41 = vpack.c.bf16 %v5898_v13, %v5897_v58  ;;  %v3271_v22 = vmax.f32 %v9631_v30, 0.0 }
 0x661   :  { %9232 = vmatpush1.bf16.msra.mxu0 %v15962_v44  ;;  %v5936_v44 = vld [vmem:[%s14981_s5 + $0x2a8] sm:$0xff] }
 0x662   :  { %9234 = vmatprep.subr.bf16.mxu0 %v15963_v17  ;;  %v9337_v53 = vpack.c.bf16 %v5936_v44, %v5935_v39  ;;  %v5919_v17 = vld [vmem:[%s14981_s5 + $0x220] sm:$0xff]  ;;  %v4778_v44 = vld [vmem:[%s14983_s7 + $0x108] sm:$0xff] }
 0x663   :  { %9304 = vmatpush3.bf16.msra.mxu1 %v9303_v23  ;;  %v4761_v39 = vld [vmem:[%s14983_s7 + $0x80] sm:$0xff] }
 0x664   :  { %9306 = vmatprep.subr.bf16.mxu1 %v9305_v54  ;;  %v5917_v54 = vld [vmem:[%s14981_s5 + $0x210] sm:$0xff] }
 0x665   :  { %9236 = vmatpush1.bf16.msra.mxu0 %v15964_v38  ;;  %v9335_v28 = vpack.c.bf16 %v5918_v10, %v5917_v54 }
 0x666   :  { %9238 = vmatprep.subr.bf16.mxu0 %v15965_v49  ;;  %v5939_v49 = vld [vmem:[%s14981_s5 + $0x2c0] sm:$0xff] }
 0x667   :  { %9308 = vmatpush3.bf16.msra.mxu1 %v9307_v9  ;;  %v5920_v9 = vld [vmem:[%s14981_s5 + $0x228] sm:$0xff] }
 0x668   :  { %9310 = vmatprep.subr.bf16.mxu1 %v9309_v16  ;;  %v5937_v16 = vld [vmem:[%s14981_s5 + $0x2b0] sm:$0xff]  ;;  %v9339_v26 = vpack.c.bf16 %v5920_v9, %v5919_v17  ;;  %v15975_v17 = vmov 0.0  }
 0x669   :  { %9240 = vmatpush1.bf16.msra.mxu0 %v15966_v18  ;;  %v9341_v38 = vpack.c.bf16 %v5938_v33, %v5937_v16  ;;  %v5924_v18 = vld [vmem:[%s14981_s5 + $0x248] sm:$0xff]  ;;  %v4777_v16 = vld [vmem:[%s14983_s7 + $0x100] sm:$0xff] }
 0x66a   :  { %9242 = vmatprep.subr.bf16.mxu0 %v15967_v56  ;;  %v9347_v55 = vpack.c.bf16 %v5924_v18, %v5923_v15  ;;  %v5942_v56 = vld [vmem:[%s14981_s5 + $0x2d8] sm:$0xff]  ;;  %v4785_v33 = vld [vmem:[%s14983_s7 + $0x140] sm:$0xff] }
 0x66b   :  { %9312 = vmatpush3.bf16.msra.mxu1 %v9311_v27  ;;  %v5940_v27 = vld [vmem:[%s14981_s5 + $0x2c8] sm:$0xff] }
 0x66c   :  { %9314 = vmatprep.subr.bf16.mxu1 %v9313_v42  ;;  %v9343_v42 = vpack.c.bf16 %v5922_v57, %v5921_v52  ;;  %v9345_v43 = vpack.c.bf16 %v5940_v27, %v5939_v49  ;;  %v9371_v52 = vpack.c.bf16 %v4785_v33, %v4777_v16  ;;  %v4793_v49 = vld [vmem:[%s14983_s7 + $0x180] sm:$0xff]  ;;  %v4812_v16 = vld [vmem:[%s14983_s7 + $0x218] sm:$0xff] }
 0x66d   :  { %9244 = vmatpush1.bf16.msra.mxu0 %v15968_v3  ;;  %v5943_v3 = vld [vmem:[%s14981_s5 + $0x2e0] sm:$0xff]  ;;  %v4820_v33 = vld [vmem:[%s14983_s7 + $0x258] sm:$0xff] }
 0x66e   :  { %9246 = vmatprep.subr.bf16.mxu0 %v15969_v34  ;;  %v9353_v46 = vpack.c.bf16 %v5944_v45, %v5943_v3  ;;  %v5927_v34 = vld [vmem:[%s14981_s5 + $0x260] sm:$0xff]  ;;  %v4842_v45 = vld [vmem:[%s14983_s7 + $0x308] sm:$0xff] }
 0x66f   :  { %9316 = vmatpush3.bf16.msra.mxu1 %v9315_v48  ;;  %v9349_v48 = vpack.c.bf16 %v5942_v56, %v5941_v25  ;;  %v4801_v27 = vld [vmem:[%s14983_s7 + $0x1c0] sm:$0xff]  ;;  %v4826_v56 = vld [vmem:[%s14983_s7 + $0x288] sm:$0xff] }
 0x670   :  { %9318 = vmatprep.subr.bf16.mxu1 %v9317_v5  ;;  %v5925_v5 = vld [vmem:[%s14981_s5 + $0x250] sm:$0xff]  ;;  %v9375_v15 = vpack.c.bf16 %v4801_v27, %v4793_v49  ;;  %v4817_v25 = vld [vmem:[%s14983_s7 + $0x240] sm:$0xff]  ;;  %v4828_v49 = vld [vmem:[%s14983_s7 + $0x298] sm:$0xff] }
 0x671   :  { %9248 = vmatpush1.bf16.msra.mxu0 %v15970_v21  ;;  %v9351_v47 = vpack.c.bf16 %v5926_v51, %v5925_v5  ;;  %v9357_v21 = vpack.c.bf16 %v5946_v62, %v5945_v4  ;;  %v4833_v3 = vld [vmem:[%s14983_s7 + $0x2c0] sm:$0xff]  ;;  %v4836_v27 = vld [vmem:[%s14983_s7 + $0x2d8] sm:$0xff] }
 0x672   :  { %9250 = vmatprep.subr.bf16.mxu0 %v15971_v37  ;;  %v9359_v37 = vpack.c.bf16 %v5930_v31, %v5929_v7  ;;  %v4849_v4 = vld [vmem:[%s14983_s7 + $0x340] sm:$0xff]  ;;  %v4866_v7 = vld [vmem:[%s14983_s7 + $0x3c8] sm:$0xff] }
 0x673   :  { %9320 = vmatpush3.bf16.msra.mxu1 %v9319_v61  ;;  %v5928_v61 = vld [vmem:[%s14981_s5 + $0x268] sm:$0xff] }
 0x674   :  { %9322 = vmatprep.subr.bf16.mxu1 %v9321_v1  ;;  %v9355_v1 = vpack.c.bf16 %v5928_v61, %v5927_v34 }
 0x675   :  { %9252 = vmatpush1.bf16.msra.mxu0 %v15972_v63 }
 0x676   :  { %9254 = vmatprep.subr.bf16.mxu0 %v15973_v59 }
 0x677   :  { %9324 = vmatpush3.bf16.msra.mxu1 %v9323_v6  ;;  %v4746_v6 = vld [vmem:[%s14983_s7 + $0x8] sm:$0xff] }
 0x678   :  { %9326 = vmatprep.subr.bf16.mxu1 %v9325_v50  ;;  %v4754_v50 = vld [vmem:[%s14983_s7 + $0x48] sm:$0xff] }
 0x679   :  { %9256 = vmatpush1.bf16.msra.mxu0 %v13666_v8  ;;  %v5931_v8 = vld [vmem:[%s14981_s5 + $0x280] sm:$0xff]  ;;  %v9361_v58 = vpack.c.bf16 %v4754_v50, %v4746_v6 }
 0x67a   :  { %9258 = vmatprep.subr.bf16.mxu0 %v13670_v40  ;;  %v5932_v40 = vld [vmem:[%s14981_s5 + $0x288] sm:$0xff]  ;;  %v4865_v6 = vld [vmem:[%s14983_s7 + $0x3c0] sm:$0xff] }
 0x67b   :  { %9328 = vmatpush3.bf16.msra.mxu1 %v9327_v41  ;;  %v9329_v32 = vpack.c.bf16 %v5932_v40, %v5931_v8  ;;  %v5882_v41 = vld [vmem:[%s14984_s6] ss:$0 sm:$0xff] }
 0x67d   :  { %9260 = vmatpush1.bf16.msra.mxu0 %v13686_v24  ;;  %v5915_v24 = vld [vmem:[%s14981_s5 + $0x200] sm:$0xff]  ;;  %9330 = vmatprep.subr.bf16.mxu1 %v9329_v32 }
 0x67e   :  { %4634 = vmatmul.mubr.f32.vlgmr.msra.gmra.mrb[12].mxu1 %v4130_v2  ;;  %9262 = vmatprep.subr.bf16.mxu0 %v13690_v60  ;;  %v5916_v60 = vld [vmem:[%s14981_s5 + $0x208] sm:$0xff]  ;;  %v4745_v32 = vld [vmem:[%s14983_s7] sm:$0xff] }
 0x67f   :  { %v9331_v14 = vpack.c.bf16 %v5916_v60, %v5915_v24  ;;  %v4753_v60 = vld [vmem:[%s14983_s7 + $0x40] sm:$0xff] }
 0x681   :  { %9264 = vmatpush1.bf16.msra.mxu0 %v13700_v36  ;;  %v5933_v36 = vld [vmem:[%s14981_s5 + $0x290] sm:$0xff]  ;;  %9332 = vmatpush3.bf16.msra.mxu1 %v9331_v14  ;;  %v4770_v14 = vld [vmem:[%s14983_s7 + $0xc8] sm:$0xff] }
 0x682   :  { %v9333_v23 = vpack.c.bf16 %v5934_v35, %v5933_v36  ;;  %v4762_v35 = vld [vmem:[%s14983_s7 + $0x88] sm:$0xff] }
 0x683   :  { %v9365_v10 = vpack.c.bf16 %v4770_v14, %v4762_v35  ;;  %v4771_v35 = vld [vmem:[%s14983_s7 + $0xd0] sm:$0xff]  ;;  %v4780_v14 = vld [vmem:[%s14983_s7 + $0x118] sm:$0xff] }
 0x684   :  { %4416 = vmatmul.mubr.f32.vlgmr.msra.gmra.mrb[10].mxu0 %v3271_v22  ;;  %9334 = vmatprep.subr.bf16.mxu1 %v9333_v23  ;;  %v9363_v23 = vpack.c.bf16 %v4753_v60, %v4745_v32 }
 0x685   :  { %9336 = vmatpush3.bf16.msra.mxu1 %v9335_v28  ;;  %v4786_v28 = vld [vmem:[%s14983_s7 + $0x148] sm:$0xff] }
 0x686   :  { %9338 = vmatprep.subr.bf16.mxu1 %v9337_v53  ;;  %v9369_v9 = vpack.c.bf16 %v4786_v28, %v4778_v44 }
 0x689   :  { %9340 = vmatpush3.bf16.msra.mxu1 %v9339_v26  ;;  %v4794_v26 = vld [vmem:[%s14983_s7 + $0x188] sm:$0xff] }
 0x68a   :  { %9342 = vmatprep.subr.bf16.mxu1 %v9341_v38  ;;  %v4802_v38 = vld [vmem:[%s14983_s7 + $0x1c8] sm:$0xff] }
 0x68b   :  { %v9373_v57 = vpack.c.bf16 %v4802_v38, %v4794_v26  ;;  %v9409_v38 = vpack.c.bf16 %v4820_v33, %v4812_v16  ;;  %v4846_v16 = vld [vmem:[%s14983_s7 + $0x328] sm:$0xff] }
 0x68c   :  { %v4854_v33 = vld [vmem:[%s14983_s7 + $0x368] sm:$0xff] }
 0x68d   :  { %9344 = vmatpush3.bf16.msra.mxu1 %v9343_v42  ;;  %v4810_v42 = vld [vmem:[%s14983_s7 + $0x208] sm:$0xff] }
 0x68e   :  { %9346 = vmatprep.subr.bf16.mxu1 %v9345_v43  ;;  %v4818_v43 = vld [vmem:[%s14983_s7 + $0x248] sm:$0xff] }
 0x68f   :  { %v9377_v18 = vpack.c.bf16 %v4818_v43, %v4810_v42  ;;  %v9413_v43 = vpack.c.bf16 %v4836_v27, %v4828_v49  ;;  %v4862_v49 = vld [vmem:[%s14983_s7 + $0x3a8] sm:$0xff] }
 0x690   :  { %v4870_v27 = vld [vmem:[%s14983_s7 + $0x3e8] sm:$0xff] }
 0x691   :  { %9348 = vmatpush3.bf16.msra.mxu1 %v9347_v55  ;;  %v4809_v55 = vld [vmem:[%s14983_s7 + $0x200] sm:$0xff] }
 0x692   :  { %9350 = vmatprep.subr.bf16.mxu1 %v9349_v48  ;;  %v4834_v48 = vld [vmem:[%s14983_s7 + $0x2c8] sm:$0xff]  ;;  %v9379_v5 = vpack.c.bf16 %v4817_v25, %v4809_v55  ;;  %v4844_v55 = vld [vmem:[%s14983_s7 + $0x318] sm:$0xff] }
 0x693   :  { %v9381_v51 = vpack.c.bf16 %v4834_v48, %v4826_v56  ;;  %v4852_v25 = vld [vmem:[%s14983_s7 + $0x358] sm:$0xff] }
 0x694   :  { %v9417_v48 = vpack.c.bf16 %v4852_v25, %v4844_v55  ;;  %v4752_v55 = vld [vmem:[%s14983_s7 + $0x38] sm:$0xff] }
 0x695   :  { %9352 = vmatpush3.bf16.msra.mxu1 %v9351_v47  ;;  %v4825_v47 = vld [vmem:[%s14983_s7 + $0x280] sm:$0xff]  ;;  %v4760_v25 = vld [vmem:[%s14983_s7 + $0x78] sm:$0xff] }
 0x696   :  { %9354 = vmatprep.subr.bf16.mxu1 %v9353_v46  ;;  %v4850_v46 = vld [vmem:[%s14983_s7 + $0x348] sm:$0xff]  ;;  %v9383_v34 = vpack.c.bf16 %v4833_v3, %v4825_v47  ;;  %v4860_v47 = vld [vmem:[%s14983_s7 + $0x398] sm:$0xff] }
 0x697   :  { %v9385_v61 = vpack.c.bf16 %v4850_v46, %v4842_v45  ;;  %v4868_v3 = vld [vmem:[%s14983_s7 + $0x3d8] sm:$0xff] }
 0x698   :  { %v9421_v46 = vpack.c.bf16 %v4868_v3, %v4860_v47  ;;  %v4768_v47 = vld [vmem:[%s14983_s7 + $0xb8] sm:$0xff] }
 0x699   :  { %9356 = vmatpush3.bf16.msra.mxu1 %v9355_v1  ;;  %v4841_v1 = vld [vmem:[%s14983_s7 + $0x300] sm:$0xff]  ;;  %v4776_v3 = vld [vmem:[%s14983_s7 + $0xf8] sm:$0xff] }
 0x69a   :  { %9358 = vmatprep.subr.bf16.mxu1 %v9357_v21  ;;  %v9387_v62 = vpack.c.bf16 %v4849_v4, %v4841_v1  ;;  %v4858_v21 = vld [vmem:[%s14983_s7 + $0x388] sm:$0xff] }
 0x69b   :  { %v9389_v31 = vpack.c.bf16 %v4866_v7, %v4858_v21  ;;  %v4750_v1 = vld [vmem:[%s14983_s7 + $0x28] sm:$0xff]  ;;  %v4749_v7 = vld [vmem:[%s14983_s7 + $0x20] sm:$0xff] }
 0x69c   :  { %v4758_v4 = vld [vmem:[%s14983_s7 + $0x68] sm:$0xff] }
 0x69d   :  { %9360 = vmatpush3.bf16.msra.mxu1 %v9359_v37  ;;  %v4857_v37 = vld [vmem:[%s14983_s7 + $0x380] sm:$0xff]  ;;  %v9425_v21 = vpack.c.bf16 %v4758_v4, %v4750_v1  ;;  %v4784_v1 = vld [vmem:[%s14983_s7 + $0x138] sm:$0xff] }
 0x69e   :  { %9362 = vmatprep.subr.bf16.mxu1 %v9361_v58  ;;  %v9391_v50 = vpack.c.bf16 %v4865_v6, %v4857_v37  ;;  %v4748_v58 = vld [vmem:[%s14983_s7 + $0x18] sm:$0xff]  ;;  %v4766_v37 = vld [vmem:[%s14983_s7 + $0xa8] sm:$0xff] }
 0x69f   :  { %v4774_v6 = vld [vmem:[%s14983_s7 + $0xe8] sm:$0xff]  ;;  %v4792_v4 = vld [vmem:[%s14983_s7 + $0x178] sm:$0xff] }
 0x731   :  { %v5980_v13 = vpop.f32.mrb[10].mxu1 }
 0x732   :  { %v5981_v63 = vpop.f32.mrb[11].mxu1 }
 0x733   :  { %v5982_v59 = vadd.f32 %v5981_v63, %v5980_v13  ;;  %v4756_v13 = vld [vmem:[%s14983_s7 + $0x58] sm:$0xff] }
 0x734   :  { %v9393_v63 = vpack.c.bf16 %v4756_v13, %v4748_v58  ;;  %v9429_v58 = vpack.c.bf16 %v4774_v6, %v4766_v37  ;;  %v4765_v13 = vld [vmem:[%s14983_s7 + $0xa0] sm:$0xff]  ;;  %v4800_v37 = vld [vmem:[%s14983_s7 + $0x1b8] sm:$0xff] }
 0x735   :  { %v4535_v29 = vadd.f32 %v5982_v59, %v5882_v41  ;;  %v4808_v6 = vld [vmem:[%s14983_s7 + $0x1f8] sm:$0xff] }
 0x751   :  { %v6015_v11 = vpop.f32.mrb[12].mxu1 }
 0x752   :  { %v6016_v2 = vpop.f32.mrb[13].mxu1 }
 0x753   :  { %v6017_v30 = vadd.f32 %v6016_v2, %v6015_v11  ;;  %v4747_v2 = vld [vmem:[%s14983_s7 + $0x10] sm:$0xff] }
 0x755   :  { %v14173_v22 = vadd.f32 %v6017_v30, %v4535_v29  ;;  %v4755_v29 = vld [vmem:[%s14983_s7 + $0x50] sm:$0xff]  ;;  %v4764_v30 = vld [vmem:[%s14983_s7 + $0x98] sm:$0xff] }
 0x757   :  { %v4417_v8 = vpop.f32.mrb[10].mxu0 }
 0x758   :  { %v9637_v40 = vadd.f32 %v4417_v8, %v13941_v12  ;;  %v4419_v24 = vpop.f32.mrb[11].mxu0  ;;  %v4772_v8 = vld [vmem:[%s14983_s7 + $0xd8] sm:$0xff] }
 0x759   :  { %v9638_v36 = vadd.f32 %v4419_v24, %v13945_v20  ;;  %v4769_v20 = vld [vmem:[%s14983_s7 + $0xc0] sm:$0xff]  ;;  %v9395_v24 = vpack.c.bf16 %v4755_v29, %v4747_v2  ;;  %v9397_v60 = vpack.c.bf16 %v4772_v8, %v4764_v30  ;;  %v4798_v8 = vld [vmem:[%s14983_s7 + $0x1a8] sm:$0xff] }
 0x75a   :  { %v4424_v54 = vmax.f32 %v9637_v40, 0.0  ;;  %v9367_v53 = vpack.c.bf16 %v4769_v20, %v4761_v39  ;;  %v4796_v39 = vld [vmem:[%s14983_s7 + $0x198] sm:$0xff]  ;;  %v4781_v29 = vld [vmem:[%s14983_s7 + $0x120] sm:$0xff] }
 0x75b   :  { %v4425_v12 = vmax.f32 %v9638_v36, 0.0  ;;  %v4763_v36 = vld [vmem:[%s14983_s7 + $0x90] sm:$0xff]  ;;  %v4804_v20 = vld [vmem:[%s14983_s7 + $0x1d8] sm:$0xff]  ;;  %v4789_v30 = vld [vmem:[%s14983_s7 + $0x160] sm:$0xff] }
 0x75c   :  { %v9405_v28 = vpack.c.bf16 %v4804_v20, %v4796_v39  ;;  %v4830_v39 = vld [vmem:[%s14983_s7 + $0x2a8] sm:$0xff] }
 0x75d   :  { %4737 = vmatprep.mubr.f32.mxu1 %v4425_v12  ;;  %v9399_v12 = vpack.c.bf16 %v4771_v35, %v4763_v36  ;;  %v4797_v36 = vld [vmem:[%s14983_s7 + $0x1a0] sm:$0xff]  ;;  %v4838_v20 = vld [vmem:[%s14983_s7 + $0x2e8] sm:$0xff] }
 0x75e   :  { %4738 = vmatmul.mubr.f32.vlgmr.msra.gmra.mrb[14].mxu1 %v4424_v54  ;;  %v4779_v54 = vld [vmem:[%s14983_s7 + $0x110] sm:$0xff]  ;;  %v4805_v35 = vld [vmem:[%s14983_s7 + $0x1e0] sm:$0xff] }
 0x75f   :  { %9364 = vmatpush1.bf16.msra.mxu1 %v9363_v23  ;;  %4979 = vmatprep.mubr.f32.mxu1 %v15975_v17 }
 0x760   :  { %9366 = vmatprep.subr.bf16.mxu1 %v9365_v10  ;;  %v4787_v10 = vld [vmem:[%s14983_s7 + $0x150] sm:$0xff] }
 0x761   :  { %v9403_v44 = vpack.c.bf16 %v4787_v10, %v4779_v54  ;;  %v4813_v54 = vld [vmem:[%s14983_s7 + $0x220] sm:$0xff] }
 0x762   :  { %v4821_v10 = vld [vmem:[%s14983_s7 + $0x260] sm:$0xff] }
 0x763   :  { %9368 = vmatpush1.bf16.msra.mxu1 %v9367_v53  ;;  %v4795_v53 = vld [vmem:[%s14983_s7 + $0x190] sm:$0xff] }
 0x764   :  { %9370 = vmatprep.subr.bf16.mxu1 %v9369_v9  ;;  %v4803_v9 = vld [vmem:[%s14983_s7 + $0x1d0] sm:$0xff] }
 0x765   :  { %v9407_v26 = vpack.c.bf16 %v4803_v9, %v4795_v53  ;;  %v4829_v53 = vld [vmem:[%s14983_s7 + $0x2a0] sm:$0xff] }
 0x766   :  { %v4837_v9 = vld [vmem:[%s14983_s7 + $0x2e0] sm:$0xff] }
 0x767   :  { %9372 = vmatpush1.bf16.msra.mxu1 %v9371_v52  ;;  %v4811_v52 = vld [vmem:[%s14983_s7 + $0x210] sm:$0xff] }
 0x768   :  { %9374 = vmatprep.subr.bf16.mxu1 %v9373_v57  ;;  %v4819_v57 = vld [vmem:[%s14983_s7 + $0x250] sm:$0xff] }
 0x769   :  { %v9411_v42 = vpack.c.bf16 %v4819_v57, %v4811_v52  ;;  %v4845_v52 = vld [vmem:[%s14983_s7 + $0x320] sm:$0xff] }
 0x76a   :  { %v4853_v57 = vld [vmem:[%s14983_s7 + $0x360] sm:$0xff] }
 0x76b   :  { %9376 = vmatpush1.bf16.msra.mxu1 %v9375_v15  ;;  %v4827_v15 = vld [vmem:[%s14983_s7 + $0x290] sm:$0xff] }
 0x76c   :  { %9378 = vmatprep.subr.bf16.mxu1 %v9377_v18  ;;  %v4835_v18 = vld [vmem:[%s14983_s7 + $0x2d0] sm:$0xff] }
 0x76d   :  { %v9415_v56 = vpack.c.bf16 %v4835_v18, %v4827_v15  ;;  %v4861_v15 = vld [vmem:[%s14983_s7 + $0x3a0] sm:$0xff] }
 0x76e   :  { %v4869_v18 = vld [vmem:[%s14983_s7 + $0x3e0] sm:$0xff] }
 0x76f   :  { %9380 = vmatpush1.bf16.msra.mxu1 %v9379_v5  ;;  %v4843_v5 = vld [vmem:[%s14983_s7 + $0x310] sm:$0xff] }
 0x770   :  { %9382 = vmatprep.subr.bf16.mxu1 %v9381_v51  ;;  %v4851_v51 = vld [vmem:[%s14983_s7 + $0x350] sm:$0xff] }
 0x771   :  { %v9419_v45 = vpack.c.bf16 %v4851_v51, %v4843_v5  ;;  %v4751_v5 = vld [vmem:[%s14983_s7 + $0x30] sm:$0xff] }
 0x772   :  { %v4759_v51 = vld [vmem:[%s14983_s7 + $0x70] sm:$0xff] }
 0x773   :  { %9384 = vmatpush1.bf16.msra.mxu1 %v9383_v34  ;;  %v4859_v34 = vld [vmem:[%s14983_s7 + $0x390] sm:$0xff] }
 0x774   :  { %9386 = vmatprep.subr.bf16.mxu1 %v9385_v61  ;;  %v4867_v61 = vld [vmem:[%s14983_s7 + $0x3d0] sm:$0xff] }
 0x777   :  { %9388 = vmatpush1.bf16.msra.mxu1 %v9387_v62  ;;  %v9423_v62 = vpack.c.bf16 %v4867_v61, %v4859_v34  ;;  %v4767_v34 = vld [vmem:[%s14983_s7 + $0xb0] sm:$0xff] }
 0x778   :  { %9390 = vmatprep.subr.bf16.mxu1 %v9389_v31  ;;  %v4757_v31 = vld [vmem:[%s14983_s7 + $0x60] sm:$0xff]  ;;  %v4775_v61 = vld [vmem:[%s14983_s7 + $0xf0] sm:$0xff] }
 0x77b   :  { %9392 = vmatpush1.bf16.msra.mxu1 %v9391_v50  ;;  %v9427_v50 = vpack.c.bf16 %v4757_v31, %v4749_v7  ;;  %v4783_v7 = vld [vmem:[%s14983_s7 + $0x130] sm:$0xff] }
 0x77c   :  { %9394 = vmatprep.subr.bf16.mxu1 %v9393_v63  ;;  %v4773_v63 = vld [vmem:[%s14983_s7 + $0xe0] sm:$0xff]  ;;  %v4791_v31 = vld [vmem:[%s14983_s7 + $0x170] sm:$0xff] }
 0x831   :  { %v6050_v59 = vpop.f32.mrb[14].mxu1 }
 0x832   :  { %v6051_v41 = vpop.f32.mrb[15].mxu1 }
 0x833   :  { %v6052_v11 = vadd.f32 %v6051_v41, %v6050_v59  ;;  %v4782_v59 = vld [vmem:[%s14983_s7 + $0x128] sm:$0xff] }
 0x834   :  { %v4790_v41 = vld [vmem:[%s14983_s7 + $0x168] sm:$0xff] }
 0x835   :  { %v4743_v40 = vadd.f32 %v6052_v11, %v14173_v22  ;;  %v4788_v22 = vld [vmem:[%s14983_s7 + $0x158] sm:$0xff]  ;;  %v9431_v11 = vpack.c.bf16 %v4773_v63, %v4765_v13  ;;  %v9433_v2 = vpack.c.bf16 %v4790_v41, %v4782_v59  ;;  %v4807_v13 = vld [vmem:[%s14983_s7 + $0x1f0] sm:$0xff] }
 0x836   :  { %v9401_v23 = vpack.c.bf16 %v4788_v22, %v4780_v14  ;;  %v4814_v14 = vld [vmem:[%s14983_s7 + $0x228] sm:$0xff]  ;;  %v4816_v63 = vld [vmem:[%s14983_s7 + $0x238] sm:$0xff] }
 0x837   :  { %v14287_v32 = vmax.f32 %v4743_v40, 0.0  ;;  %v4806_v40 = vld [vmem:[%s14983_s7 + $0x1e8] sm:$0xff]  ;;  %v4824_v59 = vld [vmem:[%s14983_s7 + $0x278] sm:$0xff] }
 0x838   :  { %v4822_v22 = vld [vmem:[%s14983_s7 + $0x268] sm:$0xff] }
 0x839   :  { %4980 = vmatmul.mubr.f32.vlgmr.msra.gmra.mrb[16].mxu1 %v14287_v32 }
 0x83a   :  { %9396 = vmatpush1.bf16.msra.mxu1 %v9395_v24  ;;  %5050 = vmatprep.mubr.f32.mxu1 %v15975_v17  ;;  %v9435_v24 = vpack.c.bf16 %v4789_v30, %v4781_v29  ;;  %v4823_v29 = vld [vmem:[%s14983_s7 + $0x270] sm:$0xff]  ;;  %v4832_v30 = vld [vmem:[%s14983_s7 + $0x2b8] sm:$0xff] }
 0x83b   :  { %9398 = vmatprep.subr.bf16.mxu1 %v9397_v60  ;;  %v9437_v60 = vpack.c.bf16 %v4806_v40, %v4798_v8  ;;  %v4840_v8 = vld [vmem:[%s14983_s7 + $0x2f8] sm:$0xff] }
 0x83e   :  { %9400 = vmatpush1.bf16.msra.mxu1 %v9399_v12  ;;  %v9439_v12 = vpack.c.bf16 %v4805_v35, %v4797_v36  ;;  %v4839_v36 = vld [vmem:[%s14983_s7 + $0x2f0] sm:$0xff]  ;;  %v4848_v35 = vld [vmem:[%s14983_s7 + $0x338] sm:$0xff] }
 0x83f   :  { %9402 = vmatprep.subr.bf16.mxu1 %v9401_v23  ;;  %v9441_v23 = vpack.c.bf16 %v4822_v22, %v4814_v14  ;;  %v4856_v14 = vld [vmem:[%s14983_s7 + $0x378] sm:$0xff] }
 0x842   :  { %9404 = vmatpush1.bf16.msra.mxu1 %v9403_v44  ;;  %v9443_v44 = vpack.c.bf16 %v4821_v10, %v4813_v54  ;;  %v4855_v54 = vld [vmem:[%s14983_s7 + $0x370] sm:$0xff]  ;;  %v4864_v10 = vld [vmem:[%s14983_s7 + $0x3b8] sm:$0xff] }
 0x843   :  { %9406 = vmatprep.subr.bf16.mxu1 %v9405_v28  ;;  %v9445_v28 = vpack.c.bf16 %v4838_v20, %v4830_v39  ;;  %v4872_v39 = vld [vmem:[%s14983_s7 + $0x3f8] sm:$0xff] }
 0x846   :  { %9408 = vmatpush1.bf16.msra.mxu1 %v9407_v26  ;;  %v9447_v26 = vpack.c.bf16 %v4837_v9, %v4829_v53  ;;  %v4871_v53 = vld [vmem:[%s14983_s7 + $0x3f0] sm:$0xff]  ;;  %v5223_v9 = vld [vmem:[%s14985_s9 + $0x80] sm:$0xff] }
 0x847   :  { %9410 = vmatprep.subr.bf16.mxu1 %v9409_v38  ;;  %v9449_v38 = vpack.c.bf16 %v4854_v33, %v4846_v16  ;;  %v5224_v16 = vld [vmem:[%s14985_s9 + $0x88] sm:$0xff]  ;;  %v5207_v33 = vld [vmem:[%s14985_s9] sm:$0xff] }
 0x84a   :  { %9412 = vmatpush1.bf16.msra.mxu1 %v9411_v42  ;;  %v9451_v42 = vpack.c.bf16 %v4853_v57, %v4845_v52  ;;  %v5256_v52 = vld [vmem:[%s14985_s9 + $0x188] sm:$0xff] }
 0x84b   :  { %9414 = vmatprep.subr.bf16.mxu1 %v9413_v43  ;;  %v9453_v43 = vpack.c.bf16 %v4870_v27, %v4862_v49  ;;  %v5225_v49 = vld [vmem:[%s14985_s9 + $0x90] sm:$0xff]  ;;  %v5226_v27 = vld [vmem:[%s14985_s9 + $0x98] sm:$0xff] }
 0x84e   :  { %9416 = vmatpush1.bf16.msra.mxu1 %v9415_v56  ;;  %v9455_v56 = vpack.c.bf16 %v4869_v18, %v4861_v15  ;;  %v5240_v15 = vld [vmem:[%s14985_s9 + $0x108] sm:$0xff]  ;;  %v9489_v18 = vpack.c.bf16 %v5224_v16, %v5223_v9  ;;  %v5250_v9 = vld [vmem:[%s14985_s9 + $0x158] sm:$0xff] }
 0x84f   :  { %9418 = vmatprep.subr.bf16.mxu1 %v9417_v48  ;;  %v9457_v48 = vpack.c.bf16 %v4760_v25, %v4752_v55  ;;  %v5257_v25 = vld [vmem:[%s14985_s9 + $0x190] sm:$0xff] }
 0x852   :  { %9420 = vmatpush1.bf16.msra.mxu1 %v9419_v45  ;;  %v9459_v45 = vpack.c.bf16 %v4759_v51, %v4751_v5  ;;  %v5242_v51 = vld [vmem:[%s14985_s9 + $0x118] sm:$0xff] }
 0x853   :  { %9422 = vmatprep.subr.bf16.mxu1 %v9421_v46  ;;  %v9461_v46 = vpack.c.bf16 %v4776_v3, %v4768_v47  ;;  %v5259_v47 = vld [vmem:[%s14985_s9 + $0x1a0] sm:$0xff]  ;;  %v5260_v3 = vld [vmem:[%s14985_s9 + $0x1a8] sm:$0xff] }
 0x856   :  { %9424 = vmatpush1.bf16.msra.mxu1 %v9423_v62  ;;  %v9463_v62 = vpack.c.bf16 %v4775_v61, %v4767_v34  ;;  %v5209_v34 = vld [vmem:[%s14985_s9 + $0x10] sm:$0xff]  ;;  %v9529_v61 = vpack.c.bf16 %v5260_v3, %v5259_v47  ;;  %v5219_v47 = vld [vmem:[%s14985_s9 + $0x60] sm:$0xff]  ;;  %v5220_v3 = vld [vmem:[%s14985_s9 + $0x68] sm:$0xff] }
 0x857   :  { %9426 = vmatprep.subr.bf16.mxu1 %v9425_v21  ;;  %v9465_v21 = vpack.c.bf16 %v4792_v4, %v4784_v1  ;;  %v5243_v1 = vld [vmem:[%s14985_s9 + $0x120] sm:$0xff]  ;;  %v5244_v4 = vld [vmem:[%s14985_s9 + $0x128] sm:$0xff] }
 0x859   :  { %5051 = vmatmul.mubr.f32.vlgmr.msra.gmra.mrb[18].mxu1 %v14287_v32 }
 0x85a   :  { %9428 = vmatpush1.bf16.msra.mxu1 %v9427_v50  ;;  %5121 = vmatprep.mubr.f32.mxu1 %v15975_v17  ;;  %v9469_v50 = vpack.c.bf16 %v4808_v6, %v4800_v37  ;;  %v5227_v37 = vld [vmem:[%s14985_s9 + $0xa0] sm:$0xff]  ;;  %v5228_v6 = vld [vmem:[%s14985_s9 + $0xa8] sm:$0xff] }
 0x85b   :  { %9430 = vmatprep.subr.bf16.mxu1 %v9429_v58  ;;  %v4799_v58 = vld [vmem:[%s14983_s7 + $0x1b0] sm:$0xff] }
 0x85c   :  { %v9471_v41 = vpack.c.bf16 %v4807_v13, %v4799_v58  ;;  %v5211_v58 = vld [vmem:[%s14985_s9 + $0x20] sm:$0xff] }
 0x85e   :  { %9432 = vmatpush1.bf16.msra.mxu1 %v9431_v11  ;;  %v9473_v11 = vpack.c.bf16 %v4824_v59, %v4816_v63  ;;  %v5245_v63 = vld [vmem:[%s14985_s9 + $0x130] sm:$0xff]  ;;  %v5246_v59 = vld [vmem:[%s14985_s9 + $0x138] sm:$0xff] }
 0x85f   :  { %9434 = vmatprep.subr.bf16.mxu1 %v9433_v2  ;;  %v4815_v2 = vld [vmem:[%s14983_s7 + $0x230] sm:$0xff] }
 0x860   :  { %v9475_v40 = vpack.c.bf16 %v4823_v29, %v4815_v2  ;;  %v5264_v2 = vld [vmem:[%s14985_s9 + $0x1c8] sm:$0xff]  ;;  %v5229_v29 = vld [vmem:[%s14985_s9 + $0xb0] sm:$0xff] }
 0x862   :  { %9436 = vmatpush1.bf16.msra.mxu1 %v9435_v24  ;;  %v9477_v24 = vpack.c.bf16 %v4840_v8, %v4832_v30  ;;  %v5230_v30 = vld [vmem:[%s14985_s9 + $0xb8] sm:$0xff]  ;;  %v9535_v8 = vpack.c.bf16 %v5246_v59, %v5245_v63  ;;  %v5319_v59 = vld [vmem:[%s14985_s9 + $0x380] sm:$0xff] }
 0x863   :  { %9438 = vmatprep.subr.bf16.mxu1 %v9437_v60  ;;  %v4831_v60 = vld [vmem:[%s14983_s7 + $0x2b0] sm:$0xff] }
 0x864   :  { %v9479_v22 = vpack.c.bf16 %v4839_v36, %v4831_v60  ;;  %v5247_v36 = vld [vmem:[%s14985_s9 + $0x140] sm:$0xff] }
 0x866   :  { %9440 = vmatpush1.bf16.msra.mxu1 %v9439_v12  ;;  %v9481_v12 = vpack.c.bf16 %v4856_v14, %v4848_v35  ;;  %v5248_v35 = vld [vmem:[%s14985_s9 + $0x148] sm:$0xff]  ;;  %v9501_v14 = vpack.c.bf16 %v5230_v30, %v5229_v29 }
 0x867   :  { %9442 = vmatprep.subr.bf16.mxu1 %v9441_v23  ;;  %v4847_v23 = vld [vmem:[%s14983_s7 + $0x330] sm:$0xff] }
 0x868   :  { %v9483_v20 = vpack.c.bf16 %v4855_v54, %v4847_v23  ;;  %v5266_v23 = vld [vmem:[%s14985_s9 + $0x1d8] sm:$0xff]  ;;  %v5231_v54 = vld [vmem:[%s14985_s9 + $0xc0] sm:$0xff] }
 0x86a   :  { %9444 = vmatpush1.bf16.msra.mxu1 %v9443_v44  ;;  %v9485_v44 = vpack.c.bf16 %v4872_v39, %v4864_v10  ;;  %v5232_v10 = vld [vmem:[%s14985_s9 + $0xc8] sm:$0xff]  ;;  %v9539_v39 = vpack.c.bf16 %v5248_v35, %v5247_v36  ;;  %v5289_v35 = vld [vmem:[%s14985_s9 + $0x290] sm:$0xff] }
 0x86b   :  { %9446 = vmatprep.subr.bf16.mxu1 %v9445_v28  ;;  %v4863_v28 = vld [vmem:[%s14983_s7 + $0x3b0] sm:$0xff]  ;;  %v9505_v16 = vpack.c.bf16 %v5232_v10, %v5231_v54  ;;  %v5274_v54 = vld [vmem:[%s14985_s9 + $0x218] sm:$0xff]  ;;  %v5291_v10 = vld [vmem:[%s14985_s9 + $0x2a0] sm:$0xff] }
 0x86c   :  { %v9487_v57 = vpack.c.bf16 %v4871_v53, %v4863_v28  ;;  %v5249_v53 = vld [vmem:[%s14985_s9 + $0x150] sm:$0xff] }
 0x86e   :  { %9448 = vmatpush1.bf16.msra.mxu1 %v9447_v26  ;;  %v5208_v26 = vld [vmem:[%s14985_s9 + $0x8] sm:$0xff] }
 0x86f   :  { %9450 = vmatprep.subr.bf16.mxu1 %v9449_v38  ;;  %v5255_v38 = vld [vmem:[%s14985_s9 + $0x180] sm:$0xff] }
 0x872   :  { %9452 = vmatpush1.bf16.msra.mxu1 %v9451_v42  ;;  %v9521_v42 = vpack.c.bf16 %v5256_v52, %v5255_v38  ;;  %v5268_v38 = vld [vmem:[%s14985_s9 + $0x1e8] sm:$0xff]  ;;  %v5233_v52 = vld [vmem:[%s14985_s9 + $0xd0] sm:$0xff] }
 0x873   :  { %9454 = vmatprep.subr.bf16.mxu1 %v9453_v43  ;;  %v5239_v43 = vld [vmem:[%s14985_s9 + $0x100] sm:$0xff] }
 0x874   :  { %v9523_v55 = vpack.c.bf16 %v5240_v15, %v5239_v43  ;;  %9522 = vmatprep.subr.bf16.mxu0 %v9521_v42  ;;  %v5217_v15 = vld [vmem:[%s14985_s9 + $0x50] sm:$0xff] }
 0x876   :  { %9456 = vmatpush1.bf16.msra.mxu1 %v9455_v56  ;;  %v5258_v56 = vld [vmem:[%s14985_s9 + $0x198] sm:$0xff]  ;;  %9524 = vmatpush3.bf16.msra.mxu0 %v9523_v55  ;;  %v5235_v55 = vld [vmem:[%s14985_s9 + $0xe0] sm:$0xff] }
 0x877   :  { %9458 = vmatprep.subr.bf16.mxu1 %v9457_v48  ;;  %v5241_v48 = vld [vmem:[%s14985_s9 + $0x110] sm:$0xff]  ;;  %v9525_v5 = vpack.c.bf16 %v5258_v56, %v5257_v25  ;;  %v5236_v25 = vld [vmem:[%s14985_s9 + $0xe8] sm:$0xff] }
 0x879   :  { %5122 = vmatmul.mubr.f32.vlgmr.msra.gmra.mrb[20].mxu1 %v14287_v32  ;;  %9526 = vmatprep.subr.bf16.mxu0 %v9525_v5  ;;  %v5252_v5 = vld [vmem:[%s14985_s9 + $0x168] sm:$0xff] }
 0x87a   :  { %9460 = vmatpush1.bf16.msra.mxu1 %v9459_v45  ;;  %5192 = vmatprep.mubr.f32.mxu1 %v15975_v17  ;;  %v9467_v17 = vpack.c.bf16 %v4791_v31, %v4783_v7  ;;  %v9527_v45 = vpack.c.bf16 %v5242_v51, %v5241_v48  ;;  %v5261_v7 = vld [vmem:[%s14985_s9 + $0x1b0] sm:$0xff]  ;;  %v5262_v31 = vld [vmem:[%s14985_s9 + $0x1b8] sm:$0xff]  ;;  %v5251_v48 = vld [vmem:[%s14985_s9 + $0x160] sm:$0xff]  ;;  %v9513_v51 = vpack.c.bf16 %v5236_v25, %v5235_v55 }
 0x87b   :  { %9462 = vmatprep.subr.bf16.mxu1 %v9461_v46  ;;  %v9491_v46 = vpack.c.bf16 %v5208_v26, %v5207_v33  ;;  %v9533_v13 = vpack.c.bf16 %v5262_v31, %v5261_v7  ;;  %v5216_v33 = vld [vmem:[%s14985_s9 + $0x48] sm:$0xff]  ;;  %v5267_v26 = vld [vmem:[%s14985_s9 + $0x1e0] sm:$0xff]  ;;  %v5254_v7 = vld [vmem:[%s14985_s9 + $0x178] sm:$0xff] }
 0x87c   :  { %9528 = vmatpush3.bf16.msra.mxu0 %v9527_v45  ;;  %v9545_v42 = vpack.c.bf16 %v5268_v38, %v5267_v26  ;;  %v9547_v45 = vpack.c.bf16 %v5252_v5, %v5251_v48  ;;  %v5277_v38 = vld [vmem:[%s14985_s9 + $0x230] sm:$0xff]  ;;  %v5298_v55 = vld [vmem:[%s14985_s9 + $0x2d8] sm:$0xff] }
 0x87d   :  { %9530 = vmatprep.subr.bf16.mxu0 %v9529_v61  ;;  %v5269_v61 = vld [vmem:[%s14985_s9 + $0x1f0] sm:$0xff]  ;;  %v5282_v5 = vld [vmem:[%s14985_s9 + $0x258] sm:$0xff] }
 0x87e   :  { %9464 = vmatpush1.bf16.msra.mxu1 %v9463_v62  ;;  %v9493_v62 = vpack.c.bf16 %v5226_v27, %v5225_v49  ;;  %v9543_v49 = vpack.c.bf16 %v5250_v9, %v5249_v53  ;;  %v5276_v53 = vld [vmem:[%s14985_s9 + $0x228] sm:$0xff]  ;;  %v5293_v9 = vld [vmem:[%s14985_s9 + $0x2b0] sm:$0xff] }
 0x87f   :  { %9466 = vmatprep.subr.bf16.mxu1 %v9465_v21  ;;  %v5210_v21 = vld [vmem:[%s14985_s9 + $0x18] sm:$0xff]  ;;  %v5281_v48 = vld [vmem:[%s14985_s9 + $0x250] sm:$0xff] }
 0x882   :  { %9468 = vmatpush1.bf16.msra.mxu1 %v9467_v17  ;;  %v9531_v17 = vpack.c.bf16 %v5244_v4, %v5243_v1  ;;  %v5270_v1 = vld [vmem:[%s14985_s9 + $0x1f8] sm:$0xff]  ;;  %v9515_v4 = vpack.c.bf16 %v5220_v3, %v5219_v47  ;;  %v5300_v47 = vld [vmem:[%s14985_s9 + $0x2e8] sm:$0xff]  ;;  %v9575_v3 = vpack.c.bf16 %v5282_v5, %v5281_v48  ;;  %v5315_v48 = vld [vmem:[%s14985_s9 + $0x360] sm:$0xff] }
 0x883   :  { %9470 = vmatprep.subr.bf16.mxu1 %v9469_v50  ;;  %v9495_v50 = vpack.c.bf16 %v5210_v21, %v5209_v34  ;;  %v5238_v34 = vld [vmem:[%s14985_s9 + $0xf8] sm:$0xff]  ;;  %v5253_v21 = vld [vmem:[%s14985_s9 + $0x170] sm:$0xff]  ;;  %v5316_v5 = vld [vmem:[%s14985_s9 + $0x368] sm:$0xff] }
 0x884   :  { %9532 = vmatpush3.bf16.msra.mxu0 %v9531_v17  ;;  %v9551_v17 = vpack.c.bf16 %v5254_v7, %v5253_v21  ;;  %v5302_v21 = vld [vmem:[%s14985_s9 + $0x2f8] sm:$0xff] }
 0x885   :  { %9534 = vmatprep.subr.bf16.mxu0 %v9533_v13 }
 0x886   :  { %9472 = vmatpush1.bf16.msra.mxu1 %v9471_v41  ;;  %v5212_v41 = vld [vmem:[%s14985_s9 + $0x28] sm:$0xff] }
 0x887   :  { %9474 = vmatprep.subr.bf16.mxu1 %v9473_v11  ;;  %v5263_v11 = vld [vmem:[%s14985_s9 + $0x1c0] sm:$0xff] }
 0x888   :  { %v9537_v60 = vpack.c.bf16 %v5264_v2, %v5263_v11  ;;  %9536 = vmatpush3.bf16.msra.mxu0 %v9535_v8  ;;  %v14773_v11 = vld [vmem:[%s14986_s8] sm:$0xff] }
 0x889   :  { %v4878_v2 = vrot.slane %v14773_v11, %v15954_v0  ;;  %v4882_v29 = vrot.slane %v14773_v11, %v15956_v19  ;;  %v5290_v0 = vld [vmem:[%s14985_s9 + $0x298] sm:$0xff] }
 0x88a   :  { %9476 = vmatpush1.bf16.msra.mxu1 %v9475_v40  ;;  %v9499_v40 = vpack.c.bf16 %v5212_v41, %v5211_v58  ;;  %9538 = vmatprep.subr.bf16.mxu0 %v9537_v60  ;;  %v5288_v58 = vld [vmem:[%s14985_s9 + $0x288] sm:$0xff] }
 0x88b   :  { %9478 = vmatprep.subr.bf16.mxu1 %v9477_v24  ;;  %v5213_v24 = vld [vmem:[%s14985_s9 + $0x30] sm:$0xff]  ;;  %v5272_v60 = vld [vmem:[%s14985_s9 + $0x208] sm:$0xff] }
 0x88c   :  { %9540 = vmatpush3.bf16.msra.mxu0 %v9539_v39  ;;  %v5292_v39 = vld [vmem:[%s14985_s9 + $0x2a8] sm:$0xff] }
 0x88e   :  { %9480 = vmatpush1.bf16.msra.mxu1 %v9479_v22  ;;  %v5214_v22 = vld [vmem:[%s14985_s9 + $0x38] sm:$0xff] }
 0x88f   :  { %9482 = vmatprep.subr.bf16.mxu1 %v9481_v12  ;;  %v5265_v12 = vld [vmem:[%s14985_s9 + $0x1d0] sm:$0xff] }
 0x890   :  { %v9541_v28 = vpack.c.bf16 %v5266_v23, %v5265_v12  ;;  %v9557_v12 = vpack.c.bf16 %v5290_v0, %v5289_v35  ;;  %v5273_v23 = vld [vmem:[%s14985_s9 + $0x210] sm:$0xff]  ;;  %v5306_v35 = vld [vmem:[%s14985_s9 + $0x318] sm:$0xff]  ;;  %v5323_v0 = vld [vmem:[%s14985_s9 + $0x3a0] sm:$0xff] }
 0x892   :  { %9484 = vmatpush1.bf16.msra.mxu1 %v9483_v20  ;;  %v9503_v20 = vpack.c.bf16 %v5214_v22, %v5213_v24  ;;  %9542 = vmatprep.subr.bf16.mxu0 %v9541_v28  ;;  %v5271_v24 = vld [vmem:[%s14985_s9 + $0x200] sm:$0xff] }
 0x893   :  { %9486 = vmatprep.subr.bf16.mxu1 %v9485_v44  ;;  %v5215_v44 = vld [vmem:[%s14985_s9 + $0x40] sm:$0xff]  ;;  %9544 = vmatpush3.bf16.msra.mxu0 %v9543_v49  ;;  %v5296_v49 = vld [vmem:[%s14985_s9 + $0x2c8] sm:$0xff] }
 0x894   :  { %v9507_v27 = vpack.c.bf16 %v5216_v33, %v5215_v44  ;;  %9546 = vmatprep.subr.bf16.mxu0 %v9545_v42  ;;  %v9561_v44 = vpack.c.bf16 %v5292_v39, %v5291_v10  ;;  %v5275_v28 = vld [vmem:[%s14985_s9 + $0x220] sm:$0xff]  ;;  %v5326_v10 = vld [vmem:[%s14985_s9 + $0x3b8] sm:$0xff] }
 0x895   :  { %v9563_v33 = vpack.c.bf16 %v5276_v53, %v5275_v28  ;;  %v5310_v28 = vld [vmem:[%s14985_s9 + $0x338] sm:$0xff]  ;;  %v5327_v53 = vld [vmem:[%s14985_s9 + $0x3c0] sm:$0xff] }
 0x896   :  { %9488 = vmatpush1.bf16.msra.mxu1 %v9487_v57  ;;  %v5234_v57 = vld [vmem:[%s14985_s9 + $0xd8] sm:$0xff] }
 0x897   :  { %9490 = vmatprep.subr.bf16.mxu1 %v9489_v18  ;;  %v9509_v43 = vpack.c.bf16 %v5234_v57, %v5233_v52  ;;  %v5218_v18 = vld [vmem:[%s14985_s9 + $0x58] sm:$0xff]  ;;  %9548 = vmatpush3.bf16.msra.mxu0 %v9547_v45  ;;  %v5295_v57 = vld [vmem:[%s14985_s9 + $0x2c0] sm:$0xff] }
 0x898   :  { %v9511_v56 = vpack.c.bf16 %v5218_v18, %v5217_v15  ;;  %v5278_v52 = vld [vmem:[%s14985_s9 + $0x238] sm:$0xff]  ;;  %v9569_v42 = vpack.c.bf16 %v5296_v49, %v5295_v57  ;;  %v5280_v15 = vld [vmem:[%s14985_s9 + $0x248] sm:$0xff]  ;;  %v5297_v18 = vld [vmem:[%s14985_s9 + $0x2d0] sm:$0xff] }
 0x899   :  { %5193 = vmatmul.mubr.f32.vlgmr.msra.gmra.mrb[22].mxu1 %v14287_v32  ;;  %v9497_v32 = vpack.c.bf16 %v5228_v6, %v5227_v37  ;;  %v5221_v37 = vld [vmem:[%s14985_s9 + $0x70] sm:$0xff]  ;;  %v5222_v6 = vld [vmem:[%s14985_s9 + $0x78] sm:$0xff]  ;;  %v15976_v45 = vld [vmem:[#allocation90_spill] sm:$0xff] }
 0x89a   :  { %9492 = vmatpush3.bf16.msra.mxu1 %v9491_v46  ;;  %v5237_v46 = vld [vmem:[%s14985_s9 + $0xf0] sm:$0xff]  ;;  %v9519_v13 = vpack.c.bf16 %v5222_v6, %v5221_v37  ;;  %v5330_v57 = vld [vmem:[%s14985_s9 + $0x3d8] sm:$0xff] }
 0x89b   :  { %9494 = vmatprep.subr.bf16.mxu1 %v9493_v62  ;;  %v9549_v62 = vpack.c.bf16 %v5270_v1, %v5269_v61  ;;  %v9517_v31 = vpack.c.bf16 %v5238_v34, %v5237_v46  ;;  %v4885_v46 = vsub.s32 2, %v15976_v45  ;;  %v5283_v61 = vld [vmem:[%s14985_s9 + $0x260] sm:$0xff]  ;;  %v5284_v1 = vld [vmem:[%s14985_s9 + $0x268] sm:$0xff]  ;;  %v5285_v6 = vld [vmem:[%s14985_s9 + $0x270] sm:$0xff] }
 0x89c   :  { %v9579_v7 = vpack.c.bf16 %v5284_v1, %v5283_v61  ;;  %v5317_v1 = vld [vmem:[%s14985_s9 + $0x370] sm:$0xff] }
 0x89d   :  { %9550 = vmatprep.subr.bf16.mxu0 %v9549_v62  ;;  %v5301_v62 = vld [vmem:[%s14985_s9 + $0x2f0] sm:$0xff] }
 0x89e   :  { %9496 = vmatpush3.bf16.msra.mxu1 %v9495_v50  ;;  %9552 = vmatpush3.bf16.msra.mxu0 %v9551_v17  ;;  %v5287_v50 = vld [vmem:[%s14985_s9 + $0x280] sm:$0xff]  ;;  %v9581_v37 = vpack.c.bf16 %v5302_v21, %v5301_v62  ;;  %v5286_v17 = vld [vmem:[%s14985_s9 + $0x278] sm:$0xff] }
 0x89f   :  { %9498 = vmatprep.subr.bf16.mxu1 %v9497_v32  ;;  %v9553_v63 = vpack.c.bf16 %v5288_v58, %v5287_v50  ;;  %v5320_v32 = vld [vmem:[%s14985_s9 + $0x388] sm:$0xff] }
 0x8a0   :  { %v9585_v41 = vpack.c.bf16 %v5320_v32, %v5319_v59  ;;  %v5303_v32 = vld [vmem:[%s14985_s9 + $0x300] sm:$0xff] }
 0x8a2   :  { %9500 = vmatpush3.bf16.msra.mxu1 %v9499_v40  ;;  %9586 = vmatprep.subr.bf16.mxu0 %v9585_v41  ;;  %v5304_v41 = vld [vmem:[%s14985_s9 + $0x308] sm:$0xff] }
 0x8a3   :  { %9502 = vmatprep.subr.bf16.mxu1 %v9501_v14  ;;  %v9555_v14 = vpack.c.bf16 %v5272_v60, %v5271_v24 }
 0x8a6   :  { %9504 = vmatpush3.bf16.msra.mxu1 %v9503_v20  ;;  %v9559_v20 = vpack.c.bf16 %v5274_v54, %v5273_v23  ;;  %v5308_v23 = vld [vmem:[%s14985_s9 + $0x328] sm:$0xff]  ;;  %v5325_v54 = vld [vmem:[%s14985_s9 + $0x3b0] sm:$0xff] }
 0x8a7   :  { %9506 = vmatprep.subr.bf16.mxu1 %v9505_v16  ;;  %v5294_v16 = vld [vmem:[%s14985_s9 + $0x2b8] sm:$0xff] }
 0x8a8   :  { %v9565_v26 = vpack.c.bf16 %v5294_v16, %v5293_v9  ;;  %v5328_v9 = vld [vmem:[%s14985_s9 + $0x3c8] sm:$0xff] }
 0x8aa   :  { %9508 = vmatpush3.bf16.msra.mxu1 %v9507_v27  ;;  %v9567_v27 = vpack.c.bf16 %v5278_v52, %v5277_v38  ;;  %v5312_v38 = vld [vmem:[%s14985_s9 + $0x348] sm:$0xff]  ;;  %v5329_v52 = vld [vmem:[%s14985_s9 + $0x3d0] sm:$0xff] }
 0x8ab   :  { %9510 = vmatprep.subr.bf16.mxu1 %v9509_v43  ;;  %v5279_v43 = vld [vmem:[%s14985_s9 + $0x240] sm:$0xff] }
 0x8ac   :  { %v9571_v25 = vpack.c.bf16 %v5280_v15, %v5279_v43  ;;  %v5314_v43 = vld [vmem:[%s14985_s9 + $0x358] sm:$0xff]  ;;  %v5331_v15 = vld [vmem:[%s14985_s9 + $0x3e0] sm:$0xff] }
 0x8ae   :  { %9512 = vmatpush3.bf16.msra.mxu1 %v9511_v56  ;;  %v9573_v56 = vpack.c.bf16 %v5298_v55, %v5297_v18  ;;  %v5332_v18 = vld [vmem:[%s14985_s9 + $0x3e8] sm:$0xff] }
 0x8af   :  { %9514 = vmatprep.subr.bf16.mxu1 %v9513_v51  ;;  %v5299_v51 = vld [vmem:[%s14985_s9 + $0x2e0] sm:$0xff] }
 0x8b0   :  { %v9577_v34 = vpack.c.bf16 %v5300_v47, %v5299_v51  ;;  %v4897_v51 = vsub.s32 5, %v15976_v45  ;;  %v5333_v47 = vld [vmem:[%s14985_s9 + $0x3f0] sm:$0xff] }
 0x8b2   :  { %9516 = vmatpush3.bf16.msra.mxu1 %v9515_v4  ;;  %v4889_v4 = vsub.s32 3, %v15976_v45  ;;  %v4898_v62 = vrot.slane %v14773_v11, %v4897_v51 }
 0x8b3   :  { %9518 = vmatprep.subr.bf16.mxu1 %v9517_v31  ;;  %v4886_v31 = vrot.slane %v14773_v11, %v4885_v46  ;;  %v9611_v46 = vpack.c.bf16 %v5316_v5, %v5315_v48 }
 0x8b4   :  { %v4890_v50 = vrot.slane %v14773_v11, %v4889_v4  ;;  %v5318_v4 = vld [vmem:[%s14985_s9 + $0x378] sm:$0xff] }
 0x8b6   :  { %9520 = vmatpush3.bf16.msra.mxu1 %v9519_v13  ;;  %v9583_v13 = vpack.c.bf16 %v5286_v17, %v5285_v6 }
 0x8b7   :  { %9554 = vmatprep.subr.bf16.mxu1 %v9553_v63 }
 0x90c   :  { %v4981_v30 = vpop.f32.mrb[16].mxu1 }
 0x90d   :  { %v4982_v8 = vadd.f32 %v4981_v30, %v4878_v2  ;;  %v4983_v40 = vpop.f32.mrb[17].mxu1  ;;  %v5322_v30 = vld [vmem:[%s14985_s9 + $0x398] sm:$0xff] }
 0x90e   :  { %v4984_v36 = vadd.f32 %v4983_v40, %v4882_v29  ;;  %v5321_v29 = vld [vmem:[%s14985_s9 + $0x390] sm:$0xff]  ;;  %v9587_v40 = vpack.c.bf16 %v5304_v41, %v5303_v32 }
 0x90f   :  { %v5199_v22 = vmax.f32 %v4982_v8, 0.0  ;;  %v9589_v60 = vpack.c.bf16 %v5322_v30, %v5321_v29 }
 0x910   :  { %v5200_v19 = vmax.f32 %v4984_v36, 0.0  ;;  %v5305_v36 = vld [vmem:[%s14985_s9 + $0x310] sm:$0xff] }
 0x912   :  { %5406 = vmatprep.mubr.f32.mxu1 %v5200_v19  ;;  %v5324_v19 = vld [vmem:[%s14985_s9 + $0x3a8] sm:$0xff] }
 0x913   :  { %5407 = vmatmul.mubr.f32.vlgmr.msra.gmra.mrb[24].mxu1 %v5199_v22  ;;  %v9593_v22 = vpack.c.bf16 %v5324_v19, %v5323_v0 }
 0x914   :  { %9556 = vmatpush3.bf16.msra.mxu1 %v9555_v14  ;;  %v9591_v14 = vpack.c.bf16 %v5306_v35, %v5305_v36  ;;  %v5947_v36 = vld [vmem:[%s14987_s10] ss:$0 sm:$0xff] }
 0x915   :  { %9558 = vmatprep.subr.bf16.mxu1 %v9557_v12  ;;  %v5307_v12 = vld [vmem:[%s14985_s9 + $0x320] sm:$0xff] }
 0x916   :  { %v9595_v39 = vpack.c.bf16 %v5308_v23, %v5307_v12 }
 0x918   :  { %9560 = vmatpush3.bf16.msra.mxu1 %v9559_v20  ;;  %v9597_v20 = vpack.c.bf16 %v5326_v10, %v5325_v54 }
 0x919   :  { %9562 = vmatprep.subr.bf16.mxu1 %v9561_v44  ;;  %v5309_v44 = vld [vmem:[%s14985_s9 + $0x330] sm:$0xff] }
 0x91a   :  { %v9599_v16 = vpack.c.bf16 %v5310_v28, %v5309_v44 }
 0x91c   :  { %9564 = vmatpush3.bf16.msra.mxu1 %v9563_v33  ;;  %v9601_v33 = vpack.c.bf16 %v5328_v9, %v5327_v53 }
 0x91d   :  { %9566 = vmatprep.subr.bf16.mxu1 %v9565_v26  ;;  %v5311_v26 = vld [vmem:[%s14985_s9 + $0x340] sm:$0xff] }
 0x91e   :  { %v9603_v49 = vpack.c.bf16 %v5312_v38, %v5311_v26 }
 0x920   :  { %9568 = vmatpush3.bf16.msra.mxu1 %v9567_v27  ;;  %v9605_v27 = vpack.c.bf16 %v5330_v57, %v5329_v52 }
 0x921   :  { %9570 = vmatprep.subr.bf16.mxu1 %v9569_v42  ;;  %v5313_v42 = vld [vmem:[%s14985_s9 + $0x350] sm:$0xff] }
 0x922   :  { %v9607_v55 = vpack.c.bf16 %v5314_v43, %v5313_v42 }
 0x924   :  { %9572 = vmatpush3.bf16.msra.mxu1 %v9571_v25  ;;  %v4893_v25 = vsub.s32 4, %v15976_v45 }
 0x925   :  { %9574 = vmatprep.subr.bf16.mxu1 %v9573_v56  ;;  %v9609_v56 = vpack.c.bf16 %v5332_v18, %v5331_v15 }
 0x928   :  { %9576 = vmatpush3.bf16.msra.mxu1 %v9575_v3  ;;  %v5334_v3 = vld [vmem:[%s14985_s9 + $0x3f8] sm:$0xff] }
 0x929   :  { %9578 = vmatprep.subr.bf16.mxu1 %v9577_v34  ;;  %v4894_v34 = vrot.slane %v14773_v11, %v4893_v25  ;;  %v9613_v61 = vpack.c.bf16 %v5334_v3, %v5333_v47 }
 0x92c   :  { %v5052_v58 = vpop.f32.mrb[18].mxu1  ;;  %9580 = vmatpush3.bf16.msra.mxu1 %v9579_v7  ;;  %v9615_v7 = vpack.c.bf16 %v5318_v4, %v5317_v1 }
 0x92d   :  { %v5053_v63 = vadd.f32 %v5052_v58, %v4886_v31  ;;  %v5054_v59 = vpop.f32.mrb[19].mxu1  ;;  %9582 = vmatprep.subr.bf16.mxu1 %v9581_v37  ;;  %v4901_v58 = vsub.s32 6, %v15976_v45 }
 0x92e   :  { %v5055_v2 = vadd.f32 %v5054_v59, %v4890_v50 }
 0x92f   :  { %v5201_v24 = vmax.f32 %v5053_v63, 0.0  ;;  %v4902_v63 = vrot.slane %v14773_v11, %v4901_v58 }
 0x930   :  { %v5202_v8 = vmax.f32 %v5055_v2, 0.0  ;;  %9584 = vmatpush3.bf16.msra.mxu1 %v9583_v13  ;;  %v4905_v13 = vsub.s32 7, %v15976_v45 }
 0x932   :  { %5476 = vmatprep.mubr.f32.mxu0 %v5202_v8  ;;  %v4906_v59 = vrot.slane %v14773_v11, %v4905_v13 }
 0x933   :  { %5477 = vmatmul.mubr.f32.vlgmr.msra.gmra.mrb[12].mxu0 %v5201_v24 }
 0x934   :  { %9588 = vmatpush3.bf16.msra.mxu0 %v9587_v40 }
 0x935   :  { %9590 = vmatprep.subr.bf16.mxu0 %v9589_v60 }
 0x938   :  { %9592 = vmatpush3.bf16.msra.mxu0 %v9591_v14 }
 0x939   :  { %9594 = vmatprep.subr.bf16.mxu0 %v9593_v22 }
 0x93c   :  { %9596 = vmatpush3.bf16.msra.mxu0 %v9595_v39 }
 0x93d   :  { %9598 = vmatprep.subr.bf16.mxu0 %v9597_v20 }
 0x940   :  { %9600 = vmatpush3.bf16.msra.mxu0 %v9599_v16 }
 0x941   :  { %9602 = vmatprep.subr.bf16.mxu0 %v9601_v33 }
 0x944   :  { %9604 = vmatpush3.bf16.msra.mxu0 %v9603_v49 }
 0x945   :  { %9606 = vmatprep.subr.bf16.mxu0 %v9605_v27 }
 0x948   :  { %9608 = vmatpush3.bf16.msra.mxu0 %v9607_v55 }
 0x949   :  { %9610 = vmatprep.subr.bf16.mxu0 %v9609_v56 }
 0x94c   :  { %v5123_v21 = vpop.f32.mrb[20].mxu1  ;;  %9612 = vmatpush3.bf16.msra.mxu0 %v9611_v46 }
 0x94d   :  { %v5124_v31 = vadd.f32 %v5123_v21, %v4894_v34  ;;  %v5125_v37 = vpop.f32.mrb[21].mxu1  ;;  %9614 = vmatprep.subr.bf16.mxu0 %v9613_v61 }
 0x94e   :  { %v5126_v6 = vadd.f32 %v5125_v37, %v4898_v62 }
 0x94f   :  { %v5203_v50 = vmax.f32 %v5124_v31, 0.0 }
 0x950   :  { %v5204_v17 = vmax.f32 %v5126_v6, 0.0  ;;  %9616 = vmatpush3.bf16.msra.mxu0 %v9615_v7 }
 0x952   :  { %5546 = vmatprep.mubr.f32.mxu1 %v5204_v17 }
 0x953   :  { %5547 = vmatmul.mubr.f32.vlgmr.msra.gmra.mrb[26].mxu1 %v5203_v50 }
 0x96c   :  { %v5194_v32 = vpop.f32.mrb[22].mxu1 }
 0x96d   :  { %v5195_v41 = vadd.f32 %v5194_v32, %v4902_v63  ;;  %v5196_v2 = vpop.f32.mrb[23].mxu1 }
 0x96e   :  { %v5197_v29 = vadd.f32 %v5196_v2, %v4906_v59 }
 0x96f   :  { %v5205_v8 = vmax.f32 %v5195_v41, 0.0 }
 0x970   :  { %v5206_v30 = vmax.f32 %v5197_v29, 0.0 }
 0x972   :  { %5616 = vmatprep.mubr.f32.mxu0 %v5206_v30 }
 0x973   :  { %5617 = vmatmul.mubr.f32.vlgmr.msra.gmra.mrb[14].mxu0 %v5205_v8 }
 0x9e6   :  { %v6085_v40 = vpop.f32.mrb[24].mxu1 }
 0x9e7   :  { %v6086_v24 = vpop.f32.mrb[25].mxu1 }
 0x9e8   :  { %v6087_v60 = vadd.f32 %v6086_v24, %v6085_v40 }
 0x9ea   :  { %v5409_v0 = vadd.f32 %v6087_v60, %v5947_v36 }
 0xa06   :  { %v6120_v45 = vpop.f32.mrb[12].mxu0 }
 0xa07   :  { %v6121_v35 = vpop.f32.mrb[13].mxu0 }
 0xa08   :  { %v6122_v19 = vadd.f32 %v6121_v35, %v6120_v45 }
 0xa0a   :  { %v5479_v11 = vadd.f32 %v6122_v19, %v5409_v0 }
 0xa26   :  { %v6155_v14 = vpop.f32.mrb[26].mxu1 }
 0xa27   :  { %v6156_v22 = vpop.f32.mrb[27].mxu1 }
 0xa28   :  { %v6157_v12 = vadd.f32 %v6156_v22, %v6155_v14 }
 0xa2a   :  { %v5549_v23 = vadd.f32 %v6157_v12, %v5479_v11 }
 0xa46   :  { %v6190_v54 = vpop.f32.mrb[14].mxu0 }
 0xa47   :  { %v6191_v10 = vpop.f32.mrb[15].mxu0 }
 0xa48   :  { %v6192_v39 = vadd.f32 %v6191_v10, %v6190_v54 }
 0xa4a   :  { %v5619_v20 = vadd.f32 %v6192_v39, %v5549_v23 }
 0xa4c   :  { %5622 = vst [vmem:[%s14988_s11] sm:$0xff] %v5619_v20 }

</bundles_post_ra>
